<compile_context>
chip_gen: v6e
topology: v6e:2x2x1
jax: 0.10.0
libtpu: 0.0.40
codegen_flags: <defaults>
</compile_context>

<pallas_src>
import jax
import jax.numpy as jnp
from jax.experimental import pallas as pl
from jax.experimental.pallas import tpu as pltpu

H = 128  # LSTM hidden size


def _round8(n):
    return -(-n // 8) * 8


# ----------------------------------------------------------------------------
# Fused CNN + LSTM + head kernel
# ----------------------------------------------------------------------------
def _fused_forward(x_cols, params, B, S):
    """x_cols: (B*S, L1, K1*C) stage-1 im2col, rows ordered time-major (t*B + b)."""
    N, L1, KC1 = x_cols.shape
    assert N == B * S
    P1 = (L1 - 3) // 2 + 1          # MaxPool1d(3, 2)
    L2 = P1 - 2                     # Conv1d(k=3)
    P2 = (L2 - 3) // 2 + 1
    L3 = P2 - 2
    P3 = (L3 - 3) // 2 + 1
    L4 = P3 - 2
    # AdaptiveMaxPool1d(4) windows (PyTorch floor/ceil rule).
    win4 = [((i * L4) // 4, -((-(i + 1) * L4) // 4)) for i in range(4)]

    L1p, P1p, L2p, P2p, L3p, P3p = map(_round8, (L1, P1, L2, P2, L3, P3))
    KCp = _round8(KC1)

    # Pad so every (N, L, C) <-> (N*L, C) reshape is sublane-tile aligned (free).
    x_flat = jnp.pad(x_cols, ((0, 0), (0, L1p - L1), (0, KCp - KC1))
                     ).reshape(N * L1p, KCp)
    w1 = jnp.pad(params["w1"], ((0, KCp - KC1), (0, 0)))            # (KCp, 16)

    b1, w2, b2 = params["b1"], params["w2"], params["b2"]
    w3, b3, w4, b4 = params["w3"], params["b3"], params["w4"], params["b4"]
    wih_p, whh_t = params["wih_p"], params["whh_t"]                 # bf16, stay in HBM
    b_lstm, wfc_t, bfc = params["b_lstm"], params["wfc_t"], params["bfc"]

    def kernel(x_ref, w1_ref, b1_ref, w2_ref, b2_ref, w3_ref, b3_ref,
               w4_ref, b4_ref, wih_hbm, whh_hbm, blstm_ref, wfc_ref, bfc_ref,
               o_ref,
               y1_ref, a1_ref, y2_ref, a2_ref, y3_ref, a3_ref,
               wih_v, whh_v, dma_sem):
        f32 = jnp.float32
        bf16 = jnp.bfloat16

        # Start the big LSTM-weight DMAs immediately; they overlap the CNN compute.
        wih_cp = pltpu.make_async_copy(wih_hbm, wih_v, dma_sem.at[0])
        whh_cp = pltpu.make_async_copy(whh_hbm, whh_v, dma_sem.at[1])
        wih_cp.start()
        whh_cp.start()

        # ---- Stage 1: Conv1d(2->16, k=11, s=2)+BN+ReLU as ONE im2col matmul ----
        y1 = jnp.dot(x_ref[...], w1_ref[...], preferred_element_type=f32) + b1_ref[...]
        y1_ref[...] = jnp.maximum(y1, 0.0).reshape(N, L1p, 16)

        def pool3s2(src_ref, dst_ref, P, Pp, C):
            # MaxPool1d(kernel_size=3, stride=2) for all N rows at once.
            # Zero the pad rows: they get flattened into the next matmul.
            p = jnp.maximum(src_ref[:, pl.ds(0, P, 2), :],
                            src_ref[:, pl.ds(1, P, 2), :])
            dst_ref[:, 0:P, :] = jnp.maximum(p, src_ref[:, pl.ds(2, P, 2), :])
            if Pp > P:
                dst_ref[:, P:Pp, :] = jnp.zeros((N, Pp - P, C), f32)

        def conv3(src_ref, Lsp, Cin, w_ref, b_ref, Cout, L_out):
            # Conv1d(k=3,s=1)+BN+ReLU: one (N*Lsp,Cin)x(Cin,3*Cout) matmul (the 3
            # taps are concatenated along the output dim), then shifted adds on the
            # in-register result.  Pad rows only pollute positions never read.
            z = jnp.dot(src_ref[...].reshape(N * Lsp, Cin), w_ref[...],
                        preferred_element_type=f32).reshape(N, Lsp, 3 * Cout)
            y = (z[:, 0:L_out, 0:Cout]
                 + z[:, 1:L_out + 1, Cout:2 * Cout]
                 + z[:, 2:L_out + 2, 2 * Cout:3 * Cout]) + b_ref[...]
            return jnp.maximum(y, 0.0)

        pool3s2(y1_ref, a1_ref, P1, P1p, 16)
        y2_ref[:, 0:L2, :] = conv3(a1_ref, P1p, 16, w2_ref, b2_ref, 32, L2)
        pool3s2(y2_ref, a2_ref, P2, P2p, 32)
        y3_ref[:, 0:L3, :] = conv3(a2_ref, P2p, 32, w3_ref, b3_ref, 64, L3)
        pool3s2(y3_ref, a3_ref, P3, P3p, 64)
        y4 = conv3(a3_ref, P3p, 64, w4_ref, b4_ref, 128, L4)        # (N, L4, 128)

        # ---- AdaptiveMaxPool1d(4); 128-lane chunks concatenated f-major ----
        pooled = jnp.concatenate(
            [jnp.max(y4[:, ws:we, :], axis=1) for (ws, we) in win4], axis=-1)  # (N, 512)

        # ---- Hoisted LSTM input projection over all B*S rows (one 512-contraction) ----
        wih_cp.wait()
        gx = jnp.dot(pooled.astype(bf16), wih_v[...],
                     preferred_element_type=f32) + blstm_ref[...]   # (N, 4H), in regs

        # ---- LSTM recurrence with (B, H) state; Linear(128->1) + Sigmoid head ----
        whh_cp.wait()
        whh = whh_v[...]
        h = jnp.zeros((B, H), f32)
        c = jnp.zeros((B, H), f32)
        for t in range(S):
            g = gx[t * B:(t + 1) * B, :] + jnp.dot(h.astype(bf16), whh,
                                                   preferred_element_type=f32)
            i_g = jax.nn.sigmoid(g[:, 0:H])
            f_g = jax.nn.sigmoid(g[:, H:2 * H])
            g_g = jnp.tanh(g[:, 2 * H:3 * H])
            o_g = jax.nn.sigmoid(g[:, 3 * H:4 * H])
            c = f_g * c + i_g * g_g
            h = o_g * jnp.tanh(c)
        o_ref[...] = jax.nn.sigmoid(
            jnp.dot(h, wfc_ref[...], preferred_element_type=f32) + bfc_ref[...])

    def vmem_spec(arr):
        return pl.BlockSpec(arr.shape, lambda i: (0, 0))

    return pl.pallas_call(
        kernel,
        out_shape=jax.ShapeDtypeStruct((B, 1), jnp.float32),
        grid=(1,),
        in_specs=[
            vmem_spec(x_flat),
            vmem_spec(w1), vmem_spec(b1),
            vmem_spec(w2), vmem_spec(b2),
            vmem_spec(w3), vmem_spec(b3),
            vmem_spec(w4), vmem_spec(b4),
            pl.BlockSpec(memory_space=pl.ANY),      # wih_p: stays in HBM, manual DMA
            pl.BlockSpec(memory_space=pl.ANY),      # whh_t: stays in HBM, manual DMA
            vmem_spec(b_lstm), vmem_spec(wfc_t), vmem_spec(bfc),
        ],
        out_specs=pl.BlockSpec((B, 1), lambda i: (0, 0)),
        scratch_shapes=[
            pltpu.VMEM((N, L1p, 16), jnp.float32),      # conv1 output
            pltpu.VMEM((N, P1p, 16), jnp.float32),      # pool1 output
            pltpu.VMEM((N, L2p, 32), jnp.float32),      # conv2 output
            pltpu.VMEM((N, P2p, 32), jnp.float32),      # pool2 output
            pltpu.VMEM((N, L3p, 64), jnp.float32),      # conv3 output
            pltpu.VMEM((N, P3p, 64), jnp.float32),      # pool3 output
            pltpu.VMEM((4 * H, 4 * H), jnp.bfloat16),   # resident W_ih (permuted)
            pltpu.VMEM((H, 4 * H), jnp.bfloat16),       # resident W_hh.T
            pltpu.SemaphoreType.DMA((2,)),
        ],
        compiler_params=pltpu.CompilerParams(dimension_semantics=("arbitrary",)),
    )(x_flat, w1, b1, w2, b2, w3, b3, w4, b4, wih_p, whh_t, b_lstm, wfc_t, bfc)


# ----------------------------------------------------------------------------
# Deterministic parameter init (BN folded into conv weights, eval semantics)
# ----------------------------------------------------------------------------
def init_params(key):
    keys = iter(jax.random.split(key, 32))
    nk = lambda: next(keys)
    params = {}
    convs = [(2, 16, 11), (16, 32, 3), (32, 64, 3), (64, 128, 3)]
    for idx, (cin, cout, k) in enumerate(convs, start=1):
        w = jax.random.normal(nk(), (cout, cin, k), jnp.float32) / jnp.sqrt(cin * k)
        bias = 0.1 * jax.random.normal(nk(), (cout,), jnp.float32)
        gamma = 1.0 + 0.1 * jax.random.normal(nk(), (cout,), jnp.float32)
        beta = 0.1 * jax.random.normal(nk(), (cout,), jnp.float32)
        rmean = 0.1 * jax.random.normal(nk(), (cout,), jnp.float32)
        rvar = 1.0 + 0.1 * jnp.abs(jax.random.normal(nk(), (cout,), jnp.float32))
        scale = gamma / jnp.sqrt(rvar + 1e-5)
        w_kcio = jnp.transpose(w * scale[:, None, None], (2, 1, 0))     # (K, Cin, Cout)
        if idx == 1:
            params["w1"] = w_kcio.reshape(k * cin, cout)                # im2col layout (22, 16)
        else:
            # Taps concatenated along the output dim -> one matmul per conv stage.
            params[f"w{idx}"] = jnp.concatenate(
                [w_kcio[0], w_kcio[1], w_kcio[2]], axis=1)              # (Cin, 3*Cout)
        params[f"b{idx}"] = ((bias - rmean) * scale + beta).reshape(1, cout)

    D = 4 * H  # LSTM input size (128 channels x 4 pooled positions)
    wih = jax.random.normal(nk(), (4 * H, D), jnp.float32) / jnp.sqrt(D)
    whh = jax.random.normal(nk(), (4 * H, H), jnp.float32) / jnp.sqrt(H)
    bih = 0.1 * jax.random.normal(nk(), (4 * H,), jnp.float32)
    bhh = 0.1 * jax.random.normal(nk(), (4 * H,), jnp.float32)
    # PyTorch .view(-1, fea*C) flatten is channel-major: feat[c*4 + f] = cnn[c, f].
    # Permute W_ih columns to the kernel's pooled layout (f*128 + c) and transpose
    # so gates = pooled @ wih_p.  bf16: LSTM weights dominate HBM traffic;
    # accumulation stays f32 in the MXU.
    wih_p = jnp.transpose(wih.reshape(4 * H, H, 4), (2, 1, 0)).reshape(D, 4 * H)
    params["wih_p"] = wih_p.astype(jnp.bfloat16)
    params["whh_t"] = whh.T.astype(jnp.bfloat16)         # (H, 4H), gate order i,f,g,o
    params["b_lstm"] = (bih + bhh).reshape(1, 4 * H)
    wfc = jax.random.normal(nk(), (1, H), jnp.float32) / jnp.sqrt(H)
    bfc = 0.1 * jax.random.normal(nk(), (1,), jnp.float32)
    params["wfc_t"] = wfc.T                              # (H, 1)
    params["bfc"] = bfc.reshape(1, 1)
    return params


# ----------------------------------------------------------------------------
# Full forward
# ----------------------------------------------------------------------------
@jax.jit
def model_forward(x, params):
    B, S, C, fea = x.shape
    # Time-major row ordering (row n = t*B + b) so LSTM step t reads a contiguous
    # (B, 4H) slab of the projected features.  Rows are independent through the CNN.
    xc = jnp.transpose(x, (1, 0, 3, 2)).reshape(S * B, fea, C)       # (N, fea, C)
    K1, st1 = 11, 2
    L1 = (fea - K1) // st1 + 1
    # Stage-1 im2col: columns ordered (k, ci) to match w1 (K*Cin, Cout).
    x_cols = jnp.concatenate(
        [xc[:, k:k + st1 * L1:st1, :] for k in range(K1)], axis=-1)  # (N, L1, K1*C)
    return _fused_forward(x_cols, params, B, S)


if __name__ == "__main__":
    key = jax.random.PRNGKey(0)
    kx, kp = jax.random.split(key)
    B, S, C, FEA = 2, 4, 2, 160
    x = jax.random.normal(kx, (B, S, C, FEA), jnp.float32)
    params = init_params(kp)
    out = model_forward(x, params)
    out = jax.block_until_ready(out)
    assert out.shape == (B, 1)
    assert bool(jnp.all(jnp.isfinite(out)))
    print("KERNEL_OK")
</pallas_src>

<mosaic_0001>
module attributes {stable_mosaic.version = 11 : i64} {
  func.func @kernel(%arg0: i32, %arg1: memref<640x24xf32, #tpu.memory_space<vmem>>, %arg2: memref<24x16xf32, #tpu.memory_space<vmem>>, %arg3: memref<1x16xf32, #tpu.memory_space<vmem>>, %arg4: memref<16x96xf32, #tpu.memory_space<vmem>>, %arg5: memref<1x32xf32, #tpu.memory_space<vmem>>, %arg6: memref<32x192xf32, #tpu.memory_space<vmem>>, %arg7: memref<1x64xf32, #tpu.memory_space<vmem>>, %arg8: memref<64x384xf32, #tpu.memory_space<vmem>>, %arg9: memref<1x128xf32, #tpu.memory_space<vmem>>, %arg10: memref<512x512xbf16, #tpu.memory_space<any>>, %arg11: memref<128x512xbf16, #tpu.memory_space<any>>, %arg12: memref<1x512xf32, #tpu.memory_space<vmem>>, %arg13: memref<128x1xf32, #tpu.memory_space<vmem>>, %arg14: memref<1x1xf32, #tpu.memory_space<vmem>>, %arg15: memref<2x1xf32, #tpu.memory_space<vmem>>, %arg16: memref<8x80x16xf32, #tpu.memory_space<vmem>>, %arg17: memref<8x40x16xf32, #tpu.memory_space<vmem>>, %arg18: memref<8x40x32xf32, #tpu.memory_space<vmem>>, %arg19: memref<8x24x32xf32, #tpu.memory_space<vmem>>, %arg20: memref<8x16x64xf32, #tpu.memory_space<vmem>>, %arg21: memref<8x8x64xf32, #tpu.memory_space<vmem>>, %arg22: memref<512x512xbf16, #tpu.memory_space<vmem>>, %arg23: memref<128x512xbf16, #tpu.memory_space<vmem>>, %arg24: memref<2x!tpu.dma_semaphore, #tpu.memory_space<semaphore_mem>>) attributes {dimension_semantics = [#tpu.dimension_semantics<arbitrary>], iteration_bounds = array<i64: 1>, scalar_prefetch = 0 : i64, scratch_operands = 9 : i64, tpu.core_type = #tpu.core_type<tc>, window_params = [{pipeline_mode = #tpu.pipeline_mode<synchronous>, transform_indices = @transform_0, window_bounds = array<i64: 640, 24>}, {pipeline_mode = #tpu.pipeline_mode<synchronous>, transform_indices = @transform_1, window_bounds = array<i64: 24, 16>}, {pipeline_mode = #tpu.pipeline_mode<synchronous>, transform_indices = @transform_2, window_bounds = array<i64: 1, 16>}, {pipeline_mode = #tpu.pipeline_mode<synchronous>, transform_indices = @transform_3, window_bounds = array<i64: 16, 96>}, {pipeline_mode = #tpu.pipeline_mode<synchronous>, transform_indices = @transform_4, window_bounds = array<i64: 1, 32>}, {pipeline_mode = #tpu.pipeline_mode<synchronous>, transform_indices = @transform_5, window_bounds = array<i64: 32, 192>}, {pipeline_mode = #tpu.pipeline_mode<synchronous>, transform_indices = @transform_6, window_bounds = array<i64: 1, 64>}, {pipeline_mode = #tpu.pipeline_mode<synchronous>, transform_indices = @transform_7, window_bounds = array<i64: 64, 384>}, {pipeline_mode = #tpu.pipeline_mode<synchronous>, transform_indices = @transform_8, window_bounds = array<i64: 1, 128>}, {}, {}, {pipeline_mode = #tpu.pipeline_mode<synchronous>, transform_indices = @transform_11, window_bounds = array<i64: 1, 512>}, {pipeline_mode = #tpu.pipeline_mode<synchronous>, transform_indices = @transform_12, window_bounds = array<i64: 128, 1>}, {pipeline_mode = #tpu.pipeline_mode<synchronous>, transform_indices = @transform_13, window_bounds = array<i64: 1, 1>}, {pipeline_mode = #tpu.pipeline_mode<synchronous>, transform_indices = @transform_14, window_bounds = array<i64: 2, 1>}]} {
    %c0_i32 = arith.constant 0 : i32
    %0 = tpu.memref_slice %arg24[%c0_i32] : memref<2x!tpu.dma_semaphore, #tpu.memory_space<semaphore_mem>> -> memref<1x!tpu.dma_semaphore, #tpu.memory_space<semaphore_mem>>
    %1 = tpu.memref_squeeze %0 : memref<1x!tpu.dma_semaphore, #tpu.memory_space<semaphore_mem>> -> memref<!tpu.dma_semaphore, #tpu.memory_space<semaphore_mem>>
    tpu.enqueue_dma source(%arg10 : memref<512x512xbf16, #tpu.memory_space<any>>) target(%arg22 : memref<512x512xbf16, #tpu.memory_space<vmem>>) target_semaphore(%1 : memref<!tpu.dma_semaphore, #tpu.memory_space<semaphore_mem>>)
    %c1_i32 = arith.constant 1 : i32
    %2 = tpu.memref_slice %arg24[%c1_i32] : memref<2x!tpu.dma_semaphore, #tpu.memory_space<semaphore_mem>> -> memref<1x!tpu.dma_semaphore, #tpu.memory_space<semaphore_mem>>
    %3 = tpu.memref_squeeze %2 : memref<1x!tpu.dma_semaphore, #tpu.memory_space<semaphore_mem>> -> memref<!tpu.dma_semaphore, #tpu.memory_space<semaphore_mem>>
    tpu.enqueue_dma source(%arg11 : memref<128x512xbf16, #tpu.memory_space<any>>) target(%arg23 : memref<128x512xbf16, #tpu.memory_space<vmem>>) target_semaphore(%3 : memref<!tpu.dma_semaphore, #tpu.memory_space<semaphore_mem>>)
    %c0 = arith.constant 0 : index
    %c0_0 = arith.constant 0 : index
    %4 = vector.load %arg1[%c0, %c0_0] : memref<640x24xf32, #tpu.memory_space<vmem>>, vector<640x24xf32>
    %c0_1 = arith.constant 0 : index
    %c0_2 = arith.constant 0 : index
    %5 = vector.load %arg2[%c0_1, %c0_2] : memref<24x16xf32, #tpu.memory_space<vmem>>, vector<24x16xf32>
    %cst = arith.constant dense<0.000000e+00> : vector<640x16xf32>
    %6 = tpu.matmul %4, %5, %cst {dimension_numbers = #tpu.dot_dimension_numbers<[1], [0], [0], [1], [0, 0, 1, 1], [], []>} : vector<640x24xf32>, vector<24x16xf32>, vector<640x16xf32> -> vector<640x16xf32>
    %c0_3 = arith.constant 0 : index
    %c0_4 = arith.constant 0 : index
    %7 = vector.load %arg3[%c0_3, %c0_4] : memref<1x16xf32, #tpu.memory_space<vmem>>, vector<1x16xf32>
    %8 = vector.broadcast %7 : vector<1x16xf32> to vector<640x16xf32>
    %9 = arith.addf %6, %8 : vector<640x16xf32>
    %cst_5 = arith.constant 0.000000e+00 : f32
    %10 = vector.broadcast %cst_5 : f32 to vector<640x16xf32>
    %11 = arith.maximumf %9, %10 : vector<640x16xf32>
    %12 = vector.shape_cast %11 : vector<640x16xf32> to vector<8x80x16xf32>
    %c0_6 = arith.constant 0 : index
    %c0_7 = arith.constant 0 : index
    %c0_8 = arith.constant 0 : index
    %13 = vector.load %arg16[%c0_6, %c0_7, %c0_8] : memref<8x80x16xf32, #tpu.memory_space<vmem>>, vector<8x80x16xf32>
    tpu.vector_store %arg16[%c0_6, %c0_7, %c0_8], %12 {strides = array<i32>} : memref<8x80x16xf32, #tpu.memory_space<vmem>>, vector<8x80x16xf32>,
    %c0_9 = arith.constant 0 : index
    %c0_10 = arith.constant 0 : index
    %c0_11 = arith.constant 0 : index
    %14 = tpu.strided_load %arg16[%c0_9, %c0_10, %c0_11] {strides = array<i32: 1, 2, 1>} : memref<8x80x16xf32, #tpu.memory_space<vmem>>, vector<8x37x16xf32>
    %c0_12 = arith.constant 0 : index
    %c1 = arith.constant 1 : index
    %c0_13 = arith.constant 0 : index
    %15 = tpu.strided_load %arg16[%c0_12, %c1, %c0_13] {strides = array<i32: 1, 2, 1>} : memref<8x80x16xf32, #tpu.memory_space<vmem>>, vector<8x37x16xf32>
    %16 = arith.maximumf %14, %15 : vector<8x37x16xf32>
    %c0_14 = arith.constant 0 : index
    %c2 = arith.constant 2 : index
    %c0_15 = arith.constant 0 : index
    %17 = tpu.strided_load %arg16[%c0_14, %c2, %c0_15] {strides = array<i32: 1, 2, 1>} : memref<8x80x16xf32, #tpu.memory_space<vmem>>, vector<8x37x16xf32>
    %18 = arith.maximumf %16, %17 : vector<8x37x16xf32>
    %c0_16 = arith.constant 0 : index
    %c0_17 = arith.constant 0 : index
    %c0_18 = arith.constant 0 : index
    %19 = vector.load %arg17[%c0_16, %c0_17, %c0_18] : memref<8x40x16xf32, #tpu.memory_space<vmem>>, vector<8x37x16xf32>
    tpu.vector_store %arg17[%c0_16, %c0_17, %c0_18], %18 {strides = array<i32>} : memref<8x40x16xf32, #tpu.memory_space<vmem>>, vector<8x37x16xf32>,
    %cst_19 = arith.constant 0.000000e+00 : f32
    %20 = vector.broadcast %cst_19 : f32 to vector<8x3x16xf32>
    %c0_20 = arith.constant 0 : index
    %c37 = arith.constant 37 : index
    %c0_21 = arith.constant 0 : index
    %21 = vector.load %arg17[%c0_20, %c37, %c0_21] : memref<8x40x16xf32, #tpu.memory_space<vmem>>, vector<8x3x16xf32>
    tpu.vector_store %arg17[%c0_20, %c37, %c0_21], %20 {strides = array<i32>} : memref<8x40x16xf32, #tpu.memory_space<vmem>>, vector<8x3x16xf32>,
    %c0_22 = arith.constant 0 : index
    %c0_23 = arith.constant 0 : index
    %c0_24 = arith.constant 0 : index
    %22 = vector.load %arg17[%c0_22, %c0_23, %c0_24] : memref<8x40x16xf32, #tpu.memory_space<vmem>>, vector<8x40x16xf32>
    %23 = vector.shape_cast %22 : vector<8x40x16xf32> to vector<320x16xf32>
    %c0_25 = arith.constant 0 : index
    %c0_26 = arith.constant 0 : index
    %24 = vector.load %arg4[%c0_25, %c0_26] : memref<16x96xf32, #tpu.memory_space<vmem>>, vector<16x96xf32>
    %cst_27 = arith.constant dense<0.000000e+00> : vector<320x96xf32>
    %25 = tpu.matmul %23, %24, %cst_27 {dimension_numbers = #tpu.dot_dimension_numbers<[1], [0], [0], [1], [0, 0, 1, 1], [], []>} : vector<320x16xf32>, vector<16x96xf32>, vector<320x96xf32> -> vector<320x96xf32>
    %26 = vector.shape_cast %25 : vector<320x96xf32> to vector<8x40x96xf32>
    %27 = vector.extract_strided_slice %26 {offsets = [0, 0, 0], sizes = [8, 35, 32], strides = [1, 1, 1]} : vector<8x40x96xf32> to vector<8x35x32xf32>
    %28 = vector.extract_strided_slice %26 {offsets = [0, 1, 32], sizes = [8, 35, 32], strides = [1, 1, 1]} : vector<8x40x96xf32> to vector<8x35x32xf32>
    %29 = arith.addf %27, %28 : vector<8x35x32xf32>
    %30 = vector.extract_strided_slice %26 {offsets = [0, 2, 64], sizes = [8, 35, 32], strides = [1, 1, 1]} : vector<8x40x96xf32> to vector<8x35x32xf32>
    %31 = arith.addf %29, %30 : vector<8x35x32xf32>
    %c0_28 = arith.constant 0 : index
    %c0_29 = arith.constant 0 : index
    %32 = vector.load %arg5[%c0_28, %c0_29] : memref<1x32xf32, #tpu.memory_space<vmem>>, vector<1x32xf32>
    %33 = vector.shape_cast %32 : vector<1x32xf32> to vector<1x1x32xf32>
    %34 = vector.broadcast %33 : vector<1x1x32xf32> to vector<8x35x32xf32>
    %35 = arith.addf %31, %34 : vector<8x35x32xf32>
    %cst_30 = arith.constant 0.000000e+00 : f32
    %36 = vector.broadcast %cst_30 : f32 to vector<8x35x32xf32>
    %37 = arith.maximumf %35, %36 : vector<8x35x32xf32>
    %c0_31 = arith.constant 0 : index
    %c0_32 = arith.constant 0 : index
    %c0_33 = arith.constant 0 : index
    %38 = vector.load %arg18[%c0_31, %c0_32, %c0_33] : memref<8x40x32xf32, #tpu.memory_space<vmem>>, vector<8x35x32xf32>
    tpu.vector_store %arg18[%c0_31, %c0_32, %c0_33], %37 {strides = array<i32>} : memref<8x40x32xf32, #tpu.memory_space<vmem>>, vector<8x35x32xf32>,
    %c0_34 = arith.constant 0 : index
    %c0_35 = arith.constant 0 : index
    %c0_36 = arith.constant 0 : index
    %39 = tpu.strided_load %arg18[%c0_34, %c0_35, %c0_36] {strides = array<i32: 1, 2, 1>} : memref<8x40x32xf32, #tpu.memory_space<vmem>>, vector<8x17x32xf32>
    %c0_37 = arith.constant 0 : index
    %c1_38 = arith.constant 1 : index
    %c0_39 = arith.constant 0 : index
    %40 = tpu.strided_load %arg18[%c0_37, %c1_38, %c0_39] {strides = array<i32: 1, 2, 1>} : memref<8x40x32xf32, #tpu.memory_space<vmem>>, vector<8x17x32xf32>
    %41 = arith.maximumf %39, %40 : vector<8x17x32xf32>
    %c0_40 = arith.constant 0 : index
    %c2_41 = arith.constant 2 : index
    %c0_42 = arith.constant 0 : index
    %42 = tpu.strided_load %arg18[%c0_40, %c2_41, %c0_42] {strides = array<i32: 1, 2, 1>} : memref<8x40x32xf32, #tpu.memory_space<vmem>>, vector<8x17x32xf32>
    %43 = arith.maximumf %41, %42 : vector<8x17x32xf32>
    %c0_43 = arith.constant 0 : index
    %c0_44 = arith.constant 0 : index
    %c0_45 = arith.constant 0 : index
    %44 = vector.load %arg19[%c0_43, %c0_44, %c0_45] : memref<8x24x32xf32, #tpu.memory_space<vmem>>, vector<8x17x32xf32>
    tpu.vector_store %arg19[%c0_43, %c0_44, %c0_45], %43 {strides = array<i32>} : memref<8x24x32xf32, #tpu.memory_space<vmem>>, vector<8x17x32xf32>,
    %cst_46 = arith.constant 0.000000e+00 : f32
    %45 = vector.broadcast %cst_46 : f32 to vector<8x7x32xf32>
    %c0_47 = arith.constant 0 : index
    %c17 = arith.constant 17 : index
    %c0_48 = arith.constant 0 : index
    %46 = vector.load %arg19[%c0_47, %c17, %c0_48] : memref<8x24x32xf32, #tpu.memory_space<vmem>>, vector<8x7x32xf32>
    tpu.vector_store %arg19[%c0_47, %c17, %c0_48], %45 {strides = array<i32>} : memref<8x24x32xf32, #tpu.memory_space<vmem>>, vector<8x7x32xf32>,
    %c0_49 = arith.constant 0 : index
    %c0_50 = arith.constant 0 : index
    %c0_51 = arith.constant 0 : index
    %47 = vector.load %arg19[%c0_49, %c0_50, %c0_51] : memref<8x24x32xf32, #tpu.memory_space<vmem>>, vector<8x24x32xf32>
    %48 = vector.shape_cast %47 : vector<8x24x32xf32> to vector<192x32xf32>
    %c0_52 = arith.constant 0 : index
    %c0_53 = arith.constant 0 : index
    %49 = vector.load %arg6[%c0_52, %c0_53] : memref<32x192xf32, #tpu.memory_space<vmem>>, vector<32x192xf32>
    %cst_54 = arith.constant dense<0.000000e+00> : vector<192x192xf32>
    %50 = tpu.matmul %48, %49, %cst_54 {dimension_numbers = #tpu.dot_dimension_numbers<[1], [0], [0], [1], [0, 0, 1, 1], [], []>} : vector<192x32xf32>, vector<32x192xf32>, vector<192x192xf32> -> vector<192x192xf32>
    %51 = vector.shape_cast %50 : vector<192x192xf32> to vector<8x24x192xf32>
    %52 = vector.extract_strided_slice %51 {offsets = [0, 0, 0], sizes = [8, 15, 64], strides = [1, 1, 1]} : vector<8x24x192xf32> to vector<8x15x64xf32>
    %53 = vector.extract_strided_slice %51 {offsets = [0, 1, 64], sizes = [8, 15, 64], strides = [1, 1, 1]} : vector<8x24x192xf32> to vector<8x15x64xf32>
    %54 = arith.addf %52, %53 : vector<8x15x64xf32>
    %55 = vector.extract_strided_slice %51 {offsets = [0, 2, 128], sizes = [8, 15, 64], strides = [1, 1, 1]} : vector<8x24x192xf32> to vector<8x15x64xf32>
    %56 = arith.addf %54, %55 : vector<8x15x64xf32>
    %c0_55 = arith.constant 0 : index
    %c0_56 = arith.constant 0 : index
    %57 = vector.load %arg7[%c0_55, %c0_56] : memref<1x64xf32, #tpu.memory_space<vmem>>, vector<1x64xf32>
    %58 = vector.shape_cast %57 : vector<1x64xf32> to vector<1x1x64xf32>
    %59 = vector.broadcast %58 : vector<1x1x64xf32> to vector<8x15x64xf32>
    %60 = arith.addf %56, %59 : vector<8x15x64xf32>
    %cst_57 = arith.constant 0.000000e+00 : f32
    %61 = vector.broadcast %cst_57 : f32 to vector<8x15x64xf32>
    %62 = arith.maximumf %60, %61 : vector<8x15x64xf32>
    %c0_58 = arith.constant 0 : index
    %c0_59 = arith.constant 0 : index
    %c0_60 = arith.constant 0 : index
    %63 = vector.load %arg20[%c0_58, %c0_59, %c0_60] : memref<8x16x64xf32, #tpu.memory_space<vmem>>, vector<8x15x64xf32>
    tpu.vector_store %arg20[%c0_58, %c0_59, %c0_60], %62 {strides = array<i32>} : memref<8x16x64xf32, #tpu.memory_space<vmem>>, vector<8x15x64xf32>,
    %c0_61 = arith.constant 0 : index
    %c0_62 = arith.constant 0 : index
    %c0_63 = arith.constant 0 : index
    %64 = tpu.strided_load %arg20[%c0_61, %c0_62, %c0_63] {strides = array<i32: 1, 2, 1>} : memref<8x16x64xf32, #tpu.memory_space<vmem>>, vector<8x7x64xf32>
    %c0_64 = arith.constant 0 : index
    %c1_65 = arith.constant 1 : index
    %c0_66 = arith.constant 0 : index
    %65 = tpu.strided_load %arg20[%c0_64, %c1_65, %c0_66] {strides = array<i32: 1, 2, 1>} : memref<8x16x64xf32, #tpu.memory_space<vmem>>, vector<8x7x64xf32>
    %66 = arith.maximumf %64, %65 : vector<8x7x64xf32>
    %c0_67 = arith.constant 0 : index
    %c2_68 = arith.constant 2 : index
    %c0_69 = arith.constant 0 : index
    %67 = tpu.strided_load %arg20[%c0_67, %c2_68, %c0_69] {strides = array<i32: 1, 2, 1>} : memref<8x16x64xf32, #tpu.memory_space<vmem>>, vector<8x7x64xf32>
    %68 = arith.maximumf %66, %67 : vector<8x7x64xf32>
    %c0_70 = arith.constant 0 : index
    %c0_71 = arith.constant 0 : index
    %c0_72 = arith.constant 0 : index
    %69 = vector.load %arg21[%c0_70, %c0_71, %c0_72] : memref<8x8x64xf32, #tpu.memory_space<vmem>>, vector<8x7x64xf32>
    tpu.vector_store %arg21[%c0_70, %c0_71, %c0_72], %68 {strides = array<i32>} : memref<8x8x64xf32, #tpu.memory_space<vmem>>, vector<8x7x64xf32>,
    %cst_73 = arith.constant 0.000000e+00 : f32
    %70 = vector.broadcast %cst_73 : f32 to vector<8x1x64xf32>
    %c0_74 = arith.constant 0 : index
    %c7 = arith.constant 7 : index
    %c0_75 = arith.constant 0 : index
    %71 = vector.load %arg21[%c0_74, %c7, %c0_75] : memref<8x8x64xf32, #tpu.memory_space<vmem>>, vector<8x1x64xf32>
    tpu.vector_store %arg21[%c0_74, %c7, %c0_75], %70 {strides = array<i32>} : memref<8x8x64xf32, #tpu.memory_space<vmem>>, vector<8x1x64xf32>,
    %c0_76 = arith.constant 0 : index
    %c0_77 = arith.constant 0 : index
    %c0_78 = arith.constant 0 : index
    %72 = vector.load %arg21[%c0_76, %c0_77, %c0_78] : memref<8x8x64xf32, #tpu.memory_space<vmem>>, vector<8x8x64xf32>
    %73 = vector.shape_cast %72 : vector<8x8x64xf32> to vector<64x64xf32>
    %c0_79 = arith.constant 0 : index
    %c0_80 = arith.constant 0 : index
    %74 = vector.load %arg8[%c0_79, %c0_80] : memref<64x384xf32, #tpu.memory_space<vmem>>, vector<64x384xf32>
    %cst_81 = arith.constant dense<0.000000e+00> : vector<64x384xf32>
    %75 = tpu.matmul %73, %74, %cst_81 {dimension_numbers = #tpu.dot_dimension_numbers<[1], [0], [0], [1], [0, 0, 1, 1], [], []>} : vector<64x64xf32>, vector<64x384xf32>, vector<64x384xf32> -> vector<64x384xf32>
    %76 = vector.shape_cast %75 : vector<64x384xf32> to vector<8x8x384xf32>
    %77 = vector.extract_strided_slice %76 {offsets = [0, 0, 0], sizes = [8, 5, 128], strides = [1, 1, 1]} : vector<8x8x384xf32> to vector<8x5x128xf32>
    %78 = vector.extract_strided_slice %76 {offsets = [0, 1, 128], sizes = [8, 5, 128], strides = [1, 1, 1]} : vector<8x8x384xf32> to vector<8x5x128xf32>
    %79 = arith.addf %77, %78 : vector<8x5x128xf32>
    %80 = vector.extract_strided_slice %76 {offsets = [0, 2, 256], sizes = [8, 5, 128], strides = [1, 1, 1]} : vector<8x8x384xf32> to vector<8x5x128xf32>
    %81 = arith.addf %79, %80 : vector<8x5x128xf32>
    %c0_82 = arith.constant 0 : index
    %c0_83 = arith.constant 0 : index
    %82 = vector.load %arg9[%c0_82, %c0_83] : memref<1x128xf32, #tpu.memory_space<vmem>>, vector<1x128xf32>
    %83 = vector.shape_cast %82 : vector<1x128xf32> to vector<1x1x128xf32>
    %84 = vector.broadcast %83 : vector<1x1x128xf32> to vector<8x5x128xf32>
    %85 = arith.addf %81, %84 : vector<8x5x128xf32>
    %cst_84 = arith.constant 0.000000e+00 : f32
    %86 = vector.broadcast %cst_84 : f32 to vector<8x5x128xf32>
    %87 = arith.maximumf %85, %86 : vector<8x5x128xf32>
    %88 = vector.extract_strided_slice %87 {offsets = [0, 0, 0], sizes = [8, 2, 128], strides = [1, 1, 1]} : vector<8x5x128xf32> to vector<8x2x128xf32>
    %cst_85 = arith.constant dense<0xFF800000> : vector<8x128xf32>
    %89 = vector.multi_reduction <maximumf>, %88, %cst_85 [1] : vector<8x2x128xf32> to vector<8x128xf32>
    %90 = vector.extract_strided_slice %87 {offsets = [0, 1, 0], sizes = [8, 2, 128], strides = [1, 1, 1]} : vector<8x5x128xf32> to vector<8x2x128xf32>
    %cst_86 = arith.constant dense<0xFF800000> : vector<8x128xf32>
    %91 = vector.multi_reduction <maximumf>, %90, %cst_86 [1] : vector<8x2x128xf32> to vector<8x128xf32>
    %92 = vector.extract_strided_slice %87 {offsets = [0, 2, 0], sizes = [8, 2, 128], strides = [1, 1, 1]} : vector<8x5x128xf32> to vector<8x2x128xf32>
    %cst_87 = arith.constant dense<0xFF800000> : vector<8x128xf32>
    %93 = vector.multi_reduction <maximumf>, %92, %cst_87 [1] : vector<8x2x128xf32> to vector<8x128xf32>
    %94 = vector.extract_strided_slice %87 {offsets = [0, 3, 0], sizes = [8, 2, 128], strides = [1, 1, 1]} : vector<8x5x128xf32> to vector<8x2x128xf32>
    %cst_88 = arith.constant dense<0xFF800000> : vector<8x128xf32>
    %95 = vector.multi_reduction <maximumf>, %94, %cst_88 [1] : vector<8x2x128xf32> to vector<8x128xf32>
    %96 = tpu.concatenate %89, %91, %93, %95 in 1 : vector<8x128xf32>, vector<8x128xf32>, vector<8x128xf32>, vector<8x128xf32> -> vector<8x512xf32>
    %c0_i32_89 = arith.constant 0 : i32
    %97 = tpu.memref_slice %arg24[%c0_i32_89] : memref<2x!tpu.dma_semaphore, #tpu.memory_space<semaphore_mem>> -> memref<1x!tpu.dma_semaphore, #tpu.memory_space<semaphore_mem>>
    %98 = tpu.memref_squeeze %97 : memref<1x!tpu.dma_semaphore, #tpu.memory_space<semaphore_mem>> -> memref<!tpu.dma_semaphore, #tpu.memory_space<semaphore_mem>>
    tpu.wait_dma2 semaphore(%98 : memref<!tpu.dma_semaphore, #tpu.memory_space<semaphore_mem>>) src(%arg10 : memref<512x512xbf16, #tpu.memory_space<any>>) dst(%arg22 : memref<512x512xbf16, #tpu.memory_space<vmem>>)
    %99 = arith.truncf %96 : vector<8x512xf32> to vector<8x512xbf16>
    %c0_90 = arith.constant 0 : index
    %c0_91 = arith.constant 0 : index
    %100 = vector.load %arg22[%c0_90, %c0_91] : memref<512x512xbf16, #tpu.memory_space<vmem>>, vector<512x512xbf16>
    %cst_92 = arith.constant dense<0.000000e+00> : vector<8x512xf32>
    %101 = tpu.matmul %99, %100, %cst_92 {dimension_numbers = #tpu.dot_dimension_numbers<[1], [0], [0], [1], [0, 0, 1, 1], [], []>} : vector<8x512xbf16>, vector<512x512xbf16>, vector<8x512xf32> -> vector<8x512xf32>
    %c0_93 = arith.constant 0 : index
    %c0_94 = arith.constant 0 : index
    %102 = vector.load %arg12[%c0_93, %c0_94] : memref<1x512xf32, #tpu.memory_space<vmem>>, vector<1x512xf32>
    %103 = vector.broadcast %102 : vector<1x512xf32> to vector<8x512xf32>
    %104 = arith.addf %101, %103 : vector<8x512xf32>
    %c1_i32_95 = arith.constant 1 : i32
    %105 = tpu.memref_slice %arg24[%c1_i32_95] : memref<2x!tpu.dma_semaphore, #tpu.memory_space<semaphore_mem>> -> memref<1x!tpu.dma_semaphore, #tpu.memory_space<semaphore_mem>>
    %106 = tpu.memref_squeeze %105 : memref<1x!tpu.dma_semaphore, #tpu.memory_space<semaphore_mem>> -> memref<!tpu.dma_semaphore, #tpu.memory_space<semaphore_mem>>
    tpu.wait_dma2 semaphore(%106 : memref<!tpu.dma_semaphore, #tpu.memory_space<semaphore_mem>>) src(%arg11 : memref<128x512xbf16, #tpu.memory_space<any>>) dst(%arg23 : memref<128x512xbf16, #tpu.memory_space<vmem>>)
    %c0_96 = arith.constant 0 : index
    %c0_97 = arith.constant 0 : index
    %107 = vector.load %arg23[%c0_96, %c0_97] : memref<128x512xbf16, #tpu.memory_space<vmem>>, vector<128x512xbf16>
    %cst_98 = arith.constant 0.000000e+00 : f32
    %108 = vector.broadcast %cst_98 : f32 to vector<2x128xf32>
    %cst_99 = arith.constant 0.000000e+00 : f32
    %109 = vector.broadcast %cst_99 : f32 to vector<2x128xf32>
    %110 = vector.extract_strided_slice %104 {offsets = [0, 0], sizes = [2, 512], strides = [1, 1]} : vector<8x512xf32> to vector<2x512xf32>
    %111 = arith.truncf %108 : vector<2x128xf32> to vector<2x128xbf16>
    %cst_100 = arith.constant dense<0.000000e+00> : vector<2x512xf32>
    %112 = tpu.matmul %111, %107, %cst_100 {dimension_numbers = #tpu.dot_dimension_numbers<[1], [0], [0], [1], [0, 0, 1, 1], [], []>} : vector<2x128xbf16>, vector<128x512xbf16>, vector<2x512xf32> -> vector<2x512xf32>
    %113 = arith.addf %110, %112 : vector<2x512xf32>
    %114 = vector.extract_strided_slice %113 {offsets = [0, 0], sizes = [2, 128], strides = [1, 1]} : vector<2x512xf32> to vector<2x128xf32>
    %115 = arith.negf %114 : vector<2x128xf32>
    %116 = math.exp %115 : vector<2x128xf32>
    %cst_101 = arith.constant 1.000000e+00 : f32
    %117 = vector.broadcast %cst_101 : f32 to vector<2x128xf32>
    %118 = arith.addf %117, %116 : vector<2x128xf32>
    %119 = arith.divf %117, %118 : vector<2x128xf32>
    %120 = vector.extract_strided_slice %113 {offsets = [0, 128], sizes = [2, 128], strides = [1, 1]} : vector<2x512xf32> to vector<2x128xf32>
    %121 = arith.negf %120 : vector<2x128xf32>
    %122 = math.exp %121 : vector<2x128xf32>
    %cst_102 = arith.constant 1.000000e+00 : f32
    %123 = vector.broadcast %cst_102 : f32 to vector<2x128xf32>
    %124 = arith.addf %123, %122 : vector<2x128xf32>
    %125 = arith.divf %123, %124 : vector<2x128xf32>
    %126 = vector.extract_strided_slice %113 {offsets = [0, 256], sizes = [2, 128], strides = [1, 1]} : vector<2x512xf32> to vector<2x128xf32>
    %127 = math.tanh %126 : vector<2x128xf32>
    %128 = vector.extract_strided_slice %113 {offsets = [0, 384], sizes = [2, 128], strides = [1, 1]} : vector<2x512xf32> to vector<2x128xf32>
    %129 = arith.negf %128 : vector<2x128xf32>
    %130 = math.exp %129 : vector<2x128xf32>
    %cst_103 = arith.constant 1.000000e+00 : f32
    %131 = vector.broadcast %cst_103 : f32 to vector<2x128xf32>
    %132 = arith.addf %131, %130 : vector<2x128xf32>
    %133 = arith.divf %131, %132 : vector<2x128xf32>
    %134 = arith.mulf %125, %109 : vector<2x128xf32>
    %135 = arith.mulf %119, %127 : vector<2x128xf32>
    %136 = arith.addf %134, %135 : vector<2x128xf32>
    %137 = math.tanh %136 : vector<2x128xf32>
    %138 = arith.mulf %133, %137 : vector<2x128xf32>
    %139 = vector.extract_strided_slice %104 {offsets = [2, 0], sizes = [2, 512], strides = [1, 1]} : vector<8x512xf32> to vector<2x512xf32>
    %140 = arith.truncf %138 : vector<2x128xf32> to vector<2x128xbf16>
    %cst_104 = arith.constant dense<0.000000e+00> : vector<2x512xf32>
    %141 = tpu.matmul %140, %107, %cst_104 {dimension_numbers = #tpu.dot_dimension_numbers<[1], [0], [0], [1], [0, 0, 1, 1], [], []>} : vector<2x128xbf16>, vector<128x512xbf16>, vector<2x512xf32> -> vector<2x512xf32>
    %142 = arith.addf %139, %141 : vector<2x512xf32>
    %143 = vector.extract_strided_slice %142 {offsets = [0, 0], sizes = [2, 128], strides = [1, 1]} : vector<2x512xf32> to vector<2x128xf32>
    %144 = arith.negf %143 : vector<2x128xf32>
    %145 = math.exp %144 : vector<2x128xf32>
    %cst_105 = arith.constant 1.000000e+00 : f32
    %146 = vector.broadcast %cst_105 : f32 to vector<2x128xf32>
    %147 = arith.addf %146, %145 : vector<2x128xf32>
    %148 = arith.divf %146, %147 : vector<2x128xf32>
    %149 = vector.extract_strided_slice %142 {offsets = [0, 128], sizes = [2, 128], strides = [1, 1]} : vector<2x512xf32> to vector<2x128xf32>
    %150 = arith.negf %149 : vector<2x128xf32>
    %151 = math.exp %150 : vector<2x128xf32>
    %cst_106 = arith.constant 1.000000e+00 : f32
    %152 = vector.broadcast %cst_106 : f32 to vector<2x128xf32>
    %153 = arith.addf %152, %151 : vector<2x128xf32>
    %154 = arith.divf %152, %153 : vector<2x128xf32>
    %155 = vector.extract_strided_slice %142 {offsets = [0, 256], sizes = [2, 128], strides = [1, 1]} : vector<2x512xf32> to vector<2x128xf32>
    %156 = math.tanh %155 : vector<2x128xf32>
    %157 = vector.extract_strided_slice %142 {offsets = [0, 384], sizes = [2, 128], strides = [1, 1]} : vector<2x512xf32> to vector<2x128xf32>
    %158 = arith.negf %157 : vector<2x128xf32>
    %159 = math.exp %158 : vector<2x128xf32>
    %cst_107 = arith.constant 1.000000e+00 : f32
    %160 = vector.broadcast %cst_107 : f32 to vector<2x128xf32>
    %161 = arith.addf %160, %159 : vector<2x128xf32>
    %162 = arith.divf %160, %161 : vector<2x128xf32>
    %163 = arith.mulf %154, %136 : vector<2x128xf32>
    %164 = arith.mulf %148, %156 : vector<2x128xf32>
    %165 = arith.addf %163, %164 : vector<2x128xf32>
    %166 = math.tanh %165 : vector<2x128xf32>
    %167 = arith.mulf %162, %166 : vector<2x128xf32>
    %168 = vector.extract_strided_slice %104 {offsets = [4, 0], sizes = [2, 512], strides = [1, 1]} : vector<8x512xf32> to vector<2x512xf32>
    %169 = arith.truncf %167 : vector<2x128xf32> to vector<2x128xbf16>
    %cst_108 = arith.constant dense<0.000000e+00> : vector<2x512xf32>
    %170 = tpu.matmul %169, %107, %cst_108 {dimension_numbers = #tpu.dot_dimension_numbers<[1], [0], [0], [1], [0, 0, 1, 1], [], []>} : vector<2x128xbf16>, vector<128x512xbf16>, vector<2x512xf32> -> vector<2x512xf32>
    %171 = arith.addf %168, %170 : vector<2x512xf32>
    %172 = vector.extract_strided_slice %171 {offsets = [0, 0], sizes = [2, 128], strides = [1, 1]} : vector<2x512xf32> to vector<2x128xf32>
    %173 = arith.negf %172 : vector<2x128xf32>
    %174 = math.exp %173 : vector<2x128xf32>
    %cst_109 = arith.constant 1.000000e+00 : f32
    %175 = vector.broadcast %cst_109 : f32 to vector<2x128xf32>
    %176 = arith.addf %175, %174 : vector<2x128xf32>
    %177 = arith.divf %175, %176 : vector<2x128xf32>
    %178 = vector.extract_strided_slice %171 {offsets = [0, 128], sizes = [2, 128], strides = [1, 1]} : vector<2x512xf32> to vector<2x128xf32>
    %179 = arith.negf %178 : vector<2x128xf32>
    %180 = math.exp %179 : vector<2x128xf32>
    %cst_110 = arith.constant 1.000000e+00 : f32
    %181 = vector.broadcast %cst_110 : f32 to vector<2x128xf32>
    %182 = arith.addf %181, %180 : vector<2x128xf32>
    %183 = arith.divf %181, %182 : vector<2x128xf32>
    %184 = vector.extract_strided_slice %171 {offsets = [0, 256], sizes = [2, 128], strides = [1, 1]} : vector<2x512xf32> to vector<2x128xf32>
    %185 = math.tanh %184 : vector<2x128xf32>
    %186 = vector.extract_strided_slice %171 {offsets = [0, 384], sizes = [2, 128], strides = [1, 1]} : vector<2x512xf32> to vector<2x128xf32>
    %187 = arith.negf %186 : vector<2x128xf32>
    %188 = math.exp %187 : vector<2x128xf32>
    %cst_111 = arith.constant 1.000000e+00 : f32
    %189 = vector.broadcast %cst_111 : f32 to vector<2x128xf32>
    %190 = arith.addf %189, %188 : vector<2x128xf32>
    %191 = arith.divf %189, %190 : vector<2x128xf32>
    %192 = arith.mulf %183, %165 : vector<2x128xf32>
    %193 = arith.mulf %177, %185 : vector<2x128xf32>
    %194 = arith.addf %192, %193 : vector<2x128xf32>
    %195 = math.tanh %194 : vector<2x128xf32>
    %196 = arith.mulf %191, %195 : vector<2x128xf32>
    %197 = vector.extract_strided_slice %104 {offsets = [6, 0], sizes = [2, 512], strides = [1, 1]} : vector<8x512xf32> to vector<2x512xf32>
    %198 = arith.truncf %196 : vector<2x128xf32> to vector<2x128xbf16>
    %cst_112 = arith.constant dense<0.000000e+00> : vector<2x512xf32>
    %199 = tpu.matmul %198, %107, %cst_112 {dimension_numbers = #tpu.dot_dimension_numbers<[1], [0], [0], [1], [0, 0, 1, 1], [], []>} : vector<2x128xbf16>, vector<128x512xbf16>, vector<2x512xf32> -> vector<2x512xf32>
    %200 = arith.addf %197, %199 : vector<2x512xf32>
    %201 = vector.extract_strided_slice %200 {offsets = [0, 0], sizes = [2, 128], strides = [1, 1]} : vector<2x512xf32> to vector<2x128xf32>
    %202 = arith.negf %201 : vector<2x128xf32>
    %203 = math.exp %202 : vector<2x128xf32>
    %cst_113 = arith.constant 1.000000e+00 : f32
    %204 = vector.broadcast %cst_113 : f32 to vector<2x128xf32>
    %205 = arith.addf %204, %203 : vector<2x128xf32>
    %206 = arith.divf %204, %205 : vector<2x128xf32>
    %207 = vector.extract_strided_slice %200 {offsets = [0, 128], sizes = [2, 128], strides = [1, 1]} : vector<2x512xf32> to vector<2x128xf32>
    %208 = arith.negf %207 : vector<2x128xf32>
    %209 = math.exp %208 : vector<2x128xf32>
    %cst_114 = arith.constant 1.000000e+00 : f32
    %210 = vector.broadcast %cst_114 : f32 to vector<2x128xf32>
    %211 = arith.addf %210, %209 : vector<2x128xf32>
    %212 = arith.divf %210, %211 : vector<2x128xf32>
    %213 = vector.extract_strided_slice %200 {offsets = [0, 256], sizes = [2, 128], strides = [1, 1]} : vector<2x512xf32> to vector<2x128xf32>
    %214 = math.tanh %213 : vector<2x128xf32>
    %215 = vector.extract_strided_slice %200 {offsets = [0, 384], sizes = [2, 128], strides = [1, 1]} : vector<2x512xf32> to vector<2x128xf32>
    %216 = arith.negf %215 : vector<2x128xf32>
    %217 = math.exp %216 : vector<2x128xf32>
    %cst_115 = arith.constant 1.000000e+00 : f32
    %218 = vector.broadcast %cst_115 : f32 to vector<2x128xf32>
    %219 = arith.addf %218, %217 : vector<2x128xf32>
    %220 = arith.divf %218, %219 : vector<2x128xf32>
    %221 = arith.mulf %212, %194 : vector<2x128xf32>
    %222 = arith.mulf %206, %214 : vector<2x128xf32>
    %223 = arith.addf %221, %222 : vector<2x128xf32>
    %224 = math.tanh %223 : vector<2x128xf32>
    %225 = arith.mulf %220, %224 : vector<2x128xf32>
    %c0_116 = arith.constant 0 : index
    %c0_117 = arith.constant 0 : index
    %226 = vector.load %arg13[%c0_116, %c0_117] : memref<128x1xf32, #tpu.memory_space<vmem>>, vector<128x1xf32>
    %cst_118 = arith.constant dense<0.000000e+00> : vector<2x1xf32>
    %227 = tpu.matmul %225, %226, %cst_118 {dimension_numbers = #tpu.dot_dimension_numbers<[1], [0], [0], [1], [0, 0, 1, 1], [], []>} : vector<2x128xf32>, vector<128x1xf32>, vector<2x1xf32> -> vector<2x1xf32>
    %c0_119 = arith.constant 0 : index
    %c0_120 = arith.constant 0 : index
    %228 = vector.load %arg14[%c0_119, %c0_120] : memref<1x1xf32, #tpu.memory_space<vmem>>, vector<1x1xf32>
    %229 = vector.broadcast %228 : vector<1x1xf32> to vector<2x1xf32>
    %230 = arith.addf %227, %229 : vector<2x1xf32>
    %231 = arith.negf %230 : vector<2x1xf32>
    %232 = math.exp %231 : vector<2x1xf32>
    %cst_121 = arith.constant 1.000000e+00 : f32
    %233 = vector.broadcast %cst_121 : f32 to vector<2x1xf32>
    %234 = arith.addf %233, %232 : vector<2x1xf32>
    %235 = arith.divf %233, %234 : vector<2x1xf32>
    %c0_122 = arith.constant 0 : index
    %c0_123 = arith.constant 0 : index
    %236 = vector.load %arg15[%c0_122, %c0_123] : memref<2x1xf32, #tpu.memory_space<vmem>>, vector<2x1xf32>
    tpu.vector_store %arg15[%c0_122, %c0_123], %235 {strides = array<i32>} : memref<2x1xf32, #tpu.memory_space<vmem>>, vector<2x1xf32>,
    return
  }
  func.func @transform_0(%arg0: i32) -> (i32, i32) {
    %c0_i32 = arith.constant 0 : i32
    %c0_i32_0 = arith.constant 0 : i32
    %c0_i32_1 = arith.constant 0 : i32
    return %c0_i32, %c0_i32_0 : i32, i32
  }
  func.func @transform_1(%arg0: i32) -> (i32, i32) {
    %c0_i32 = arith.constant 0 : i32
    %c0_i32_0 = arith.constant 0 : i32
    %c0_i32_1 = arith.constant 0 : i32
    return %c0_i32, %c0_i32_0 : i32, i32
  }
  func.func @transform_2(%arg0: i32) -> (i32, i32) {
    %c0_i32 = arith.constant 0 : i32
    %c0_i32_0 = arith.constant 0 : i32
    %c0_i32_1 = arith.constant 0 : i32
    return %c0_i32, %c0_i32_0 : i32, i32
  }
  func.func @transform_3(%arg0: i32) -> (i32, i32) {
    %c0_i32 = arith.constant 0 : i32
    %c0_i32_0 = arith.constant 0 : i32
    %c0_i32_1 = arith.constant 0 : i32
    return %c0_i32, %c0_i32_0 : i32, i32
  }
  func.func @transform_4(%arg0: i32) -> (i32, i32) {
    %c0_i32 = arith.constant 0 : i32
    %c0_i32_0 = arith.constant 0 : i32
    %c0_i32_1 = arith.constant 0 : i32
    return %c0_i32, %c0_i32_0 : i32, i32
  }
  func.func @transform_5(%arg0: i32) -> (i32, i32) {
    %c0_i32 = arith.constant 0 : i32
    %c0_i32_0 = arith.constant 0 : i32
    %c0_i32_1 = arith.constant 0 : i32
    return %c0_i32, %c0_i32_0 : i32, i32
  }
  func.func @transform_6(%arg0: i32) -> (i32, i32) {
    %c0_i32 = arith.constant 0 : i32
    %c0_i32_0 = arith.constant 0 : i32
    %c0_i32_1 = arith.constant 0 : i32
    return %c0_i32, %c0_i32_0 : i32, i32
  }
  func.func @transform_7(%arg0: i32) -> (i32, i32) {
    %c0_i32 = arith.constant 0 : i32
    %c0_i32_0 = arith.constant 0 : i32
    %c0_i32_1 = arith.constant 0 : i32
    return %c0_i32, %c0_i32_0 : i32, i32
  }
  func.func @transform_8(%arg0: i32) -> (i32, i32) {
    %c0_i32 = arith.constant 0 : i32
    %c0_i32_0 = arith.constant 0 : i32
    %c0_i32_1 = arith.constant 0 : i32
    return %c0_i32, %c0_i32_0 : i32, i32
  }
  func.func @transform_11(%arg0: i32) -> (i32, i32) {
    %c0_i32 = arith.constant 0 : i32
    %c0_i32_0 = arith.constant 0 : i32
    %c0_i32_1 = arith.constant 0 : i32
    return %c0_i32, %c0_i32_0 : i32, i32
  }
  func.func @transform_12(%arg0: i32) -> (i32, i32) {
    %c0_i32 = arith.constant 0 : i32
    %c0_i32_0 = arith.constant 0 : i32
    %c0_i32_1 = arith.constant 0 : i32
    return %c0_i32, %c0_i32_0 : i32, i32
  }
  func.func @transform_13(%arg0: i32) -> (i32, i32) {
    %c0_i32 = arith.constant 0 : i32
    %c0_i32_0 = arith.constant 0 : i32
    %c0_i32_1 = arith.constant 0 : i32
    return %c0_i32, %c0_i32_0 : i32, i32
  }
  func.func @transform_14(%arg0: i32) -> (i32, i32) {
    %c0_i32 = arith.constant 0 : i32
    %c0_i32_0 = arith.constant 0 : i32
    %c0_i32_1 = arith.constant 0 : i32
    return %c0_i32, %c0_i32_0 : i32, i32
  }
}

</mosaic_0001>

<bundles_post_ra>
// kernel: model_forward.1
= control target key start
LH: loop header
LB: loop body
LE: loop exit
PB: predicated region body
PF: predicated region fallthrough
CT: control target
= control target key end

     0   :  { %s10056_s0 = inlined_call_operand.vmem [shape: f32[640,24], index: 0, kind: input, shape index: {}]   ;;  %s10057_s1 = inlined_call_operand.vmem [shape: f32[24,16], index: 1, kind: input, shape index: {}]   ;;  %s10058_s2 = inlined_call_operand.vmem [shape: f32[1,16], index: 2, kind: input, shape index: {}]   ;;  %s10059_s3 = inlined_call_operand.vmem [shape: f32[16,96], index: 3, kind: input, shape index: {}]   ;;  %s10060_s4 = inlined_call_operand.vmem [shape: f32[1,32], index: 4, kind: input, shape index: {}]   ;;  %s10061_s5 = inlined_call_operand.vmem [shape: f32[32,192], index: 5, kind: input, shape index: {}]   ;;  %s10062_s6 = inlined_call_operand.vmem [shape: f32[1,64], index: 6, kind: input, shape index: {}]   ;;  %s10063_s7 = inlined_call_operand.vmem [shape: f32[64,384], index: 7, kind: input, shape index: {}]   ;;  %s10064_s8 = inlined_call_operand.vmem [shape: f32[1,128], index: 8, kind: input, shape index: {}]   ;;  %s10065_s9 = inlined_call_operand.vmem [shape: bf16[512,512], index: 9, kind: input, shape index: {}]   ;;  %s10066_s10 = inlined_call_operand.vmem [shape: bf16[128,512], index: 10, kind: input, shape index: {}]   ;;  %s10067_s11 = inlined_call_operand.vmem [shape: f32[1,512], index: 11, kind: input, shape index: {}]   ;;  %s10068_s12 = inlined_call_operand.vmem [shape: f32[128,1], index: 12, kind: input, shape index: {}]   ;;  %s10069_s13 = inlined_call_operand.<no memory space> [shape: f32[1,1], index: 13, kind: input, shape index: {}]   ;;  %s10070_s14 = inlined_call_operand.vmem [shape: f32[2,1], index: 14, kind: output, shape index: {}]  }
   0x1   :  { %v19_v0 = vstv %s10069_s13  ;;  %v7075_v1 = vld [vmem:[%s10065_s9] sm:$0xff]  ;;  %v7080_v2 = vld [vmem:[%s10065_s9 + $0x8] sm:$0xff]  ;;  %v7085_v3 = vld [vmem:[%s10065_s9 + $0x10] sm:$0xff] }
   0x2   :  { %10226 = vst [vmem:[#allocation16_spill] sm:$0xff] %v7075_v1  ;;  %10227 = vst [vmem:[#allocation17_spill] sm:$0xff] %v7080_v2  ;;  %v7090_v4 = vld [vmem:[%s10065_s9 + $0x18] sm:$0xff]  ;;  %v7095_v5 = vld [vmem:[%s10065_s9 + $0x20] sm:$0xff] }
   0x3   :  { %10228 = vst [vmem:[#allocation18_spill] sm:$0xff] %v7085_v3  ;;  %20 = vst [vmem:[#allocation11] sm:$0x1] %v19_v0  ;;  %v7100_v6 = vld [vmem:[%s10065_s9 + $0x28] sm:$0xff]  ;;  %v7105_v7 = vld [vmem:[%s10065_s9 + $0x30] sm:$0xff] }
   0x4   :  { %10229 = vst [vmem:[#allocation19_spill] sm:$0xff] %v7090_v4  ;;  %10230 = vst [vmem:[#allocation20_spill] sm:$0xff] %v7095_v5  ;;  %v7110_v8 = vld [vmem:[%s10065_s9 + $0x38] sm:$0xff]  ;;  %v7115_v9 = vld [vmem:[%s10065_s9 + $0x40] sm:$0xff] }
   0x5   :  { %10231 = vst [vmem:[#allocation21_spill] sm:$0xff] %v7100_v6  ;;  %10232 = vst [vmem:[#allocation22_spill] sm:$0xff] %v7105_v7  ;;  %v7120_v10 = vld [vmem:[%s10065_s9 + $0x48] sm:$0xff]  ;;  %v7125_v11 = vld [vmem:[%s10065_s9 + $0x50] sm:$0xff] }
   0x6   :  { %10233 = vst [vmem:[#allocation23_spill] sm:$0xff] %v7110_v8  ;;  %10234 = vst [vmem:[#allocation24_spill] sm:$0xff] %v7115_v9  ;;  %v7130_v12 = vld [vmem:[%s10065_s9 + $0x58] sm:$0xff]  ;;  %v7135_v13 = vld [vmem:[%s10065_s9 + $0x60] sm:$0xff] }
   0x7   :  { %10235 = vst [vmem:[#allocation25_spill] sm:$0xff] %v7120_v10  ;;  %10236 = vst [vmem:[#allocation26_spill] sm:$0xff] %v7125_v11  ;;  %v7140_v14 = vld [vmem:[%s10065_s9 + $0x68] sm:$0xff]  ;;  %v7145_v15 = vld [vmem:[%s10065_s9 + $0x70] sm:$0xff] }
   0x8   :  { %10237 = vst [vmem:[#allocation27_spill] sm:$0xff] %v7130_v12  ;;  %10238 = vst [vmem:[#allocation28_spill] sm:$0xff] %v7135_v13  ;;  %v7150_v16 = vld [vmem:[%s10065_s9 + $0x78] sm:$0xff]  ;;  %v7155_v17 = vld [vmem:[%s10065_s9 + $0x80] sm:$0xff] }
   0x9   :  { %10239 = vst [vmem:[#allocation29_spill] sm:$0xff] %v7140_v14  ;;  %10240 = vst [vmem:[#allocation30_spill] sm:$0xff] %v7145_v15  ;;  %v7160_v18 = vld [vmem:[%s10065_s9 + $0x88] sm:$0xff]  ;;  %v7165_v19 = vld [vmem:[%s10065_s9 + $0x90] sm:$0xff] }
   0xa   :  { %10241 = vst [vmem:[#allocation31_spill] sm:$0xff] %v7150_v16  ;;  %10242 = vst [vmem:[#allocation32_spill] sm:$0xff] %v7155_v17  ;;  %v7170_v20 = vld [vmem:[%s10065_s9 + $0x98] sm:$0xff]  ;;  %v7175_v21 = vld [vmem:[%s10065_s9 + $0xa0] sm:$0xff] }
   0xb   :  { %10243 = vst [vmem:[#allocation33_spill] sm:$0xff] %v7160_v18  ;;  %10244 = vst [vmem:[#allocation34_spill] sm:$0xff] %v7165_v19  ;;  %v7180_v22 = vld [vmem:[%s10065_s9 + $0xa8] sm:$0xff]  ;;  %v7185_v23 = vld [vmem:[%s10065_s9 + $0xb0] sm:$0xff] }
   0xc   :  { %10245 = vst [vmem:[#allocation35_spill] sm:$0xff] %v7170_v20  ;;  %10246 = vst [vmem:[#allocation36_spill] sm:$0xff] %v7175_v21  ;;  %v7190_v24 = vld [vmem:[%s10065_s9 + $0xb8] sm:$0xff]  ;;  %v7195_v25 = vld [vmem:[%s10065_s9 + $0xc0] sm:$0xff] }
   0xd   :  { %10247 = vst [vmem:[#allocation37_spill] sm:$0xff] %v7180_v22  ;;  %10248 = vst [vmem:[#allocation38_spill] sm:$0xff] %v7185_v23  ;;  %v7200_v26 = vld [vmem:[%s10065_s9 + $0xc8] sm:$0xff]  ;;  %v7205_v27 = vld [vmem:[%s10065_s9 + $0xd0] sm:$0xff] }
   0xe   :  { %10249 = vst [vmem:[#allocation39_spill] sm:$0xff] %v7190_v24  ;;  %10250 = vst [vmem:[#allocation40_spill] sm:$0xff] %v7200_v26  ;;  %v7210_v28 = vld [vmem:[%s10065_s9 + $0xd8] sm:$0xff]  ;;  %v7215_v29 = vld [vmem:[%s10065_s9 + $0xe0] sm:$0xff] }
   0xf   :  { %10251 = vst [vmem:[#allocation41_spill] sm:$0xff] %v7210_v28  ;;  %v7220_v30 = vld [vmem:[%s10065_s9 + $0xe8] sm:$0xff]  ;;  %v7225_v31 = vld [vmem:[%s10065_s9 + $0xf0] sm:$0xff]  ;;  %v7230_v32 = vld [vmem:[%s10065_s9 + $0xf8] sm:$0xff] }
  0x10   :  { %10252 = vst [vmem:[#allocation42_spill] sm:$0xff] %v7220_v30  ;;  %10253 = vst [vmem:[#allocation43_spill] sm:$0xff] %v7230_v32  ;;  %v7235_v33 = vld [vmem:[%s10065_s9 + $0x100] sm:$0xff]  ;;  %v7240_v34 = vld [vmem:[%s10065_s9 + $0x108] sm:$0xff] }
  0x11   :  { %10254 = vst [vmem:[#allocation44_spill] sm:$0xff] %v7235_v33  ;;  %10255 = vst [vmem:[#allocation45_spill] sm:$0xff] %v7240_v34  ;;  %v7245_v35 = vld [vmem:[%s10065_s9 + $0x110] sm:$0xff]  ;;  %v7250_v36 = vld [vmem:[%s10065_s9 + $0x118] sm:$0xff] }
  0x12   :  { %10256 = vst [vmem:[#allocation46_spill] sm:$0xff] %v7245_v35  ;;  %10257 = vst [vmem:[#allocation47_spill] sm:$0xff] %v7250_v36  ;;  %v7255_v37 = vld [vmem:[%s10065_s9 + $0x120] sm:$0xff]  ;;  %v7260_v38 = vld [vmem:[%s10065_s9 + $0x128] sm:$0xff] }
  0x13   :  { %10258 = vst [vmem:[#allocation48_spill] sm:$0xff] %v7255_v37  ;;  %10259 = vst [vmem:[#allocation49_spill] sm:$0xff] %v7260_v38  ;;  %v7265_v39 = vld [vmem:[%s10065_s9 + $0x130] sm:$0xff]  ;;  %v7270_v40 = vld [vmem:[%s10065_s9 + $0x138] sm:$0xff] }
  0x14   :  { %10260 = vst [vmem:[#allocation50_spill] sm:$0xff] %v7265_v39  ;;  %10261 = vst [vmem:[#allocation51_spill] sm:$0xff] %v7270_v40  ;;  %v7275_v41 = vld [vmem:[%s10065_s9 + $0x140] sm:$0xff]  ;;  %v7280_v42 = vld [vmem:[%s10065_s9 + $0x148] sm:$0xff] }
  0x15   :  { %10262 = vst [vmem:[#allocation52_spill] sm:$0xff] %v7275_v41  ;;  %10263 = vst [vmem:[#allocation53_spill] sm:$0xff] %v7280_v42  ;;  %v7285_v43 = vld [vmem:[%s10065_s9 + $0x150] sm:$0xff]  ;;  %v7290_v44 = vld [vmem:[%s10065_s9 + $0x158] sm:$0xff] }
  0x16   :  { %10264 = vst [vmem:[#allocation54_spill] sm:$0xff] %v7285_v43  ;;  %10265 = vst [vmem:[#allocation55_spill] sm:$0xff] %v7290_v44  ;;  %v7295_v45 = vld [vmem:[%s10065_s9 + $0x160] sm:$0xff]  ;;  %v7300_v46 = vld [vmem:[%s10065_s9 + $0x168] sm:$0xff] }
  0x17   :  { %10266 = vst [vmem:[#allocation56_spill] sm:$0xff] %v7295_v45  ;;  %10267 = vst [vmem:[#allocation57_spill] sm:$0xff] %v7300_v46  ;;  %v7305_v47 = vld [vmem:[%s10065_s9 + $0x170] sm:$0xff]  ;;  %v7310_v48 = vld [vmem:[%s10065_s9 + $0x178] sm:$0xff] }
  0x18   :  { %10268 = vst [vmem:[#allocation58_spill] sm:$0xff] %v7305_v47  ;;  %10269 = vst [vmem:[#allocation59_spill] sm:$0xff] %v7310_v48  ;;  %v7315_v49 = vld [vmem:[%s10065_s9 + $0x180] sm:$0xff]  ;;  %v7320_v50 = vld [vmem:[%s10065_s9 + $0x188] sm:$0xff] }
  0x19   :  { %10270 = vst [vmem:[#allocation60_spill] sm:$0xff] %v7315_v49  ;;  %10271 = vst [vmem:[#allocation61_spill] sm:$0xff] %v7320_v50  ;;  %v7325_v51 = vld [vmem:[%s10065_s9 + $0x190] sm:$0xff]  ;;  %v7330_v52 = vld [vmem:[%s10065_s9 + $0x198] sm:$0xff] }
  0x1a   :  { %10272 = vst [vmem:[#allocation62_spill] sm:$0xff] %v7325_v51  ;;  %10273 = vst [vmem:[#allocation63_spill] sm:$0xff] %v7330_v52  ;;  %v7335_v53 = vld [vmem:[%s10065_s9 + $0x1a0] sm:$0xff]  ;;  %v7340_v54 = vld [vmem:[%s10065_s9 + $0x1a8] sm:$0xff] }
  0x1b   :  { %10274 = vst [vmem:[#allocation64_spill] sm:$0xff] %v7335_v53  ;;  %10275 = vst [vmem:[#allocation65_spill] sm:$0xff] %v7340_v54  ;;  %v7345_v55 = vld [vmem:[%s10065_s9 + $0x1b0] sm:$0xff]  ;;  %v7350_v56 = vld [vmem:[%s10065_s9 + $0x1b8] sm:$0xff] }
  0x1c   :  { %10276 = vst [vmem:[#allocation66_spill] sm:$0xff] %v7345_v55  ;;  %10277 = vst [vmem:[#allocation67_spill] sm:$0xff] %v7350_v56  ;;  %v7355_v57 = vld [vmem:[%s10065_s9 + $0x1c0] sm:$0xff]  ;;  %v7360_v58 = vld [vmem:[%s10065_s9 + $0x1c8] sm:$0xff] }
  0x1d   :  { %10278 = vst [vmem:[#allocation68_spill] sm:$0xff] %v7355_v57  ;;  %10279 = vst [vmem:[#allocation69_spill] sm:$0xff] %v7360_v58  ;;  %v7365_v59 = vld [vmem:[%s10065_s9 + $0x1d0] sm:$0xff]  ;;  %v7370_v60 = vld [vmem:[%s10065_s9 + $0x1d8] sm:$0xff] }
  0x1e   :  { %10280 = vst [vmem:[#allocation70_spill] sm:$0xff] %v7365_v59  ;;  %10281 = vst [vmem:[#allocation71_spill] sm:$0xff] %v7370_v60  ;;  %v7375_v61 = vld [vmem:[%s10065_s9 + $0x1e0] sm:$0xff]  ;;  %v7380_v62 = vld [vmem:[%s10065_s9 + $0x1e8] sm:$0xff] }
  0x1f   :  { %10282 = vst [vmem:[#allocation72_spill] sm:$0xff] %v7375_v61  ;;  %10283 = vst [vmem:[#allocation73_spill] sm:$0xff] %v7380_v62  ;;  %v7385_v63 = vld [vmem:[%s10065_s9 + $0x1f0] sm:$0xff]  ;;  %v7390_v0 = vld [vmem:[%s10065_s9 + $0x1f8] sm:$0xff] }
  0x20   :  { %10284 = vst [vmem:[#allocation74_spill] sm:$0xff] %v7385_v63  ;;  %10285 = vst [vmem:[#allocation75_spill] sm:$0xff] %v7390_v0  ;;  %v7395_v34 = vld [vmem:[%s10065_s9 + $0x200] sm:$0xff]  ;;  %v7400_v36 = vld [vmem:[%s10065_s9 + $0x208] sm:$0xff] }
  0x21   :  { %10286 = vst [vmem:[#allocation76_spill] sm:$0xff] %v7395_v34  ;;  %10287 = vst [vmem:[#allocation77_spill] sm:$0xff] %v7400_v36  ;;  %v7405_v38 = vld [vmem:[%s10065_s9 + $0x210] sm:$0xff]  ;;  %v7410_v40 = vld [vmem:[%s10065_s9 + $0x218] sm:$0xff] }
  0x22   :  { %10288 = vst [vmem:[#allocation78_spill] sm:$0xff] %v7405_v38  ;;  %10289 = vst [vmem:[#allocation79_spill] sm:$0xff] %v7410_v40  ;;  %v7415_v42 = vld [vmem:[%s10065_s9 + $0x220] sm:$0xff]  ;;  %v7420_v44 = vld [vmem:[%s10065_s9 + $0x228] sm:$0xff] }
  0x23   :  { %10290 = vst [vmem:[#allocation80_spill] sm:$0xff] %v7415_v42  ;;  %10291 = vst [vmem:[#allocation81_spill] sm:$0xff] %v7420_v44  ;;  %v7425_v46 = vld [vmem:[%s10065_s9 + $0x230] sm:$0xff]  ;;  %v7430_v48 = vld [vmem:[%s10065_s9 + $0x238] sm:$0xff] }
  0x24   :  { %10292 = vst [vmem:[#allocation82_spill] sm:$0xff] %v7425_v46  ;;  %10293 = vst [vmem:[#allocation83_spill] sm:$0xff] %v7430_v48  ;;  %v7435_v50 = vld [vmem:[%s10065_s9 + $0x240] sm:$0xff]  ;;  %v7440_v52 = vld [vmem:[%s10065_s9 + $0x248] sm:$0xff] }
  0x25   :  { %10294 = vst [vmem:[#allocation84_spill] sm:$0xff] %v7435_v50  ;;  %10295 = vst [vmem:[#allocation85_spill] sm:$0xff] %v7440_v52  ;;  %v7445_v54 = vld [vmem:[%s10065_s9 + $0x250] sm:$0xff]  ;;  %v7450_v56 = vld [vmem:[%s10065_s9 + $0x258] sm:$0xff] }
  0x26   :  { %10296 = vst [vmem:[#allocation86_spill] sm:$0xff] %v7445_v54  ;;  %10297 = vst [vmem:[#allocation87_spill] sm:$0xff] %v7450_v56  ;;  %v7455_v58 = vld [vmem:[%s10065_s9 + $0x260] sm:$0xff]  ;;  %v7460_v60 = vld [vmem:[%s10065_s9 + $0x268] sm:$0xff] }
  0x27   :  { %10298 = vst [vmem:[#allocation88_spill] sm:$0xff] %v7455_v58  ;;  %10299 = vst [vmem:[#allocation89_spill] sm:$0xff] %v7460_v60  ;;  %v7465_v62 = vld [vmem:[%s10065_s9 + $0x270] sm:$0xff]  ;;  %v7470_v0 = vld [vmem:[%s10065_s9 + $0x278] sm:$0xff] }
  0x28   :  { %10300 = vst [vmem:[#allocation90_spill] sm:$0xff] %v7465_v62  ;;  %10301 = vst [vmem:[#allocation91_spill] sm:$0xff] %v7470_v0  ;;  %v7475_v36 = vld [vmem:[%s10065_s9 + $0x280] sm:$0xff]  ;;  %v7480_v40 = vld [vmem:[%s10065_s9 + $0x288] sm:$0xff] }
  0x29   :  { %10302 = vst [vmem:[#allocation92_spill] sm:$0xff] %v7475_v36  ;;  %10303 = vst [vmem:[#allocation93_spill] sm:$0xff] %v7480_v40  ;;  %v7485_v2 = vld [vmem:[%s10065_s9 + $0x290] sm:$0xff]  ;;  %v7490_v4 = vld [vmem:[%s10065_s9 + $0x298] sm:$0xff] }
  0x2a   :  { %10304 = vst [vmem:[#allocation94_spill] sm:$0xff] %v7485_v2  ;;  %10305 = vst [vmem:[#allocation95_spill] sm:$0xff] %v7490_v4  ;;  %v7495_v44 = vld [vmem:[%s10065_s9 + $0x2a0] sm:$0xff]  ;;  %v7500_v48 = vld [vmem:[%s10065_s9 + $0x2a8] sm:$0xff] }
  0x2b   :  { %10306 = vst [vmem:[#allocation96_spill] sm:$0xff] %v7495_v44  ;;  %10307 = vst [vmem:[#allocation97_spill] sm:$0xff] %v7500_v48  ;;  %v7505_v6 = vld [vmem:[%s10065_s9 + $0x2b0] sm:$0xff]  ;;  %v7510_v8 = vld [vmem:[%s10065_s9 + $0x2b8] sm:$0xff] }
  0x2c   :  { %10308 = vst [vmem:[#allocation98_spill] sm:$0xff] %v7505_v6  ;;  %10309 = vst [vmem:[#allocation99_spill] sm:$0xff] %v7510_v8  ;;  %v7515_v52 = vld [vmem:[%s10065_s9 + $0x2c0] sm:$0xff]  ;;  %v7520_v56 = vld [vmem:[%s10065_s9 + $0x2c8] sm:$0xff] }
  0x2d   :  { %10310 = vst [vmem:[#allocation100_spill] sm:$0xff] %v7515_v52  ;;  %10311 = vst [vmem:[#allocation101_spill] sm:$0xff] %v7520_v56  ;;  %v7525_v10 = vld [vmem:[%s10065_s9 + $0x2d0] sm:$0xff]  ;;  %v7530_v12 = vld [vmem:[%s10065_s9 + $0x2d8] sm:$0xff] }
  0x2e   :  { %10312 = vst [vmem:[#allocation102_spill] sm:$0xff] %v7530_v12  ;;  %v7535_v60 = vld [vmem:[%s10065_s9 + $0x2e0] sm:$0xff]  ;;  %v7540_v0 = vld [vmem:[%s10065_s9 + $0x2e8] sm:$0xff]  ;;  %v7545_v14 = vld [vmem:[%s10065_s9 + $0x2f0] sm:$0xff] }
  0x2f   :  { %10313 = vst [vmem:[#allocation103_spill] sm:$0xff] %v7540_v0  ;;  %v7550_v16 = vld [vmem:[%s10065_s9 + $0x2f8] sm:$0xff]  ;;  %v7555_v40 = vld [vmem:[%s10065_s9 + $0x300] sm:$0xff]  ;;  %v7560_v4 = vld [vmem:[%s10065_s9 + $0x308] sm:$0xff] }
  0x30   :  { %10314 = vst [vmem:[#allocation104_spill] sm:$0xff] %v7550_v16  ;;  %10315 = vst [vmem:[#allocation105_spill] sm:$0xff] %v7555_v40  ;;  %v7565_v18 = vld [vmem:[%s10065_s9 + $0x310] sm:$0xff]  ;;  %v7570_v20 = vld [vmem:[%s10065_s9 + $0x318] sm:$0xff] }
  0x31   :  { %10316 = vst [vmem:[#allocation106_spill] sm:$0xff] %v7560_v4  ;;  %10317 = vst [vmem:[#allocation107_spill] sm:$0xff] %v7565_v18  ;;  %v7575_v48 = vld [vmem:[%s10065_s9 + $0x320] sm:$0xff]  ;;  %v7580_v8 = vld [vmem:[%s10065_s9 + $0x328] sm:$0xff] }
  0x32   :  { %10318 = vst [vmem:[#allocation108_spill] sm:$0xff] %v7570_v20  ;;  %10319 = vst [vmem:[#allocation109_spill] sm:$0xff] %v7575_v48  ;;  %v7585_v4 = vld [vmem:[%s10065_s9 + $0x330] sm:$0xff]  ;;  %v7590_v22 = vld [vmem:[%s10065_s9 + $0x338] sm:$0xff] }
  0x33   :  { %10320 = vst [vmem:[#allocation110_spill] sm:$0xff] %v7580_v8  ;;  %10321 = vst [vmem:[#allocation111_spill] sm:$0xff] %v7585_v4  ;;  %v7595_v20 = vld [vmem:[%s10065_s9 + $0x340] sm:$0xff]  ;;  %v7600_v24 = vld [vmem:[%s10065_s9 + $0x348] sm:$0xff] }
  0x34   :  { %10322 = vst [vmem:[#allocation112_spill] sm:$0xff] %v7590_v22  ;;  %10323 = vst [vmem:[#allocation113_spill] sm:$0xff] %v7595_v20  ;;  %v7605_v8 = vld [vmem:[%s10065_s9 + $0x350] sm:$0xff]  ;;  %v7610_v56 = vld [vmem:[%s10065_s9 + $0x358] sm:$0xff] }
  0x35   :  { %10324 = vst [vmem:[#allocation114_spill] sm:$0xff] %v7600_v24  ;;  %10325 = vst [vmem:[#allocation115_spill] sm:$0xff] %v7605_v8  ;;  %v7615_v22 = vld [vmem:[%s10065_s9 + $0x360] sm:$0xff]  ;;  %v7620_v12 = vld [vmem:[%s10065_s9 + $0x368] sm:$0xff] }
  0x36   :  { %10326 = vst [vmem:[#allocation116_spill] sm:$0xff] %v7610_v56  ;;  %10327 = vst [vmem:[#allocation117_spill] sm:$0xff] %v7615_v22  ;;  %v7625_v24 = vld [vmem:[%s10065_s9 + $0x370] sm:$0xff]  ;;  %v7630_v26 = vld [vmem:[%s10065_s9 + $0x378] sm:$0xff] }
  0x37   :  { %10328 = vst [vmem:[#allocation118_spill] sm:$0xff] %v7620_v12  ;;  %10329 = vst [vmem:[#allocation119_spill] sm:$0xff] %v7625_v24  ;;  %v7635_v56 = vld [vmem:[%s10065_s9 + $0x380] sm:$0xff]  ;;  %v7640_v28 = vld [vmem:[%s10065_s9 + $0x388] sm:$0xff] }
  0x38   :  { %10330 = vst [vmem:[#allocation120_spill] sm:$0xff] %v7630_v26  ;;  %10331 = vst [vmem:[#allocation121_spill] sm:$0xff] %v7635_v56  ;;  %v7645_v12 = vld [vmem:[%s10065_s9 + $0x390] sm:$0xff]  ;;  %v7650_v0 = vld [vmem:[%s10065_s9 + $0x398] sm:$0xff] }
  0x39   :  { %10332 = vst [vmem:[#allocation122_spill] sm:$0xff] %v7640_v28  ;;  %10333 = vst [vmem:[#allocation123_spill] sm:$0xff] %v7645_v12  ;;  %v7655_v26 = vld [vmem:[%s10065_s9 + $0x3a0] sm:$0xff]  ;;  %v7660_v16 = vld [vmem:[%s10065_s9 + $0x3a8] sm:$0xff] }
  0x3a   :  { %10334 = vst [vmem:[#allocation124_spill] sm:$0xff] %v7650_v0  ;;  %10335 = vst [vmem:[#allocation125_spill] sm:$0xff] %v7655_v26  ;;  %v7665_v28 = vld [vmem:[%s10065_s9 + $0x3b0] sm:$0xff]  ;;  %v7670_v30 = vld [vmem:[%s10065_s9 + $0x3b8] sm:$0xff] }
  0x3b   :  { %10336 = vst [vmem:[#allocation126_spill] sm:$0xff] %v7660_v16  ;;  %10337 = vst [vmem:[#allocation127_spill] sm:$0xff] %v7665_v28  ;;  %v7675_v0 = vld [vmem:[%s10065_s9 + $0x3c0] sm:$0xff]  ;;  %v7680_v32 = vld [vmem:[%s10065_s9 + $0x3c8] sm:$0xff] }
  0x3c   :  { %10338 = vst [vmem:[#allocation128_spill] sm:$0xff] %v7670_v30  ;;  %10339 = vst [vmem:[#allocation129_spill] sm:$0xff] %v7675_v0  ;;  %v7685_v16 = vld [vmem:[%s10065_s9 + $0x3d0] sm:$0xff]  ;;  %v7690_v40 = vld [vmem:[%s10065_s9 + $0x3d8] sm:$0xff] }
  0x3d   :  { %10340 = vst [vmem:[#allocation130_spill] sm:$0xff] %v7680_v32  ;;  %10341 = vst [vmem:[#allocation131_spill] sm:$0xff] %v7685_v16  ;;  %v7695_v30 = vld [vmem:[%s10065_s9 + $0x3e0] sm:$0xff]  ;;  %v7700_v18 = vld [vmem:[%s10065_s9 + $0x3e8] sm:$0xff] }
  0x3e   :  { %10342 = vst [vmem:[#allocation132_spill] sm:$0xff] %v7690_v40  ;;  %10343 = vst [vmem:[#allocation133_spill] sm:$0xff] %v7695_v30  ;;  %v7705_v32 = vld [vmem:[%s10065_s9 + $0x3f0] sm:$0xff]  ;;  %v7710_v33 = vld [vmem:[%s10065_s9 + $0x3f8] sm:$0xff] }
  0x3f   :  { %10344 = vst [vmem:[#allocation134_spill] sm:$0xff] %v7700_v18  ;;  %10345 = vst [vmem:[#allocation135_spill] sm:$0xff] %v7705_v32 }
  0x40   :  { %10346 = vst [vmem:[#allocation136_spill] sm:$0xff] %v7710_v33 }
  0x41   :  { %342 = vsyncadd [#allocation10], 16384  ;;  %v7715_v40 = vld [vmem:[%s10066_s10] sm:$0xff]  ;;  %v7720_v18 = vld [vmem:[%s10066_s10 + $0x8] sm:$0xff] }
  0x42   :  { %10347 = vst [vmem:[#allocation137_spill] sm:$0xff] %v7715_v40  ;;  %10348 = vst [vmem:[#allocation138_spill] sm:$0xff] %v7720_v18  ;;  %v7725_v35 = vld [vmem:[%s10066_s10 + $0x10] sm:$0xff]  ;;  %v7730_v33 = vld [vmem:[%s10066_s10 + $0x18] sm:$0xff] }
  0x43   :  { %10349 = vst [vmem:[#allocation139_spill] sm:$0xff] %v7725_v35  ;;  %10350 = vst [vmem:[#allocation140_spill] sm:$0xff] %v7730_v33  ;;  %v7735_v48 = vld [vmem:[%s10066_s10 + $0x20] sm:$0xff]  ;;  %v7740_v40 = vld [vmem:[%s10066_s10 + $0x28] sm:$0xff] }
  0x44   :  { %10351 = vst [vmem:[#allocation141_spill] sm:$0xff] %v7735_v48  ;;  %10352 = vst [vmem:[#allocation142_spill] sm:$0xff] %v7740_v40  ;;  %v7745_v18 = vld [vmem:[%s10066_s10 + $0x30] sm:$0xff]  ;;  %v7750_v35 = vld [vmem:[%s10066_s10 + $0x38] sm:$0xff] }
  0x45   :  { %10353 = vst [vmem:[#allocation143_spill] sm:$0xff] %v7745_v18  ;;  %10354 = vst [vmem:[#allocation144_spill] sm:$0xff] %v7750_v35  ;;  %v7755_v33 = vld [vmem:[%s10066_s10 + $0x40] sm:$0xff]  ;;  %v7760_v48 = vld [vmem:[%s10066_s10 + $0x48] sm:$0xff] }
  0x46   :  { %10355 = vst [vmem:[#allocation145_spill] sm:$0xff] %v7755_v33  ;;  %10356 = vst [vmem:[#allocation146_spill] sm:$0xff] %v7760_v48  ;;  %v7765_v40 = vld [vmem:[%s10066_s10 + $0x50] sm:$0xff]  ;;  %v7770_v18 = vld [vmem:[%s10066_s10 + $0x58] sm:$0xff] }
  0x47   :  { %10357 = vst [vmem:[#allocation147_spill] sm:$0xff] %v7765_v40  ;;  %10358 = vst [vmem:[#allocation148_spill] sm:$0xff] %v7770_v18  ;;  %v7775_v35 = vld [vmem:[%s10066_s10 + $0x60] sm:$0xff]  ;;  %v7780_v33 = vld [vmem:[%s10066_s10 + $0x68] sm:$0xff] }
  0x48   :  { %10359 = vst [vmem:[#allocation149_spill] sm:$0xff] %v7775_v35  ;;  %10360 = vst [vmem:[#allocation150_spill] sm:$0xff] %v7780_v33  ;;  %v7785_v48 = vld [vmem:[%s10066_s10 + $0x70] sm:$0xff]  ;;  %v7790_v40 = vld [vmem:[%s10066_s10 + $0x78] sm:$0xff] }
  0x49   :  { %10361 = vst [vmem:[#allocation151_spill] sm:$0xff] %v7785_v48  ;;  %10362 = vst [vmem:[#allocation152_spill] sm:$0xff] %v7790_v40  ;;  %v7795_v18 = vld [vmem:[%s10066_s10 + $0x80] sm:$0xff]  ;;  %v7800_v35 = vld [vmem:[%s10066_s10 + $0x88] sm:$0xff] }
  0x4a   :  { %10363 = vst [vmem:[#allocation153_spill] sm:$0xff] %v7795_v18  ;;  %10364 = vst [vmem:[#allocation154_spill] sm:$0xff] %v7800_v35  ;;  %v7805_v33 = vld [vmem:[%s10066_s10 + $0x90] sm:$0xff]  ;;  %v7810_v48 = vld [vmem:[%s10066_s10 + $0x98] sm:$0xff] }
  0x4b   :  { %10365 = vst [vmem:[#allocation155_spill] sm:$0xff] %v7805_v33  ;;  %10366 = vst [vmem:[#allocation156_spill] sm:$0xff] %v7810_v48  ;;  %v7815_v40 = vld [vmem:[%s10066_s10 + $0xa0] sm:$0xff]  ;;  %v7820_v18 = vld [vmem:[%s10066_s10 + $0xa8] sm:$0xff] }
  0x4c   :  { %10367 = vst [vmem:[#allocation157_spill] sm:$0xff] %v7815_v40  ;;  %10368 = vst [vmem:[#allocation158_spill] sm:$0xff] %v7820_v18  ;;  %v7825_v35 = vld [vmem:[%s10066_s10 + $0xb0] sm:$0xff]  ;;  %v7830_v33 = vld [vmem:[%s10066_s10 + $0xb8] sm:$0xff] }
  0x4d   :  { %10369 = vst [vmem:[#allocation159_spill] sm:$0xff] %v7825_v35  ;;  %10370 = vst [vmem:[#allocation160_spill] sm:$0xff] %v7830_v33  ;;  %v7835_v48 = vld [vmem:[%s10066_s10 + $0xc0] sm:$0xff]  ;;  %v7840_v40 = vld [vmem:[%s10066_s10 + $0xc8] sm:$0xff] }
  0x4e   :  { %10371 = vst [vmem:[#allocation161_spill] sm:$0xff] %v7835_v48  ;;  %10372 = vst [vmem:[#allocation162_spill] sm:$0xff] %v7840_v40  ;;  %v7845_v18 = vld [vmem:[%s10066_s10 + $0xd0] sm:$0xff]  ;;  %v7850_v35 = vld [vmem:[%s10066_s10 + $0xd8] sm:$0xff] }
  0x4f   :  { %10373 = vst [vmem:[#allocation163_spill] sm:$0xff] %v7845_v18  ;;  %10374 = vst [vmem:[#allocation164_spill] sm:$0xff] %v7850_v35  ;;  %v7855_v33 = vld [vmem:[%s10066_s10 + $0xe0] sm:$0xff]  ;;  %v7860_v48 = vld [vmem:[%s10066_s10 + $0xe8] sm:$0xff] }
  0x50   :  { %10375 = vst [vmem:[#allocation165_spill] sm:$0xff] %v7855_v33  ;;  %10376 = vst [vmem:[#allocation166_spill] sm:$0xff] %v7860_v48  ;;  %v7865_v40 = vld [vmem:[%s10066_s10 + $0xf0] sm:$0xff]  ;;  %v7870_v18 = vld [vmem:[%s10066_s10 + $0xf8] sm:$0xff] }
  0x51   :  { %10377 = vst [vmem:[#allocation167_spill] sm:$0xff] %v7865_v40  ;;  %10378 = vst [vmem:[#allocation168_spill] sm:$0xff] %v7870_v18 }
  0x52   :  { %448 = vsyncadd [#allocation10 + $0x1], 4096  ;;  %v531_v35 = vld [vmem:[%s10057_s1 + $0x10] sm:$0xff]  ;;  %v530_v33 = vld [vmem:[%s10057_s1 + $0x8] sm:$0xff]  ;;  %vm539_vm0 = vcmask 195584   ;;  %vm1766_vm1 = vcmask 124928  }
  0x53   :  { %6651 = vmatprep.subr.mxu0 %v531_v35  ;;  %v449_v48 = vld [vmem:[%s10056_s0] sm:$0xff]  ;;  %6904 = vmatprep.subr.mxu1 %v531_v35  ;;  %v450_v40 = vld [vmem:[%s10056_s0 + $0x8] sm:$0xff]  ;;  %v451_v4 = vld [vmem:[%s10056_s0 + $0x10] sm:$0xff]  ;;  %vm1325_vm2 = vcmask 130048   ;;  %vm1729_vm3 = vcmask 126976   ;;  %vm2475_vm4 = vcmask 1045504  }
  0x54   :  { %6652 = vmatpush3.msra.mxu0 %v531_v35  ;;  %v529_v18 = vld [vmem:[%s10057_s1] sm:$0xff]  ;;  %6657 = vmatprep.mubr.msk.f32.mxu0 %vm539_vm0, %v449_v48  ;;  %vm2242_vm5 = vcmask 1046528   ;;  %s6991_s17 = smov 96   ;;  %vm3053_vm6 = vcmask 260096   ;;  %vm2795_vm7 = vcmask 261120   ;;  %vm2800_vm8 = vcmask 256000  }
  0x55   :  { %6653 = vmatprep.subr.mxu0 %v530_v33  ;;  %6907 = vmatpush3.msra.mxu1 %v531_v35  ;;  %v452_v35 = vld [vmem:[%s10056_s0 + $0x18] sm:$0xff]  ;;  %v453_v48 = vld [vmem:[%s10056_s0 + $0x20] sm:$0xff]  ;;  %vm3030_vm9 = vcmask 253952   ;;  %vm3695_vm10 = vcmask 516096   ;;  %vm3608_vm11 = vcmask 522240   ;;  %vm3606_vm12 = vcmask 523264  }
  0x56   :  { %6654 = vmatpush3.msra.mxu0 %v530_v33  ;;  %6905 = vmatprep.subr.mxu1 %v530_v33  ;;  %vm4065_vm13 = vcmask 1041408   ;;  %vm4122_vm14 = vcmask 1042433   ;;  %vm4179_vm15 = vcmask 1043458  }
  0x57   :  { %6655 = vmatprep.subr.mxu0 %v529_v18  ;;  %6908 = vmatpush3.msra.mxu1 %v530_v33  ;;  %v454_v33 = vld [vmem:[%s10056_s0 + $0x28] sm:$0xff] }
  0x58   :  { %6656 = vmatpush3.msra.mxu0 %v529_v18  ;;  %6906 = vmatprep.subr.mxu1 %v529_v18 }
  0x59   :  { %6658 = vmatmul.mubr.msk.f32.vlgmr.msra.gmra.mxu0 %vm539_vm0, %v450_v40  ;;  %6909 = vmatpush3.msra.mxu1 %v529_v18  ;;  %v456_v18 = vld [vmem:[%s10056_s0 + $0x38] sm:$0xff]  ;;  %v457_v40 = vld [vmem:[%s10056_s0 + $0x40] sm:$0xff] }
  0x5a   :  { %6660 = vmatprep.mubr.msk.f32.mxu0 %vm539_vm0, %v451_v4  ;;  %v455_v4 = vld [vmem:[%s10056_s0 + $0x30] sm:$0xff] }
  0x5d   :  { %6661 = vmatmul.mubr.msk.f32.gmra.mxu0 %vm539_vm0, %v452_v35  ;;  %v458_v35 = vld [vmem:[%s10056_s0 + $0x48] sm:$0xff] }
  0x5e   :  { %6663 = vmatprep.mubr.msk.f32.mxu0 %vm539_vm0, %v453_v48  ;;  %v459_v48 = vld [vmem:[%s10056_s0 + $0x50] sm:$0xff] }
  0x61   :  { %6664 = vmatmul.mubr.msk.f32.gmra.mxu0 %vm539_vm0, %v454_v33  ;;  %v460_v33 = vld [vmem:[%s10056_s0 + $0x58] sm:$0xff] }
  0x62   :  { %6666 = vmatprep.mubr.msk.f32.mxu0 %vm539_vm0, %v455_v4  ;;  %v461_v4 = vld [vmem:[%s10056_s0 + $0x60] sm:$0xff] }
  0x65   :  { %6667 = vmatmul.mubr.msk.f32.gmra.mxu0 %vm539_vm0, %v456_v18  ;;  %v462_v18 = vld [vmem:[%s10056_s0 + $0x68] sm:$0xff] }
  0x66   :  { %6669 = vmatprep.mubr.msk.f32.mxu0 %vm539_vm0, %v457_v40  ;;  %v527_v40 = vld [vmem:[%s10056_s0 + $0x270] sm:$0xff] }
  0x67   :  { %6774 = vmatprep.mubr.msk.f32.mxu1 %vm539_vm0, %v527_v40  ;;  %v467_v40 = vld [vmem:[%s10056_s0 + $0x90] sm:$0xff] }
  0x69   :  { %6670 = vmatmul.mubr.msk.f32.gmra.mxu0 %vm539_vm0, %v458_v35  ;;  %v463_v35 = vld [vmem:[%s10056_s0 + $0x70] sm:$0xff] }
  0x6a   :  { %6672 = vmatprep.mubr.msk.f32.mxu0 %vm539_vm0, %v459_v48  ;;  %v528_v48 = vld [vmem:[%s10056_s0 + $0x278] sm:$0xff] }
  0x6b   :  { %6775 = vmatmul.mubr.msk.f32.vlgmr.msra.gmra.mxu1 %vm539_vm0, %v528_v48  ;;  %v469_v48 = vld [vmem:[%s10056_s0 + $0xa0] sm:$0xff] }
  0x6d   :  { %6673 = vmatmul.mubr.msk.f32.gmra.mxu0 %vm539_vm0, %v460_v33  ;;  %v464_v33 = vld [vmem:[%s10056_s0 + $0x78] sm:$0xff] }
  0x6e   :  { %6675 = vmatprep.mubr.msk.f32.mxu0 %vm539_vm0, %v461_v4  ;;  %v465_v4 = vld [vmem:[%s10056_s0 + $0x80] sm:$0xff] }
  0x71   :  { %6676 = vmatmul.mubr.msk.f32.gmra.mxu0 %vm539_vm0, %v462_v18  ;;  %v466_v18 = vld [vmem:[%s10056_s0 + $0x88] sm:$0xff] }
  0x72   :  { %6678 = vmatprep.mubr.msk.f32.mxu0 %vm539_vm0, %v463_v35  ;;  %v468_v35 = vld [vmem:[%s10056_s0 + $0x98] sm:$0xff] }
  0x75   :  { %6679 = vmatmul.mubr.msk.f32.gmra.mxu0 %vm539_vm0, %v464_v33  ;;  %v470_v33 = vld [vmem:[%s10056_s0 + $0xa8] sm:$0xff] }
  0x76   :  { %6681 = vmatprep.mubr.msk.f32.mxu0 %vm539_vm0, %v465_v4  ;;  %v471_v4 = vld [vmem:[%s10056_s0 + $0xb0] sm:$0xff] }
  0x79   :  { %6682 = vmatmul.mubr.msk.f32.gmra.mxu0 %vm539_vm0, %v466_v18  ;;  %v472_v18 = vld [vmem:[%s10056_s0 + $0xb8] sm:$0xff] }
  0x7a   :  { %6684 = vmatprep.mubr.msk.f32.mxu0 %vm539_vm0, %v467_v40  ;;  %v473_v40 = vld [vmem:[%s10056_s0 + $0xc0] sm:$0xff] }
  0x7d   :  { %6685 = vmatmul.mubr.msk.f32.gmra.mxu0 %vm539_vm0, %v468_v35  ;;  %v474_v35 = vld [vmem:[%s10056_s0 + $0xc8] sm:$0xff] }
  0x7e   :  { %6687 = vmatprep.mubr.msk.f32.mxu0 %vm539_vm0, %v469_v48  ;;  %v475_v48 = vld [vmem:[%s10056_s0 + $0xd0] sm:$0xff] }
  0x81   :  { %6688 = vmatmul.mubr.msk.f32.gmra.mxu0 %vm539_vm0, %v470_v33  ;;  %v476_v33 = vld [vmem:[%s10056_s0 + $0xd8] sm:$0xff] }
  0x82   :  { %6690 = vmatprep.mubr.msk.f32.mxu0 %vm539_vm0, %v471_v4  ;;  %v477_v4 = vld [vmem:[%s10056_s0 + $0xe0] sm:$0xff] }
  0x85   :  { %6691 = vmatmul.mubr.msk.f32.gmra.mxu0 %vm539_vm0, %v472_v18  ;;  %v478_v18 = vld [vmem:[%s10056_s0 + $0xe8] sm:$0xff] }
  0x86   :  { %6693 = vmatprep.mubr.msk.f32.mxu0 %vm539_vm0, %v473_v40  ;;  %v479_v40 = vld [vmem:[%s10056_s0 + $0xf0] sm:$0xff] }
  0x89   :  { %6694 = vmatmul.mubr.msk.f32.gmra.mxu0 %vm539_vm0, %v474_v35  ;;  %v480_v35 = vld [vmem:[%s10056_s0 + $0xf8] sm:$0xff] }
  0x8a   :  { %6696 = vmatprep.mubr.msk.f32.mxu0 %vm539_vm0, %v475_v48  ;;  %v481_v48 = vld [vmem:[%s10056_s0 + $0x100] sm:$0xff] }
  0x8d   :  { %6697 = vmatmul.mubr.msk.f32.gmra.mxu0 %vm539_vm0, %v476_v33  ;;  %v482_v33 = vld [vmem:[%s10056_s0 + $0x108] sm:$0xff] }
  0x8e   :  { %6699 = vmatprep.mubr.msk.f32.mxu0 %vm539_vm0, %v477_v4  ;;  %v483_v4 = vld [vmem:[%s10056_s0 + $0x110] sm:$0xff] }
  0x91   :  { %6700 = vmatmul.mubr.msk.f32.gmra.mxu0 %vm539_vm0, %v478_v18  ;;  %v484_v18 = vld [vmem:[%s10056_s0 + $0x118] sm:$0xff] }
  0x92   :  { %6702 = vmatprep.mubr.msk.f32.mxu0 %vm539_vm0, %v479_v40  ;;  %v485_v40 = vld [vmem:[%s10056_s0 + $0x120] sm:$0xff] }
  0x95   :  { %6703 = vmatmul.mubr.msk.f32.gmra.mxu0 %vm539_vm0, %v480_v35  ;;  %v486_v35 = vld [vmem:[%s10056_s0 + $0x128] sm:$0xff] }
  0x96   :  { %6705 = vmatprep.mubr.msk.f32.mxu0 %vm539_vm0, %v481_v48  ;;  %v487_v48 = vld [vmem:[%s10056_s0 + $0x130] sm:$0xff] }
  0x99   :  { %6706 = vmatmul.mubr.msk.f32.gmra.mxu0 %vm539_vm0, %v482_v33  ;;  %v488_v33 = vld [vmem:[%s10056_s0 + $0x138] sm:$0xff] }
  0x9a   :  { %6708 = vmatprep.mubr.msk.f32.mxu0 %vm539_vm0, %v483_v4  ;;  %v489_v4 = vld [vmem:[%s10056_s0 + $0x140] sm:$0xff] }
  0x9d   :  { %6709 = vmatmul.mubr.msk.f32.gmra.mxu0 %vm539_vm0, %v484_v18  ;;  %v490_v18 = vld [vmem:[%s10056_s0 + $0x148] sm:$0xff] }
  0x9e   :  { %6711 = vmatprep.mubr.msk.f32.mxu0 %vm539_vm0, %v485_v40  ;;  %v491_v40 = vld [vmem:[%s10056_s0 + $0x150] sm:$0xff] }
  0xa1   :  { %6712 = vmatmul.mubr.msk.f32.gmra.mxu0 %vm539_vm0, %v486_v35  ;;  %v492_v35 = vld [vmem:[%s10056_s0 + $0x158] sm:$0xff] }
  0xa2   :  { %6714 = vmatprep.mubr.msk.f32.mxu0 %vm539_vm0, %v487_v48  ;;  %v493_v48 = vld [vmem:[%s10056_s0 + $0x160] sm:$0xff] }
  0xa5   :  { %6715 = vmatmul.mubr.msk.f32.gmra.mxu0 %vm539_vm0, %v488_v33  ;;  %v494_v33 = vld [vmem:[%s10056_s0 + $0x168] sm:$0xff] }
  0xa6   :  { %6717 = vmatprep.mubr.msk.f32.mxu0 %vm539_vm0, %v489_v4  ;;  %v495_v4 = vld [vmem:[%s10056_s0 + $0x170] sm:$0xff] }
  0xa9   :  { %6718 = vmatmul.mubr.msk.f32.gmra.mxu0 %vm539_vm0, %v490_v18  ;;  %v496_v18 = vld [vmem:[%s10056_s0 + $0x178] sm:$0xff] }
  0xaa   :  { %6720 = vmatprep.mubr.msk.f32.mxu0 %vm539_vm0, %v491_v40  ;;  %v497_v40 = vld [vmem:[%s10056_s0 + $0x180] sm:$0xff] }
  0xad   :  { %6721 = vmatmul.mubr.msk.f32.gmra.mxu0 %vm539_vm0, %v492_v35  ;;  %v498_v35 = vld [vmem:[%s10056_s0 + $0x188] sm:$0xff] }
  0xae   :  { %6723 = vmatprep.mubr.msk.f32.mxu0 %vm539_vm0, %v493_v48  ;;  %v1816_v48 = vld [vmem:[%s10059_s3 + $0x8] sm:$0xff] }
  0xaf   :  { %6777 = vmatprep.subr.mxu1 %v1816_v48 }
  0xb0   :  { %6778 = vmatpush3.msra.mxu1 %v1816_v48  ;;  %v10177_v48 = vmov 0.0  }
  0xb1   :  { %6724 = vmatmul.mubr.msk.f32.gmra.mxu0 %vm539_vm0, %v494_v33  ;;  %v499_v33 = vld [vmem:[%s10056_s0 + $0x190] sm:$0xff]  ;;  %1767 = vst.msk [vmem:[#allocation3 + $0x25] sm:$0x7] %vm1766_vm1, %v10177_v48  ;;  %1768 = vst.msk [vmem:[#allocation3 + $0x4d] sm:$0x7] %vm1766_vm1, %v10177_v48 }
  0xb2   :  { %6726 = vmatprep.mubr.msk.f32.mxu0 %vm539_vm0, %v495_v4  ;;  %v1815_v4 = vld [vmem:[%s10059_s3] sm:$0xff]  ;;  %1769 = vst.msk [vmem:[#allocation3 + $0x75] sm:$0x7] %vm1766_vm1, %v10177_v48  ;;  %1770 = vst.msk [vmem:[#allocation3 + $0x9d] sm:$0x7] %vm1766_vm1, %v10177_v48 }
  0xb3   :  { %6779 = vmatprep.subr.mxu1 %v1815_v4  ;;  %1771 = vst.msk [vmem:[#allocation3 + $0xc5] sm:$0x7] %vm1766_vm1, %v10177_v48  ;;  %1772 = vst.msk [vmem:[#allocation3 + $0xed] sm:$0x7] %vm1766_vm1, %v10177_v48 }
  0xb4   :  { %6780 = vmatpush3.msra.mxu1 %v1815_v4  ;;  %1773 = vst.msk [vmem:[#allocation3 + $0x115] sm:$0x7] %vm1766_vm1, %v10177_v48  ;;  %1774 = vst.msk [vmem:[#allocation3 + $0x13d] sm:$0x7] %vm1766_vm1, %v10177_v48  ;;  %v504_v4 = vld [vmem:[%s10056_s0 + $0x1b8] sm:$0xff]  ;;  %vm4301_vm1 = vcmask 1041409  }
  0xb5   :  { %6727 = vmatmul.mubr.msk.f32.gmra.mxu0 %vm539_vm0, %v496_v18  ;;  %v500_v18 = vld [vmem:[%s10056_s0 + $0x198] sm:$0xff] }
  0xb6   :  { %6729 = vmatprep.mubr.msk.f32.mxu0 %vm539_vm0, %v497_v40  ;;  %v501_v40 = vld [vmem:[%s10056_s0 + $0x1a0] sm:$0xff] }
  0xb9   :  { %6730 = vmatmul.mubr.msk.f32.gmra.mxu0 %vm539_vm0, %v498_v35  ;;  %v502_v35 = vld [vmem:[%s10056_s0 + $0x1a8] sm:$0xff] }
  0xba   :  { %6732 = vmatprep.mubr.msk.f32.mxu0 %vm539_vm0, %v499_v33  ;;  %v503_v33 = vld [vmem:[%s10056_s0 + $0x1b0] sm:$0xff] }
  0xbd   :  { %6733 = vmatmul.mubr.msk.f32.gmra.mxu0 %vm539_vm0, %v500_v18  ;;  %v505_v18 = vld [vmem:[%s10056_s0 + $0x1c0] sm:$0xff] }
  0xbe   :  { %6735 = vmatprep.mubr.msk.f32.mxu0 %vm539_vm0, %v501_v40  ;;  %v506_v40 = vld [vmem:[%s10056_s0 + $0x1c8] sm:$0xff] }
  0xc1   :  { %6736 = vmatmul.mubr.msk.f32.gmra.mxu0 %vm539_vm0, %v502_v35  ;;  %v507_v35 = vld [vmem:[%s10056_s0 + $0x1d0] sm:$0xff] }
  0xc2   :  { %6738 = vmatprep.mubr.msk.f32.mxu0 %vm539_vm0, %v503_v33  ;;  %v508_v33 = vld [vmem:[%s10056_s0 + $0x1d8] sm:$0xff] }
  0xc5   :  { %6739 = vmatmul.mubr.msk.f32.gmra.mxu0 %vm539_vm0, %v504_v4  ;;  %v509_v4 = vld [vmem:[%s10056_s0 + $0x1e0] sm:$0xff] }
  0xc6   :  { %6741 = vmatprep.mubr.msk.f32.mxu0 %vm539_vm0, %v505_v18  ;;  %v510_v18 = vld [vmem:[%s10056_s0 + $0x1e8] sm:$0xff] }
  0xc9   :  { %6742 = vmatmul.mubr.msk.f32.gmra.mxu0 %vm539_vm0, %v506_v40  ;;  %v511_v40 = vld [vmem:[%s10056_s0 + $0x1f0] sm:$0xff] }
  0xca   :  { %6744 = vmatprep.mubr.msk.f32.mxu0 %vm539_vm0, %v507_v35  ;;  %v512_v35 = vld [vmem:[%s10056_s0 + $0x1f8] sm:$0xff] }
  0xcd   :  { %6745 = vmatmul.mubr.msk.f32.gmra.mxu0 %vm539_vm0, %v508_v33  ;;  %v513_v33 = vld [vmem:[%s10056_s0 + $0x200] sm:$0xff] }
  0xce   :  { %6747 = vmatprep.mubr.msk.f32.mxu0 %vm539_vm0, %v509_v4  ;;  %v514_v4 = vld [vmem:[%s10056_s0 + $0x208] sm:$0xff] }
  0xd1   :  { %6748 = vmatmul.mubr.msk.f32.gmra.mxu0 %vm539_vm0, %v510_v18  ;;  %v515_v18 = vld [vmem:[%s10056_s0 + $0x210] sm:$0xff] }
  0xd2   :  { %6750 = vmatprep.mubr.msk.f32.mxu0 %vm539_vm0, %v511_v40  ;;  %v516_v40 = vld [vmem:[%s10056_s0 + $0x218] sm:$0xff] }
  0xd5   :  { %6751 = vmatmul.mubr.msk.f32.gmra.mxu0 %vm539_vm0, %v512_v35  ;;  %v517_v35 = vld [vmem:[%s10056_s0 + $0x220] sm:$0xff] }
  0xd6   :  { %6753 = vmatprep.mubr.msk.f32.mxu0 %vm539_vm0, %v513_v33  ;;  %v518_v33 = vld [vmem:[%s10056_s0 + $0x228] sm:$0xff] }
  0xd9   :  { %6754 = vmatmul.mubr.msk.f32.gmra.mxu0 %vm539_vm0, %v514_v4  ;;  %v519_v4 = vld [vmem:[%s10056_s0 + $0x230] sm:$0xff] }
  0xda   :  { %6756 = vmatprep.mubr.msk.f32.mxu0 %vm539_vm0, %v515_v18  ;;  %v520_v18 = vld [vmem:[%s10056_s0 + $0x238] sm:$0xff] }
  0xdd   :  { %6757 = vmatmul.mubr.msk.f32.gmra.mxu0 %vm539_vm0, %v516_v40  ;;  %v521_v40 = vld [vmem:[%s10056_s0 + $0x240] sm:$0xff] }
  0xde   :  { %6759 = vmatprep.mubr.msk.f32.mxu0 %vm539_vm0, %v517_v35  ;;  %v522_v35 = vld [vmem:[%s10056_s0 + $0x248] sm:$0xff] }
  0xe1   :  { %6760 = vmatmul.mubr.msk.f32.gmra.mxu0 %vm539_vm0, %v518_v33  ;;  %v523_v33 = vld [vmem:[%s10056_s0 + $0x250] sm:$0xff] }
  0xe2   :  { %6762 = vmatprep.mubr.msk.f32.mxu0 %vm539_vm0, %v519_v4  ;;  %v524_v4 = vld [vmem:[%s10056_s0 + $0x258] sm:$0xff] }
  0xe5   :  { %6763 = vmatmul.mubr.msk.f32.gmra.mxu0 %vm539_vm0, %v520_v18  ;;  %v525_v18 = vld [vmem:[%s10056_s0 + $0x260] sm:$0xff] }
  0xe6   :  { %6765 = vmatprep.mubr.msk.f32.mxu0 %vm539_vm0, %v521_v40  ;;  %v526_v40 = vld [vmem:[%s10056_s0 + $0x268] sm:$0xff] }
  0xe9   :  { %6766 = vmatmul.mubr.msk.f32.gmra.mxu0 %vm539_vm0, %v522_v35  ;;  %v8219_v35 = vld [vmem:[%s10058_s2] ss:$0 sm:$0xff] }
  0xea   :  { %6768 = vmatprep.mubr.msk.f32.mxu0 %vm539_vm0, %v523_v33 }
  0xed   :  { %6769 = vmatmul.mubr.msk.f32.gmra.mxu0 %vm539_vm0, %v524_v4 }
  0xee   :  { %6771 = vmatprep.mubr.msk.f32.mxu0 %vm539_vm0, %v525_v18 }
  0xf1   :  { %6772 = vmatmul.mubr.msk.f32.gmra.mxu0 %vm539_vm0, %v526_v40  ;;  %vm4236_vm0 = vcmask 1044483  }
  0xf2   :  { %3824 = vmatprep.mubr.f32.mxu0 %v10177_v48 }
 0x119   :  { %v6659_v33 = vpop.f32.mrf.mxu0 }
 0x11a   :  { %v852_v37 = vadd.f32 %v6659_v33, %v8219_v35 }
 0x11b   :  { %v846_v4 = vpop.f32.mrf.mxu0 }
 0x11c   :  { %v1246_v39 = vmax.f32 %v852_v37, 0.0  ;;  %v847_v18 = vadd.f32 %v8219_v35, %v846_v4 }
 0x11d   :  { %v6662_v20 = vpop.f32.mrf.mxu0 }
 0x11e   :  { %1327 = vst.msk [vmem:[#allocation2 + $0x8] sm:$0xff] %vm1325_vm2, %v1246_v39  ;;  %v1245_v8 = vmax.f32 %v847_v18, 0.0  ;;  %v862_v40 = vadd.f32 %v6662_v20, %v8219_v35 }
 0x11f   :  { %v856_v48 = vpop.f32.mrf.mxu0 }
 0x120   :  { %1326 = vst.msk [vmem:[#allocation2] sm:$0xff] %vm1325_vm2, %v1245_v8  ;;  %v1248_v41 = vmax.f32 %v862_v40, 0.0  ;;  %v857_v43 = vadd.f32 %v8219_v35, %v856_v48 }
 0x121   :  { %v6665_v22 = vpop.f32.mrf.mxu0 }
 0x122   :  { %1329 = vst.msk [vmem:[#allocation2 + $0x18] sm:$0xff] %vm1325_vm2, %v1248_v41  ;;  %v1247_v33 = vmax.f32 %v857_v43, 0.0  ;;  %v872_v37 = vadd.f32 %v6665_v22, %v8219_v35 }
 0x123   :  { %v866_v24 = vpop.f32.mrf.mxu0 }
 0x124   :  { %1328 = vst.msk [vmem:[#allocation2 + $0x10] sm:$0xff] %vm1325_vm2, %v1247_v33  ;;  %v1250_v4 = vmax.f32 %v872_v37, 0.0  ;;  %v867_v39 = vadd.f32 %v8219_v35, %v866_v24 }
 0x125   :  { %v6668_v18 = vpop.f32.mrf.mxu0 }
 0x126   :  { %1331 = vst.msk [vmem:[#allocation2 + $0x28] sm:$0xff] %vm1325_vm2, %v1250_v4  ;;  %v1249_v20 = vmax.f32 %v867_v39, 0.0  ;;  %v882_v8 = vadd.f32 %v6668_v18, %v8219_v35 }
 0x127   :  { %v1406_v40 = vld [vmem:[#allocation2] ss:$2 sm:$0xff]  ;;  %v1486_v48 = vld [vmem:[#allocation2 + $0x1] ss:$2 sm:$0xff]  ;;  %v876_v45 = vpop.f32.mrf.mxu0 }
 0x128   :  { %1330 = vst.msk [vmem:[#allocation2 + $0x20] sm:$0xff] %vm1325_vm2, %v1249_v20  ;;  %v1252_v41 = vmax.f32 %v882_v8, 0.0  ;;  %v877_v22 = vadd.f32 %v8219_v35, %v876_v45  ;;  %v1565_v47 = vmax.f32 %v1406_v40, %v1486_v48 }
 0x129   :  { %v6671_v43 = vpop.f32.mrf.mxu0 }
 0x12a   :  { %1333 = vst.msk [vmem:[#allocation2 + $0x38] sm:$0xff] %vm1325_vm2, %v1252_v41  ;;  %v1251_v33 = vmax.f32 %v877_v22, 0.0  ;;  %v892_v24 = vadd.f32 %v6671_v43, %v8219_v35 }
 0x12b   :  { %v1408_v37 = vld [vmem:[#allocation2 + $0x10] ss:$2 sm:$0xff]  ;;  %v1488_v4 = vld [vmem:[#allocation2 + $0x11] ss:$2 sm:$0xff]  ;;  %v886_v56 = vpop.f32.mrf.mxu0 }
 0x12c   :  { %v1606_v39 = vld [vmem:[#allocation2 + $0x2] ss:$2 sm:$0xff]  ;;  %1332 = vst.msk [vmem:[#allocation2 + $0x30] sm:$0xff] %vm1325_vm2, %v1251_v33  ;;  %v1254_v12 = vmax.f32 %v892_v24, 0.0  ;;  %v887_v20 = vadd.f32 %v8219_v35, %v886_v56  ;;  %v1566_v49 = vmax.f32 %v1408_v37, %v1488_v4  ;;  %v6776_v4 = vpop.f32.mrf.mxu1 }
 0x12d   :  { %v1685_v18 = vmax.f32 %v1565_v47, %v1606_v39  ;;  %v6674_v8 = vpop.f32.mrf.mxu0 }
 0x12e   :  { %1335 = vst.msk [vmem:[#allocation2 + $0x48] sm:$0xff] %vm1325_vm2, %v1254_v12  ;;  %v1253_v45 = vmax.f32 %v887_v20, 0.0  ;;  %v902_v40 = vadd.f32 %v6674_v8, %v8219_v35 }
 0x12f   :  { %1725 = vst.msk [vmem:[#allocation3] sm:$0xff] %vm1325_vm2, %v1685_v18  ;;  %v1410_v48 = vld [vmem:[#allocation2 + $0x20] ss:$2 sm:$0xff]  ;;  %v1490_v41 = vld [vmem:[#allocation2 + $0x21] ss:$2 sm:$0xff]  ;;  %v896_v43 = vpop.f32.mrf.mxu0 }
 0x130   :  { %v1608_v22 = vld [vmem:[#allocation2 + $0x12] ss:$2 sm:$0xff]  ;;  %1334 = vst.msk [vmem:[#allocation2 + $0x40] sm:$0xff] %vm1325_vm2, %v1253_v45  ;;  %v1256_v47 = vmax.f32 %v902_v40, 0.0  ;;  %v897_v33 = vadd.f32 %v8219_v35, %v896_v43  ;;  %v1567_v24 = vmax.f32 %v1410_v48, %v1490_v41 }
 0x131   :  { %v1686_v51 = vmax.f32 %v1566_v49, %v1608_v22  ;;  %v6677_v56 = vpop.f32.mrf.mxu0  ;;  %v1236_v22 = vpop.f32.mrf.mxu1 }
 0x132   :  { %1337 = vst.msk [vmem:[#allocation2 + $0x58] sm:$0xff] %vm1325_vm2, %v1256_v47  ;;  %v1255_v12 = vmax.f32 %v897_v33, 0.0  ;;  %v912_v37 = vadd.f32 %v6677_v56, %v8219_v35 }
 0x133   :  { %1726 = vst.msk [vmem:[#allocation3 + $0x8] sm:$0xff] %vm1325_vm2, %v1686_v51  ;;  %v1610_v39 = vld [vmem:[#allocation2 + $0x22] ss:$2 sm:$0xff]  ;;  %v906_v18 = vpop.f32.mrf.mxu0  ;;  %v1492_v8 = vld [vmem:[#allocation2 + $0x31] ss:$2 sm:$0xff]  ;;  %v1237_v51 = vadd.f32 %v8219_v35, %v1236_v22 }
 0x134   :  { %v1412_v20 = vld [vmem:[#allocation2 + $0x30] ss:$2 sm:$0xff]  ;;  %v1687_v49 = vmax.f32 %v1567_v24, %v1610_v39  ;;  %1336 = vst.msk [vmem:[#allocation2 + $0x50] sm:$0xff] %vm1325_vm2, %v1255_v12  ;;  %v1258_v45 = vmax.f32 %v912_v37, 0.0  ;;  %v907_v40 = vadd.f32 %v8219_v35, %v906_v18  ;;  %v1242_v37 = vadd.f32 %v6776_v4, %v8219_v35 }
 0x135   :  { %v6680_v48 = vpop.f32.mrf.mxu0  ;;  %v1568_v33 = vmax.f32 %v1412_v20, %v1492_v8 }
 0x136   :  { %v1775_v41 = vld [vmem:[#allocation3] sm:$0xff]  ;;  %1727 = vst.msk [vmem:[#allocation3 + $0x10] sm:$0xff] %vm1325_vm2, %v1687_v49  ;;  %1339 = vst.msk [vmem:[#allocation2 + $0x68] sm:$0xff] %vm1325_vm2, %v1258_v45  ;;  %v1257_v43 = vmax.f32 %v907_v40, 0.0  ;;  %v922_v47 = vadd.f32 %v6680_v48, %v8219_v35  ;;  %v1324_v28 = vmax.f32 %v1242_v37, 0.0 }
 0x137   :  { %6781 = vmatprep.mubr.msk.f32.mxu1 %vm1325_vm2, %v1775_v41  ;;  %v1414_v56 = vld [vmem:[#allocation2 + $0x40] ss:$2 sm:$0x1f]  ;;  %v1494_v24 = vld [vmem:[#allocation2 + $0x41] ss:$2 sm:$0x1f]  ;;  %v916_v12 = vpop.f32.mrf.mxu0 }
 0x138   :  { %v1569_v39 = vmax.f32 %v1414_v56, %v1494_v24  ;;  %v1612_v18 = vld [vmem:[#allocation2 + $0x32] ss:$2 sm:$0xff]  ;;  %1338 = vst.msk [vmem:[#allocation2 + $0x60] sm:$0xff] %vm1325_vm2, %v1257_v43  ;;  %v1260_v22 = vmax.f32 %v922_v47, 0.0  ;;  %v917_v49 = vadd.f32 %v8219_v35, %v916_v12  ;;  %v1323_v41 = vmax.f32 %v1237_v51, 0.0  ;;  %1405 = vst.msk [vmem:[#allocation2 + $0x278] sm:$0xff] %vm1325_vm2, %v1324_v28 }
 0x139   :  { %v1614_v45 = vld [vmem:[#allocation2 + $0x42] ss:$2 sm:$0x1f]  ;;  %v1688_v40 = vmax.f32 %v1568_v33, %v1612_v18  ;;  %v6683_v26 = vpop.f32.mrf.mxu0 }
 0x13a   :  { %v1776_v48 = vld [vmem:[#allocation3 + $0x8] sm:$0xff]  ;;  %v1689_v20 = vmax.f32 %v1569_v39, %v1614_v45  ;;  %1341 = vst.msk [vmem:[#allocation2 + $0x78] sm:$0xff] %vm1325_vm2, %v1260_v22  ;;  %v1259_v8 = vmax.f32 %v917_v49, 0.0  ;;  %v932_v4 = vadd.f32 %v6683_v26, %v8219_v35  ;;  %1404 = vst.msk [vmem:[#allocation2 + $0x270] sm:$0xff] %vm1325_vm2, %v1323_v41 }
 0x13b   :  { %6782 = vmatmul.mubr.msk.f32.vlgmr.msra.gmra.mxu1 %vm1325_vm2, %v1776_v48  ;;  %1728 = vst.msk [vmem:[#allocation3 + $0x18] sm:$0xff] %vm1325_vm2, %v1688_v40  ;;  %v1416_v43 = vld [vmem:[#allocation2 + $0x50] ss:$2 sm:$0xff]  ;;  %v1496_v47 = vld [vmem:[#allocation2 + $0x51] ss:$2 sm:$0xff]  ;;  %v926_v56 = vpop.f32.mrf.mxu0 }
 0x13c   :  { %1340 = vst.msk [vmem:[#allocation2 + $0x70] sm:$0xff] %vm1325_vm2, %v1259_v8  ;;  %v1262_v51 = vmax.f32 %v932_v4, 0.0  ;;  %v927_v33 = vadd.f32 %v8219_v35, %v926_v56  ;;  %v1570_v12 = vmax.f32 %v1416_v43, %v1496_v47 }
 0x13d   :  { %1730 = vst.msk [vmem:[#allocation3 + $0x20] sm:$0x1f] %vm1729_vm3, %v1689_v20  ;;  %v6686_v24 = vpop.f32.mrf.mxu0  ;;  %v1777_v26 = vld [vmem:[#allocation3 + $0x10] sm:$0xff] }
 0x13e   :  { %1343 = vst.msk [vmem:[#allocation2 + $0x88] sm:$0xff] %vm1325_vm2, %v1262_v51  ;;  %v1261_v37 = vmax.f32 %v927_v33, 0.0  ;;  %v942_v39 = vadd.f32 %v6686_v24, %v8219_v35  ;;  %6784 = vmatprep.mubr.msk.f32.mxu1 %vm1325_vm2, %v1777_v26 }
 0x13f   :  { %v1418_v28 = vld [vmem:[#allocation2 + $0x60] ss:$2 sm:$0xff]  ;;  %v1498_v18 = vld [vmem:[#allocation2 + $0x61] ss:$2 sm:$0xff]  ;;  %v936_v49 = vpop.f32.mrf.mxu0 }
 0x140   :  { %v1616_v22 = vld [vmem:[#allocation2 + $0x52] ss:$2 sm:$0xff]  ;;  %1342 = vst.msk [vmem:[#allocation2 + $0x80] sm:$0xff] %vm1325_vm2, %v1261_v37  ;;  %v1264_v40 = vmax.f32 %v942_v39, 0.0  ;;  %v937_v48 = vadd.f32 %v8219_v35, %v936_v49  ;;  %v1571_v20 = vmax.f32 %v1418_v28, %v1498_v18 }
 0x141   :  { %v1690_v45 = vmax.f32 %v1570_v12, %v1616_v22  ;;  %v6689_v41 = vpop.f32.mrf.mxu0  ;;  %v1484_v47 = vld [vmem:[#allocation2 + $0x270] ss:$2 sm:$0x1f]  ;;  %v1564_v28 = vld [vmem:[#allocation2 + $0x271] ss:$2 sm:$0x1f] }
 0x142   :  { %1345 = vst.msk [vmem:[#allocation2 + $0x98] sm:$0xff] %vm1325_vm2, %v1264_v40  ;;  %v1263_v8 = vmax.f32 %v937_v48, 0.0  ;;  %v952_v4 = vadd.f32 %v6689_v41, %v8219_v35  ;;  %v1778_v43 = vld [vmem:[#allocation3 + $0x18] sm:$0xff]  ;;  %v1604_v22 = vmax.f32 %v1484_v47, %v1564_v28 }
 0x143   :  { %1731 = vst.msk [vmem:[#allocation3 + $0x28] sm:$0xff] %vm1325_vm2, %v1690_v45  ;;  %v1420_v56 = vld [vmem:[#allocation2 + $0x70] ss:$2 sm:$0xff]  ;;  %v1500_v51 = vld [vmem:[#allocation2 + $0x71] ss:$2 sm:$0xff]  ;;  %6785 = vmatmul.mubr.msk.f32.gmra.mxu1 %vm1325_vm2, %v1778_v43  ;;  %v946_v24 = vpop.f32.mrf.mxu0 }
 0x144   :  { %v1618_v33 = vld [vmem:[#allocation2 + $0x62] ss:$2 sm:$0xff]  ;;  %1344 = vst.msk [vmem:[#allocation2 + $0x90] sm:$0xff] %vm1325_vm2, %v1263_v8  ;;  %v1266_v12 = vmax.f32 %v952_v4, 0.0  ;;  %v947_v37 = vadd.f32 %v8219_v35, %v946_v24  ;;  %v1572_v45 = vmax.f32 %v1420_v56, %v1500_v51 }
 0x145   :  { %v1691_v26 = vmax.f32 %v1571_v20, %v1618_v33  ;;  %v1779_v39 = vld [vmem:[#allocation3 + $0x20] sm:$0xff]  ;;  %v6692_v18 = vpop.f32.mrf.mxu0  ;;  %v1684_v49 = vld [vmem:[#allocation2 + $0x272] ss:$2 sm:$0x1f] }
 0x146   :  { %6787 = vmatprep.mubr.msk.f32.mxu1 %vm1325_vm2, %v1779_v39  ;;  %1347 = vst.msk [vmem:[#allocation2 + $0xa8] sm:$0xff] %vm1325_vm2, %v1266_v12  ;;  %v1265_v40 = vmax.f32 %v947_v37, 0.0  ;;  %v962_v48 = vadd.f32 %v6692_v18, %v8219_v35  ;;  %v1724_v8 = vmax.f32 %v1604_v22, %v1684_v49 }
 0x147   :  { %1732 = vst.msk [vmem:[#allocation3 + $0x30] sm:$0xff] %vm1325_vm2, %v1691_v26  ;;  %v1620_v41 = vld [vmem:[#allocation2 + $0x72] ss:$2 sm:$0xff]  ;;  %v956_v20 = vpop.f32.mrf.mxu0  ;;  %v1502_v43 = vld [vmem:[#allocation2 + $0x81] ss:$2 sm:$0xff] }
 0x148   :  { %v1422_v4 = vld [vmem:[#allocation2 + $0x80] ss:$2 sm:$0xff]  ;;  %v1692_v33 = vmax.f32 %v1572_v45, %v1620_v41  ;;  %1346 = vst.msk [vmem:[#allocation2 + $0xa0] sm:$0xff] %vm1325_vm2, %v1265_v40  ;;  %v1268_v24 = vmax.f32 %v962_v48, 0.0  ;;  %v957_v47 = vadd.f32 %v8219_v35, %v956_v20 }
 0x149   :  { %v6695_v39 = vpop.f32.mrf.mxu0  ;;  %1765 = vst.msk [vmem:[#allocation3 + $0x138] sm:$0x1f] %vm1729_vm3, %v1724_v8  ;;  %v1573_v12 = vmax.f32 %v1422_v4, %v1502_v43 }
 0x14a   :  { %v1780_v56 = vld [vmem:[#allocation3 + $0x28] sm:$0xff]  ;;  %1733 = vst.msk [vmem:[#allocation3 + $0x38] sm:$0xff] %vm1325_vm2, %v1692_v33  ;;  %1349 = vst.msk [vmem:[#allocation2 + $0xb8] sm:$0xff] %vm1325_vm2, %v1268_v24  ;;  %v1267_v51 = vmax.f32 %v957_v47, 0.0  ;;  %v972_v26 = vadd.f32 %v6695_v39, %v8219_v35 }
 0x14b   :  { %6788 = vmatmul.mubr.msk.f32.gmra.mxu1 %vm1325_vm2, %v1780_v56  ;;  %v1424_v37 = vld [vmem:[#allocation2 + $0x90] ss:$2 sm:$0x1f]  ;;  %v1504_v28 = vld [vmem:[#allocation2 + $0x91] ss:$2 sm:$0x1f]  ;;  %v966_v18 = vpop.f32.mrf.mxu0 }
 0x14c   :  { %v1574_v22 = vmax.f32 %v1424_v37, %v1504_v28  ;;  %v1622_v49 = vld [vmem:[#allocation2 + $0x82] ss:$2 sm:$0xff]  ;;  %1348 = vst.msk [vmem:[#allocation2 + $0xb0] sm:$0xff] %vm1325_vm2, %v1267_v51  ;;  %v1270_v45 = vmax.f32 %v972_v26, 0.0  ;;  %v967_v40 = vadd.f32 %v8219_v35, %v966_v18 }
 0x14d   :  { %v1624_v48 = vld [vmem:[#allocation2 + $0x92] ss:$2 sm:$0x1f]  ;;  %v1693_v41 = vmax.f32 %v1573_v12, %v1622_v49  ;;  %v6698_v20 = vpop.f32.mrf.mxu0 }
 0x14e   :  { %v1781_v8 = vld [vmem:[#allocation3 + $0x30] sm:$0xff]  ;;  %v1694_v33 = vmax.f32 %v1574_v22, %v1624_v48  ;;  %1351 = vst.msk [vmem:[#allocation2 + $0xc8] sm:$0xff] %vm1325_vm2, %v1270_v45  ;;  %v1269_v24 = vmax.f32 %v967_v40, 0.0  ;;  %v982_v4 = vadd.f32 %v6698_v20, %v8219_v35 }
 0x14f   :  { %6790 = vmatprep.mubr.msk.f32.mxu1 %vm1325_vm2, %v1781_v8  ;;  %1734 = vst.msk [vmem:[#allocation3 + $0x40] sm:$0xff] %vm1325_vm2, %v1693_v41  ;;  %v1426_v43 = vld [vmem:[#allocation2 + $0xa0] ss:$2 sm:$0xff]  ;;  %v1506_v47 = vld [vmem:[#allocation2 + $0xa1] ss:$2 sm:$0xff]  ;;  %v976_v39 = vpop.f32.mrf.mxu0 }
 0x150   :  { %1735 = vst.msk [vmem:[#allocation3 + $0x48] sm:$0x1f] %vm1729_vm3, %v1694_v33  ;;  %v1272_v56 = vmax.f32 %v982_v4, 0.0  ;;  %v977_v51 = vadd.f32 %v8219_v35, %v976_v39  ;;  %v1575_v37 = vmax.f32 %v1426_v43, %v1506_v47 }
 0x151   :  { %1350 = vst.msk [vmem:[#allocation2 + $0xc0] sm:$0xff] %vm1325_vm2, %v1269_v24  ;;  %v6701_v26 = vpop.f32.mrf.mxu0  ;;  %v1782_v12 = vld [vmem:[#allocation3 + $0x38] sm:$0xff] }
 0x152   :  { %1353 = vst.msk [vmem:[#allocation2 + $0xd8] sm:$0xff] %vm1325_vm2, %v1272_v56  ;;  %v1271_v28 = vmax.f32 %v977_v51, 0.0  ;;  %v992_v18 = vadd.f32 %v6701_v26, %v8219_v35  ;;  %6791 = vmatmul.mubr.msk.f32.gmra.mxu1 %vm1325_vm2, %v1782_v12 }
 0x153   :  { %v1428_v22 = vld [vmem:[#allocation2 + $0xb0] ss:$2 sm:$0xff]  ;;  %v1508_v49 = vld [vmem:[#allocation2 + $0xb1] ss:$2 sm:$0xff]  ;;  %v986_v40 = vpop.f32.mrf.mxu0 }
 0x154   :  { %v1626_v45 = vld [vmem:[#allocation2 + $0xa2] ss:$2 sm:$0xff]  ;;  %1352 = vst.msk [vmem:[#allocation2 + $0xd0] sm:$0xff] %vm1325_vm2, %v1271_v28  ;;  %v1274_v41 = vmax.f32 %v992_v18, 0.0  ;;  %v987_v20 = vadd.f32 %v8219_v35, %v986_v40  ;;  %v1576_v33 = vmax.f32 %v1428_v22, %v1508_v49 }
 0x155   :  { %v1695_v48 = vmax.f32 %v1575_v37, %v1626_v45  ;;  %v6704_v8 = vpop.f32.mrf.mxu0 }
 0x156   :  { %1355 = vst.msk [vmem:[#allocation2 + $0xe8] sm:$0xff] %vm1325_vm2, %v1274_v41  ;;  %v1273_v24 = vmax.f32 %v987_v20, 0.0  ;;  %v1002_v4 = vadd.f32 %v6704_v8, %v8219_v35  ;;  %v1783_v43 = vld [vmem:[#allocation3 + $0x40] sm:$0xff] }
 0x157   :  { %1736 = vst.msk [vmem:[#allocation3 + $0x50] sm:$0xff] %vm1325_vm2, %v1695_v48  ;;  %6793 = vmatprep.mubr.msk.f32.mxu1 %vm1325_vm2, %v1783_v43  ;;  %v996_v51 = vpop.f32.mrf.mxu0  ;;  %v1784_v28 = vld [vmem:[#allocation3 + $0x48] sm:$0xff] }
 0x158   :  { %v1430_v47 = vld [vmem:[#allocation2 + $0xc0] ss:$2 sm:$0xff]  ;;  %v1510_v39 = vld [vmem:[#allocation2 + $0xc1] ss:$2 sm:$0xff]  ;;  %1354 = vst.msk [vmem:[#allocation2 + $0xe0] sm:$0xff] %vm1325_vm2, %v1273_v24  ;;  %v1276_v12 = vmax.f32 %v1002_v4, 0.0  ;;  %v997_v37 = vadd.f32 %v8219_v35, %v996_v51  ;;  %6794 = vmatmul.mubr.msk.f32.gmra.mxu1 %vm1325_vm2, %v1784_v28 }
 0x159   :  { %v1628_v56 = vld [vmem:[#allocation2 + $0xb2] ss:$2 sm:$0xff]  ;;  %v6707_v18 = vpop.f32.mrf.mxu0  ;;  %v1577_v22 = vmax.f32 %v1430_v47, %v1510_v39 }
 0x15a   :  { %v1696_v26 = vmax.f32 %v1576_v33, %v1628_v56  ;;  %1357 = vst.msk [vmem:[#allocation2 + $0xf8] sm:$0xff] %vm1325_vm2, %v1276_v12  ;;  %v1275_v49 = vmax.f32 %v997_v37, 0.0  ;;  %v1012_v45 = vadd.f32 %v6707_v18, %v8219_v35 }
 0x15b   :  { %v1630_v40 = vld [vmem:[#allocation2 + $0xc2] ss:$2 sm:$0xff]  ;;  %v1006_v48 = vpop.f32.mrf.mxu0  ;;  %v1512_v20 = vld [vmem:[#allocation2 + $0xd1] ss:$2 sm:$0xff] }
 0x15c   :  { %1737 = vst.msk [vmem:[#allocation3 + $0x58] sm:$0xff] %vm1325_vm2, %v1696_v26  ;;  %v1432_v41 = vld [vmem:[#allocation2 + $0xd0] ss:$2 sm:$0xff]  ;;  %v1697_v8 = vmax.f32 %v1577_v22, %v1630_v40  ;;  %1356 = vst.msk [vmem:[#allocation2 + $0xf0] sm:$0xff] %vm1325_vm2, %v1275_v49  ;;  %v1278_v33 = vmax.f32 %v1012_v45, 0.0  ;;  %v1007_v24 = vadd.f32 %v8219_v35, %v1006_v48 }
 0x15d   :  { %v6710_v4 = vpop.f32.mrf.mxu0  ;;  %v1578_v56 = vmax.f32 %v1432_v41, %v1512_v20 }
 0x15e   :  { %v1785_v43 = vld [vmem:[#allocation3 + $0x50] sm:$0xff]  ;;  %1738 = vst.msk [vmem:[#allocation3 + $0x60] sm:$0xff] %vm1325_vm2, %v1697_v8  ;;  %1359 = vst.msk [vmem:[#allocation2 + $0x108] sm:$0xff] %vm1325_vm2, %v1278_v33  ;;  %v1277_v47 = vmax.f32 %v1007_v24, 0.0  ;;  %v1022_v39 = vadd.f32 %v6710_v4, %v8219_v35 }
 0x15f   :  { %6796 = vmatprep.mubr.msk.f32.mxu1 %vm1325_vm2, %v1785_v43  ;;  %v1434_v51 = vld [vmem:[#allocation2 + $0xe0] ss:$2 sm:$0x1f]  ;;  %v1514_v26 = vld [vmem:[#allocation2 + $0xe1] ss:$2 sm:$0x1f]  ;;  %v1016_v12 = vpop.f32.mrf.mxu0 }
 0x160   :  { %v1579_v37 = vmax.f32 %v1434_v51, %v1514_v26  ;;  %v1632_v28 = vld [vmem:[#allocation2 + $0xd2] ss:$2 sm:$0xff]  ;;  %1358 = vst.msk [vmem:[#allocation2 + $0x100] sm:$0xff] %vm1325_vm2, %v1277_v47  ;;  %v1280_v18 = vmax.f32 %v1022_v39, 0.0  ;;  %v1017_v22 = vadd.f32 %v8219_v35, %v1016_v12 }
 0x161   :  { %v1634_v49 = vld [vmem:[#allocation2 + $0xe2] ss:$2 sm:$0x1f]  ;;  %v1698_v45 = vmax.f32 %v1578_v56, %v1632_v28  ;;  %v6713_v40 = vpop.f32.mrf.mxu0 }
 0x162   :  { %v1699_v8 = vmax.f32 %v1579_v37, %v1634_v49  ;;  %1361 = vst.msk [vmem:[#allocation2 + $0x118] sm:$0xff] %vm1325_vm2, %v1280_v18  ;;  %v1279_v33 = vmax.f32 %v1017_v22, 0.0  ;;  %v1032_v41 = vadd.f32 %v6713_v40, %v8219_v35 }
 0x163   :  { %v1786_v48 = vld [vmem:[#allocation3 + $0x58] sm:$0xff]  ;;  %1739 = vst.msk [vmem:[#allocation3 + $0x68] sm:$0xff] %vm1325_vm2, %v1698_v45  ;;  %v1026_v4 = vpop.f32.mrf.mxu0 }
 0x164   :  { %6797 = vmatmul.mubr.msk.f32.gmra.mxu1 %vm1325_vm2, %v1786_v48  ;;  %v1436_v20 = vld [vmem:[#allocation2 + $0xf0] ss:$2 sm:$0xff]  ;;  %v1516_v24 = vld [vmem:[#allocation2 + $0xf1] ss:$2 sm:$0xff]  ;;  %1740 = vst.msk [vmem:[#allocation3 + $0x70] sm:$0x1f] %vm1729_vm3, %v1699_v8  ;;  %v1027_v47 = vadd.f32 %v8219_v35, %v1026_v4 }
 0x165   :  { %1360 = vst.msk [vmem:[#allocation2 + $0x110] sm:$0xff] %vm1325_vm2, %v1279_v33  ;;  %v1282_v43 = vmax.f32 %v1032_v41, 0.0  ;;  %v6716_v39 = vpop.f32.mrf.mxu0  ;;  %v1787_v56 = vld [vmem:[#allocation3 + $0x60] sm:$0xff]  ;;  %v1580_v51 = vmax.f32 %v1436_v20, %v1516_v24 }
 0x166   :  { %v1281_v26 = vmax.f32 %v1027_v47, 0.0  ;;  %v1042_v12 = vadd.f32 %v6716_v39, %v8219_v35  ;;  %6799 = vmatprep.mubr.msk.f32.mxu1 %vm1325_vm2, %v1787_v56 }
 0x167   :  { %1363 = vst.msk [vmem:[#allocation2 + $0x128] sm:$0xff] %vm1325_vm2, %v1282_v43  ;;  %v1438_v37 = vld [vmem:[#allocation2 + $0x100] ss:$2 sm:$0xff]  ;;  %v1518_v28 = vld [vmem:[#allocation2 + $0x101] ss:$2 sm:$0xff]  ;;  %v1036_v22 = vpop.f32.mrf.mxu0 }
 0x168   :  { %v1636_v18 = vld [vmem:[#allocation2 + $0xf2] ss:$2 sm:$0xff]  ;;  %1362 = vst.msk [vmem:[#allocation2 + $0x120] sm:$0xff] %vm1325_vm2, %v1281_v26  ;;  %v1284_v45 = vmax.f32 %v1042_v12, 0.0  ;;  %v1037_v40 = vadd.f32 %v8219_v35, %v1036_v22  ;;  %v1581_v8 = vmax.f32 %v1438_v37, %v1518_v28 }
 0x169   :  { %v1700_v49 = vmax.f32 %v1580_v51, %v1636_v18  ;;  %v6719_v48 = vpop.f32.mrf.mxu0 }
 0x16a   :  { %1365 = vst.msk [vmem:[#allocation2 + $0x138] sm:$0xff] %vm1325_vm2, %v1284_v45  ;;  %v1283_v33 = vmax.f32 %v1037_v40, 0.0  ;;  %v1052_v41 = vadd.f32 %v6719_v48, %v8219_v35  ;;  %v1788_v20 = vld [vmem:[#allocation3 + $0x68] sm:$0xff] }
 0x16b   :  { %1741 = vst.msk [vmem:[#allocation3 + $0x78] sm:$0xff] %vm1325_vm2, %v1700_v49  ;;  %6800 = vmatmul.mubr.msk.f32.gmra.mxu1 %vm1325_vm2, %v1788_v20  ;;  %v1046_v47 = vpop.f32.mrf.mxu0  ;;  %v1789_v26 = vld [vmem:[#allocation3 + $0x70] sm:$0xff] }
 0x16c   :  { %v1440_v24 = vld [vmem:[#allocation2 + $0x110] ss:$2 sm:$0xff]  ;;  %v1520_v4 = vld [vmem:[#allocation2 + $0x111] ss:$2 sm:$0xff]  ;;  %1364 = vst.msk [vmem:[#allocation2 + $0x130] sm:$0xff] %vm1325_vm2, %v1283_v33  ;;  %v1286_v56 = vmax.f32 %v1052_v41, 0.0  ;;  %v1047_v51 = vadd.f32 %v8219_v35, %v1046_v47  ;;  %6802 = vmatprep.mubr.msk.f32.mxu1 %vm1325_vm2, %v1789_v26 }
 0x16d   :  { %v1638_v43 = vld [vmem:[#allocation2 + $0x102] ss:$2 sm:$0xff]  ;;  %v6722_v12 = vpop.f32.mrf.mxu0  ;;  %v1582_v37 = vmax.f32 %v1440_v24, %v1520_v4 }
 0x16e   :  { %v1701_v39 = vmax.f32 %v1581_v8, %v1638_v43  ;;  %1367 = vst.msk [vmem:[#allocation2 + $0x148] sm:$0xff] %vm1325_vm2, %v1286_v56  ;;  %v1285_v28 = vmax.f32 %v1047_v51, 0.0  ;;  %v1062_v18 = vadd.f32 %v6722_v12, %v8219_v35 }
 0x16f   :  { %v1640_v22 = vld [vmem:[#allocation2 + $0x112] ss:$2 sm:$0xff]  ;;  %v1056_v49 = vpop.f32.mrf.mxu0  ;;  %v1522_v40 = vld [vmem:[#allocation2 + $0x121] ss:$2 sm:$0xff] }
 0x170   :  { %1742 = vst.msk [vmem:[#allocation3 + $0x80] sm:$0xff] %vm1325_vm2, %v1701_v39  ;;  %v1442_v45 = vld [vmem:[#allocation2 + $0x120] ss:$2 sm:$0xff]  ;;  %v1702_v48 = vmax.f32 %v1582_v37, %v1640_v22  ;;  %1366 = vst.msk [vmem:[#allocation2 + $0x140] sm:$0xff] %vm1325_vm2, %v1285_v28  ;;  %v1288_v8 = vmax.f32 %v1062_v18, 0.0  ;;  %v1057_v33 = vadd.f32 %v8219_v35, %v1056_v49 }
 0x171   :  { %v6725_v41 = vpop.f32.mrf.mxu0  ;;  %v1583_v43 = vmax.f32 %v1442_v45, %v1522_v40 }
 0x172   :  { %v1790_v20 = vld [vmem:[#allocation3 + $0x78] sm:$0xff]  ;;  %1743 = vst.msk [vmem:[#allocation3 + $0x88] sm:$0xff] %vm1325_vm2, %v1702_v48  ;;  %1369 = vst.msk [vmem:[#allocation2 + $0x158] sm:$0xff] %vm1325_vm2, %v1288_v8  ;;  %v1287_v24 = vmax.f32 %v1057_v33, 0.0  ;;  %v1072_v4 = vadd.f32 %v6725_v41, %v8219_v35 }
 0x173   :  { %6803 = vmatmul.mubr.msk.f32.gmra.mxu1 %vm1325_vm2, %v1790_v20  ;;  %v1444_v47 = vld [vmem:[#allocation2 + $0x130] ss:$2 sm:$0x1f]  ;;  %v1524_v39 = vld [vmem:[#allocation2 + $0x131] ss:$2 sm:$0x1f]  ;;  %v1066_v56 = vpop.f32.mrf.mxu0 }
 0x174   :  { %v1584_v51 = vmax.f32 %v1444_v47, %v1524_v39  ;;  %v1642_v26 = vld [vmem:[#allocation2 + $0x122] ss:$2 sm:$0xff]  ;;  %1368 = vst.msk [vmem:[#allocation2 + $0x150] sm:$0xff] %vm1325_vm2, %v1287_v24  ;;  %v1290_v12 = vmax.f32 %v1072_v4, 0.0  ;;  %v1067_v37 = vadd.f32 %v8219_v35, %v1066_v56 }
 0x175   :  { %v1644_v28 = vld [vmem:[#allocation2 + $0x132] ss:$2 sm:$0x1f]  ;;  %v1703_v18 = vmax.f32 %v1583_v43, %v1642_v26  ;;  %v6728_v22 = vpop.f32.mrf.mxu0 }
 0x176   :  { %v1704_v48 = vmax.f32 %v1584_v51, %v1644_v28  ;;  %1371 = vst.msk [vmem:[#allocation2 + $0x168] sm:$0xff] %vm1325_vm2, %v1290_v12  ;;  %v1289_v8 = vmax.f32 %v1067_v37, 0.0  ;;  %v1082_v45 = vadd.f32 %v6728_v22, %v8219_v35 }
 0x177   :  { %v1791_v49 = vld [vmem:[#allocation3 + $0x80] sm:$0xff]  ;;  %1744 = vst.msk [vmem:[#allocation3 + $0x90] sm:$0xff] %vm1325_vm2, %v1703_v18  ;;  %v1076_v41 = vpop.f32.mrf.mxu0 }
 0x178   :  { %6805 = vmatprep.mubr.msk.f32.mxu1 %vm1325_vm2, %v1791_v49  ;;  %v1446_v40 = vld [vmem:[#allocation2 + $0x140] ss:$2 sm:$0xff]  ;;  %v1526_v33 = vld [vmem:[#allocation2 + $0x141] ss:$2 sm:$0xff]  ;;  %1745 = vst.msk [vmem:[#allocation3 + $0x98] sm:$0x1f] %vm1729_vm3, %v1704_v48  ;;  %v1077_v24 = vadd.f32 %v8219_v35, %v1076_v41 }
 0x179   :  { %1370 = vst.msk [vmem:[#allocation2 + $0x160] sm:$0xff] %vm1325_vm2, %v1289_v8  ;;  %v1292_v20 = vmax.f32 %v1082_v45, 0.0  ;;  %v6731_v4 = vpop.f32.mrf.mxu0  ;;  %v1792_v43 = vld [vmem:[#allocation3 + $0x88] sm:$0xff]  ;;  %v1585_v47 = vmax.f32 %v1446_v40, %v1526_v33 }
 0x17a   :  { %v1291_v39 = vmax.f32 %v1077_v24, 0.0  ;;  %v1092_v56 = vadd.f32 %v6731_v4, %v8219_v35  ;;  %6806 = vmatmul.mubr.msk.f32.gmra.mxu1 %vm1325_vm2, %v1792_v43 }
 0x17b   :  { %1373 = vst.msk [vmem:[#allocation2 + $0x178] sm:$0xff] %vm1325_vm2, %v1292_v20  ;;  %v1448_v51 = vld [vmem:[#allocation2 + $0x150] ss:$2 sm:$0xff]  ;;  %v1528_v26 = vld [vmem:[#allocation2 + $0x151] ss:$2 sm:$0xff]  ;;  %v1086_v37 = vpop.f32.mrf.mxu0 }
 0x17c   :  { %v1646_v12 = vld [vmem:[#allocation2 + $0x142] ss:$2 sm:$0xff]  ;;  %1372 = vst.msk [vmem:[#allocation2 + $0x170] sm:$0xff] %vm1325_vm2, %v1291_v39  ;;  %v1294_v18 = vmax.f32 %v1092_v56, 0.0  ;;  %v1087_v22 = vadd.f32 %v8219_v35, %v1086_v37  ;;  %v1586_v48 = vmax.f32 %v1448_v51, %v1528_v26 }
 0x17d   :  { %v1705_v28 = vmax.f32 %v1585_v47, %v1646_v12  ;;  %v6734_v49 = vpop.f32.mrf.mxu0 }
 0x17e   :  { %1375 = vst.msk [vmem:[#allocation2 + $0x188] sm:$0xff] %vm1325_vm2, %v1294_v18  ;;  %v1293_v8 = vmax.f32 %v1087_v22, 0.0  ;;  %v1102_v45 = vadd.f32 %v6734_v49, %v8219_v35  ;;  %v1793_v40 = vld [vmem:[#allocation3 + $0x90] sm:$0xff] }
 0x17f   :  { %1746 = vst.msk [vmem:[#allocation3 + $0xa0] sm:$0xff] %vm1325_vm2, %v1705_v28  ;;  %6808 = vmatprep.mubr.msk.f32.mxu1 %vm1325_vm2, %v1793_v40  ;;  %v1096_v24 = vpop.f32.mrf.mxu0  ;;  %v1794_v39 = vld [vmem:[#allocation3 + $0x98] sm:$0xff] }
 0x180   :  { %v1450_v33 = vld [vmem:[#allocation2 + $0x160] ss:$2 sm:$0xff]  ;;  %v1530_v41 = vld [vmem:[#allocation2 + $0x161] ss:$2 sm:$0xff]  ;;  %1374 = vst.msk [vmem:[#allocation2 + $0x180] sm:$0xff] %vm1325_vm2, %v1293_v8  ;;  %v1296_v43 = vmax.f32 %v1102_v45, 0.0  ;;  %v1097_v47 = vadd.f32 %v8219_v35, %v1096_v24  ;;  %6809 = vmatmul.mubr.msk.f32.gmra.mxu1 %vm1325_vm2, %v1794_v39 }
 0x181   :  { %v1648_v20 = vld [vmem:[#allocation2 + $0x152] ss:$2 sm:$0xff]  ;;  %v6737_v56 = vpop.f32.mrf.mxu0  ;;  %v1587_v51 = vmax.f32 %v1450_v33, %v1530_v41 }
 0x182   :  { %v1706_v4 = vmax.f32 %v1586_v48, %v1648_v20  ;;  %1377 = vst.msk [vmem:[#allocation2 + $0x198] sm:$0xff] %vm1325_vm2, %v1296_v43  ;;  %v1295_v26 = vmax.f32 %v1097_v47, 0.0  ;;  %v1112_v12 = vadd.f32 %v6737_v56, %v8219_v35 }
 0x183   :  { %v1650_v37 = vld [vmem:[#allocation2 + $0x162] ss:$2 sm:$0xff]  ;;  %v1106_v28 = vpop.f32.mrf.mxu0  ;;  %v1532_v22 = vld [vmem:[#allocation2 + $0x171] ss:$2 sm:$0xff] }
 0x184   :  { %1747 = vst.msk [vmem:[#allocation3 + $0xa8] sm:$0xff] %vm1325_vm2, %v1706_v4  ;;  %v1452_v18 = vld [vmem:[#allocation2 + $0x170] ss:$2 sm:$0xff]  ;;  %v1707_v49 = vmax.f32 %v1587_v51, %v1650_v37  ;;  %1376 = vst.msk [vmem:[#allocation2 + $0x190] sm:$0xff] %vm1325_vm2, %v1295_v26  ;;  %v1298_v48 = vmax.f32 %v1112_v12, 0.0  ;;  %v1107_v8 = vadd.f32 %v8219_v35, %v1106_v28 }
 0x185   :  { %v6740_v45 = vpop.f32.mrf.mxu0  ;;  %v1588_v20 = vmax.f32 %v1452_v18, %v1532_v22 }
 0x186   :  { %v1795_v40 = vld [vmem:[#allocation3 + $0xa0] sm:$0xff]  ;;  %1748 = vst.msk [vmem:[#allocation3 + $0xb0] sm:$0xff] %vm1325_vm2, %v1707_v49  ;;  %1379 = vst.msk [vmem:[#allocation2 + $0x1a8] sm:$0xff] %vm1325_vm2, %v1298_v48  ;;  %v1297_v33 = vmax.f32 %v1107_v8, 0.0  ;;  %v1122_v41 = vadd.f32 %v6740_v45, %v8219_v35 }
 0x187   :  { %6811 = vmatprep.mubr.msk.f32.mxu1 %vm1325_vm2, %v1795_v40  ;;  %v1454_v24 = vld [vmem:[#allocation2 + $0x180] ss:$2 sm:$0x1f]  ;;  %v1534_v4 = vld [vmem:[#allocation2 + $0x181] ss:$2 sm:$0x1f]  ;;  %v1116_v43 = vpop.f32.mrf.mxu0 }
 0x188   :  { %v1589_v47 = vmax.f32 %v1454_v24, %v1534_v4  ;;  %v1652_v39 = vld [vmem:[#allocation2 + $0x172] ss:$2 sm:$0xff]  ;;  %1378 = vst.msk [vmem:[#allocation2 + $0x1a0] sm:$0xff] %vm1325_vm2, %v1297_v33  ;;  %v1300_v56 = vmax.f32 %v1122_v41, 0.0  ;;  %v1117_v51 = vadd.f32 %v8219_v35, %v1116_v43 }
 0x189   :  { %v1654_v26 = vld [vmem:[#allocation2 + $0x182] ss:$2 sm:$0x1f]  ;;  %v1708_v12 = vmax.f32 %v1588_v20, %v1652_v39  ;;  %v6743_v37 = vpop.f32.mrf.mxu0 }
 0x18a   :  { %v1709_v49 = vmax.f32 %v1589_v47, %v1654_v26  ;;  %1381 = vst.msk [vmem:[#allocation2 + $0x1b8] sm:$0xff] %vm1325_vm2, %v1300_v56  ;;  %v1299_v48 = vmax.f32 %v1117_v51, 0.0  ;;  %v1132_v18 = vadd.f32 %v6743_v37, %v8219_v35 }
 0x18b   :  { %v1796_v28 = vld [vmem:[#allocation3 + $0xa8] sm:$0xff]  ;;  %1749 = vst.msk [vmem:[#allocation3 + $0xb8] sm:$0xff] %vm1325_vm2, %v1708_v12  ;;  %v1456_v22 = vld [vmem:[#allocation2 + $0x190] ss:$2 sm:$0xff]  ;;  %v1536_v8 = vld [vmem:[#allocation2 + $0x191] ss:$2 sm:$0xff]  ;;  %v1126_v45 = vpop.f32.mrf.mxu0 }
 0x18c   :  { %6812 = vmatmul.mubr.msk.f32.gmra.mxu1 %vm1325_vm2, %v1796_v28  ;;  %1750 = vst.msk [vmem:[#allocation3 + $0xc0] sm:$0x1f] %vm1729_vm3, %v1709_v49  ;;  %v1302_v40 = vmax.f32 %v1132_v18, 0.0  ;;  %v1127_v33 = vadd.f32 %v8219_v35, %v1126_v45  ;;  %v1590_v24 = vmax.f32 %v1456_v22, %v1536_v8 }
 0x18d   :  { %1380 = vst.msk [vmem:[#allocation2 + $0x1b0] sm:$0xff] %vm1325_vm2, %v1299_v48  ;;  %v6746_v41 = vpop.f32.mrf.mxu0  ;;  %v1797_v20 = vld [vmem:[#allocation3 + $0xb0] sm:$0xff] }
 0x18e   :  { %1383 = vst.msk [vmem:[#allocation2 + $0x1c8] sm:$0xff] %vm1325_vm2, %v1302_v40  ;;  %v1301_v4 = vmax.f32 %v1127_v33, 0.0  ;;  %v1142_v43 = vadd.f32 %v6746_v41, %v8219_v35  ;;  %6814 = vmatprep.mubr.msk.f32.mxu1 %vm1325_vm2, %v1797_v20 }
 0x18f   :  { %v1458_v47 = vld [vmem:[#allocation2 + $0x1a0] ss:$2 sm:$0xff]  ;;  %v1538_v39 = vld [vmem:[#allocation2 + $0x1a1] ss:$2 sm:$0xff]  ;;  %v1136_v51 = vpop.f32.mrf.mxu0 }
 0x190   :  { %v1656_v56 = vld [vmem:[#allocation2 + $0x192] ss:$2 sm:$0xff]  ;;  %1382 = vst.msk [vmem:[#allocation2 + $0x1c0] sm:$0xff] %vm1325_vm2, %v1301_v4  ;;  %v1304_v12 = vmax.f32 %v1142_v43, 0.0  ;;  %v1137_v37 = vadd.f32 %v8219_v35, %v1136_v51  ;;  %v1591_v49 = vmax.f32 %v1458_v47, %v1538_v39 }
 0x191   :  { %v1710_v26 = vmax.f32 %v1590_v24, %v1656_v56  ;;  %v6749_v28 = vpop.f32.mrf.mxu0 }
 0x192   :  { %1385 = vst.msk [vmem:[#allocation2 + $0x1d8] sm:$0xff] %vm1325_vm2, %v1304_v12  ;;  %v1303_v48 = vmax.f32 %v1137_v37, 0.0  ;;  %v1152_v18 = vadd.f32 %v6749_v28, %v8219_v35  ;;  %v1798_v22 = vld [vmem:[#allocation3 + $0xb8] sm:$0xff] }
 0x193   :  { %1751 = vst.msk [vmem:[#allocation3 + $0xc8] sm:$0xff] %vm1325_vm2, %v1710_v26  ;;  %6815 = vmatmul.mubr.msk.f32.gmra.mxu1 %vm1325_vm2, %v1798_v22  ;;  %v1146_v33 = vpop.f32.mrf.mxu0  ;;  %v1799_v4 = vld [vmem:[#allocation3 + $0xc0] sm:$0xff] }
 0x194   :  { %v1460_v8 = vld [vmem:[#allocation2 + $0x1b0] ss:$2 sm:$0xff]  ;;  %v1540_v45 = vld [vmem:[#allocation2 + $0x1b1] ss:$2 sm:$0xff]  ;;  %1384 = vst.msk [vmem:[#allocation2 + $0x1d0] sm:$0xff] %vm1325_vm2, %v1303_v48  ;;  %v1306_v20 = vmax.f32 %v1152_v18, 0.0  ;;  %v1147_v24 = vadd.f32 %v8219_v35, %v1146_v33  ;;  %6817 = vmatprep.mubr.msk.f32.mxu1 %vm1325_vm2, %v1799_v4 }
 0x195   :  { %v1658_v40 = vld [vmem:[#allocation2 + $0x1a2] ss:$2 sm:$0xff]  ;;  %v6752_v43 = vpop.f32.mrf.mxu0  ;;  %v1592_v47 = vmax.f32 %v1460_v8, %v1540_v45 }
 0x196   :  { %v1711_v41 = vmax.f32 %v1591_v49, %v1658_v40  ;;  %1387 = vst.msk [vmem:[#allocation2 + $0x1e8] sm:$0xff] %vm1325_vm2, %v1306_v20  ;;  %v1305_v39 = vmax.f32 %v1147_v24, 0.0  ;;  %v1162_v56 = vadd.f32 %v6752_v43, %v8219_v35 }
 0x197   :  { %v1660_v51 = vld [vmem:[#allocation2 + $0x1b2] ss:$2 sm:$0xff]  ;;  %v1156_v26 = vpop.f32.mrf.mxu0  ;;  %v1542_v37 = vld [vmem:[#allocation2 + $0x1c1] ss:$2 sm:$0xff] }
 0x198   :  { %1752 = vst.msk [vmem:[#allocation3 + $0xd0] sm:$0xff] %vm1325_vm2, %v1711_v41  ;;  %v1462_v12 = vld [vmem:[#allocation2 + $0x1c0] ss:$2 sm:$0xff]  ;;  %v1712_v28 = vmax.f32 %v1592_v47, %v1660_v51  ;;  %1386 = vst.msk [vmem:[#allocation2 + $0x1e0] sm:$0xff] %vm1325_vm2, %v1305_v39  ;;  %v1308_v49 = vmax.f32 %v1162_v56, 0.0  ;;  %v1157_v48 = vadd.f32 %v8219_v35, %v1156_v26 }
 0x199   :  { %v6755_v18 = vpop.f32.mrf.mxu0  ;;  %v1593_v40 = vmax.f32 %v1462_v12, %v1542_v37  ;;  %v8414_v12 = vld [vmem:[%s10058_s2] ss:$0 sm:$0xff]  ;;  %s6990_s2 = smov 64  }
 0x19a   :  { %v1800_v22 = vld [vmem:[#allocation3 + $0xc8] sm:$0xff]  ;;  %1753 = vst.msk [vmem:[#allocation3 + $0xd8] sm:$0xff] %vm1325_vm2, %v1712_v28  ;;  %1389 = vst.msk [vmem:[#allocation2 + $0x1f8] sm:$0xff] %vm1325_vm2, %v1308_v49  ;;  %v1307_v8 = vmax.f32 %v1157_v48, 0.0  ;;  %v1172_v45 = vadd.f32 %v6755_v18, %v8219_v35 }
 0x19b   :  { %6818 = vmatmul.mubr.msk.f32.gmra.mxu1 %vm1325_vm2, %v1800_v22  ;;  %v1464_v33 = vld [vmem:[#allocation2 + $0x1d0] ss:$2 sm:$0x1f]  ;;  %v1544_v41 = vld [vmem:[#allocation2 + $0x1d1] ss:$2 sm:$0x1f]  ;;  %v1166_v20 = vpop.f32.mrf.mxu0 }
 0x19c   :  { %v1594_v24 = vmax.f32 %v1464_v33, %v1544_v41  ;;  %v1662_v4 = vld [vmem:[#allocation2 + $0x1c2] ss:$2 sm:$0xff]  ;;  %1388 = vst.msk [vmem:[#allocation2 + $0x1f0] sm:$0xff] %vm1325_vm2, %v1307_v8  ;;  %v1310_v43 = vmax.f32 %v1172_v45, 0.0  ;;  %v1167_v47 = vadd.f32 %v8219_v35, %v1166_v20 }
 0x19d   :  { %v1664_v39 = vld [vmem:[#allocation2 + $0x1d2] ss:$2 sm:$0x1f]  ;;  %v1713_v56 = vmax.f32 %v1593_v40, %v1662_v4  ;;  %v6758_v51 = vpop.f32.mrf.mxu0 }
 0x19e   :  { %v1714_v28 = vmax.f32 %v1594_v24, %v1664_v39  ;;  %1391 = vst.msk [vmem:[#allocation2 + $0x208] sm:$0xff] %vm1325_vm2, %v1310_v43  ;;  %v1309_v49 = vmax.f32 %v1167_v47, 0.0  ;;  %v1182_v37 = vadd.f32 %v8414_v12, %v6758_v51 }
 0x19f   :  { %v1801_v26 = vld [vmem:[#allocation3 + $0xd0] sm:$0xff]  ;;  %1754 = vst.msk [vmem:[#allocation3 + $0xe0] sm:$0xff] %vm1325_vm2, %v1713_v56  ;;  %v1466_v35 = vld [vmem:[#allocation2 + $0x1e0] ss:$2 sm:$0xff]  ;;  %v1546_v48 = vld [vmem:[#allocation2 + $0x1e1] ss:$2 sm:$0xff]  ;;  %v1176_v18 = vpop.f32.mrf.mxu0 }
 0x1a0   :  { %6820 = vmatprep.mubr.msk.f32.mxu1 %vm1325_vm2, %v1801_v26  ;;  %1755 = vst.msk [vmem:[#allocation3 + $0xe8] sm:$0x1f] %vm1729_vm3, %v1714_v28  ;;  %v1312_v22 = vmax.f32 %v1182_v37, 0.0  ;;  %v1177_v8 = vadd.f32 %v8414_v12, %v1176_v18  ;;  %v1595_v33 = vmax.f32 %v1466_v35, %v1546_v48 }
 0x1a1   :  { %1390 = vst.msk [vmem:[#allocation2 + $0x200] sm:$0xff] %vm1325_vm2, %v1309_v49  ;;  %v6761_v45 = vpop.f32.mrf.mxu0  ;;  %v1802_v40 = vld [vmem:[#allocation3 + $0xd8] sm:$0xff] }
 0x1a2   :  { %1393 = vst.msk [vmem:[#allocation2 + $0x218] sm:$0xff] %vm1325_vm2, %v1312_v22  ;;  %v1311_v41 = vmax.f32 %v1177_v8, 0.0  ;;  %v1192_v20 = vadd.f32 %v8414_v12, %v6761_v45  ;;  %6821 = vmatmul.mubr.msk.f32.gmra.mxu1 %vm1325_vm2, %v1802_v40 }
 0x1a3   :  { %v1468_v24 = vld [vmem:[#allocation2 + $0x1f0] ss:$2 sm:$0xff]  ;;  %v1548_v4 = vld [vmem:[#allocation2 + $0x1f1] ss:$2 sm:$0xff]  ;;  %v1186_v47 = vpop.f32.mrf.mxu0 }
 0x1a4   :  { %v1666_v43 = vld [vmem:[#allocation2 + $0x1e2] ss:$2 sm:$0xff]  ;;  %1392 = vst.msk [vmem:[#allocation2 + $0x210] sm:$0xff] %vm1325_vm2, %v1311_v41  ;;  %v1314_v56 = vmax.f32 %v1192_v20, 0.0  ;;  %v1187_v51 = vadd.f32 %v8414_v12, %v1186_v47  ;;  %v1596_v28 = vmax.f32 %v1468_v24, %v1548_v4 }
 0x1a5   :  { %v1715_v39 = vmax.f32 %v1595_v33, %v1666_v43  ;;  %v6764_v26 = vpop.f32.mrf.mxu0 }
 0x1a6   :  { %1395 = vst.msk [vmem:[#allocation2 + $0x228] sm:$0xff] %vm1325_vm2, %v1314_v56  ;;  %v1313_v49 = vmax.f32 %v1187_v51, 0.0  ;;  %v1202_v37 = vadd.f32 %v8414_v12, %v6764_v26  ;;  %v1803_v35 = vld [vmem:[#allocation3 + $0xe0] sm:$0xff] }
 0x1a7   :  { %1756 = vst.msk [vmem:[#allocation3 + $0xf0] sm:$0xff] %vm1325_vm2, %v1715_v39  ;;  %6823 = vmatprep.mubr.msk.f32.mxu1 %vm1325_vm2, %v1803_v35  ;;  %v1196_v8 = vpop.f32.mrf.mxu0  ;;  %v1804_v41 = vld [vmem:[#allocation3 + $0xe8] sm:$0xff] }
 0x1a8   :  { %v1470_v48 = vld [vmem:[#allocation2 + $0x200] ss:$2 sm:$0xff]  ;;  %v1550_v18 = vld [vmem:[#allocation2 + $0x201] ss:$2 sm:$0xff]  ;;  %1394 = vst.msk [vmem:[#allocation2 + $0x220] sm:$0xff] %vm1325_vm2, %v1313_v49  ;;  %v1316_v40 = vmax.f32 %v1202_v37, 0.0  ;;  %v1197_v33 = vadd.f32 %v8414_v12, %v1196_v8  ;;  %6824 = vmatmul.mubr.msk.f32.gmra.mxu1 %vm1325_vm2, %v1804_v41 }
 0x1a9   :  { %v1668_v22 = vld [vmem:[#allocation2 + $0x1f2] ss:$2 sm:$0xff]  ;;  %v6767_v20 = vpop.f32.mrf.mxu0  ;;  %v1597_v24 = vmax.f32 %v1470_v48, %v1550_v18 }
 0x1aa   :  { %v1716_v45 = vmax.f32 %v1596_v28, %v1668_v22  ;;  %1397 = vst.msk [vmem:[#allocation2 + $0x238] sm:$0xff] %vm1325_vm2, %v1316_v40  ;;  %v1315_v4 = vmax.f32 %v1197_v33, 0.0  ;;  %v1212_v43 = vadd.f32 %v8414_v12, %v6767_v20 }
 0x1ab   :  { %v1670_v47 = vld [vmem:[#allocation2 + $0x202] ss:$2 sm:$0xff]  ;;  %v1206_v39 = vpop.f32.mrf.mxu0  ;;  %v1552_v51 = vld [vmem:[#allocation2 + $0x211] ss:$2 sm:$0xff] }
 0x1ac   :  { %1757 = vst.msk [vmem:[#allocation3 + $0xf8] sm:$0xff] %vm1325_vm2, %v1716_v45  ;;  %v1472_v56 = vld [vmem:[#allocation2 + $0x210] ss:$2 sm:$0xff]  ;;  %v1717_v26 = vmax.f32 %v1597_v24, %v1670_v47  ;;  %1396 = vst.msk [vmem:[#allocation2 + $0x230] sm:$0xff] %vm1325_vm2, %v1315_v4  ;;  %v1318_v28 = vmax.f32 %v1212_v43, 0.0  ;;  %v1207_v49 = vadd.f32 %v8414_v12, %v1206_v39 }
 0x1ad   :  { %v6770_v37 = vpop.f32.mrf.mxu0  ;;  %v1598_v22 = vmax.f32 %v1472_v56, %v1552_v51 }
 0x1ae   :  { %v1805_v35 = vld [vmem:[#allocation3 + $0xf0] sm:$0xff]  ;;  %1758 = vst.msk [vmem:[#allocation3 + $0x100] sm:$0xff] %vm1325_vm2, %v1717_v26  ;;  %1399 = vst.msk [vmem:[#allocation2 + $0x248] sm:$0xff] %vm1325_vm2, %v1318_v28  ;;  %v1317_v48 = vmax.f32 %v1207_v49, 0.0  ;;  %v1222_v18 = vadd.f32 %v8414_v12, %v6770_v37 }
 0x1af   :  { %6826 = vmatprep.mubr.msk.f32.mxu1 %vm1325_vm2, %v1805_v35  ;;  %v1474_v8 = vld [vmem:[#allocation2 + $0x220] ss:$2 sm:$0x1f]  ;;  %v1554_v45 = vld [vmem:[#allocation2 + $0x221] ss:$2 sm:$0x1f]  ;;  %v1216_v40 = vpop.f32.mrf.mxu0 }
 0x1b0   :  { %v1599_v33 = vmax.f32 %v1474_v8, %v1554_v45  ;;  %v1672_v41 = vld [vmem:[#allocation2 + $0x212] ss:$2 sm:$0xff]  ;;  %1398 = vst.msk [vmem:[#allocation2 + $0x240] sm:$0xff] %vm1325_vm2, %v1317_v48  ;;  %v1320_v20 = vmax.f32 %v1222_v18, 0.0  ;;  %v1217_v24 = vadd.f32 %v8414_v12, %v1216_v40 }
 0x1b1   :  { %v1674_v4 = vld [vmem:[#allocation2 + $0x222] ss:$2 sm:$0x1f]  ;;  %v1718_v43 = vmax.f32 %v1598_v22, %v1672_v41  ;;  %v6773_v47 = vpop.f32.mrf.mxu0 }
 0x1b2   :  { %v1719_v26 = vmax.f32 %v1599_v33, %v1674_v4  ;;  %1401 = vst.msk [vmem:[#allocation2 + $0x258] sm:$0xff] %vm1325_vm2, %v1320_v20  ;;  %v1319_v28 = vmax.f32 %v1217_v24, 0.0  ;;  %v1232_v56 = vadd.f32 %v8414_v12, %v6773_v47 }
 0x1b3   :  { %v1806_v39 = vld [vmem:[#allocation3 + $0xf8] sm:$0xff]  ;;  %1759 = vst.msk [vmem:[#allocation3 + $0x108] sm:$0xff] %vm1325_vm2, %v1718_v43  ;;  %v1226_v37 = vpop.f32.mrf.mxu0 }
 0x1b4   :  { %6827 = vmatmul.mubr.msk.f32.gmra.mxu1 %vm1325_vm2, %v1806_v39  ;;  %v1476_v51 = vld [vmem:[#allocation2 + $0x230] ss:$2 sm:$0xff]  ;;  %v1556_v49 = vld [vmem:[#allocation2 + $0x231] ss:$2 sm:$0xff]  ;;  %1760 = vst.msk [vmem:[#allocation3 + $0x110] sm:$0x1f] %vm1729_vm3, %v1719_v26  ;;  %v1227_v48 = vadd.f32 %v8414_v12, %v1226_v37 }
 0x1b5   :  { %1400 = vst.msk [vmem:[#allocation2 + $0x250] sm:$0xff] %vm1325_vm2, %v1319_v28  ;;  %v1322_v35 = vmax.f32 %v1232_v56, 0.0  ;;  %v1807_v18 = vld [vmem:[#allocation3 + $0x100] sm:$0xff]  ;;  %v1600_v22 = vmax.f32 %v1476_v51, %v1556_v49  ;;  %vm4305_vm3 = vcmask 1043459  }
 0x1b6   :  { %v1321_v8 = vmax.f32 %v1227_v48, 0.0  ;;  %6829 = vmatprep.mubr.msk.f32.mxu1 %vm1325_vm2, %v1807_v18 }
 0x1b7   :  { %1403 = vst.msk [vmem:[#allocation2 + $0x268] sm:$0xff] %vm1325_vm2, %v1322_v35  ;;  %v1478_v45 = vld [vmem:[#allocation2 + $0x240] ss:$2 sm:$0xff]  ;;  %v1558_v40 = vld [vmem:[#allocation2 + $0x241] ss:$2 sm:$0xff] }
 0x1b8   :  { %v1676_v33 = vld [vmem:[#allocation2 + $0x232] ss:$2 sm:$0xff]  ;;  %1402 = vst.msk [vmem:[#allocation2 + $0x260] sm:$0xff] %vm1325_vm2, %v1321_v8  ;;  %v1601_v20 = vmax.f32 %v1478_v45, %v1558_v40 }
 0x1b9   :  { %v1720_v41 = vmax.f32 %v1600_v22, %v1676_v33  ;;  %v1814_v40 = vld [vmem:[#allocation3 + $0x138] sm:$0xff]  ;;  %v10379_v33 = vmov 0.0  }
 0x1ba   :  { %v1808_v24 = vld [vmem:[#allocation3 + $0x108] sm:$0xff]  ;;  %3054 = vst.msk [vmem:[#allocation5 + $0x11] sm:$0x7f] %vm3053_vm6, %v10379_v33  ;;  %3055 = vst.msk [vmem:[#allocation5 + $0x29] sm:$0x7f] %vm3053_vm6, %v10379_v33 }
 0x1bb   :  { %1761 = vst.msk [vmem:[#allocation3 + $0x118] sm:$0xff] %vm1325_vm2, %v1720_v41  ;;  %6830 = vmatmul.mubr.msk.f32.gmra.mxu1 %vm1325_vm2, %v1808_v24  ;;  %v1809_v39 = vld [vmem:[#allocation3 + $0x110] sm:$0xff] }
 0x1bc   :  { %v1480_v4 = vld [vmem:[#allocation2 + $0x250] ss:$2 sm:$0xff]  ;;  %v1560_v43 = vld [vmem:[#allocation2 + $0x251] ss:$2 sm:$0xff]  ;;  %6832 = vmatprep.mubr.msk.f32.mxu1 %vm1325_vm2, %v1809_v39  ;;  %3056 = vst.msk [vmem:[#allocation5 + $0x41] sm:$0x7f] %vm3053_vm6, %v10379_v33 }
 0x1bd   :  { %v1678_v12 = vld [vmem:[#allocation2 + $0x242] ss:$2 sm:$0xff]  ;;  %v1602_v26 = vmax.f32 %v1480_v4, %v1560_v43  ;;  %3057 = vst.msk [vmem:[#allocation5 + $0x59] sm:$0x7f] %vm3053_vm6, %v10379_v33  ;;  %3058 = vst.msk [vmem:[#allocation5 + $0x71] sm:$0x7f] %vm3053_vm6, %v10379_v33 }
 0x1be   :  { %v1721_v47 = vmax.f32 %v1601_v20, %v1678_v12  ;;  %3059 = vst.msk [vmem:[#allocation5 + $0x89] sm:$0x7f] %vm3053_vm6, %v10379_v33  ;;  %3060 = vst.msk [vmem:[#allocation5 + $0xa1] sm:$0x7f] %vm3053_vm6, %v10379_v33 }
 0x1bf   :  { %v1482_v28 = vld [vmem:[#allocation2 + $0x260] ss:$2 sm:$0xff]  ;;  %v1562_v56 = vld [vmem:[#allocation2 + $0x261] ss:$2 sm:$0xff]  ;;  %3061 = vst.msk [vmem:[#allocation5 + $0xb9] sm:$0x7f] %vm3053_vm6, %v10379_v33 }
 0x1c0   :  { %1762 = vst.msk [vmem:[#allocation3 + $0x120] sm:$0xff] %vm1325_vm2, %v1721_v47  ;;  %v1680_v51 = vld [vmem:[#allocation2 + $0x252] ss:$2 sm:$0xff]  ;;  %v1603_v49 = vmax.f32 %v1482_v28, %v1562_v56  ;;  %v1682_v35 = vld [vmem:[#allocation2 + $0x262] ss:$2 sm:$0xff]  ;;  %vm4311_vm6 = vcmask 1046534  }
 0x1c1   :  { %v1722_v37 = vmax.f32 %v1602_v26, %v1680_v51  ;;  %3696 = vst.msk [vmem:[#allocation7 + $0x7] sm:$0x1] %vm3695_vm10, %v10379_v33  ;;  %3697 = vst.msk [vmem:[#allocation7 + $0xf] sm:$0x1] %vm3695_vm10, %v10379_v33 }
 0x1c2   :  { %v1810_v48 = vld [vmem:[#allocation3 + $0x118] sm:$0xff]  ;;  %v1723_v18 = vmax.f32 %v1603_v49, %v1682_v35  ;;  %3698 = vst.msk [vmem:[#allocation7 + $0x17] sm:$0x1] %vm3695_vm10, %v10379_v33  ;;  %3699 = vst.msk [vmem:[#allocation7 + $0x1f] sm:$0x1] %vm3695_vm10, %v10379_v33 }
 0x1c3   :  { %1763 = vst.msk [vmem:[#allocation3 + $0x128] sm:$0xff] %vm1325_vm2, %v1722_v37  ;;  %6833 = vmatmul.mubr.msk.f32.gmra.mxu1 %vm1325_vm2, %v1810_v48 }
 0x1c4   :  { %1764 = vst.msk [vmem:[#allocation3 + $0x130] sm:$0xff] %vm1325_vm2, %v1723_v18 }
 0x1c5   :  { %3700 = vst.msk [vmem:[#allocation7 + $0x27] sm:$0x1] %vm3695_vm10, %v10379_v33  ;;  %3701 = vst.msk [vmem:[#allocation7 + $0x2f] sm:$0x1] %vm3695_vm10, %v10379_v33 }
 0x1c6   :  { %3702 = vst.msk [vmem:[#allocation7 + $0x37] sm:$0x1] %vm3695_vm10, %v10379_v33  ;;  %3703 = vst.msk [vmem:[#allocation7 + $0x3f] sm:$0x1] %vm3695_vm10, %v10379_v33 }
 0x1c7   :  { %v1811_v22 = vld [vmem:[#allocation3 + $0x120] sm:$0xff] }
 0x1c8   :  { %6835 = vmatprep.mubr.msk.f32.mxu1 %vm1325_vm2, %v1811_v22 }
 0x1ca   :  { %v1812_v8 = vld [vmem:[#allocation3 + $0x128] sm:$0xff] }
 0x1cb   :  { %6836 = vmatmul.mubr.msk.f32.gmra.mxu1 %vm1325_vm2, %v1812_v8  ;;  %v1813_v45 = vld [vmem:[#allocation3 + $0x130] sm:$0xff] }
 0x1cc   :  { %6838 = vmatprep.mubr.msk.f32.mxu1 %vm1325_vm2, %v1813_v45 }
 0x1cf   :  { %6839 = vmatmul.mubr.msk.f32.gmra.mxu1 %vm1325_vm2, %v1814_v40  ;;  %vm4303_vm2 = vcmask 1042434  }
 0x1d0   :  { %3230 = vmatprep.mubr.f32.mxu1 %v10379_v33 }
 0x1fb   :  { %v8467_v41 = vpop.f32.mrf.mxu1 }
 0x1fc   :  { %v2244_v24 = vrot.slane %v8467_v41, 1  ;;  %v2477_v4 = vrot.slane %v8467_v41, 2 }
 0x1fd   :  { %v8469_v20 = vpop.f32.mrf.mxu1 }
 0x1fe   :  { %v2243_v43 = vrot.slane %v8469_v20, 1  ;;  %v2476_v12 = vrot.slane %v8469_v20, 2 }
 0x200   :  { %v2478_v47 = vsel %vm2475_vm4, %v2476_v12, %v2477_v4  ;;  %v2245_v39 = vsel %vm2242_vm5, %v2243_v43, %v2244_v24 }
 0x201   :  { %2548 = vrot.lane.b32.xlu1 %v2478_v47, %s6990_s2  ;;  %2315 = vrot.lane.b32.xlu0 %v2245_v39, %s6991_s17  ;;  %v3093_v47 = vld [vmem:[%s10061_s5 + $0x38] sm:$0xff]  ;;  %v3092_v39 = vld [vmem:[%s10061_s5 + $0x30] sm:$0xff] }
 0x202   :  { %3190 = vmatprep.subr.mxu1 %v3093_v47 }
 0x203   :  { %v8479_v26 = vpop.f32.mrf.mxu1  ;;  %3191 = vmatpush1.msra.mxu1 %v3092_v39 }
 0x204   :  { %v2248_v56 = vrot.slane %v8479_v26, 1  ;;  %v2481_v45 = vrot.slane %v8479_v26, 2 }
 0x205   :  { %v8481_v28 = vpop.f32.mrf.mxu1 }
 0x206   :  { %v2246_v51 = vrot.slane %v8481_v28, 1  ;;  %v2479_v49 = vrot.slane %v8481_v28, 2 }
 0x208   :  { %v2249_v37 = vsel %vm2242_vm5, %v2246_v51, %v2248_v56  ;;  %v2247_v35 = vsel %vm2242_vm5, %v2244_v24, %v2246_v51  ;;  %v2480_v18 = vsel %vm2475_vm4, %v2477_v4, %v2479_v49  ;;  %v2482_v24 = vsel %vm2475_vm4, %v2479_v49, %v2481_v45 }
 0x209   :  { %2319 = vrot.lane.b32.xlu1 %v2249_v37, %s6991_s17  ;;  %2317 = vrot.lane.b32.xlu0 %v2247_v35, %s6991_s17  ;;  %v3091_v35 = vld [vmem:[%s10061_s5 + $0x28] sm:$0xff] }
 0x20a   :  { %3192 = vmatprep.subr.mxu1 %v3091_v35 }
 0x20b   :  { %v8490_v48 = vpop.f32.mrf.mxu1 }
 0x20c   :  { %v2252_v51 = vrot.slane %v8490_v48, 1  ;;  %v2485_v35 = vrot.slane %v8490_v48, 2 }
 0x20d   :  { %v8493_v22 = vpop.f32.mrf.mxu1  ;;  %2550 = vrot.lane.b32.xlu0 %v2480_v18, %s6990_s2 }
 0x20e   :  { %v2250_v8 = vrot.slane %v8493_v22, 1  ;;  %v2483_v40 = vrot.slane %v8493_v22, 2 }
 0x210   :  { %2323 = vrot.lane.b32.xlu1 %v2250_v8, %s6991_s17  ;;  %v2484_v4 = vsel %vm2475_vm4, %v2481_v45, %v2483_v40  ;;  %v2251_v37 = vsel %vm2242_vm5, %v2248_v56, %v2250_v8  ;;  %v3090_v45 = vld [vmem:[%s10061_s5 + $0x20] sm:$0xff]  ;;  %v3089_v56 = vld [vmem:[%s10061_s5 + $0x18] sm:$0xff] }
 0x211   :  { %2552 = vrot.lane.b32.xlu0 %v2482_v24, %s6990_s2  ;;  %3193 = vmatpush1.msra.mxu1 %v3090_v45 }
 0x212   :  { %v8502_v43 = vpop.f32.mrf.mxu1  ;;  %3194 = vmatprep.subr.mxu1 %v3089_v56 }
 0x213   :  { %v2488_v47 = vrot.slane %v8502_v43, 2 }
 0x214   :  { %2556 = vrot.lane.b32.xlu1 %v2483_v40, %s6990_s2  ;;  %v8506_v12 = vpop.f32.mrf.mxu1  ;;  %v2255_v40 = vrot.slane %v8502_v43, 1 }
 0x215   :  { %2554 = vrot.lane.b32.xlu0 %v2484_v4, %s6990_s2  ;;  %v2253_v49 = vrot.slane %v8506_v12, 1  ;;  %v2486_v24 = vrot.slane %v8506_v12, 2  ;;  %v3088_v4 = vld [vmem:[%s10061_s5 + $0x10] sm:$0xff] }
 0x216   :  { %3195 = vmatpush1.msra.mxu1 %v3088_v4 }
 0x217   :  { %v2254_v18 = vsel %vm2242_vm5, %v2252_v51, %v2253_v49  ;;  %v2256_v39 = vsel %vm2242_vm5, %v2253_v49, %v2255_v40  ;;  %v3087_v51 = vld [vmem:[%s10061_s5 + $0x8] sm:$0xff]  ;;  %v2489_v45 = vsel %vm2475_vm4, %v2486_v24, %v2488_v47  ;;  %v2487_v56 = vsel %vm2475_vm4, %v2485_v35, %v2486_v24 }
 0x218   :  { %2321 = vrot.lane.b32.xlu1 %v2251_v37, %s6991_s17  ;;  %v8532_v8 = vpop.f32.mrf.mxu1  ;;  %v3086_v37 = vld [vmem:[%s10061_s5] sm:$0xff]  ;;  %3196 = vmatprep.subr.mxu1 %v3087_v51 }
 0x219   :  { %2325 = vrot.lane.b32.xlu0 %v2254_v18, %s6991_s17  ;;  %3197 = vmatpush1.msra.mxu1 %v3086_v37  ;;  %v2259_v53 = vrot.slane %v8532_v8, 1  ;;  %v2492_v37 = vrot.slane %v8532_v8, 2 }
 0x21a   :  { %v8550_v49 = vpop.f32.mrf.mxu1 }
 0x21b   :  { %v2257_v18 = vrot.slane %v8550_v49, 1  ;;  %v2490_v4 = vrot.slane %v8550_v49, 2 }
 0x21c   :  { %2327 = vrot.lane.b32.xlu1 %v2256_v39, %s6991_s17 }
 0x21d   :  { %2560 = vrot.lane.b32.xlu0 %v2489_v45, %s6990_s2  ;;  %v2258_v39 = vsel %vm2242_vm5, %v2255_v40, %v2257_v18  ;;  %v2491_v51 = vsel %vm2475_vm4, %v2488_v47, %v2490_v4  ;;  %v2493_v35 = vsel %vm2475_vm4, %v2490_v4, %v2492_v37  ;;  %v2260_v47 = vsel %vm2242_vm5, %v2257_v18, %v2259_v53 }
 0x220   :  { %2558 = vrot.lane.b32.xlu1 %v2487_v56, %s6990_s2 }
 0x221   :  { %2329 = vrot.lane.b32.xlu0 %v2258_v39, %s6991_s17 }
 0x224   :  { %v8566_v55 = vpop.f32.mrf.mxu1  ;;  %2333 = vrot.lane.b32.xlu1 %v2259_v53, %s6991_s17 }
 0x225   :  { %2562 = vrot.lane.b32.xlu0 %v2491_v51, %s6990_s2  ;;  %v2262_v45 = vrot.slane %v8566_v55, 1  ;;  %v2495_v51 = vrot.slane %v8566_v55, 2 }
 0x226   :  { %v8572_v24 = vpop.f32.mrf.mxu1 }
 0x227   :  { %v2261_v40 = vrot.slane %v8572_v24, 1  ;;  %v2494_v56 = vrot.slane %v8572_v24, 2 }
 0x228   :  { %2566 = vrot.lane.b32.xlu1 %v2492_v37, %s6990_s2 }
 0x229   :  { %2564 = vrot.lane.b32.xlu0 %v2493_v35, %s6990_s2  ;;  %v2263_v0 = vsel %vm2242_vm5, %v2261_v40, %v2262_v45  ;;  %v2496_v35 = vsel %vm2475_vm4, %v2494_v56, %v2495_v51 }
 0x22b   :  { %v8581_v39 = vpop.f32.mrf.mxu1 }
 0x22c   :  { %2331 = vrot.lane.b32.xlu1 %v2260_v47, %s6991_s17  ;;  %v2266_v4 = vrot.slane %v8581_v39, 1 }
 0x22d   :  { %2335 = vrot.lane.b32.xlu0 %v2263_v0, %s6991_s17  ;;  %v8587_v16 = vpop.f32.mrf.mxu1 }
 0x22e   :  { %v2264_v37 = vrot.slane %v8587_v16, 1  ;;  %v2497_v53 = vrot.slane %v8587_v16, 2 }
 0x230   :  { %2568 = vrot.lane.b32.xlu1 %v2496_v35, %s6990_s2  ;;  %v2267_v18 = vsel %vm2242_vm5, %v2264_v37, %v2266_v4  ;;  %v2265_v0 = vsel %vm2242_vm5, %v2262_v45, %v2264_v37  ;;  %v2498_v40 = vsel %vm2475_vm4, %v2495_v51, %v2497_v53  ;;  %v2499_v35 = vrot.slane %v8581_v39, 2 }
 0x231   :  { %2339 = vrot.lane.b32.xlu0 %v2267_v18, %s6991_s17 }
 0x232   :  { %v2500_v59 = vsel %vm2475_vm4, %v2497_v53, %v2499_v35 }
 0x233   :  { %v8596_v47 = vpop.f32.mrf.mxu1 }
 0x234   :  { %2337 = vrot.lane.b32.xlu1 %v2265_v0, %s6991_s17  ;;  %v2270_v0 = vrot.slane %v8596_v47, 1 }
 0x235   :  { %v8601_v57 = vpop.f32.mrf.mxu1  ;;  %2570 = vrot.lane.b32.xlu0 %v2498_v40, %s6990_s2 }
 0x236   :  { %v2268_v56 = vrot.slane %v8601_v57, 1  ;;  %v2501_v18 = vrot.slane %v8601_v57, 2 }
 0x238   :  { %2343 = vrot.lane.b32.xlu1 %v2268_v56, %s6991_s17  ;;  %v2502_v51 = vsel %vm2475_vm4, %v2499_v35, %v2501_v18  ;;  %v2269_v30 = vsel %vm2242_vm5, %v2266_v4, %v2268_v56 }
 0x239   :  { %2572 = vrot.lane.b32.xlu0 %v2500_v59, %s6990_s2 }
 0x23a   :  { %v8610_v45 = vpop.f32.mrf.mxu1 }
 0x23b   :  { %v2273_v53 = vrot.slane %v8610_v45, 1 }
 0x23c   :  { %2576 = vrot.lane.b32.xlu1 %v2501_v18, %s6990_s2  ;;  %v8614_v37 = vpop.f32.mrf.mxu1  ;;  %v2506_v18 = vrot.slane %v8610_v45, 2 }
 0x23d   :  { %2574 = vrot.lane.b32.xlu0 %v2502_v51, %s6990_s2  ;;  %v2271_v40 = vrot.slane %v8614_v37, 1  ;;  %v2504_v32 = vrot.slane %v8614_v37, 2 }
 0x23f   :  { %v2272_v59 = vsel %vm2242_vm5, %v2270_v0, %v2271_v40  ;;  %v2274_v51 = vsel %vm2242_vm5, %v2271_v40, %v2273_v53  ;;  %v2507_v56 = vsel %vm2475_vm4, %v2504_v32, %v2506_v18 }
 0x240   :  { %2341 = vrot.lane.b32.xlu1 %v2269_v30, %s6991_s17  ;;  %v8625_v35 = vpop.f32.mrf.mxu1  ;;  %v2503_v30 = vrot.slane %v8596_v47, 2 }
 0x241   :  { %2345 = vrot.lane.b32.xlu0 %v2272_v59, %s6991_s17  ;;  %v2277_v63 = vrot.slane %v8625_v35, 1 }
 0x242   :  { %v8629_v61 = vpop.f32.mrf.mxu1  ;;  %v2505_v0 = vsel %vm2475_vm4, %v2503_v30, %v2504_v32 }
 0x243   :  { %v2275_v4 = vrot.slane %v8629_v61, 1  ;;  %v2508_v59 = vrot.slane %v8629_v61, 2 }
 0x244   :  { %2347 = vrot.lane.b32.xlu1 %v2274_v51, %s6991_s17 }
 0x245   :  { %2580 = vrot.lane.b32.xlu0 %v2507_v56, %s6990_s2  ;;  %v2276_v40 = vsel %vm2242_vm5, %v2273_v53, %v2275_v4  ;;  %v2509_v34 = vsel %vm2475_vm4, %v2506_v18, %v2508_v59  ;;  %v2510_v56 = vrot.slane %v8625_v35, 2  ;;  %v2278_v18 = vsel %vm2242_vm5, %v2275_v4, %v2277_v63 }
 0x247   :  { %v2511_v30 = vsel %vm2475_vm4, %v2508_v59, %v2510_v56 }
 0x248   :  { %2578 = vrot.lane.b32.xlu1 %v2505_v0, %s6990_s2 }
 0x249   :  { %2349 = vrot.lane.b32.xlu0 %v2276_v40, %s6991_s17 }
 0x24c   :  { %v8642_v51 = vpop.f32.mrf.mxu1  ;;  %2353 = vrot.lane.b32.xlu1 %v2277_v63, %s6991_s17 }
 0x24d   :  { %2582 = vrot.lane.b32.xlu0 %v2509_v34, %s6990_s2  ;;  %v2280_v0 = vrot.slane %v8642_v51, 1  ;;  %v2513_v34 = vrot.slane %v8642_v51, 2 }
 0x24e   :  { %v8648_v32 = vpop.f32.mrf.mxu1 }
 0x24f   :  { %v2279_v53 = vrot.slane %v8648_v32, 1  ;;  %v2512_v40 = vrot.slane %v8648_v32, 2 }
 0x250   :  { %2586 = vrot.lane.b32.xlu1 %v2510_v56, %s6990_s2 }
 0x251   :  { %2584 = vrot.lane.b32.xlu0 %v2511_v30, %s6990_s2  ;;  %v2281_v1 = vsel %vm2242_vm5, %v2279_v53, %v2280_v0  ;;  %v2514_v30 = vsel %vm2475_vm4, %v2512_v40, %v2513_v34 }
 0x253   :  { %v8657_v38 = vpop.f32.mrf.mxu1 }
 0x254   :  { %2351 = vrot.lane.b32.xlu1 %v2278_v18, %s6991_s17  ;;  %v2284_v59 = vrot.slane %v8657_v38, 1 }
 0x255   :  { %2355 = vrot.lane.b32.xlu0 %v2281_v1, %s6991_s17  ;;  %v8663_v3 = vpop.f32.mrf.mxu1 }
 0x256   :  { %v2282_v56 = vrot.slane %v8663_v3, 1  ;;  %v2515_v63 = vrot.slane %v8663_v3, 2 }
 0x258   :  { %2588 = vrot.lane.b32.xlu1 %v2514_v30, %s6990_s2  ;;  %v2285_v4 = vsel %vm2242_vm5, %v2282_v56, %v2284_v59  ;;  %v2283_v1 = vsel %vm2242_vm5, %v2280_v0, %v2282_v56  ;;  %v2516_v53 = vsel %vm2475_vm4, %v2513_v34, %v2515_v63  ;;  %v2517_v30 = vrot.slane %v8657_v38, 2 }
 0x259   :  { %2359 = vrot.lane.b32.xlu0 %v2285_v4, %s6991_s17 }
 0x25a   :  { %v2518_v46 = vsel %vm2475_vm4, %v2515_v63, %v2517_v30 }
 0x25b   :  { %v8672_v18 = vpop.f32.mrf.mxu1 }
 0x25c   :  { %2357 = vrot.lane.b32.xlu1 %v2283_v1, %s6991_s17  ;;  %v2288_v1 = vrot.slane %v8672_v18, 1 }
 0x25d   :  { %v8677_v42 = vpop.f32.mrf.mxu1  ;;  %2590 = vrot.lane.b32.xlu0 %v2516_v53, %s6990_s2 }
 0x25e   :  { %v2286_v40 = vrot.slane %v8677_v42, 1  ;;  %v2519_v4 = vrot.slane %v8677_v42, 2 }
 0x260   :  { %2363 = vrot.lane.b32.xlu1 %v2286_v40, %s6991_s17  ;;  %v2520_v34 = vsel %vm2475_vm4, %v2517_v30, %v2519_v4  ;;  %v2287_v5 = vsel %vm2242_vm5, %v2284_v59, %v2286_v40 }
 0x261   :  { %2592 = vrot.lane.b32.xlu0 %v2518_v46, %s6990_s2 }
 0x262   :  { %v8686_v0 = vpop.f32.mrf.mxu1 }
 0x263   :  { %v2291_v63 = vrot.slane %v8686_v0, 1 }
 0x264   :  { %2596 = vrot.lane.b32.xlu1 %v2519_v4, %s6990_s2  ;;  %v8690_v56 = vpop.f32.mrf.mxu1  ;;  %v2524_v4 = vrot.slane %v8686_v0, 2 }
 0x265   :  { %2594 = vrot.lane.b32.xlu0 %v2520_v34, %s6990_s2  ;;  %v2289_v53 = vrot.slane %v8690_v56, 1  ;;  %v2522_v7 = vrot.slane %v8690_v56, 2 }
 0x267   :  { %v2290_v46 = vsel %vm2242_vm5, %v2288_v1, %v2289_v53  ;;  %v2292_v34 = vsel %vm2242_vm5, %v2289_v53, %v2291_v63  ;;  %v2525_v40 = vsel %vm2475_vm4, %v2522_v7, %v2524_v4 }
 0x268   :  { %2361 = vrot.lane.b32.xlu1 %v2287_v5, %s6991_s17  ;;  %v8701_v30 = vpop.f32.mrf.mxu1  ;;  %v2521_v5 = vrot.slane %v8672_v18, 2 }
 0x269   :  { %2365 = vrot.lane.b32.xlu0 %v2290_v46, %s6991_s17  ;;  %v2295_v54 = vrot.slane %v8701_v30, 1 }
 0x26a   :  { %v8705_v50 = vpop.f32.mrf.mxu1  ;;  %v2523_v1 = vsel %vm2475_vm4, %v2521_v5, %v2522_v7  ;;  %v8725_v7 = vld [vmem:[%s10060_s4] ss:$0 sm:$0xff] }
 0x26b   :  { %v2293_v59 = vrot.slane %v8705_v50, 1  ;;  %v2526_v46 = vrot.slane %v8705_v50, 2 }
 0x26c   :  { %2367 = vrot.lane.b32.xlu1 %v2292_v34, %s6991_s17 }
 0x26d   :  { %2600 = vrot.lane.b32.xlu0 %v2525_v40, %s6990_s2  ;;  %v2294_v53 = vsel %vm2242_vm5, %v2291_v63, %v2293_v59  ;;  %v2527_v5 = vsel %vm2475_vm4, %v2524_v4, %v2526_v46  ;;  %v2528_v63 = vrot.slane %v8701_v30, 2 }
 0x26f   :  { %v2529_v58 = vsel %vm2475_vm4, %v2526_v46, %v2528_v63 }
 0x270   :  { %2598 = vrot.lane.b32.xlu1 %v2523_v1, %s6990_s2 }
 0x271   :  { %2369 = vrot.lane.b32.xlu0 %v2294_v53, %s6991_s17 }
 0x273   :  { %v2316_v34 = vpop.permute.xlu0 %2315  ;;  %v2549_v40 = vpop.permute.xlu1 %2548 }
 0x274   :  { %v2435_v9 = vadd.f32 %v2316_v34, %v8469_v20  ;;  %v8719_v11 = vpop.f32.mrf.mxu1  ;;  %2373 = vrot.lane.b32.xlu1 %v2295_v54, %s6991_s17 }
 0x275   :  { %2602 = vrot.lane.b32.xlu0 %v2527_v5, %s6990_s2  ;;  %v2298_v4 = vrot.slane %v8719_v11, 1 }
 0x276   :  { %v2668_v1 = vadd.f32 %v2549_v40, %v2435_v9  ;;  %v8730_v53 = vpop.f32.mrf.mxu1  ;;  %v2296_v40 = vsel %vm2242_vm5, %v2293_v59, %v2295_v54 }
 0x277   :  { %v2297_v34 = vrot.slane %v8730_v53, 1  ;;  %v2530_v9 = vrot.slane %v8730_v53, 2 }
 0x278   :  { %v2715_v20 = vadd.f32 %v8725_v7, %v2668_v1  ;;  %2606 = vrot.lane.b32.xlu1 %v2528_v63, %s6990_s2  ;;  %v2531_v1 = vrot.slane %v8719_v11, 2 }
 0x279   :  { %2604 = vrot.lane.b32.xlu0 %v2529_v58, %s6990_s2  ;;  %v2299_v46 = vsel %vm2242_vm5, %v2297_v34, %v2298_v4 }
 0x27a   :  { %v2755_v62 = vmax.f32 %v2715_v20, 0.0  ;;  %v2532_v54 = vsel %vm2475_vm4, %v2530_v9, %v2531_v1 }
 0x27b   :  { %v2318_v5 = vpop.permute.xlu0 %2317  ;;  %v8743_v13 = vpop.f32.mrf.mxu1 }
 0x27c   :  { %2796 = vst.msk [vmem:[#allocation4] sm:$0xff] %vm2795_vm7, %v2755_v62  ;;  %2371 = vrot.lane.b32.xlu1 %v2296_v40, %s6991_s17  ;;  %v2320_v63 = vpop.permute.xlu1 %2319  ;;  %v2436_v58 = vadd.f32 %v8467_v41, %v2318_v5  ;;  %v2302_v62 = vrot.slane %v8743_v13, 1 }
 0x27d   :  { %2375 = vrot.lane.b32.xlu0 %v2299_v46, %s6991_s17  ;;  %v8748_v20 = vpop.f32.mrf.mxu1  ;;  %v2437_v46 = vadd.f32 %v2320_v63, %v8481_v28 }
 0x27e   :  { %v2300_v59 = vrot.slane %v8748_v20, 1  ;;  %v2533_v36 = vrot.slane %v8748_v20, 2 }
 0x27f   :  { %v2551_v40 = vpop.permute.xlu0 %2550 }
 0x280   :  { %2608 = vrot.lane.b32.xlu1 %v2532_v54, %s6990_s2  ;;  %v2669_v15 = vadd.f32 %v2551_v40, %v2436_v58  ;;  %v2303_v34 = vsel %vm2242_vm5, %v2300_v59, %v2302_v62  ;;  %v2301_v5 = vsel %vm2242_vm5, %v2298_v4, %v2300_v59  ;;  %v2534_v44 = vsel %vm2475_vm4, %v2531_v1, %v2533_v36 }
 0x281   :  { %2379 = vrot.lane.b32.xlu0 %v2303_v34, %s6991_s17  ;;  %v2535_v59 = vrot.slane %v8743_v13, 2 }
 0x282   :  { %v2324_v2 = vpop.permute.xlu1 %2323  ;;  %v2716_v41 = vadd.f32 %v8725_v7, %v2669_v15 }
 0x283   :  { %v8759_v9 = vpop.f32.mrf.mxu1  ;;  %v2553_v17 = vpop.permute.xlu0 %2552  ;;  %v2439_v58 = vadd.f32 %v2324_v2, %v8493_v22  ;;  %v2536_v1 = vsel %vm2475_vm4, %v2533_v36, %v2535_v59 }
 0x284   :  { %2377 = vrot.lane.b32.xlu1 %v2301_v5, %s6991_s17  ;;  %v2756_v54 = vmax.f32 %v2716_v41, 0.0  ;;  %v2670_v40 = vadd.f32 %v2553_v17, %v2437_v46 }
 0x285   :  { %v8764_v19 = vpop.f32.mrf.mxu1  ;;  %2610 = vrot.lane.b32.xlu0 %v2534_v44, %s6990_s2 }
 0x286   :  { %v2304_v28 = vrot.slane %v8764_v19, 1  ;;  %v2557_v15 = vpop.permute.xlu1 %2556  ;;  %2797 = vst.msk [vmem:[#allocation4 + $0x8] sm:$0xff] %vm2795_vm7, %v2756_v54  ;;  %v2717_v63 = vadd.f32 %v8725_v7, %v2670_v40  ;;  %v2537_v22 = vrot.slane %v8764_v19, 2 }
 0x287   :  { %v2672_v4 = vadd.f32 %v2557_v15, %v2439_v58  ;;  %v2555_v34 = vpop.permute.xlu0 %2554 }
 0x288   :  { %2383 = vrot.lane.b32.xlu1 %v2304_v28, %s6991_s17  ;;  %v2757_v2 = vmax.f32 %v2717_v63, 0.0  ;;  %v2306_v63 = vrot.slane %v8759_v9, 1 }
 0x289   :  { %v2719_v17 = vadd.f32 %v8725_v7, %v2672_v4  ;;  %2612 = vrot.lane.b32.xlu0 %v2536_v1, %s6990_s2  ;;  %v2538_v4 = vsel %vm2475_vm4, %v2535_v59, %v2537_v22 }
 0x28a   :  { %v2322_v46 = vpop.permute.xlu1 %2321  ;;  %2798 = vst.msk [vmem:[#allocation4 + $0x10] sm:$0xff] %vm2795_vm7, %v2757_v2 }
 0x28b   :  { %v2759_v41 = vmax.f32 %v2719_v17, 0.0  ;;  %v2438_v44 = vadd.f32 %v8479_v26, %v2322_v46  ;;  %v8779_v5 = vpop.f32.mrf.mxu1  ;;  %v2326_v54 = vpop.permute.xlu0 %2325 }
 0x28c   :  { %2616 = vrot.lane.b32.xlu1 %v2537_v22, %s6990_s2  ;;  %v2440_v21 = vadd.f32 %v8490_v48, %v2326_v54 }
 0x28d   :  { %2801 = vst.msk [vmem:[#allocation4 + $0x20] sm:$0x7] %vm2800_vm8, %v2759_v41  ;;  %v2671_v58 = vadd.f32 %v2555_v34, %v2438_v44  ;;  %v8783_v40 = vpop.f32.mrf.mxu1  ;;  %v2837_v15 = vld [vmem:[#allocation4] ss:$2 sm:$0xff]  ;;  %v2885_v36 = vld [vmem:[#allocation4 + $0x1] ss:$2 sm:$0xff]  ;;  %2614 = vrot.lane.b32.xlu0 %v2538_v4, %s6990_s2  ;;  %v2305_v34 = vsel %vm2242_vm5, %v2302_v62, %v2304_v28 }
 0x28e   :  { %v2307_v2 = vrot.slane %v8783_v40, 1  ;;  %v2328_v17 = vpop.permute.xlu1 %2327  ;;  %v2309_v41 = vrot.slane %v8779_v5, 1  ;;  %v2932_v22 = vmax.f32 %v2837_v15, %v2885_v36  ;;  %v2542_v4 = vrot.slane %v8779_v5, 2 }
 0x28f   :  { %v2718_v26 = vadd.f32 %v8725_v7, %v2671_v58  ;;  %v2441_v1 = vadd.f32 %v2328_v17, %v8506_v12  ;;  %v8791_v46 = vpop.f32.mrf.mxu1  ;;  %v2561_v44 = vpop.permute.xlu0 %2560  ;;  %v2540_v12 = vrot.slane %v8783_v40, 2 }
 0x290   :  { %2381 = vrot.lane.b32.xlu1 %v2305_v34, %s6991_s17  ;;  %v2308_v59 = vsel %vm2242_vm5, %v2306_v63, %v2307_v2  ;;  %v2310_v36 = vsel %vm2242_vm5, %v2307_v2, %v2309_v41 }
 0x291   :  { %v2758_v6 = vmax.f32 %v2718_v26, 0.0  ;;  %v2674_v58 = vadd.f32 %v2561_v44, %v2441_v1  ;;  %v2957_v23 = vld [vmem:[#allocation4 + $0x2] ss:$2 sm:$0xff]  ;;  %2385 = vrot.lane.b32.xlu0 %v2308_v59, %s6991_s17  ;;  %v8803_v28 = vpop.f32.mrf.mxu1 }
 0x292   :  { %v2559_v17 = vpop.permute.xlu1 %2558  ;;  %v3004_v52 = vmax.f32 %v2932_v22, %v2957_v23  ;;  %v2539_v23 = vrot.slane %v8759_v9, 2  ;;  %v2311_v44 = vrot.slane %v8803_v28, 1 }
 0x293   :  { %2799 = vst.msk [vmem:[#allocation4 + $0x18] sm:$0xff] %vm2795_vm7, %v2758_v6  ;;  %v2721_v62 = vadd.f32 %v8725_v7, %v2674_v58  ;;  %v2673_v15 = vadd.f32 %v2559_v17, %v2440_v21  ;;  %v2330_v63 = vpop.permute.xlu0 %2329  ;;  %v2543_v21 = vsel %vm2475_vm4, %v2540_v12, %v2542_v4 }
 0x294   :  { %v2841_v48 = vld [vmem:[#allocation4 + $0x20] ss:$2 sm:$0x1]  ;;  %v2889_v54 = vld [vmem:[#allocation4 + $0x21] ss:$2 sm:$0x1]  ;;  %2387 = vrot.lane.b32.xlu1 %v2310_v36, %s6991_s17  ;;  %v2442_v22 = vadd.f32 %v8502_v43, %v2330_v63  ;;  %v2312_v63 = vsel %vm2242_vm5, %v2309_v41, %v2311_v44 }
 0x295   :  { %3028 = vst.msk [vmem:[#allocation5] sm:$0xff] %vm2795_vm7, %v3004_v52  ;;  %v2934_v26 = vmax.f32 %v2841_v48, %v2889_v54  ;;  %v2761_v6 = vmax.f32 %v2721_v62, 0.0  ;;  %v2720_v1 = vadd.f32 %v8725_v7, %v2673_v15  ;;  %v2961_v34 = vld [vmem:[#allocation4 + $0x22] ss:$2 sm:$0x1]  ;;  %2620 = vrot.lane.b32.xlu0 %v2543_v21, %s6990_s2  ;;  %v2541_v52 = vsel %vm2475_vm4, %v2539_v23, %v2540_v12 }
 0x296   :  { %v2334_v59 = vpop.permute.xlu1 %2333  ;;  %v2313_v54 = vrot.slane %v8791_v46, 1  ;;  %v2544_v43 = vrot.slane %v8803_v28, 2  ;;  %v2546_v41 = vrot.slane %v8791_v46, 2 }
 0x297   :  { %2803 = vst.msk [vmem:[#allocation4 + $0x30] sm:$0xff] %vm2795_vm7, %v2761_v6  ;;  %v2760_v2 = vmax.f32 %v2720_v1, 0.0  ;;  %v3006_v58 = vmax.f32 %v2934_v26, %v2961_v34  ;;  %v2563_v17 = vpop.permute.xlu0 %2562  ;;  %v2444_v62 = vadd.f32 %v8532_v8, %v2334_v59 }
 0x298   :  { %2618 = vrot.lane.b32.xlu1 %v2541_v52, %s6990_s2  ;;  %v2675_v15 = vadd.f32 %v2563_v17, %v2442_v22  ;;  %v2545_v22 = vsel %vm2475_vm4, %v2542_v4, %v2544_v43 }
 0x299   :  { %2802 = vst.msk [vmem:[#allocation4 + $0x28] sm:$0xff] %vm2795_vm7, %v2760_v2  ;;  %2389 = vrot.lane.b32.xlu0 %v2312_v63, %s6991_s17 }
 0x29a   :  { %3031 = vst.msk [vmem:[#allocation5 + $0x10] sm:$0x1] %vm3030_vm9, %v3006_v58  ;;  %v2839_v36 = vld [vmem:[#allocation4 + $0x10] ss:$2 sm:$0xff]  ;;  %v2887_v48 = vld [vmem:[#allocation4 + $0x11] ss:$2 sm:$0xff]  ;;  %v2567_v12 = vpop.permute.xlu1 %2566  ;;  %v2722_v23 = vadd.f32 %v8725_v7, %v2675_v15 }
 0x29b   :  { %v2677_v26 = vadd.f32 %v2567_v12, %v2444_v62  ;;  %v2933_v6 = vmax.f32 %v2839_v36, %v2887_v48  ;;  %v2565_v1 = vpop.permute.xlu0 %2564  ;;  %v2959_v34 = vld [vmem:[#allocation4 + $0x12] ss:$2 sm:$0xff]  ;;  %v2314_v62 = vsel %vm2242_vm5, %v2311_v44, %v2313_v54  ;;  %v2547_v12 = vsel %vm2475_vm4, %v2544_v43, %v2546_v41 }
 0x29c   :  { %v3062_v8 = vld [vmem:[#allocation5] sm:$0xff]  ;;  %2393 = vrot.lane.b32.xlu1 %v2313_v54, %s6991_s17  ;;  %v2762_v21 = vmax.f32 %v2722_v23, 0.0 }
 0x29d   :  { %v2724_v59 = vadd.f32 %v8725_v7, %v2677_v26  ;;  %6275 = vmatmul.mubr.msk.f32.vlgmr.msra.gmra.mxu1 %vm2795_vm7, %v3062_v8  ;;  %v3005_v2 = vmax.f32 %v2933_v6, %v2959_v34  ;;  %2622 = vrot.lane.b32.xlu0 %v2545_v22, %s6990_s2 }
 0x29e   :  { %v2332_v52 = vpop.permute.xlu1 %2331  ;;  %3236 = vmatprep.mubr.f32.mxu1 %v10379_v33  ;;  %2804 = vst.msk [vmem:[#allocation4 + $0x38] sm:$0xff] %vm2795_vm7, %v2762_v21 }
 0x29f   :  { %v2764_v58 = vmax.f32 %v2724_v59, 0.0  ;;  %v2443_v17 = vadd.f32 %v2332_v52, %v8550_v49  ;;  %3029 = vst.msk [vmem:[#allocation5 + $0x8] sm:$0xff] %vm2795_vm7, %v3005_v2  ;;  %v2336_v15 = vpop.permute.xlu0 %2335 }
 0x2a0   :  { %2391 = vrot.lane.b32.xlu1 %v2314_v62, %s6991_s17  ;;  %v2445_v36 = vadd.f32 %v2336_v15, %v8572_v24  ;;  %v2843_v48 = vld [vmem:[#allocation4 + $0x28] ss:$2 sm:$0xff]  ;;  %v2891_v63 = vld [vmem:[#allocation4 + $0x29] ss:$2 sm:$0xff] }
 0x2a1   :  { %2806 = vst.msk [vmem:[#allocation4 + $0x48] sm:$0x7] %vm2800_vm8, %v2764_v58  ;;  %v2676_v4 = vadd.f32 %v2565_v1, %v2443_v17  ;;  %2624 = vrot.lane.b32.xlu0 %v2547_v12, %s6990_s2  ;;  %v2935_v54 = vmax.f32 %v2843_v48, %v2891_v63  ;;  %v3064_v15 = vld [vmem:[#allocation5 + $0x10] sm:$0xff] }
 0x2a2   :  { %v2569_v23 = vpop.permute.xlu1 %2568 }
 0x2a3   :  { %v2723_v26 = vadd.f32 %v8725_v7, %v2676_v4  ;;  %v2678_v49 = vadd.f32 %v2569_v23, %v2445_v36  ;;  %v2340_v44 = vpop.permute.xlu0 %2339 }
 0x2a4   :  { %2626 = vrot.lane.b32.xlu1 %v2546_v41, %s6990_s2  ;;  %v2447_v4 = vadd.f32 %v2340_v44, %v8587_v16 }
 0x2a5   :  { %v2763_v6 = vmax.f32 %v2723_v26, 0.0  ;;  %v2725_v8 = vadd.f32 %v8725_v7, %v2678_v49  ;;  %v2963_v1 = vld [vmem:[#allocation4 + $0x2a] ss:$2 sm:$0xff] }
 0x2a6   :  { %v2338_v34 = vpop.permute.xlu1 %2337  ;;  %v3063_v24 = vld [vmem:[#allocation5 + $0x8] sm:$0xff]  ;;  %v3007_v59 = vmax.f32 %v2935_v54, %v2963_v1 }
 0x2a7   :  { %2805 = vst.msk [vmem:[#allocation4 + $0x40] sm:$0xff] %vm2795_vm7, %v2763_v6  ;;  %v2765_v21 = vmax.f32 %v2725_v8, 0.0  ;;  %v2446_v43 = vadd.f32 %v8566_v55, %v2338_v34  ;;  %6276 = vmatmul.mubr.msk.f32.gmra.mxu1 %vm2795_vm7, %v3063_v24  ;;  %v2571_v52 = vpop.permute.xlu0 %2570 }
 0x2a8   :  { %v2847_v2 = vld [vmem:[#allocation4 + $0x48] ss:$2 sm:$0x1]  ;;  %v2895_v22 = vld [vmem:[#allocation4 + $0x49] ss:$2 sm:$0x1]  ;;  %3242 = vmatprep.mubr.f32.mxu1 %v10379_v33 }
 0x2a9   :  { %v2937_v41 = vmax.f32 %v2847_v2, %v2895_v22  ;;  %2807 = vst.msk [vmem:[#allocation4 + $0x50] sm:$0xff] %vm2795_vm7, %v2765_v21  ;;  %v2679_v58 = vadd.f32 %v2571_v52, %v2446_v43  ;;  %3032 = vst.msk [vmem:[#allocation5 + $0x18] sm:$0xff] %vm2795_vm7, %v3007_v59  ;;  %v2967_v17 = vld [vmem:[#allocation4 + $0x4a] ss:$2 sm:$0x1] }
 0x2aa   :  { %v2344_v62 = vpop.permute.xlu1 %2343 }
 0x2ab   :  { %v2726_v55 = vadd.f32 %v8725_v7, %v2679_v58  ;;  %6277 = vmatmul.mubr.msk.f32.gmra.mxu1 %vm2795_vm7, %v3064_v15  ;;  %v3009_v36 = vmax.f32 %v2937_v41, %v2967_v17  ;;  %v2573_v48 = vpop.permute.xlu0 %2572  ;;  %v2449_v12 = vadd.f32 %v2344_v62, %v8601_v57 }
 0x2ac   :  { %3247 = vmatprep.mubr.f32.mxu1 %v10379_v33  ;;  %v2680_v23 = vadd.f32 %v2573_v48, %v2447_v4 }
 0x2ad   :  { %v2766_v63 = vmax.f32 %v2726_v55, 0.0  ;;  %3034 = vst.msk [vmem:[#allocation5 + $0x28] sm:$0x1] %vm3030_vm9, %v3009_v36 }
 0x2ae   :  { %v2845_v26 = vld [vmem:[#allocation4 + $0x38] ss:$2 sm:$0xff]  ;;  %v2893_v49 = vld [vmem:[#allocation4 + $0x39] ss:$2 sm:$0xff]  ;;  %v2577_v54 = vpop.permute.xlu1 %2576  ;;  %v2727_v16 = vadd.f32 %v8725_v7, %v2680_v23 }
 0x2af   :  { %2808 = vst.msk [vmem:[#allocation4 + $0x58] sm:$0xff] %vm2795_vm7, %v2766_v63  ;;  %v2682_v44 = vadd.f32 %v2577_v54, %v2449_v12  ;;  %v2936_v6 = vmax.f32 %v2845_v26, %v2893_v49  ;;  %v2575_v8 = vpop.permute.xlu0 %2574  ;;  %v2965_v34 = vld [vmem:[#allocation4 + $0x3a] ss:$2 sm:$0xff] }
 0x2b0   :  { %v3065_v1 = vld [vmem:[#allocation5 + $0x18] sm:$0xff]  ;;  %v2767_v24 = vmax.f32 %v2727_v16, 0.0 }
 0x2b1   :  { %v2729_v21 = vadd.f32 %v8725_v7, %v2682_v44  ;;  %6278 = vmatmul.mubr.msk.f32.gmra.mxu1 %vm2795_vm7, %v3065_v1  ;;  %v3008_v57 = vmax.f32 %v2936_v6, %v2965_v34 }
 0x2b2   :  { %v2342_v43 = vpop.permute.xlu1 %2341  ;;  %3253 = vmatprep.mubr.f32.mxu1 %v10379_v33  ;;  %2809 = vst.msk [vmem:[#allocation4 + $0x60] sm:$0xff] %vm2795_vm7, %v2767_v24 }
 0x2b3   :  { %v2769_v59 = vmax.f32 %v2729_v21, 0.0  ;;  %v2448_v2 = vadd.f32 %v8581_v39, %v2342_v43  ;;  %3033 = vst.msk [vmem:[#allocation5 + $0x20] sm:$0xff] %vm2795_vm7, %v3008_v57  ;;  %v2346_v22 = vpop.permute.xlu0 %2345 }
 0x2b4   :  { %v2450_v48 = vadd.f32 %v8596_v47, %v2346_v22  ;;  %v3067_v24 = vld [vmem:[#allocation5 + $0x28] sm:$0xff] }
 0x2b5   :  { %2811 = vst.msk [vmem:[#allocation4 + $0x70] sm:$0x7] %vm2800_vm8, %v2769_v59  ;;  %v2681_v52 = vadd.f32 %v2575_v8, %v2448_v2 }
 0x2b6   :  { %v2849_v41 = vld [vmem:[#allocation4 + $0x50] ss:$2 sm:$0xff]  ;;  %v2897_v58 = vld [vmem:[#allocation4 + $0x51] ss:$2 sm:$0xff]  ;;  %v2348_v17 = vpop.permute.xlu1 %2347 }
 0x2b7   :  { %v2938_v62 = vmax.f32 %v2849_v41, %v2897_v58  ;;  %v2728_v15 = vadd.f32 %v8725_v7, %v2681_v52  ;;  %v2451_v4 = vadd.f32 %v2348_v17, %v8614_v37  ;;  %v2581_v55 = vpop.permute.xlu0 %2580 }
 0x2b9   :  { %v2768_v36 = vmax.f32 %v2728_v15, 0.0  ;;  %v2684_v63 = vadd.f32 %v2581_v55, %v2451_v4  ;;  %v2969_v39 = vld [vmem:[#allocation4 + $0x52] ss:$2 sm:$0xff] }
 0x2ba   :  { %v2579_v12 = vpop.permute.xlu1 %2578  ;;  %v3066_v23 = vld [vmem:[#allocation5 + $0x20] sm:$0xff]  ;;  %v3010_v54 = vmax.f32 %v2938_v62, %v2969_v39 }
 0x2bb   :  { %2810 = vst.msk [vmem:[#allocation4 + $0x68] sm:$0xff] %vm2795_vm7, %v2768_v36  ;;  %v2731_v26 = vadd.f32 %v8725_v7, %v2684_v63  ;;  %v2683_v49 = vadd.f32 %v2579_v12, %v2450_v48  ;;  %6279 = vmatmul.mubr.msk.f32.gmra.mxu1 %vm2795_vm7, %v3066_v23  ;;  %v2350_v6 = vpop.permute.xlu0 %2349 }
 0x2bc   :  { %v2853_v16 = vld [vmem:[#allocation4 + $0x70] ss:$2 sm:$0x1]  ;;  %v2901_v44 = vld [vmem:[#allocation4 + $0x71] ss:$2 sm:$0x1]  ;;  %3259 = vmatprep.mubr.f32.mxu1 %v10379_v33  ;;  %v2452_v57 = vadd.f32 %v8610_v45, %v2350_v6 }
 0x2bd   :  { %v2940_v37 = vmax.f32 %v2853_v16, %v2901_v44  ;;  %v2771_v8 = vmax.f32 %v2731_v26, 0.0  ;;  %v2730_v47 = vadd.f32 %v8725_v7, %v2683_v49  ;;  %3035 = vst.msk [vmem:[#allocation5 + $0x30] sm:$0xff] %vm2795_vm7, %v3010_v54  ;;  %v2973_v1 = vld [vmem:[#allocation4 + $0x72] ss:$2 sm:$0x1] }
 0x2be   :  { %v2354_v34 = vpop.permute.xlu1 %2353 }
 0x2bf   :  { %2813 = vst.msk [vmem:[#allocation4 + $0x80] sm:$0xff] %vm2795_vm7, %v2771_v8  ;;  %v2770_v21 = vmax.f32 %v2730_v47, 0.0  ;;  %6280 = vmatmul.mubr.msk.f32.gmra.mxu1 %vm2795_vm7, %v3067_v24  ;;  %v3012_v43 = vmax.f32 %v2940_v37, %v2973_v1  ;;  %v2583_v59 = vpop.permute.xlu0 %2582  ;;  %v2454_v2 = vadd.f32 %v8625_v35, %v2354_v34 }
 0x2c0   :  { %3264 = vmatprep.mubr.f32.mxu1 %v10379_v33  ;;  %v2685_v22 = vadd.f32 %v2583_v59, %v2452_v57 }
 0x2c1   :  { %2812 = vst.msk [vmem:[#allocation4 + $0x78] sm:$0xff] %vm2795_vm7, %v2770_v21 }
 0x2c2   :  { %3037 = vst.msk [vmem:[#allocation5 + $0x40] sm:$0x1] %vm3030_vm9, %v3012_v43  ;;  %v2851_v52 = vld [vmem:[#allocation4 + $0x60] ss:$2 sm:$0xff]  ;;  %v2899_v41 = vld [vmem:[#allocation4 + $0x61] ss:$2 sm:$0xff]  ;;  %v2587_v58 = vpop.permute.xlu1 %2586  ;;  %v2732_v17 = vadd.f32 %v8725_v7, %v2685_v22 }
 0x2c3   :  { %v2687_v62 = vadd.f32 %v2587_v58, %v2454_v2  ;;  %v2939_v45 = vmax.f32 %v2851_v52, %v2899_v41  ;;  %v2585_v15 = vpop.permute.xlu0 %2584  ;;  %v2971_v55 = vld [vmem:[#allocation4 + $0x62] ss:$2 sm:$0xff] }
 0x2c4   :  { %v3068_v4 = vld [vmem:[#allocation5 + $0x30] sm:$0xff]  ;;  %v2772_v36 = vmax.f32 %v2732_v17, 0.0 }
 0x2c5   :  { %v2734_v48 = vadd.f32 %v8725_v7, %v2687_v62  ;;  %6281 = vmatmul.mubr.msk.f32.gmra.mxu1 %vm2795_vm7, %v3068_v4  ;;  %v3011_v63 = vmax.f32 %v2939_v45, %v2971_v55 }
 0x2c6   :  { %v2352_v35 = vpop.permute.xlu1 %2351  ;;  %3270 = vmatprep.mubr.f32.mxu1 %v10379_v33  ;;  %2814 = vst.msk [vmem:[#allocation4 + $0x88] sm:$0xff] %vm2795_vm7, %v2772_v36 }
 0x2c7   :  { %v2774_v39 = vmax.f32 %v2734_v48, 0.0  ;;  %v2453_v12 = vadd.f32 %v2352_v35, %v8629_v61  ;;  %3036 = vst.msk [vmem:[#allocation5 + $0x38] sm:$0xff] %vm2795_vm7, %v3011_v63  ;;  %v2356_v23 = vpop.permute.xlu0 %2355 }
 0x2c8   :  { %v2455_v49 = vadd.f32 %v2356_v23, %v8648_v32  ;;  %v2855_v54 = vld [vmem:[#allocation4 + $0x78] ss:$2 sm:$0xff]  ;;  %v2903_v16 = vld [vmem:[#allocation4 + $0x79] ss:$2 sm:$0xff] }
 0x2c9   :  { %2816 = vst.msk [vmem:[#allocation4 + $0x98] sm:$0x7] %vm2800_vm8, %v2774_v39  ;;  %v2686_v26 = vadd.f32 %v2585_v15, %v2453_v12  ;;  %v2941_v47 = vmax.f32 %v2855_v54, %v2903_v16  ;;  %v3070_v62 = vld [vmem:[#allocation5 + $0x40] sm:$0xff] }
 0x2ca   :  { %v2589_v44 = vpop.permute.xlu1 %2588 }
 0x2cb   :  { %v2733_v6 = vadd.f32 %v8725_v7, %v2686_v26  ;;  %v2688_v37 = vadd.f32 %v2589_v44, %v2455_v49  ;;  %v2360_v8 = vpop.permute.xlu0 %2359 }
 0x2cc   :  { %v2457_v45 = vadd.f32 %v2360_v8, %v8663_v3 }
 0x2cd   :  { %v2773_v1 = vmax.f32 %v2733_v6, 0.0  ;;  %v2735_v34 = vadd.f32 %v8725_v7, %v2688_v37  ;;  %v2975_v61 = vld [vmem:[#allocation4 + $0x7a] ss:$2 sm:$0xff] }
 0x2ce   :  { %v2358_v24 = vpop.permute.xlu1 %2357  ;;  %v3069_v21 = vld [vmem:[#allocation5 + $0x38] sm:$0xff]  ;;  %v3013_v32 = vmax.f32 %v2941_v47, %v2975_v61 }
 0x2cf   :  { %2815 = vst.msk [vmem:[#allocation4 + $0x90] sm:$0xff] %vm2795_vm7, %v2773_v1  ;;  %v2775_v57 = vmax.f32 %v2735_v34, 0.0  ;;  %v2456_v43 = vadd.f32 %v8642_v51, %v2358_v24  ;;  %6282 = vmatmul.mubr.msk.f32.gmra.mxu1 %vm2795_vm7, %v3069_v21  ;;  %v2591_v22 = vpop.permute.xlu0 %2590 }
 0x2d0   :  { %v2859_v59 = vld [vmem:[#allocation4 + $0x98] ss:$2 sm:$0x1]  ;;  %v2907_v2 = vld [vmem:[#allocation4 + $0x99] ss:$2 sm:$0x1]  ;;  %3276 = vmatprep.mubr.f32.mxu1 %v10379_v33 }
 0x2d1   :  { %v2943_v52 = vmax.f32 %v2859_v59, %v2907_v2  ;;  %2817 = vst.msk [vmem:[#allocation4 + $0xa0] sm:$0xff] %vm2795_vm7, %v2775_v57  ;;  %v2689_v41 = vadd.f32 %v2591_v22, %v2456_v43  ;;  %3038 = vst.msk [vmem:[#allocation5 + $0x48] sm:$0xff] %vm2795_vm7, %v3013_v32  ;;  %v2979_v58 = vld [vmem:[#allocation4 + $0x9a] ss:$2 sm:$0x1] }
 0x2d2   :  { %v2364_v17 = vpop.permute.xlu1 %2363 }
 0x2d3   :  { %v2736_v51 = vadd.f32 %v8725_v7, %v2689_v41  ;;  %6283 = vmatmul.mubr.msk.f32.gmra.mxu1 %vm2795_vm7, %v3070_v62  ;;  %v3015_v15 = vmax.f32 %v2943_v52, %v2979_v58  ;;  %v2593_v4 = vpop.permute.xlu0 %2592  ;;  %v2459_v36 = vadd.f32 %v2364_v17, %v8677_v42 }
 0x2d4   :  { %3281 = vmatprep.mubr.f32.mxu1 %v10379_v33  ;;  %v2690_v48 = vadd.f32 %v2593_v4, %v2457_v45 }
 0x2d5   :  { %v2776_v55 = vmax.f32 %v2736_v51, 0.0  ;;  %3040 = vst.msk [vmem:[#allocation5 + $0x58] sm:$0x1] %vm3030_vm9, %v3015_v15 }
 0x2d6   :  { %v2857_v63 = vld [vmem:[#allocation4 + $0x88] ss:$2 sm:$0xff]  ;;  %v2905_v35 = vld [vmem:[#allocation4 + $0x89] ss:$2 sm:$0xff]  ;;  %v2597_v39 = vpop.permute.xlu1 %2596  ;;  %v2737_v3 = vadd.f32 %v8725_v7, %v2690_v48 }
 0x2d7   :  { %2818 = vst.msk [vmem:[#allocation4 + $0xa8] sm:$0xff] %vm2795_vm7, %v2776_v55  ;;  %v2692_v12 = vadd.f32 %v2597_v39, %v2459_v36  ;;  %v2942_v23 = vmax.f32 %v2857_v63, %v2905_v35  ;;  %v2595_v26 = vpop.permute.xlu0 %2594  ;;  %v2977_v54 = vld [vmem:[#allocation4 + $0x8a] ss:$2 sm:$0xff] }
 0x2d8   :  { %v3071_v49 = vld [vmem:[#allocation5 + $0x48] sm:$0xff]  ;;  %v2777_v16 = vmax.f32 %v2737_v3, 0.0 }
 0x2d9   :  { %v2739_v44 = vadd.f32 %v8725_v7, %v2692_v12  ;;  %6284 = vmatmul.mubr.msk.f32.gmra.mxu1 %vm2795_vm7, %v3071_v49  ;;  %v3014_v42 = vmax.f32 %v2942_v23, %v2977_v54 }
 0x2da   :  { %v2362_v6 = vpop.permute.xlu1 %2361  ;;  %3287 = vmatprep.mubr.f32.mxu1 %v10379_v33  ;;  %2819 = vst.msk [vmem:[#allocation4 + $0xb0] sm:$0xff] %vm2795_vm7, %v2777_v16 }
 0x2db   :  { %v2779_v37 = vmax.f32 %v2739_v44, 0.0  ;;  %v2458_v8 = vadd.f32 %v8657_v38, %v2362_v6  ;;  %3039 = vst.msk [vmem:[#allocation5 + $0x50] sm:$0xff] %vm2795_vm7, %v3014_v42  ;;  %v2366_v47 = vpop.permute.xlu0 %2365 }
 0x2dc   :  { %v2460_v2 = vadd.f32 %v8672_v18, %v2366_v47  ;;  %v3073_v48 = vld [vmem:[#allocation5 + $0x58] sm:$0xff] }
 0x2dd   :  { %2821 = vst.msk [vmem:[#allocation4 + $0xc0] sm:$0x7] %vm2800_vm8, %v2779_v37  ;;  %v2691_v1 = vadd.f32 %v2595_v26, %v2458_v8 }
 0x2de   :  { %v2861_v34 = vld [vmem:[#allocation4 + $0xa0] ss:$2 sm:$0xff]  ;;  %v2909_v61 = vld [vmem:[#allocation4 + $0xa1] ss:$2 sm:$0xff]  ;;  %v2368_v24 = vpop.permute.xlu1 %2367 }
 0x2df   :  { %v2944_v21 = vmax.f32 %v2861_v34, %v2909_v61  ;;  %v2738_v57 = vadd.f32 %v8725_v7, %v2691_v1  ;;  %v2461_v43 = vadd.f32 %v2368_v24, %v8690_v56  ;;  %v2601_v32 = vpop.permute.xlu0 %2600 }
 0x2e1   :  { %v2778_v59 = vmax.f32 %v2738_v57, 0.0  ;;  %v2694_v22 = vadd.f32 %v2601_v32, %v2461_v43  ;;  %v2981_v38 = vld [vmem:[#allocation4 + $0xa2] ss:$2 sm:$0xff] }
 0x2e2   :  { %v2599_v52 = vpop.permute.xlu1 %2598  ;;  %v3072_v41 = vld [vmem:[#allocation5 + $0x50] sm:$0xff]  ;;  %v3016_v62 = vmax.f32 %v2944_v21, %v2981_v38 }
 0x2e3   :  { %2820 = vst.msk [vmem:[#allocation4 + $0xb8] sm:$0xff] %vm2795_vm7, %v2778_v59  ;;  %v2741_v58 = vadd.f32 %v8725_v7, %v2694_v22  ;;  %v2693_v17 = vadd.f32 %v2599_v52, %v2460_v2  ;;  %6285 = vmatmul.mubr.msk.f32.gmra.mxu1 %vm2795_vm7, %v3072_v41  ;;  %v2370_v15 = vpop.permute.xlu0 %2369 }
 0x2e4   :  { %v2865_v45 = vld [vmem:[#allocation4 + $0xc0] ss:$2 sm:$0x1]  ;;  %v2913_v51 = vld [vmem:[#allocation4 + $0xc1] ss:$2 sm:$0x1]  ;;  %3293 = vmatprep.mubr.f32.mxu1 %v10379_v33  ;;  %v2462_v35 = vadd.f32 %v8686_v0, %v2370_v15 }
 0x2e5   :  { %v2946_v56 = vmax.f32 %v2865_v45, %v2913_v51  ;;  %v2781_v4 = vmax.f32 %v2741_v58, 0.0  ;;  %v2740_v18 = vadd.f32 %v8725_v7, %v2693_v17  ;;  %3041 = vst.msk [vmem:[#allocation5 + $0x60] sm:$0xff] %vm2795_vm7, %v3016_v62  ;;  %v2985_v55 = vld [vmem:[#allocation4 + $0xc2] ss:$2 sm:$0x1] }
 0x2e6   :  { %v2374_v36 = vpop.permute.xlu1 %2373 }
 0x2e7   :  { %2823 = vst.msk [vmem:[#allocation4 + $0xd0] sm:$0xff] %vm2795_vm7, %v2781_v4  ;;  %v2780_v63 = vmax.f32 %v2740_v18, 0.0  ;;  %6286 = vmatmul.mubr.msk.f32.gmra.mxu1 %vm2795_vm7, %v3073_v48  ;;  %v3018_v39 = vmax.f32 %v2946_v56, %v2985_v55  ;;  %v2603_v3 = vpop.permute.xlu0 %2602  ;;  %v2464_v12 = vadd.f32 %v8701_v30, %v2374_v36 }
 0x2e8   :  { %3298 = vmatprep.mubr.f32.mxu1 %v10379_v33  ;;  %v2695_v23 = vadd.f32 %v2603_v3, %v2462_v35 }
 0x2e9   :  { %2822 = vst.msk [vmem:[#allocation4 + $0xc8] sm:$0xff] %vm2795_vm7, %v2780_v63 }
 0x2ea   :  { %3043 = vst.msk [vmem:[#allocation5 + $0x70] sm:$0x1] %vm3030_vm9, %v3018_v39  ;;  %v2863_v26 = vld [vmem:[#allocation4 + $0xb0] ss:$2 sm:$0xff]  ;;  %v2911_v49 = vld [vmem:[#allocation4 + $0xb1] ss:$2 sm:$0xff]  ;;  %v2607_v54 = vpop.permute.xlu1 %2606  ;;  %v2742_v16 = vadd.f32 %v8725_v7, %v2695_v23 }
 0x2eb   :  { %v2697_v44 = vadd.f32 %v2607_v54, %v2464_v12  ;;  %v2945_v0 = vmax.f32 %v2863_v26, %v2911_v49  ;;  %v2605_v42 = vpop.permute.xlu0 %2604  ;;  %v2983_v37 = vld [vmem:[#allocation4 + $0xb2] ss:$2 sm:$0xff] }
 0x2ec   :  { %v3074_v6 = vld [vmem:[#allocation5 + $0x60] sm:$0xff]  ;;  %v2782_v8 = vmax.f32 %v2742_v16, 0.0 }
 0x2ed   :  { %v2744_v47 = vadd.f32 %v8725_v7, %v2697_v44  ;;  %6287 = vmatmul.mubr.msk.f32.gmra.mxu1 %vm2795_vm7, %v3074_v6  ;;  %v3017_v1 = vmax.f32 %v2945_v0, %v2983_v37 }
 0x2ee   :  { %v2372_v30 = vpop.permute.xlu1 %2371  ;;  %3304 = vmatprep.mubr.f32.mxu1 %v10379_v33  ;;  %2824 = vst.msk [vmem:[#allocation4 + $0xd8] sm:$0xff] %vm2795_vm7, %v2782_v8 }
 0x2ef   :  { %v2784_v34 = vmax.f32 %v2744_v47, 0.0  ;;  %v2463_v61 = vadd.f32 %v2372_v30, %v8705_v50  ;;  %3042 = vst.msk [vmem:[#allocation5 + $0x68] sm:$0xff] %vm2795_vm7, %v3017_v1  ;;  %v2376_v24 = vpop.permute.xlu0 %2375 }
 0x2f0   :  { %v2465_v57 = vadd.f32 %v2376_v24, %v8730_v53  ;;  %v2867_v43 = vld [vmem:[#allocation4 + $0xc8] ss:$2 sm:$0xff]  ;;  %v2915_v32 = vld [vmem:[#allocation4 + $0xc9] ss:$2 sm:$0xff] }
 0x2f1   :  { %2826 = vst.msk [vmem:[#allocation4 + $0xe8] sm:$0x7] %vm2800_vm8, %v2784_v34  ;;  %v2696_v21 = vadd.f32 %v2605_v42, %v2463_v61  ;;  %v2947_v38 = vmax.f32 %v2867_v43, %v2915_v32  ;;  %v3076_v63 = vld [vmem:[#allocation5 + $0x70] sm:$0xff] }
 0x2f2   :  { %v2609_v59 = vpop.permute.xlu1 %2608 }
 0x2f3   :  { %v2743_v2 = vadd.f32 %v8725_v7, %v2696_v21  ;;  %v2698_v22 = vadd.f32 %v2609_v59, %v2465_v57  ;;  %v2380_v58 = vpop.permute.xlu0 %2379 }
 0x2f4   :  { %v2467_v35 = vadd.f32 %v2380_v58, %v8748_v20 }
 0x2f5   :  { %v2783_v52 = vmax.f32 %v2743_v2, 0.0  ;;  %v2745_v41 = vadd.f32 %v8725_v7, %v2698_v22  ;;  %v2987_v50 = vld [vmem:[#allocation4 + $0xca] ss:$2 sm:$0xff] }
 0x2f6   :  { %v2378_v17 = vpop.permute.xlu1 %2377  ;;  %v3075_v62 = vld [vmem:[#allocation5 + $0x68] sm:$0xff]  ;;  %v3019_v53 = vmax.f32 %v2947_v38, %v2987_v50 }
 0x2f7   :  { %2825 = vst.msk [vmem:[#allocation4 + $0xe0] sm:$0xff] %vm2795_vm7, %v2783_v52  ;;  %v2785_v45 = vmax.f32 %v2745_v41, 0.0  ;;  %v2466_v51 = vadd.f32 %v8719_v11, %v2378_v17  ;;  %6288 = vmatmul.mubr.msk.f32.gmra.mxu1 %vm2795_vm7, %v3075_v62  ;;  %v2611_v18 = vpop.permute.xlu0 %2610 }
 0x2f8   :  { %v2871_v15 = vld [vmem:[#allocation4 + $0xe8] ss:$2 sm:$0x1]  ;;  %v2919_v56 = vld [vmem:[#allocation4 + $0xe9] ss:$2 sm:$0x1]  ;;  %3310 = vmatprep.mubr.f32.mxu1 %v10379_v33 }
 0x2f9   :  { %v2949_v4 = vmax.f32 %v2871_v15, %v2919_v56  ;;  %2827 = vst.msk [vmem:[#allocation4 + $0xf0] sm:$0xff] %vm2795_vm7, %v2785_v45  ;;  %3044 = vst.msk [vmem:[#allocation5 + $0x78] sm:$0xff] %vm2795_vm7, %v3019_v53  ;;  %v2991_v55 = vld [vmem:[#allocation4 + $0xea] ss:$2 sm:$0x1]  ;;  %v2699_v36 = vadd.f32 %v2611_v18, %v2466_v51 }
 0x2fa   :  { %v2384_v48 = vpop.permute.xlu1 %2383 }
 0x2fb   :  { %6289 = vmatmul.mubr.msk.f32.gmra.mxu1 %vm2795_vm7, %v3076_v63  ;;  %v3021_v11 = vmax.f32 %v2949_v4, %v2991_v55  ;;  %v2746_v39 = vadd.f32 %v8725_v7, %v2699_v36  ;;  %v2469_v3 = vadd.f32 %v2384_v48, %v8764_v19  ;;  %v2613_v12 = vpop.permute.xlu0 %2612 }
 0x2fc   :  { %3315 = vmatprep.mubr.f32.mxu1 %v10379_v33  ;;  %v2700_v54 = vadd.f32 %v2613_v12, %v2467_v35 }
 0x2fd   :  { %3046 = vst.msk [vmem:[#allocation5 + $0x88] sm:$0x1] %vm3030_vm9, %v3021_v11  ;;  %v2786_v49 = vmax.f32 %v2746_v39, 0.0 }
 0x2fe   :  { %v2869_v23 = vld [vmem:[#allocation4 + $0xd8] ss:$2 sm:$0xff]  ;;  %v2917_v26 = vld [vmem:[#allocation4 + $0xd9] ss:$2 sm:$0xff]  ;;  %v2617_v16 = vpop.permute.xlu1 %2616  ;;  %v2747_v20 = vadd.f32 %v8725_v7, %v2700_v54 }
 0x2ff   :  { %v2702_v44 = vadd.f32 %v2617_v16, %v2469_v3  ;;  %v2948_v0 = vmax.f32 %v2869_v23, %v2917_v26  ;;  %2828 = vst.msk [vmem:[#allocation4 + $0xf8] sm:$0xff] %vm2795_vm7, %v2786_v49  ;;  %v2989_v6 = vld [vmem:[#allocation4 + $0xda] ss:$2 sm:$0xff]  ;;  %v2615_v8 = vpop.permute.xlu0 %2614 }
 0x300   :  { %v3077_v42 = vld [vmem:[#allocation5 + $0x78] sm:$0xff]  ;;  %v2787_v47 = vmax.f32 %v2747_v20, 0.0  ;;  %v6916_v26 = vld [vmem:[%s10060_s4] ss:$0 sm:$0xff] }
 0x301   :  { %v2749_v37 = vadd.f32 %v8725_v7, %v2702_v44  ;;  %6290 = vmatmul.mubr.msk.f32.gmra.mxu1 %vm2795_vm7, %v3077_v42  ;;  %v3020_v19 = vmax.f32 %v2948_v0, %v2989_v6 }
 0x302   :  { %v2382_v1 = vpop.permute.xlu1 %2381  ;;  %3321 = vmatprep.mubr.f32.mxu1 %v10379_v33  ;;  %2829 = vst.msk [vmem:[#allocation4 + $0x100] sm:$0xff] %vm2795_vm7, %v2787_v47 }
 0x303   :  { %v2789_v30 = vmax.f32 %v2749_v37, 0.0  ;;  %v2468_v34 = vadd.f32 %v8743_v13, %v2382_v1  ;;  %3045 = vst.msk [vmem:[#allocation5 + $0x80] sm:$0xff] %vm2795_vm7, %v3020_v19  ;;  %v2386_v24 = vpop.permute.xlu0 %2385 }
 0x304   :  { %v2470_v38 = vadd.f32 %v8759_v9, %v2386_v24  ;;  %v3079_v55 = vld [vmem:[#allocation5 + $0x88] sm:$0xff] }
 0x305   :  { %2831 = vst.msk [vmem:[#allocation4 + $0x110] sm:$0x7] %vm2800_vm8, %v2789_v30  ;;  %v2701_v61 = vadd.f32 %v2615_v8, %v2468_v34 }
 0x306   :  { %v2388_v21 = vpop.permute.xlu1 %2387  ;;  %v2873_v57 = vld [vmem:[#allocation4 + $0xf0] ss:$2 sm:$0xff]  ;;  %v2921_v43 = vld [vmem:[#allocation4 + $0xf1] ss:$2 sm:$0xff] }
 0x307   :  { %v2748_v32 = vadd.f32 %v8725_v7, %v2701_v61  ;;  %v2471_v59 = vadd.f32 %v2388_v21, %v8783_v40  ;;  %v2950_v2 = vmax.f32 %v2873_v57, %v2921_v43  ;;  %v2621_v13 = vpop.permute.xlu0 %2620 }
 0x309   :  { %v2788_v22 = vmax.f32 %v2748_v32, 0.0  ;;  %v2704_v52 = vadd.f32 %v2621_v13, %v2471_v59  ;;  %v2993_v50 = vld [vmem:[#allocation4 + $0xf2] ss:$2 sm:$0xff] }
 0x30a   :  { %v2619_v41 = vpop.permute.xlu1 %2618  ;;  %v3078_v58 = vld [vmem:[#allocation5 + $0x80] sm:$0xff]  ;;  %v3022_v40 = vmax.f32 %v2950_v2, %v2993_v50 }
 0x30b   :  { %2830 = vst.msk [vmem:[#allocation4 + $0x108] sm:$0xff] %vm2795_vm7, %v2788_v22  ;;  %v2703_v17 = vadd.f32 %v2619_v41, %v2470_v38  ;;  %6291 = vmatmul.mubr.msk.f32.gmra.mxu1 %vm2795_vm7, %v3078_v58  ;;  %v2751_v51 = vadd.f32 %v8725_v7, %v2704_v52  ;;  %v2390_v15 = vpop.permute.xlu0 %2389 }
 0x30c   :  { %v2877_v62 = vld [vmem:[#allocation4 + $0x110] ss:$2 sm:$0x1]  ;;  %v2925_v45 = vld [vmem:[#allocation4 + $0x111] ss:$2 sm:$0x1]  ;;  %3327 = vmatprep.mubr.f32.mxu1 %v10379_v33  ;;  %v2472_v63 = vadd.f32 %v8779_v5, %v2390_v15 }
 0x30d   :  { %v2952_v53 = vmax.f32 %v2877_v62, %v2925_v45  ;;  %v2750_v9 = vadd.f32 %v8725_v7, %v2703_v17  ;;  %v2997_v56 = vld [vmem:[#allocation4 + $0x112] ss:$2 sm:$0x1]  ;;  %v2791_v4 = vmax.f32 %v2751_v51, 0.0  ;;  %3047 = vst.msk [vmem:[#allocation5 + $0x90] sm:$0xff] %vm2795_vm7, %v3022_v40  ;;  %v3733_v45 = vld [vmem:[%s10063_s7 + $0xa8] sm:$0xff] }
 0x30e   :  { %v2394_v18 = vpop.permute.xlu1 %2393  ;;  %v3734_v62 = vld [vmem:[%s10063_s7 + $0xb0] sm:$0xff] }
 0x30f   :  { %v2790_v36 = vmax.f32 %v2750_v9, 0.0  ;;  %6292 = vmatmul.mubr.msk.f32.gmra.mxu1 %vm2795_vm7, %v3079_v55  ;;  %v3024_v48 = vmax.f32 %v2952_v53, %v2997_v56  ;;  %2833 = vst.msk [vmem:[#allocation4 + $0x120] sm:$0xff] %vm2795_vm7, %v2791_v4  ;;  %v2623_v7 = vpop.permute.xlu0 %2622  ;;  %v2474_v54 = vadd.f32 %v8791_v46, %v2394_v18  ;;  %3776 = vmatprep.subr.mxu0 %v3734_v62  ;;  %v3731_v53 = vld [vmem:[%s10063_s7 + $0x98] sm:$0xff] }
 0x310   :  { %3332 = vmatprep.mubr.f32.mxu1 %v10379_v33  ;;  %v2705_v39 = vadd.f32 %v2623_v7, %v2472_v63  ;;  %3777 = vmatpush1.msra.mxu0 %v3733_v45 }
 0x311   :  { %2832 = vst.msk [vmem:[#allocation4 + $0x118] sm:$0xff] %vm2795_vm7, %v2790_v36  ;;  %3778 = vmatprep.subr.mxu0 %v3731_v53 }
 0x312   :  { %3049 = vst.msk [vmem:[#allocation5 + $0xa0] sm:$0x1] %vm3030_vm9, %v3024_v48  ;;  %v2875_v11 = vld [vmem:[#allocation4 + $0x100] ss:$2 sm:$0xff]  ;;  %v2923_v35 = vld [vmem:[#allocation4 + $0x101] ss:$2 sm:$0xff]  ;;  %v2392_v3 = vpop.permute.xlu1 %2391  ;;  %v2752_v49 = vadd.f32 %v6916_v26, %v2705_v39 }
 0x313   :  { %v2473_v12 = vadd.f32 %v2392_v3, %v8803_v28  ;;  %v2951_v23 = vmax.f32 %v2875_v11, %v2923_v35  ;;  %v2995_v5 = vld [vmem:[#allocation4 + $0x102] ss:$2 sm:$0xff]  ;;  %v2625_v16 = vpop.permute.xlu0 %2624 }
 0x314   :  { %v3080_v44 = vld [vmem:[#allocation5 + $0x90] sm:$0xff]  ;;  %v2792_v20 = vmax.f32 %v2752_v49, 0.0  ;;  %v3728_v3 = vld [vmem:[%s10063_s7 + $0x80] sm:$0xff] }
 0x315   :  { %v3023_v0 = vmax.f32 %v2951_v23, %v2995_v5  ;;  %v2706_v42 = vadd.f32 %v2625_v16, %v2473_v12  ;;  %6293 = vmatmul.mubr.msk.f32.gmra.mxu1 %vm2795_vm7, %v3080_v44  ;;  %v3730_v35 = vld [vmem:[%s10063_s7 + $0x90] sm:$0xff]  ;;  %v3727_v12 = vld [vmem:[%s10063_s7 + $0x78] sm:$0xff]  ;;  %v3725_v23 = vld [vmem:[%s10063_s7 + $0x68] sm:$0xff] }
 0x316   :  { %v2627_v6 = vpop.permute.xlu1 %2626  ;;  %3338 = vmatprep.mubr.f32.mxu1 %v10379_v33  ;;  %2834 = vst.msk [vmem:[#allocation4 + $0x128] sm:$0xff] %vm2795_vm7, %v2792_v20  ;;  %3779 = vmatpush1.msra.mxu0 %v3730_v35  ;;  %v3722_v49 = vld [vmem:[%s10063_s7 + $0x50] sm:$0xff]  ;;  %v3719_v16 = vld [vmem:[%s10063_s7 + $0x38] sm:$0xff] }
 0x317   :  { %v2707_v37 = vadd.f32 %v2627_v6, %v2474_v54  ;;  %3048 = vst.msk [vmem:[#allocation5 + $0x98] sm:$0xff] %vm2795_vm7, %v3023_v0  ;;  %v2753_v28 = vadd.f32 %v6916_v26, %v2706_v42  ;;  %3780 = vmatprep.subr.mxu0 %v3728_v3  ;;  %v3721_v54 = vld [vmem:[%s10063_s7 + $0x48] sm:$0xff]  ;;  %v3718_v44 = vld [vmem:[%s10063_s7 + $0x30] sm:$0xff]  ;;  %v3716_v0 = vld [vmem:[%s10063_s7 + $0x20] sm:$0xff] }
 0x318   :  { %v2879_v47 = vld [vmem:[#allocation4 + $0x118] ss:$2 sm:$0xff]  ;;  %v2927_v46 = vld [vmem:[#allocation4 + $0x119] ss:$2 sm:$0xff]  ;;  %3781 = vmatpush1.msra.mxu0 %v3727_v12  ;;  %v3713_v6 = vld [vmem:[%s10063_s7 + $0x8] sm:$0xff] }
 0x319   :  { %v2754_v8 = vadd.f32 %v6916_v26, %v2707_v37  ;;  %v2793_v19 = vmax.f32 %v2753_v28, 0.0  ;;  %v2953_v30 = vmax.f32 %v2879_v47, %v2927_v46  ;;  %v3082_v21 = vld [vmem:[#allocation5 + $0xa0] sm:$0xff]  ;;  %3782 = vmatprep.subr.mxu0 %v3725_v23  ;;  %v3715_v42 = vld [vmem:[%s10063_s7 + $0x18] sm:$0xff] }
 0x31a   :  { %v3724_v26 = vld [vmem:[%s10063_s7 + $0x60] sm:$0xff] }
 0x31b   :  { %v2794_v1 = vmax.f32 %v2754_v8, 0.0  ;;  %2835 = vst.msk [vmem:[#allocation4 + $0x130] sm:$0xff] %vm2795_vm7, %v2793_v19  ;;  %3783 = vmatpush1.msra.mxu0 %v3724_v26  ;;  %v3712_v28 = vld [vmem:[%s10063_s7] sm:$0xff] }
 0x31c   :  { %3784 = vmatprep.subr.mxu0 %v3722_v49 }
 0x31d   :  { %2836 = vst.msk [vmem:[#allocation4 + $0x138] sm:$0x7] %vm2800_vm8, %v2794_v1  ;;  %v2999_v61 = vld [vmem:[#allocation4 + $0x11a] ss:$2 sm:$0xff]  ;;  %3785 = vmatpush1.msra.mxu0 %v3721_v54 }
 0x31e   :  { %v3081_v34 = vld [vmem:[#allocation5 + $0x98] sm:$0xff]  ;;  %v3025_v24 = vmax.f32 %v2953_v30, %v2999_v61  ;;  %3786 = vmatprep.subr.mxu0 %v3719_v16 }
 0x31f   :  { %6294 = vmatmul.mubr.msk.f32.gmra.mxu1 %vm2795_vm7, %v3081_v34  ;;  %3787 = vmatpush1.msra.mxu0 %v3718_v44 }
 0x320   :  { %3344 = vmatprep.mubr.f32.mxu1 %v10379_v33  ;;  %3050 = vst.msk [vmem:[#allocation5 + $0xa8] sm:$0xff] %vm2795_vm7, %v3025_v24  ;;  %3788 = vmatprep.subr.mxu0 %v3716_v0  ;;  %v3735_v24 = vld [vmem:[%s10063_s7 + $0xb8] sm:$0xff] }
 0x321   :  { %3789 = vmatpush1.msra.mxu0 %v3715_v42  ;;  %6841 = vmatprep.subr.mxu1 %v3735_v24 }
 0x322   :  { %v2881_v57 = vld [vmem:[#allocation4 + $0x128] ss:$2 sm:$0xff]  ;;  %v2929_v43 = vld [vmem:[#allocation4 + $0x129] ss:$2 sm:$0xff]  ;;  %3790 = vmatprep.subr.mxu0 %v3713_v6  ;;  %6842 = vmatpush3.msra.mxu1 %v3735_v24 }
 0x323   :  { %6295 = vmatmul.mubr.msk.f32.gmra.mxu1 %vm2795_vm7, %v3082_v21  ;;  %v2954_v32 = vmax.f32 %v2881_v57, %v2929_v43  ;;  %3791 = vmatpush1.msra.mxu0 %v3712_v28  ;;  %v3732_v57 = vld [vmem:[%s10063_s7 + $0xa0] sm:$0xff] }
 0x324   :  { %v2883_v59 = vld [vmem:[#allocation4 + $0x138] ss:$2 sm:$0x1]  ;;  %v2931_v2 = vld [vmem:[#allocation4 + $0x139] ss:$2 sm:$0x1]  ;;  %3349 = vmatprep.mubr.f32.mxu1 %v10379_v33  ;;  %6843 = vmatprep.subr.mxu1 %v3732_v57 }
 0x325   :  { %v2955_v22 = vmax.f32 %v2883_v59, %v2931_v2  ;;  %v3001_v38 = vld [vmem:[#allocation4 + $0x12a] ss:$2 sm:$0xff]  ;;  %v3003_v13 = vld [vmem:[#allocation4 + $0x13a] ss:$2 sm:$0x1]  ;;  %6844 = vmatpush3.msra.mxu1 %v3732_v57 }
 0x326   :  { %v3026_v52 = vmax.f32 %v2954_v32, %v3001_v38  ;;  %v3729_v32 = vld [vmem:[%s10063_s7 + $0x88] sm:$0xff]  ;;  %v3726_v2 = vld [vmem:[%s10063_s7 + $0x70] sm:$0xff] }
 0x327   :  { %v3027_v41 = vmax.f32 %v2955_v22, %v3003_v13  ;;  %v3083_v58 = vld [vmem:[#allocation5 + $0xa8] sm:$0xff]  ;;  %6845 = vmatprep.subr.mxu1 %v3729_v32  ;;  %v3723_v22 = vld [vmem:[%s10063_s7 + $0x58] sm:$0xff]  ;;  %v3720_v13 = vld [vmem:[%s10063_s7 + $0x40] sm:$0xff] }
 0x328   :  { %3051 = vst.msk [vmem:[#allocation5 + $0xb0] sm:$0xff] %vm2795_vm7, %v3026_v52  ;;  %6296 = vmatmul.mubr.msk.f32.gmra.mxu1 %vm2795_vm7, %v3083_v58  ;;  %v3717_v52 = vld [vmem:[%s10063_s7 + $0x28] sm:$0xff]  ;;  %v3714_v58 = vld [vmem:[%s10063_s7 + $0x10] sm:$0xff] }
 0x329   :  { %3052 = vst.msk [vmem:[#allocation5 + $0xb8] sm:$0x1] %vm3030_vm9, %v3027_v41  ;;  %3355 = vmatprep.mubr.f32.mxu1 %v10379_v33  ;;  %6846 = vmatpush3.msra.mxu1 %v3729_v32 }
 0x32a   :  { %6847 = vmatprep.subr.mxu1 %v3726_v2 }
 0x32b   :  { %6848 = vmatpush3.msra.mxu1 %v3726_v2 }
 0x32c   :  { %6849 = vmatprep.subr.mxu1 %v3723_v22 }
 0x32d   :  { %6850 = vmatpush3.msra.mxu1 %v3723_v22 }
 0x32e   :  { %6851 = vmatprep.subr.mxu1 %v3720_v13 }
 0x32f   :  { %v3084_v50 = vld [vmem:[#allocation5 + $0xb0] sm:$0xff]  ;;  %6852 = vmatpush3.msra.mxu1 %v3720_v13 }
 0x330   :  { %6297 = vmatmul.mubr.msk.f32.gmra.mxu1 %vm2795_vm7, %v3084_v50  ;;  %v3085_v17 = vld [vmem:[#allocation5 + $0xb8] sm:$0xff]  ;;  %6853 = vmatprep.subr.mxu1 %v3717_v52 }
 0x331   :  { %3361 = vmatprep.mubr.f32.mxu1 %v10379_v33  ;;  %6854 = vmatpush3.msra.mxu1 %v3717_v52 }
 0x332   :  { %6855 = vmatprep.subr.mxu1 %v3714_v58 }
 0x333   :  { %6856 = vmatpush3.msra.mxu1 %v3714_v58 }
 0x334   :  { %6298 = vmatmul.mubr.msk.f32.gmra.mxu1 %vm2795_vm7, %v3085_v17  ;;  %vm4313_vm7 = vcmask 1047559  }
 0x35d   :  { %v9005_v51 = vpop.f32.mrf.mxu1 }
 0x35e   :  { %v3383_v15 = vrot.slane %v9005_v51, 1 }
 0x35f   :  { %v3234_v40 = vpop.f32.mrf.mxu1 }
 0x360   :  { %v3495_v18 = vrot.slane %v3234_v40, 2 }
 0x367   :  { %v9010_v9 = vpop.f32.mrf.mxu1 }
 0x368   :  { %v3384_v56 = vrot.slane %v9010_v9, 1 }
 0x369   :  { %v3240_v4 = vpop.f32.mrf.mxu1 }
 0x36a   :  { %v3496_v55 = vrot.slane %v3240_v4, 2  ;;  %3409 = vrot.lane.b32.xlu1 %v3384_v56, %s6990_s2  ;;  %v3385_v36 = vsel %vm2242_vm5, %v3383_v15, %v3384_v56 }
 0x36b   :  { %v3244_v48 = vpop.f32.mrf.mxu1  ;;  %3407 = vrot.lane.b32.xlu0 %v3385_v36, %s6990_s2 }
 0x36c   :  { %v9018_v63 = vsel %vm2475_vm4, %v3495_v18, %v3496_v55 }
 0x36d   :  { %v3245_v7 = vpop.f32.mrf.mxu1 }
 0x36e   :  { %v3498_v11 = vrot.slane %v3245_v7, 2 }
 0x370   :  { %v9024_v39 = vsel %vm2475_vm4, %v3496_v55, %v3498_v11 }
 0x371   :  { %v9041_v5 = vpop.f32.mrf.mxu1 }
 0x372   :  { %v3386_v8 = vrot.slane %v9041_v5, 1 }
 0x373   :  { %v3251_v20 = vpop.f32.mrf.mxu1 }
 0x374   :  { %v3500_v46 = vrot.slane %v3251_v20, 2 }
 0x37b   :  { %v9069_v37 = vpop.f32.mrf.mxu1 }
 0x37c   :  { %v3387_v19 = vrot.slane %v9069_v37, 1 }
 0x37d   :  { %v3257_v47 = vpop.f32.mrf.mxu1 }
 0x37e   :  { %v3501_v1 = vrot.slane %v3257_v47, 2  ;;  %3413 = vrot.lane.b32.xlu1 %v3387_v19, %s6990_s2  ;;  %v3388_v30 = vsel %vm2242_vm5, %v3386_v8, %v3387_v19 }
 0x37f   :  { %v3261_v34 = vpop.f32.mrf.mxu1  ;;  %3411 = vrot.lane.b32.xlu0 %v3388_v30, %s6990_s2 }
 0x380   :  { %v9080_v61 = vsel %vm2475_vm4, %v3500_v46, %v3501_v1 }
 0x381   :  { %v3262_v21 = vpop.f32.mrf.mxu1 }
 0x382   :  { %v3503_v43 = vrot.slane %v3262_v21, 2 }
 0x384   :  { %v9092_v59 = vsel %vm2475_vm4, %v3501_v1, %v3503_v43 }
 0x385   :  { %v9100_v38 = vpop.f32.mrf.mxu1 }
 0x386   :  { %v3389_v17 = vrot.slane %v9100_v38, 1 }
 0x387   :  { %v3268_v41 = vpop.f32.mrf.mxu1 }
 0x388   :  { %v3505_v40 = vrot.slane %v3268_v41, 2 }
 0x38f   :  { %v9111_v50 = vpop.f32.mrf.mxu1 }
 0x390   :  { %v3390_v62 = vrot.slane %v9111_v50, 1 }
 0x391   :  { %v3274_v45 = vpop.f32.mrf.mxu1 }
 0x392   :  { %v3506_v53 = vrot.slane %v3274_v45, 2  ;;  %3417 = vrot.lane.b32.xlu1 %v3390_v62, %s6990_s2  ;;  %v3391_v15 = vsel %vm2242_vm5, %v3389_v17, %v3390_v62 }
 0x393   :  { %v3278_v56 = vpop.f32.mrf.mxu1  ;;  %3415 = vrot.lane.b32.xlu0 %v3391_v15, %s6990_s2 }
 0x394   :  { %v9119_v4 = vsel %vm2475_vm4, %v3505_v40, %v3506_v53 }
 0x395   :  { %v3279_v18 = vpop.f32.mrf.mxu1 }
 0x396   :  { %v3508_v55 = vrot.slane %v3279_v18, 2 }
 0x398   :  { %v9122_v36 = vsel %vm2475_vm4, %v3506_v53, %v3508_v55 }
 0x399   :  { %v9124_v48 = vpop.f32.mrf.mxu1 }
 0x39a   :  { %v3392_v35 = vrot.slane %v9124_v48, 1 }
 0x39b   :  { %v3285_v7 = vpop.f32.mrf.mxu1 }
 0x39c   :  { %v3510_v23 = vrot.slane %v3285_v7, 2 }
 0x3a3   :  { %v9126_v11 = vpop.f32.mrf.mxu1 }
 0x3a4   :  { %v3393_v3 = vrot.slane %v9126_v11, 1 }
 0x3a5   :  { %v3291_v12 = vpop.f32.mrf.mxu1 }
 0x3a6   :  { %v3511_v26 = vrot.slane %v3291_v12, 2  ;;  %3421 = vrot.lane.b32.xlu1 %v3393_v3, %s6990_s2  ;;  %v3394_v49 = vsel %vm2242_vm5, %v3392_v35, %v3393_v3  ;;  %v9175_v12 = vld [vmem:[%s10062_s6] ss:$0 sm:$0xff] }
 0x3a7   :  { %v3295_v54 = vpop.f32.mrf.mxu1  ;;  %3419 = vrot.lane.b32.xlu0 %v3394_v49, %s6990_s2 }
 0x3a8   :  { %v9134_v16 = vsel %vm2475_vm4, %v3510_v23, %v3511_v26 }
 0x3a9   :  { %v3296_v44 = vpop.f32.mrf.mxu1 }
 0x3aa   :  { %v3513_v0 = vrot.slane %v3296_v44, 2 }
 0x3ac   :  { %v9137_v20 = vsel %vm2475_vm4, %v3511_v26, %v3513_v0 }
 0x3ad   :  { %v9139_v42 = vpop.f32.mrf.mxu1 }
 0x3ae   :  { %v3395_v8 = vrot.slane %v9139_v42, 1 }
 0x3af   :  { %v3302_v6 = vpop.f32.mrf.mxu1 }
 0x3b0   :  { %v3515_v46 = vrot.slane %v3302_v6, 2 }
 0x3b7   :  { %v9141_v28 = vpop.f32.mrf.mxu1 }
 0x3b8   :  { %v3396_v19 = vrot.slane %v9141_v28, 1 }
 0x3b9   :  { %v3308_v47 = vpop.f32.mrf.mxu1 }
 0x3ba   :  { %v3516_v1 = vrot.slane %v3308_v47, 2  ;;  %3425 = vrot.lane.b32.xlu1 %v3396_v19, %s6990_s2  ;;  %v3397_v30 = vsel %vm2242_vm5, %v3395_v8, %v3396_v19 }
 0x3bb   :  { %v3312_v34 = vpop.f32.mrf.mxu1  ;;  %3423 = vrot.lane.b32.xlu0 %v3397_v30, %s6990_s2 }
 0x3bc   :  { %v9149_v24 = vsel %vm2475_vm4, %v3515_v46, %v3516_v1 }
 0x3bd   :  { %v3313_v21 = vpop.f32.mrf.mxu1 }
 0x3be   :  { %v3518_v57 = vrot.slane %v3313_v21, 2 }
 0x3c0   :  { %v9152_v43 = vsel %vm2475_vm4, %v3516_v1, %v3518_v57 }
 0x3c1   :  { %v9154_v32 = vpop.f32.mrf.mxu1 }
 0x3c2   :  { %v3398_v13 = vrot.slane %v9154_v32, 1 }
 0x3c3   :  { %v3319_v2 = vpop.f32.mrf.mxu1 }
 0x3c4   :  { %v3520_v58 = vrot.slane %v3319_v2, 2 }
 0x3cb   :  { %v9156_v22 = vpop.f32.mrf.mxu1 }
 0x3cc   :  { %v3399_v52 = vrot.slane %v9156_v22, 1 }
 0x3cd   :  { %v3325_v41 = vpop.f32.mrf.mxu1 }
 0x3ce   :  { %v3521_v17 = vrot.slane %v3325_v41, 2  ;;  %3429 = vrot.lane.b32.xlu1 %v3399_v52, %s6990_s2  ;;  %v3400_v62 = vsel %vm2242_vm5, %v3398_v13, %v3399_v52 }
 0x3cf   :  { %v3329_v45 = vpop.f32.mrf.mxu1  ;;  %3427 = vrot.lane.b32.xlu0 %v3400_v62, %s6990_s2 }
 0x3d0   :  { %v9164_v40 = vsel %vm2475_vm4, %v3520_v58, %v3521_v17 }
 0x3d1   :  { %v3330_v53 = vpop.f32.mrf.mxu1 }
 0x3d2   :  { %v3523_v15 = vrot.slane %v3330_v53, 2 }
 0x3d4   :  { %v9167_v56 = vsel %vm2475_vm4, %v3521_v17, %v3523_v15 }
 0x3d5   :  { %v9169_v18 = vpop.f32.mrf.mxu1 }
 0x3d6   :  { %v3401_v54 = vrot.slane %v9169_v18, 1 }
 0x3d7   :  { %v3336_v7 = vpop.f32.mrf.mxu1 }
 0x3d8   :  { %v3525_v8 = vrot.slane %v3336_v7, 2 }
 0x3dc   :  { %v3410_v55 = vpop.permute.xlu1 %3409 }
 0x3dd   :  { %v3456_v35 = vadd.f32 %v3410_v55, %v9010_v9  ;;  %v3408_v3 = vpop.permute.xlu0 %3407 }
 0x3de   :  { %v3455_v23 = vadd.f32 %v3408_v3, %v9005_v51 }
 0x3df   :  { %v3552_v26 = vadd.f32 %v9024_v39, %v3456_v35  ;;  %v9179_v49 = vpop.f32.mrf.mxu1 }
 0x3e0   :  { %v3551_v44 = vadd.f32 %v9018_v63, %v3455_v23  ;;  %v3402_v0 = vrot.slane %v9179_v49, 1 }
 0x3e1   :  { %v3575_v9 = vadd.f32 %v9175_v12, %v3552_v26  ;;  %v3342_v6 = vpop.f32.mrf.mxu1 }
 0x3e2   :  { %v3574_v19 = vadd.f32 %v9175_v12, %v3551_v44  ;;  %v3526_v47 = vrot.slane %v3342_v6, 2  ;;  %3433 = vrot.lane.b32.xlu1 %v3402_v0, %s6990_s2  ;;  %v3403_v51 = vsel %vm2242_vm5, %v3401_v54, %v3402_v0 }
 0x3e3   :  { %v3591_v39 = vmax.f32 %v3575_v9, 0.0  ;;  %v3346_v46 = vpop.f32.mrf.mxu1  ;;  %3431 = vrot.lane.b32.xlu0 %v3403_v51, %s6990_s2 }
 0x3e4   :  { %v3590_v63 = vmax.f32 %v3574_v19, 0.0  ;;  %v9190_v1 = vsel %vm2475_vm4, %v3525_v8, %v3526_v47 }
 0x3e5   :  { %3609 = vst.msk [vmem:[#allocation6 + $0x8] sm:$0x7f] %vm3608_vm11, %v3591_v39  ;;  %v3347_v30 = vpop.f32.mrf.mxu1 }
 0x3e6   :  { %3607 = vst.msk [vmem:[#allocation6] sm:$0xff] %vm3606_vm12, %v3590_v63  ;;  %v3528_v34 = vrot.slane %v3347_v30, 2 }
 0x3e8   :  { %v9195_v21 = vsel %vm2475_vm4, %v3526_v47, %v3528_v34  ;;  %v9197_v57 = vpop.f32.mrf.mxu1 }
 0x3e9   :  { %v3404_v53 = vrot.slane %v9197_v57, 1 }
 0x3ea   :  { %v3353_v41 = vpop.f32.mrf.mxu1 }
 0x3eb   :  { %v3530_v23 = vrot.slane %v3353_v41, 2 }
 0x3ed   :  { %v3624_v2 = vld [vmem:[#allocation6] ss:$2 sm:$0x7f]  ;;  %v3640_v13 = vld [vmem:[#allocation6 + $0x1] ss:$2 sm:$0x7f] }
 0x3ee   :  { %v3655_v52 = vmax.f32 %v3624_v2, %v3640_v13  ;;  %v3664_v58 = vld [vmem:[#allocation6 + $0x2] ss:$2 sm:$0x7f] }
 0x3f0   :  { %v3679_v17 = vmax.f32 %v3655_v52, %v3664_v58  ;;  %v9199_v62 = vpop.f32.mrf.mxu1  ;;  %v3414_v45 = vpop.permute.xlu1 %3413 }
 0x3f1   :  { %v3405_v15 = vrot.slane %v9199_v62, 1  ;;  %v3458_v55 = vadd.f32 %v3414_v45, %v9069_v37  ;;  %v3412_v7 = vpop.permute.xlu0 %3411 }
 0x3f2   :  { %3687 = vst.msk [vmem:[#allocation7] sm:$0x7f] %vm3608_vm11, %v3679_v17  ;;  %v9205_v35 = vpop.f32.mrf.mxu1  ;;  %v3457_v3 = vadd.f32 %v3412_v7, %v9041_v5 }
 0x3f3   :  { %v3554_v26 = vadd.f32 %v9092_v59, %v3458_v55  ;;  %v3531_v54 = vrot.slane %v9205_v35, 2  ;;  %3437 = vrot.lane.b32.xlu1 %v3405_v15, %s6990_s2  ;;  %v3406_v44 = vsel %vm2242_vm5, %v3404_v53, %v3405_v15  ;;  %vm4309_vm5 = vcmask 1045509  }
 0x3f4   :  { %v3553_v0 = vadd.f32 %v9080_v61, %v3457_v3  ;;  %3435 = vrot.lane.b32.xlu0 %v3406_v44, %s6990_s2  ;;  %v3363_v37 = vpop.f32.mrf.mxu1 }
 0x3f5   :  { %v3577_v9 = vadd.f32 %v9175_v12, %v3554_v26  ;;  %v9218_v5 = vsel %vm2475_vm4, %v3530_v23, %v3531_v54 }
 0x3f6   :  { %v3576_v59 = vadd.f32 %v9175_v12, %v3553_v0 }
 0x3f7   :  { %v3593_v6 = vmax.f32 %v3577_v9, 0.0 }
 0x3f8   :  { %v3592_v8 = vmax.f32 %v3576_v59, 0.0 }
 0x3f9   :  { %3611 = vst.msk [vmem:[#allocation6 + $0x18] sm:$0x7f] %vm3608_vm11, %v3593_v6  ;;  %v3704_v19 = vld [vmem:[#allocation7] sm:$0xff] }
 0x3fa   :  { %3610 = vst.msk [vmem:[#allocation6 + $0x10] sm:$0xff] %vm3606_vm12, %v3592_v8  ;;  %6300 = vmatmul.mubr.msk.f32.vlgmr.msra.gmra.mxu0 %vm3606_vm12, %v3704_v19  ;;  %6857 = vmatprep.mubr.msk.f32.mxu1 %vm3606_vm12, %v3704_v19 }
 0x3fb   :  { %3830 = vmatprep.mubr.f32.mxu0 %v10379_v33 }
 0x401   :  { %v3626_v61 = vld [vmem:[#allocation6 + $0x10] ss:$2 sm:$0x7f]  ;;  %v3642_v47 = vld [vmem:[#allocation6 + $0x11] ss:$2 sm:$0x7f] }
 0x402   :  { %v3656_v51 = vmax.f32 %v3626_v61, %v3642_v47  ;;  %v3666_v39 = vld [vmem:[#allocation6 + $0x12] ss:$2 sm:$0x7f] }
 0x404   :  { %v3418_v46 = vpop.permute.xlu1 %3417  ;;  %v3680_v63 = vmax.f32 %v3656_v51, %v3666_v39 }
 0x405   :  { %v3460_v30 = vadd.f32 %v3418_v46, %v9111_v50  ;;  %v3416_v34 = vpop.permute.xlu0 %3415 }
 0x406   :  { %v3459_v2 = vadd.f32 %v3416_v34, %v9100_v38  ;;  %3688 = vst.msk [vmem:[#allocation7 + $0x8] sm:$0x7f] %vm3608_vm11, %v3680_v63 }
 0x407   :  { %v3556_v13 = vadd.f32 %v9122_v36, %v3460_v30 }
 0x408   :  { %v3555_v52 = vadd.f32 %v9119_v4, %v3459_v2 }
 0x409   :  { %v3579_v41 = vadd.f32 %v9175_v12, %v3556_v13 }
 0x40a   :  { %v3578_v58 = vadd.f32 %v9175_v12, %v3555_v52 }
 0x40b   :  { %v3595_v17 = vmax.f32 %v3579_v41, 0.0 }
 0x40c   :  { %v3594_v45 = vmax.f32 %v3578_v58, 0.0 }
 0x40d   :  { %3613 = vst.msk [vmem:[#allocation6 + $0x28] sm:$0x7f] %vm3608_vm11, %v3595_v17  ;;  %v3705_v53 = vld [vmem:[#allocation7 + $0x8] sm:$0xff] }
 0x40e   :  { %3612 = vst.msk [vmem:[#allocation6 + $0x20] sm:$0xff] %vm3606_vm12, %v3594_v45  ;;  %6301 = vmatmul.mubr.msk.f32.gmra.mxu0 %vm3606_vm12, %v3705_v53  ;;  %6858 = vmatmul.mubr.msk.f32.vlgmr.msra.gmra.mxu1 %vm3606_vm12, %v3705_v53 }
 0x40f   :  { %3836 = vmatprep.mubr.f32.mxu0 %v10379_v33 }
 0x415   :  { %v3628_v38 = vld [vmem:[#allocation6 + $0x20] ss:$2 sm:$0x7f]  ;;  %v3644_v50 = vld [vmem:[#allocation6 + $0x21] ss:$2 sm:$0x7f] }
 0x416   :  { %v3657_v4 = vmax.f32 %v3628_v38, %v3644_v50  ;;  %v3668_v36 = vld [vmem:[#allocation6 + $0x22] ss:$2 sm:$0x7f] }
 0x418   :  { %v3422_v15 = vpop.permute.xlu1 %3421  ;;  %v3681_v55 = vmax.f32 %v3657_v4, %v3668_v36 }
 0x419   :  { %v3462_v7 = vadd.f32 %v3422_v15, %v9126_v11  ;;  %v3420_v3 = vpop.permute.xlu0 %3419 }
 0x41a   :  { %v3461_v23 = vadd.f32 %v3420_v3, %v9124_v48  ;;  %3689 = vst.msk [vmem:[#allocation7 + $0x10] sm:$0x7f] %vm3608_vm11, %v3681_v55 }
 0x41b   :  { %v3558_v26 = vadd.f32 %v9137_v20, %v3462_v7 }
 0x41c   :  { %v3557_v44 = vadd.f32 %v9134_v16, %v3461_v23 }
 0x41d   :  { %v3581_v0 = vadd.f32 %v9175_v12, %v3558_v26 }
 0x41e   :  { %v3580_v37 = vadd.f32 %v9175_v12, %v3557_v44 }
 0x41f   :  { %v3597_v9 = vmax.f32 %v3581_v0, 0.0 }
 0x420   :  { %v3596_v59 = vmax.f32 %v3580_v37, 0.0 }
 0x421   :  { %3615 = vst.msk [vmem:[#allocation6 + $0x38] sm:$0x7f] %vm3608_vm11, %v3597_v9  ;;  %v3706_v6 = vld [vmem:[#allocation7 + $0x10] sm:$0xff] }
 0x422   :  { %3614 = vst.msk [vmem:[#allocation6 + $0x30] sm:$0xff] %vm3606_vm12, %v3596_v59  ;;  %6302 = vmatmul.mubr.msk.f32.gmra.mxu0 %vm3606_vm12, %v3706_v6  ;;  %6860 = vmatprep.mubr.msk.f32.mxu1 %vm3606_vm12, %v3706_v6 }
 0x423   :  { %3842 = vmatprep.mubr.f32.mxu0 %v10379_v33 }
 0x429   :  { %v3630_v48 = vld [vmem:[#allocation6 + $0x30] ss:$2 sm:$0x7f]  ;;  %v3646_v11 = vld [vmem:[#allocation6 + $0x31] ss:$2 sm:$0x7f] }
 0x42a   :  { %v3658_v16 = vmax.f32 %v3630_v48, %v3646_v11  ;;  %v3670_v20 = vld [vmem:[#allocation6 + $0x32] ss:$2 sm:$0x7f] }
 0x42c   :  { %v3426_v8 = vpop.permute.xlu1 %3425  ;;  %v3682_v19 = vmax.f32 %v3658_v16, %v3670_v20 }
 0x42d   :  { %v3464_v61 = vadd.f32 %v3426_v8, %v9141_v28  ;;  %v3424_v47 = vpop.permute.xlu0 %3423 }
 0x42e   :  { %v3463_v51 = vadd.f32 %v3424_v47, %v9139_v42  ;;  %3690 = vst.msk [vmem:[#allocation7 + $0x18] sm:$0x7f] %vm3608_vm11, %v3682_v19 }
 0x42f   :  { %v3560_v39 = vadd.f32 %v9152_v43, %v3464_v61 }
 0x430   :  { %v3559_v46 = vadd.f32 %v9149_v24, %v3463_v51 }
 0x431   :  { %v3583_v63 = vadd.f32 %v9175_v12, %v3560_v39 }
 0x432   :  { %v3582_v30 = vadd.f32 %v9175_v12, %v3559_v46 }
 0x433   :  { %v3599_v34 = vmax.f32 %v3583_v63, 0.0 }
 0x434   :  { %v3598_v2 = vmax.f32 %v3582_v30, 0.0 }
 0x435   :  { %3617 = vst.msk [vmem:[#allocation6 + $0x48] sm:$0x7f] %vm3608_vm11, %v3599_v34  ;;  %v3707_v13 = vld [vmem:[#allocation7 + $0x18] sm:$0xff] }
 0x436   :  { %3616 = vst.msk [vmem:[#allocation6 + $0x40] sm:$0xff] %vm3606_vm12, %v3598_v2  ;;  %6303 = vmatmul.mubr.msk.f32.gmra.mxu0 %vm3606_vm12, %v3707_v13  ;;  %6861 = vmatmul.mubr.msk.f32.gmra.mxu1 %vm3606_vm12, %v3707_v13 }
 0x437   :  { %3848 = vmatprep.mubr.f32.mxu0 %v10379_v33 }
 0x43d   :  { %v3632_v42 = vld [vmem:[#allocation6 + $0x40] ss:$2 sm:$0x7f]  ;;  %v3648_v28 = vld [vmem:[#allocation6 + $0x41] ss:$2 sm:$0x7f] }
 0x43e   :  { %v3659_v24 = vmax.f32 %v3632_v42, %v3648_v28  ;;  %v3672_v43 = vld [vmem:[#allocation6 + $0x42] ss:$2 sm:$0x7f] }
 0x440   :  { %v3430_v52 = vpop.permute.xlu1 %3429  ;;  %v3683_v41 = vmax.f32 %v3659_v24, %v3672_v43 }
 0x441   :  { %v3466_v58 = vadd.f32 %v3430_v52, %v9156_v22  ;;  %v3428_v17 = vpop.permute.xlu0 %3427 }
 0x442   :  { %v3465_v45 = vadd.f32 %v3428_v17, %v9154_v32  ;;  %3691 = vst.msk [vmem:[#allocation7 + $0x20] sm:$0x7f] %vm3608_vm11, %v3683_v41 }
 0x443   :  { %v3562_v53 = vadd.f32 %v9167_v56, %v3466_v58 }
 0x444   :  { %v3561_v38 = vadd.f32 %v9164_v40, %v3465_v45 }
 0x445   :  { %v3585_v50 = vadd.f32 %v9175_v12, %v3562_v53 }
 0x446   :  { %v3584_v4 = vadd.f32 %v9175_v12, %v3561_v38 }
 0x447   :  { %v3601_v36 = vmax.f32 %v3585_v50, 0.0 }
 0x448   :  { %v3600_v15 = vmax.f32 %v3584_v4, 0.0 }
 0x449   :  { %3619 = vst.msk [vmem:[#allocation6 + $0x58] sm:$0x7f] %vm3608_vm11, %v3601_v36  ;;  %v3708_v55 = vld [vmem:[#allocation7 + $0x20] sm:$0xff] }
 0x44a   :  { %3618 = vst.msk [vmem:[#allocation6 + $0x50] sm:$0xff] %vm3606_vm12, %v3600_v15  ;;  %6304 = vmatmul.mubr.msk.f32.gmra.mxu0 %vm3606_vm12, %v3708_v55  ;;  %6863 = vmatprep.mubr.msk.f32.mxu1 %vm3606_vm12, %v3708_v55  ;;  %v9306_v55 = vld [vmem:[%s10064_s8] ss:$0 sm:$0xff] }
 0x44b   :  { %3854 = vmatprep.mubr.f32.mxu0 %v10379_v33 }
 0x451   :  { %v3634_v32 = vld [vmem:[#allocation6 + $0x50] ss:$2 sm:$0x7f]  ;;  %v3650_v22 = vld [vmem:[#allocation6 + $0x51] ss:$2 sm:$0x7f] }
 0x452   :  { %v3660_v40 = vmax.f32 %v3634_v32, %v3650_v22  ;;  %v3674_v56 = vld [vmem:[#allocation6 + $0x52] ss:$2 sm:$0x7f] }
 0x454   :  { %v3434_v7 = vpop.permute.xlu1 %3433  ;;  %v3684_v3 = vmax.f32 %v3660_v40, %v3674_v56 }
 0x455   :  { %v3468_v23 = vadd.f32 %v3434_v7, %v9179_v49  ;;  %v3432_v26 = vpop.permute.xlu0 %3431 }
 0x456   :  { %v3467_v44 = vadd.f32 %v3432_v26, %v9169_v18  ;;  %3692 = vst.msk [vmem:[#allocation7 + $0x28] sm:$0x7f] %vm3608_vm11, %v3684_v3  ;;  %v3364_v18 = vpop.f32.mrf.mxu1 }
 0x457   :  { %v3564_v0 = vadd.f32 %v9195_v21, %v3468_v23  ;;  %v3533_v49 = vrot.slane %v3364_v18, 2 }
 0x458   :  { %v3563_v37 = vadd.f32 %v9190_v1, %v3467_v44 }
 0x459   :  { %v3587_v9 = vadd.f32 %v9175_v12, %v3564_v0  ;;  %v3534_v61 = vsel %vm2475_vm4, %v3531_v54, %v3533_v49  ;;  %vm4307_vm4 = vcmask 1044484  }
 0x45a   :  { %v3586_v59 = vadd.f32 %v9175_v12, %v3563_v37 }
 0x45b   :  { %v3603_v6 = vmax.f32 %v3587_v9, 0.0 }
 0x45c   :  { %v3602_v48 = vmax.f32 %v3586_v59, 0.0 }
 0x45d   :  { %3621 = vst.msk [vmem:[#allocation6 + $0x68] sm:$0x7f] %vm3608_vm11, %v3603_v6  ;;  %v3709_v11 = vld [vmem:[#allocation7 + $0x28] sm:$0xff] }
 0x45e   :  { %3620 = vst.msk [vmem:[#allocation6 + $0x60] sm:$0xff] %vm3606_vm12, %v3602_v48  ;;  %6305 = vmatmul.mubr.msk.f32.gmra.mxu0 %vm3606_vm12, %v3709_v11  ;;  %6864 = vmatmul.mubr.msk.f32.gmra.mxu1 %vm3606_vm12, %v3709_v11 }
 0x45f   :  { %3860 = vmatprep.mubr.f32.mxu0 %v10379_v33 }
 0x465   :  { %v3636_v1 = vld [vmem:[#allocation6 + $0x60] ss:$2 sm:$0x7f]  ;;  %v3652_v21 = vld [vmem:[#allocation6 + $0x61] ss:$2 sm:$0x7f]  ;;  %v3438_v16 = vpop.permute.xlu1 %3437 }
 0x466   :  { %v3470_v20 = vadd.f32 %v3438_v16, %v9199_v62  ;;  %v3436_v8 = vpop.permute.xlu0 %3435  ;;  %v3661_v19 = vmax.f32 %v3636_v1, %v3652_v21  ;;  %v3676_v51 = vld [vmem:[#allocation6 + $0x62] ss:$2 sm:$0x7f] }
 0x467   :  { %v3469_v47 = vadd.f32 %v3436_v8, %v9197_v57 }
 0x468   :  { %v3566_v39 = vadd.f32 %v3534_v61, %v3470_v20  ;;  %v3685_v46 = vmax.f32 %v3661_v19, %v3676_v51 }
 0x469   :  { %v3565_v63 = vadd.f32 %v9218_v5, %v3469_v47 }
 0x46a   :  { %v3589_v30 = vadd.f32 %v9175_v12, %v3566_v39  ;;  %3693 = vst.msk [vmem:[#allocation7 + $0x30] sm:$0x7f] %vm3608_vm11, %v3685_v46 }
 0x46b   :  { %v3588_v34 = vadd.f32 %v9175_v12, %v3565_v63 }
 0x46c   :  { %v3605_v62 = vmax.f32 %v3589_v30, 0.0 }
 0x46d   :  { %v3604_v2 = vmax.f32 %v3588_v34, 0.0 }
 0x46e   :  { %3623 = vst.msk [vmem:[#allocation6 + $0x78] sm:$0x7f] %vm3608_vm11, %v3605_v62 }
 0x46f   :  { %3622 = vst.msk [vmem:[#allocation6 + $0x70] sm:$0xff] %vm3606_vm12, %v3604_v2 }
 0x471   :  { %v3710_v35 = vld [vmem:[#allocation7 + $0x30] sm:$0xff] }
 0x472   :  { %6306 = vmatmul.mubr.msk.f32.gmra.mxu0 %vm3606_vm12, %v3710_v35  ;;  %6866 = vmatprep.mubr.msk.f32.mxu1 %vm3606_vm12, %v3710_v35 }
 0x473   :  { %3866 = vmatprep.mubr.f32.mxu0 %v10379_v33 }
 0x476   :  { %v3638_v57 = vld [vmem:[#allocation6 + $0x70] ss:$2 sm:$0x7f]  ;;  %v3654_v54 = vld [vmem:[#allocation6 + $0x71] ss:$2 sm:$0x7f] }
 0x477   :  { %v3662_v5 = vmax.f32 %v3638_v57, %v3654_v54  ;;  %v3678_v13 = vld [vmem:[#allocation6 + $0x72] ss:$2 sm:$0x7f] }
 0x479   :  { %v3686_v42 = vmax.f32 %v3662_v5, %v3678_v13 }
 0x47b   :  { %3694 = vst.msk [vmem:[#allocation7 + $0x38] sm:$0x7f] %vm3608_vm11, %v3686_v42 }
 0x482   :  { %v3711_v12 = vld [vmem:[#allocation7 + $0x38] sm:$0xff] }
 0x483   :  { %6307 = vmatmul.mubr.msk.f32.gmra.mxu0 %vm3606_vm12, %v3711_v12  ;;  %6867 = vmatmul.mubr.msk.f32.gmra.mxu1 %vm3606_vm12, %v3711_v12 }
 0x4ba   :  { %v3826_v28 = vpop.f32.mrf.mxu0 }
 0x4bc   :  { %v3828_v24 = vpop.f32.mrf.mxu0 }
 0x4bd   :  { %v3986_v45 = vrot.slane %v3828_v24, 1 }
 0x4bf   :  { %v4002_v50 = vadd.f32 %v3986_v45, %v3826_v28 }
 0x4ce   :  { %v3832_v43 = vpop.f32.mrf.mxu0  ;;  %v6859_v52 = vpop.f32.mrf.mxu1 }
 0x4cf   :  { %v4019_v4 = vrot.slane %v6859_v52, 2 }
 0x4d0   :  { %v3834_v41 = vpop.f32.mrf.mxu0  ;;  %v3939_v17 = vpop.f32.mrf.mxu1 }
 0x4d1   :  { %v3987_v58 = vrot.slane %v3834_v41, 1  ;;  %v4018_v53 = vrot.slane %v3939_v17, 2 }
 0x4d3   :  { %v4003_v38 = vadd.f32 %v3987_v58, %v3832_v43  ;;  %v4034_v36 = vadd.f32 %v4018_v53, %v4002_v50 }
 0x4d5   :  { %v4035_v15 = vadd.f32 %v4019_v4, %v4003_v38  ;;  %v4049_v32 = vadd.f32 %v9306_v55, %v4034_v36 }
 0x4d7   :  { %v4050_v40 = vadd.f32 %v9306_v55, %v4035_v15  ;;  %v4057_v56 = vmax.f32 %v4049_v32, 0.0 }
 0x4d9   :  { %v4058_v3 = vmax.f32 %v4050_v40, 0.0  ;;  %v4066_v44 = vsel %vm4065_vm13, %v4057_v56, -inf  ;;  %v4123_v0 = vsel %vm4122_vm14, %v4057_v56, -inf  ;;  %v4180_v6 = vsel %vm4179_vm15, %v4057_v56, -inf }
 0x4da   :  { %v4067_v18 = vrot.slane %v4066_v44, 4  ;;  %v4124_v49 = vrot.slane %v4123_v0, 4  ;;  %v4237_v16 = vsel %vm4236_vm0, %v4057_v56, -inf  ;;  %v4181_v61 = vrot.slane %v4180_v6, 4 }
 0x4db   :  { %v4073_v37 = vsel %vm4065_vm13, %v4058_v3, -inf  ;;  %v4130_v9 = vsel %vm4122_vm14, %v4058_v3, -inf  ;;  %v4187_v59 = vsel %vm4179_vm15, %v4058_v3, -inf  ;;  %v4244_v11 = vsel %vm4236_vm0, %v4058_v3, -inf }
 0x4dc   :  { %v4074_v21 = vrot.slane %v4073_v37, 4  ;;  %v4131_v8 = vrot.slane %v4130_v9, 4  ;;  %v4188_v19 = vrot.slane %v4187_v59, 4  ;;  %v4245_v51 = vrot.slane %v4244_v11, 4 }
 0x4dd   :  { %v4068_v46 = vmax.f32 %v4066_v44, %v4067_v18  ;;  %v4125_v63 = vmax.f32 %v4123_v0, %v4124_v49  ;;  %v4238_v30 = vrot.slane %v4237_v16, 4  ;;  %v4182_v54 = vmax.f32 %v4180_v6, %v4181_v61 }
 0x4de   :  { %v4075_v62 = vmax.f32 %v4073_v37, %v4074_v21  ;;  %v4132_v35 = vmax.f32 %v4130_v9, %v4131_v8  ;;  %v4189_v57 = vmax.f32 %v4187_v59, %v4188_v19  ;;  %v4246_v13 = vmax.f32 %v4244_v11, %v4245_v51 }
 0x4df   :  { %v4069_v12 = vrot.slane %v4068_v46, 2  ;;  %v4126_v28 = vrot.slane %v4125_v63, 2  ;;  %v4239_v24 = vmax.f32 %v4237_v16, %v4238_v30  ;;  %v4183_v45 = vrot.slane %v4182_v54, 2 }
 0x4e0   :  { %v4076_v41 = vrot.slane %v4075_v62, 2  ;;  %v4133_v58 = vrot.slane %v4132_v35, 2  ;;  %v4190_v17 = vrot.slane %v4189_v57, 2  ;;  %v4247_v4 = vrot.slane %v4246_v13, 2 }
 0x4e1   :  { %v4070_v36 = vmax.f32 %v4068_v46, %v4069_v12  ;;  %v4127_v15 = vmax.f32 %v4125_v63, %v4126_v28  ;;  %v4240_v32 = vrot.slane %v4239_v24, 2 }
 0x4e2   :  { %v3838_v22 = vpop.f32.mrf.mxu0  ;;  %v4077_v56 = vmax.f32 %v4075_v62, %v4076_v41  ;;  %v4191_v3 = vmax.f32 %v4189_v57, %v4190_v17 }
 0x4e3   :  { %v4071_v11 = vrot.slane %v4070_v36, 1  ;;  %v4128_v18 = vrot.slane %v4127_v15, 1  ;;  %v4241_v49 = vmax.f32 %v4239_v24, %v4240_v32 }
 0x4e4   :  { %v3840_v7 = vpop.f32.mrf.mxu0  ;;  %v4192_v61 = vrot.slane %v4191_v3, 1 }
 0x4e5   :  { %v3988_v20 = vrot.slane %v3840_v7, 1  ;;  %v4134_v7 = vmax.f32 %v4132_v35, %v4133_v58  ;;  %v4072_v46 = vmax.f32 %v4070_v36, %v4071_v11  ;;  %v4129_v62 = vmax.f32 %v4127_v15, %v4128_v18 }
 0x4e7   :  { %v4004_v2 = vadd.f32 %v3988_v20, %v3838_v22  ;;  %v4135_v8 = vrot.slane %v4134_v7, 1 }
 0x4e9   :  { %v4136_v57 = vmax.f32 %v4134_v7, %v4135_v8 }
 0x4f6   :  { %v3844_v23 = vpop.f32.mrf.mxu0  ;;  %v6862_v26 = vpop.f32.mrf.mxu1 }
 0x4f7   :  { %v4021_v43 = vrot.slane %v6862_v26, 2 }
 0x4f8   :  { %v3846_v48 = vpop.f32.mrf.mxu0  ;;  %v3949_v1 = vpop.f32.mrf.mxu1 }
 0x4f9   :  { %v3989_v47 = vrot.slane %v3846_v48, 1  ;;  %v4020_v39 = vrot.slane %v3949_v1, 2  ;;  %v4248_v48 = vmax.f32 %v4246_v13, %v4247_v4  ;;  %v4078_v1 = vrot.slane %v4077_v56, 1 }
 0x4fb   :  { %v4005_v5 = vadd.f32 %v3989_v47, %v3844_v23  ;;  %v4036_v42 = vadd.f32 %v4020_v39, %v4004_v2  ;;  %v4184_v23 = vmax.f32 %v4182_v54, %v4183_v45  ;;  %v4249_v39 = vrot.slane %v4248_v48, 1 }
 0x4fc   :  { %v4242_v2 = vrot.slane %v4241_v49, 1 }
 0x4fd   :  { %v4037_v53 = vadd.f32 %v4021_v43, %v4005_v5  ;;  %v4051_v38 = vadd.f32 %v9306_v55, %v4036_v42  ;;  %v4185_v63 = vrot.slane %v4184_v23, 1  ;;  %v4193_v42 = vmax.f32 %v4191_v3, %v4192_v61 }
 0x4fe   :  { %v4250_v43 = vmax.f32 %v4248_v48, %v4249_v39  ;;  %v4243_v17 = vmax.f32 %v4241_v49, %v4242_v2 }
 0x4ff   :  { %v4052_v26 = vadd.f32 %v9306_v55, %v4037_v53  ;;  %v4059_v37 = vmax.f32 %v4051_v38, 0.0 }
 0x501   :  { %v4060_v19 = vmax.f32 %v4052_v26, 0.0  ;;  %v4080_v47 = vsel %vm4065_vm13, %v4059_v37, -inf  ;;  %v4137_v35 = vsel %vm4122_vm14, %v4059_v37, -inf  ;;  %v4194_v13 = vsel %vm4179_vm15, %v4059_v37, -inf }
 0x502   :  { %v4081_v5 = vrot.slane %v4080_v47, 4  ;;  %v4138_v41 = vrot.slane %v4137_v35, 4  ;;  %v4195_v38 = vrot.slane %v4194_v13, 4  ;;  %v4251_v15 = vsel %vm4236_vm0, %v4059_v37, -inf }
 0x503   :  { %v4087_v54 = vsel %vm4065_vm13, %v4060_v19, -inf  ;;  %v4144_v12 = vsel %vm4122_vm14, %v4060_v19, -inf  ;;  %v4201_v28 = vsel %vm4179_vm15, %v4060_v19, -inf  ;;  %v4258_v53 = vsel %vm4236_vm0, %v4060_v19, -inf }
 0x504   :  { %v4088_v45 = vrot.slane %v4087_v54, 4  ;;  %v4202_v4 = vrot.slane %v4201_v28, 4  ;;  %v4082_v36 = vmax.f32 %v4080_v47, %v4081_v5  ;;  %v4259_v7 = vrot.slane %v4258_v53, 4 }
 0x505   :  { %v4139_v3 = vmax.f32 %v4137_v35, %v4138_v41 }
 0x506   :  { %v4203_v48 = vmax.f32 %v4201_v28, %v4202_v4  ;;  %v4083_v11 = vrot.slane %v4082_v36, 2 }
 0x507   :  { %v4140_v47 = vrot.slane %v4139_v3, 2 }
 0x508   :  { %v4204_v5 = vrot.slane %v4203_v48, 2 }
 0x50a   :  { %v3850_v34 = vpop.f32.mrf.mxu0 }
 0x50c   :  { %v3852_v52 = vpop.f32.mrf.mxu0 }
 0x50d   :  { %v3990_v50 = vrot.slane %v3852_v52, 1  ;;  %v4186_v52 = vmax.f32 %v4184_v23, %v4185_v63 }
 0x50f   :  { %v4006_v9 = vadd.f32 %v3990_v50, %v3850_v34  ;;  %v4079_v34 = vmax.f32 %v4077_v56, %v4078_v1  ;;  %v4145_v50 = vrot.slane %v4144_v12, 4 }
 0x511   :  { %v9331_v32 = vsel %vm4301_vm1, %v4079_v34, %v4072_v46  ;;  %v4084_v46 = vmax.f32 %v4082_v36, %v4083_v11  ;;  %v4205_v36 = vmax.f32 %v4203_v48, %v4204_v5 }
 0x513   :  { %v4085_v41 = vrot.slane %v4084_v46, 1 }
 0x51e   :  { %v3856_v22 = vpop.f32.mrf.mxu0  ;;  %v6865_v40 = vpop.f32.mrf.mxu1 }
 0x51f   :  { %v4023_v21 = vrot.slane %v6865_v40, 2  ;;  %v9337_v40 = vsel %vm4301_vm1, %v4193_v42, %v4186_v52 }
 0x520   :  { %v3858_v44 = vpop.f32.mrf.mxu0  ;;  %v3959_v0 = vpop.f32.mrf.mxu1 }
 0x521   :  { %v3991_v59 = vrot.slane %v3858_v44, 1  ;;  %v4022_v6 = vrot.slane %v3959_v0, 2  ;;  %v4089_v44 = vmax.f32 %v4087_v54, %v4088_v45  ;;  %v4196_v0 = vmax.f32 %v4194_v13, %v4195_v38 }
 0x523   :  { %v4007_v16 = vadd.f32 %v3991_v59, %v3856_v22  ;;  %v4038_v20 = vadd.f32 %v4022_v6, %v4006_v9  ;;  %v9334_v22 = vsel %vm4301_vm1, %v4136_v57, %v4129_v62  ;;  %v4252_v9 = vrot.slane %v4251_v15, 4 }
 0x524   :  { %v9343_v59 = vsel %vm4301_vm1, %v4250_v43, %v4243_v17  ;;  %v4146_v6 = vmax.f32 %v4144_v12, %v4145_v50  ;;  %v4090_v61 = vrot.slane %v4089_v44, 2  ;;  %v4141_v12 = vmax.f32 %v4139_v3, %v4140_v47 }
 0x525   :  { %v4039_v51 = vadd.f32 %v4023_v21, %v4007_v16  ;;  %v4053_v30 = vadd.f32 %v9306_v55, %v4038_v20  ;;  %v4260_v16 = vmax.f32 %v4258_v53, %v4259_v7  ;;  %v4253_v39 = vmax.f32 %v4251_v15, %v4252_v9 }
 0x526   :  { %v4147_v54 = vrot.slane %v4146_v6, 2  ;;  %v4091_v52 = vmax.f32 %v4089_v44, %v4090_v61  ;;  %v4142_v7 = vrot.slane %v4141_v12, 1 }
 0x527   :  { %v4054_v24 = vadd.f32 %v9306_v55, %v4039_v51  ;;  %v4061_v58 = vmax.f32 %v4053_v30, 0.0  ;;  %v4197_v51 = vrot.slane %v4196_v0, 2  ;;  %v4261_v13 = vrot.slane %v4260_v16, 2 }
 0x528   :  { %v4148_v4 = vmax.f32 %v4146_v6, %v4147_v54  ;;  %v4092_v9 = vrot.slane %v4091_v52, 1  ;;  %v4143_v48 = vmax.f32 %v4141_v12, %v4142_v7 }
 0x529   :  { %v4062_v56 = vmax.f32 %v4054_v24, 0.0  ;;  %v4094_v23 = vsel %vm4065_vm13, %v4061_v58, -inf  ;;  %v4151_v26 = vsel %vm4122_vm14, %v4061_v58, -inf  ;;  %v4208_v37 = vsel %vm4179_vm15, %v4061_v58, -inf }
 0x52a   :  { %v4095_v1 = vrot.slane %v4094_v23, 4  ;;  %v4152_v21 = vrot.slane %v4151_v26, 4  ;;  %v4209_v8 = vrot.slane %v4208_v37, 4  ;;  %v4265_v19 = vsel %vm4236_vm0, %v4061_v58, -inf }
 0x52b   :  { %v4101_v18 = vsel %vm4065_vm13, %v4062_v56, -inf  ;;  %v4158_v49 = vsel %vm4122_vm14, %v4062_v56, -inf  ;;  %v4215_v20 = vsel %vm4179_vm15, %v4062_v56, -inf  ;;  %v4272_v34 = vsel %vm4236_vm0, %v4062_v56, -inf }
 0x52c   :  { %v4102_v63 = vrot.slane %v4101_v18, 4  ;;  %v4159_v30 = vrot.slane %v4158_v49, 4  ;;  %v4216_v62 = vrot.slane %v4215_v20, 4  ;;  %v4096_v2 = vmax.f32 %v4094_v23, %v4095_v1 }
 0x52d   :  { %v4153_v35 = vmax.f32 %v4151_v26, %v4152_v21  ;;  %v4266_v57 = vrot.slane %v4265_v19, 4  ;;  %v4210_v42 = vmax.f32 %v4208_v37, %v4209_v8  ;;  %v4198_v28 = vmax.f32 %v4196_v0, %v4197_v51 }
 0x52e   :  { %v4254_v24 = vrot.slane %v4253_v39, 2  ;;  %v4273_v43 = vrot.slane %v4272_v34, 4  ;;  %v4103_v58 = vmax.f32 %v4101_v18, %v4102_v63  ;;  %v4160_v17 = vmax.f32 %v4158_v49, %v4159_v30 }
 0x52f   :  { %v4217_v45 = vmax.f32 %v4215_v20, %v4216_v62  ;;  %v4097_v53 = vrot.slane %v4096_v2, 2  ;;  %v4154_v38 = vrot.slane %v4153_v35, 2  ;;  %v4267_v50 = vmax.f32 %v4265_v19, %v4266_v57 }
 0x530   :  { %v4262_v15 = vmax.f32 %v4260_v16, %v4261_v13  ;;  %v4211_v56 = vrot.slane %v4210_v42, 2  ;;  %v4199_v23 = vrot.slane %v4198_v28, 1  ;;  %v4255_v26 = vmax.f32 %v4253_v39, %v4254_v24 }
 0x531   :  { %v4274_v3 = vmax.f32 %v4272_v34, %v4273_v43  ;;  %v4086_v37 = vmax.f32 %v4084_v46, %v4085_v41  ;;  %v4104_v44 = vrot.slane %v4103_v58, 2  ;;  %v4161_v11 = vrot.slane %v4160_v17, 2 }
 0x532   :  { %v3862_v0 = vpop.f32.mrf.mxu0  ;;  %v4218_v18 = vrot.slane %v4217_v45, 2  ;;  %v4098_v49 = vmax.f32 %v4096_v2, %v4097_v53  ;;  %v4155_v1 = vmax.f32 %v4153_v35, %v4154_v38  ;;  %v4268_v21 = vrot.slane %v4267_v50, 2 }
 0x533   :  { %v4149_v20 = vrot.slane %v4148_v4, 1  ;;  %v4206_v8 = vrot.slane %v4205_v36, 1  ;;  %v4263_v19 = vrot.slane %v4262_v15, 1  ;;  %v4212_v6 = vmax.f32 %v4210_v42, %v4211_v56 }
 0x534   :  { %v4200_v16 = vmax.f32 %v4198_v28, %v4199_v23  ;;  %v4256_v61 = vrot.slane %v4255_v26, 1  ;;  %v4275_v47 = vrot.slane %v4274_v3, 2  ;;  %v3864_v51 = vpop.f32.mrf.mxu0  ;;  %v4093_v39 = vmax.f32 %v4091_v52, %v4092_v9 }
 0x535   :  { %v4304_v46 = vsel %vm4303_vm2, %v4086_v37, %v9331_v32  ;;  %v4105_v63 = vmax.f32 %v4103_v58, %v4104_v44  ;;  %v4162_v30 = vmax.f32 %v4160_v17, %v4161_v11  ;;  %v4219_v34 = vmax.f32 %v4217_v45, %v4218_v18 }
 0x536   :  { %v4099_v62 = vrot.slane %v4098_v49, 1  ;;  %v4156_v2 = vrot.slane %v4155_v1, 1  ;;  %v4269_v35 = vmax.f32 %v4267_v50, %v4268_v21  ;;  %v4150_v57 = vmax.f32 %v4148_v4, %v4149_v20 }
 0x537   :  { %v4207_v54 = vmax.f32 %v4205_v36, %v4206_v8  ;;  %v4213_v5 = vrot.slane %v4212_v6, 1  ;;  %v3992_v13 = vrot.slane %v3864_v51, 1  ;;  %v4264_v42 = vmax.f32 %v4262_v15, %v4263_v19 }
 0x538   :  { %v4257_v12 = vmax.f32 %v4255_v26, %v4256_v61  ;;  %v4325_v28 = vsel %vm4303_vm2, %v4143_v48, %v9334_v22  ;;  %v4276_v24 = vmax.f32 %v4274_v3, %v4275_v47  ;;  %v4341_v32 = vsel %vm4303_vm2, %v4200_v16, %v9337_v40 }
 0x539   :  { %v4106_v41 = vrot.slane %v4105_v63, 1  ;;  %v4163_v58 = vrot.slane %v4162_v30, 1  ;;  %v4306_v17 = vsel %vm4305_vm3, %v4093_v39, %v4304_v46  ;;  %v4220_v45 = vrot.slane %v4219_v34, 1 }
 0x53a   :  { %v4100_v53 = vmax.f32 %v4098_v49, %v4099_v62  ;;  %v4157_v38 = vmax.f32 %v4155_v1, %v4156_v2  ;;  %v4270_v50 = vrot.slane %v4269_v35, 1  ;;  %v4214_v15 = vmax.f32 %v4212_v6, %v4213_v5 }
 0x53b   :  { %v4008_v56 = vadd.f32 %v3992_v13, %v3862_v0  ;;  %v4357_v23 = vsel %vm4303_vm2, %v4257_v12, %v9343_v59  ;;  %v4277_v26 = vrot.slane %v4276_v24, 1  ;;  %v4326_v40 = vsel %vm4305_vm3, %v4150_v57, %v4325_v28 }
 0x53c   :  { %v4342_v3 = vsel %vm4305_vm3, %v4207_v54, %v4341_v32  ;;  %v4107_v9 = vmax.f32 %v4105_v63, %v4106_v41  ;;  %v4164_v18 = vmax.f32 %v4162_v30, %v4163_v58  ;;  %v4221_v49 = vmax.f32 %v4219_v34, %v4220_v45 }
 0x53d   :  { %v4271_v1 = vmax.f32 %v4269_v35, %v4270_v50  ;;  %v4308_v21 = vsel %vm4307_vm4, %v4100_v53, %v4306_v17  ;;  %v4327_v0 = vsel %vm4307_vm4, %v4157_v38, %v4326_v40  ;;  %v4343_v20 = vsel %vm4307_vm4, %v4214_v15, %v4342_v3 }
 0x53e   :  { %v9365_v19 = vmax.f32 %v4276_v24, %v4277_v26  ;;  %v4358_v6 = vsel %vm4305_vm3, %v4264_v42, %v4357_v23  ;;  %v9373_v47 = vsel %vm4309_vm5, %v4107_v9, %v4308_v21  ;;  %v9376_v51 = vsel %vm4309_vm5, %v4164_v18, %v4327_v0 }
 0x53f   :  { %v9370_v61 = vsel %vm4307_vm4, %v4271_v1, %v4358_v6  ;;  %v9379_v39 = vsel %vm4309_vm5, %v4221_v49, %v4343_v20 }
 0x543   :  { %v3868_v43 = vpop.f32.mrf.mxu0  ;;  %v6868_v52 = vpop.f32.mrf.mxu1 }
 0x544   :  { %v4025_v37 = vrot.slane %v6868_v52, 2 }
 0x545   :  { %v3870_v4 = vpop.f32.mrf.mxu0  ;;  %v3969_v36 = vpop.f32.mrf.mxu1 }
 0x546   :  { %v3993_v7 = vrot.slane %v3870_v4, 1  ;;  %v4024_v22 = vrot.slane %v3969_v36, 2 }
 0x548   :  { %v4009_v44 = vadd.f32 %v3993_v7, %v3868_v43  ;;  %v4040_v11 = vadd.f32 %v4024_v22, %v4008_v56 }
 0x54a   :  { %v4041_v8 = vadd.f32 %v4025_v37, %v4009_v44  ;;  %v4055_v59 = vadd.f32 %v9306_v55, %v4040_v11 }
 0x54c   :  { %v4056_v48 = vadd.f32 %v9306_v55, %v4041_v8  ;;  %v4063_v16 = vmax.f32 %v4055_v59, 0.0 }
 0x54e   :  { %v4064_v46 = vmax.f32 %v4056_v48, 0.0  ;;  %v4108_v63 = vsel %vm4065_vm13, %v4063_v16, -inf  ;;  %v4165_v30 = vsel %vm4122_vm14, %v4063_v16, -inf  ;;  %v4222_v55 = vsel %vm4179_vm15, %v4063_v16, -inf }
 0x54f   :  { %v4109_v34 = vrot.slane %v4108_v63, 4  ;;  %v4166_v62 = vrot.slane %v4165_v30, 4  ;;  %v4223_v2 = vrot.slane %v4222_v55, 4  ;;  %v4279_v35 = vsel %vm4236_vm0, %v4063_v16, -inf }
 0x550   :  { %v4115_v57 = vsel %vm4065_vm13, %v4064_v46, -inf  ;;  %v4172_v54 = vsel %vm4122_vm14, %v4064_v46, -inf  ;;  %v4229_v5 = vsel %vm4179_vm15, %v4064_v46, -inf  ;;  %v4286_v13 = vsel %vm4236_vm0, %v4064_v46, -inf }
 0x551   :  { %v4116_v42 = vrot.slane %v4115_v57, 4  ;;  %v4173_v12 = vrot.slane %v4172_v54, 4  ;;  %v4230_v28 = vrot.slane %v4229_v5, 4  ;;  %v4287_v24 = vrot.slane %v4286_v13, 4 }
 0x552   :  { %v4110_v43 = vmax.f32 %v4108_v63, %v4109_v34  ;;  %v4167_v52 = vmax.f32 %v4165_v30, %v4166_v62  ;;  %v4224_v32 = vmax.f32 %v4222_v55, %v4223_v2  ;;  %v4280_v41 = vrot.slane %v4279_v35, 4 }
 0x553   :  { %v4117_v58 = vmax.f32 %v4115_v57, %v4116_v42  ;;  %v4174_v17 = vmax.f32 %v4172_v54, %v4173_v12  ;;  %v4231_v45 = vmax.f32 %v4229_v5, %v4230_v28  ;;  %v4288_v53 = vmax.f32 %v4286_v13, %v4287_v24 }
 0x554   :  { %v4111_v38 = vrot.slane %v4110_v43, 2  ;;  %v4168_v50 = vrot.slane %v4167_v52, 2  ;;  %v4225_v4 = vrot.slane %v4224_v32, 2  ;;  %v4281_v36 = vmax.f32 %v4279_v35, %v4280_v41 }
 0x555   :  { %v4118_v15 = vrot.slane %v4117_v58, 2  ;;  %v4175_v56 = vrot.slane %v4174_v17, 2  ;;  %v4232_v7 = vrot.slane %v4231_v45, 2  ;;  %v4289_v22 = vrot.slane %v4288_v53, 2 }
 0x556   :  { %v4112_v23 = vmax.f32 %v4110_v43, %v4111_v38  ;;  %v4169_v26 = vmax.f32 %v4167_v52, %v4168_v50  ;;  %v4226_v40 = vmax.f32 %v4224_v32, %v4225_v4  ;;  %v4282_v3 = vrot.slane %v4281_v36, 2 }
 0x557   :  { %v4119_v9 = vmax.f32 %v4117_v58, %v4118_v15  ;;  %v4176_v37 = vmax.f32 %v4174_v17, %v4175_v56  ;;  %v4233_v44 = vmax.f32 %v4231_v45, %v4232_v7  ;;  %v4290_v11 = vmax.f32 %v4288_v53, %v4289_v22 }
 0x558   :  { %v4113_v18 = vrot.slane %v4112_v23, 1  ;;  %v4170_v49 = vrot.slane %v4169_v26, 1  ;;  %v4227_v1 = vrot.slane %v4226_v40, 1  ;;  %v4283_v21 = vmax.f32 %v4281_v36, %v4282_v3 }
 0x559   :  { %v4120_v0 = vrot.slane %v4119_v9, 1  ;;  %v4177_v20 = vrot.slane %v4176_v37, 1  ;;  %v4234_v8 = vrot.slane %v4233_v44, 1  ;;  %v4291_v59 = vrot.slane %v4290_v11, 1 }
 0x55a   :  { %v4114_v6 = vmax.f32 %v4112_v23, %v4113_v18  ;;  %v4171_v48 = vmax.f32 %v4169_v26, %v4170_v49  ;;  %v4228_v16 = vmax.f32 %v4226_v40, %v4227_v1  ;;  %v4284_v46 = vrot.slane %v4283_v21, 1 }
 0x55b   :  { %v4121_v63 = vmax.f32 %v4119_v9, %v4120_v0  ;;  %v4178_v30 = vmax.f32 %v4176_v37, %v4177_v20  ;;  %v4235_v55 = vmax.f32 %v4233_v44, %v4234_v8  ;;  %v4292_v34 = vmax.f32 %v4290_v11, %v4291_v59 }
 0x55c   :  { %v4285_v62 = vmax.f32 %v4283_v21, %v4284_v46  ;;  %v4312_v2 = vsel %vm4311_vm6, %v4114_v6, %v9373_v47  ;;  %v4329_v35 = vsel %vm4311_vm6, %v4171_v48, %v9376_v51  ;;  %v4345_v57 = vsel %vm4311_vm6, %v4228_v16, %v9379_v39 }
 0x55d   :  { %v9396_v54 = vsel %vm4313_vm7, %v4121_v63, %v4312_v2  ;;  %v4330_v5 = vsel %vm4313_vm7, %v4178_v30, %v4329_v35  ;;  %v9400_v13 = vsel %vm4313_vm7, %v4235_v55, %v4345_v57  ;;  %v4360_v42 = vsel %vm4309_vm5, %v9365_v19, %v9370_v61 }
 0x55e   :  { %v4361_v47 = vsel %vm4311_vm6, %v4285_v62, %v4360_v42  ;;  %v6346_v51 = vcombine.high %v7215_v29, %v7225_v31  ;;  %v6410_v39 = vcombine.high %v7535_v60, %v7545_v14  ;;  %v6345_v28 = vcombine.low %v7215_v29, %v7225_v31 }
 0x55f   :  { %v4362_v12 = vsel %vm4313_vm7, %v4292_v34, %v4361_v47  ;;  %v6409_v24 = vcombine.low %v7535_v60, %v7545_v14 }
 0x560   :  { %6985 = dma.done.wait [#allocation10], 16384 }
 0x561   :  { %6986 = vsyncadd [#allocation10], 4294950912  ;;  %v6342_v19 = vcombine.high %v7195_v25, %v7205_v27  ;;  %v10380_v61 = vld [vmem:[#allocation100_spill] sm:$0xff]  ;;  %5162 = vmatprep.subr.bf16.mxu0 %v6346_v51  ;;  %5203 = vmatprep.subr.bf16.mxu1 %v6410_v39  ;;  %v6341_v52 = vcombine.low %v7195_v25, %v7205_v27  ;;  %v10381_v14 = vld [vmem:[#allocation38_spill] sm:$0xff]  ;;  %v9451_v1 = vpack.c.bf16 %v4330_v5, %v4330_v5 }
 0x562   :  { %v6406_v43 = vcombine.high %v10380_v61, %v7525_v10  ;;  %5163 = vmatpush1.bf16.msra.mxu0 %v6345_v28  ;;  %5204 = vmatpush1.bf16.msra.mxu1 %v6409_v24  ;;  %v6405_v29 = vcombine.low %v10380_v61, %v7525_v10  ;;  %v10382_v31 = vld [vmem:[#allocation36_spill] sm:$0xff]  ;;  %v10383_v32 = vld [vmem:[#allocation98_spill] sm:$0xff]  ;;  %v9453_v21 = vpack.c.bf16 %v4362_v12, %v4362_v12  ;;  %v10407_v39 = vld [vmem:[#allocation135_spill] sm:$0xff] }
 0x563   :  { %5164 = vmatprep.subr.bf16.mxu0 %v6342_v19  ;;  %v6338_v60 = vcombine.high %v10382_v31, %v10381_v14  ;;  %v10384_v41 = vld [vmem:[#allocation96_spill] sm:$0xff]  ;;  %v6337_v17 = vcombine.low %v10382_v31, %v10381_v14  ;;  %v10385_v25 = vld [vmem:[#allocation34_spill] sm:$0xff]  ;;  %5194 = vmatprep.mubr.bf16.mxu0 %v9451_v1  ;;  %v10408_v28 = vld [vmem:[#allocation133_spill] sm:$0xff] }
 0x564   :  { %5205 = vmatprep.subr.bf16.mxu1 %v6406_v43  ;;  %v6402_v58 = vcombine.high %v10384_v41, %v10383_v32  ;;  %v6401_v45 = vcombine.low %v10384_v41, %v10383_v32  ;;  %v10386_v10 = vld [vmem:[#allocation32_spill] sm:$0xff]  ;;  %v10387_v53 = vld [vmem:[#allocation94_spill] sm:$0xff]  ;;  %5235 = vmatprep.mubr.bf16.mxu1 %v9453_v21  ;;  %v6442_v24 = vcombine.high %v10408_v28, %v10407_v39  ;;  %v10411_v14 = vld [vmem:[#allocation131_spill] sm:$0xff] }
 0x565   :  { %v6334_v27 = vcombine.high %v10386_v10, %v10385_v25  ;;  %v10388_v38 = vld [vmem:[#allocation92_spill] sm:$0xff]  ;;  %v6333_v4 = vcombine.low %v10386_v10, %v10385_v25  ;;  %v10389_v15 = vld [vmem:[#allocation30_spill] sm:$0xff]  ;;  %v6441_v61 = vcombine.low %v10408_v28, %v10407_v39  ;;  %v10412_v31 = vld [vmem:[#allocation129_spill] sm:$0xff] }
 0x566   :  { %5165 = vmatpush1.bf16.msra.mxu0 %v6341_v52  ;;  %5206 = vmatpush1.bf16.msra.mxu1 %v6405_v29  ;;  %v6398_v50 = vcombine.high %v10388_v38, %v10387_v53  ;;  %v6397_v36 = vcombine.low %v10388_v38, %v10387_v53  ;;  %v10390_v56 = vld [vmem:[#allocation28_spill] sm:$0xff]  ;;  %v10391_v22 = vld [vmem:[#allocation90_spill] sm:$0xff]  ;;  %v6437_v41 = vcombine.low %v10412_v31, %v10411_v14  ;;  %v10415_v25 = vld [vmem:[#allocation127_spill] sm:$0xff] }
 0x567   :  { %5166 = vmatprep.subr.bf16.mxu0 %v6338_v60  ;;  %5207 = vmatprep.subr.bf16.mxu1 %v6402_v58  ;;  %v6330_v7 = vcombine.high %v10390_v56, %v10389_v15  ;;  %v10392_v23 = vld [vmem:[#allocation88_spill] sm:$0xff]  ;;  %v6329_v40 = vcombine.low %v10390_v56, %v10389_v15  ;;  %v10393_v9 = vld [vmem:[#allocation26_spill] sm:$0xff]  ;;  %v6438_v60 = vcombine.high %v10412_v31, %v10411_v14  ;;  %v10416_v10 = vld [vmem:[#allocation125_spill] sm:$0xff] }
 0x568   :  { %v6394_v26 = vcombine.high %v10392_v23, %v10391_v22  ;;  %v6393_v3 = vcombine.low %v10392_v23, %v10391_v22  ;;  %v10394_v37 = vld [vmem:[#allocation24_spill] sm:$0xff]  ;;  %v10395_v11 = vld [vmem:[#allocation86_spill] sm:$0xff]  ;;  %v6433_v38 = vcombine.low %v10416_v10, %v10415_v25  ;;  %v10419_v15 = vld [vmem:[#allocation123_spill] sm:$0xff]  ;;  %v9547_v14 = vpack.c.bf16 %v9396_v54, %v9396_v54 }
 0x569   :  { %v6326_v44 = vcombine.high %v10394_v37, %v10393_v9  ;;  %v10396_v18 = vld [vmem:[#allocation84_spill] sm:$0xff]  ;;  %v6325_v0 = vcombine.low %v10394_v37, %v10393_v9  ;;  %v10397_v8 = vld [vmem:[#allocation22_spill] sm:$0xff]  ;;  %v10420_v56 = vld [vmem:[#allocation121_spill] sm:$0xff]  ;;  %v9551_v31 = vpack.c.bf16 %v9400_v13, %v9400_v13 }
 0x56a   :  { %5167 = vmatpush1.bf16.msra.mxu0 %v6337_v17  ;;  %5208 = vmatpush1.bf16.msra.mxu1 %v6401_v45  ;;  %v6390_v49 = vcombine.high %v10396_v18, %v10395_v11  ;;  %v6389_v20 = vcombine.low %v10396_v18, %v10395_v11  ;;  %v10398_v59 = vld [vmem:[#allocation20_spill] sm:$0xff]  ;;  %v10399_v48 = vld [vmem:[#allocation82_spill] sm:$0xff]  ;;  %v6429_v23 = vcombine.low %v10420_v56, %v10419_v15  ;;  %v10423_v9 = vld [vmem:[#allocation119_spill] sm:$0xff] }
 0x56b   :  { %5168 = vmatprep.subr.bf16.mxu0 %v6334_v27  ;;  %5209 = vmatprep.subr.bf16.mxu1 %v6398_v50  ;;  %v6322_v6 = vcombine.high %v10398_v59, %v10397_v8  ;;  %v10400_v16 = vld [vmem:[#allocation80_spill] sm:$0xff]  ;;  %v6321_v63 = vcombine.low %v10398_v59, %v10397_v8  ;;  %v10401_v55 = vld [vmem:[#allocation18_spill] sm:$0xff]  ;;  %v6434_v27 = vcombine.high %v10416_v10, %v10415_v25  ;;  %v10424_v37 = vld [vmem:[#allocation117_spill] sm:$0xff] }
 0x56c   :  { %v6386_v46 = vcombine.high %v10400_v16, %v10399_v48  ;;  %v6385_v30 = vcombine.low %v10400_v16, %v10399_v48  ;;  %v10402_v34 = vld [vmem:[#allocation16_spill] sm:$0xff]  ;;  %v10403_v2 = vld [vmem:[#allocation78_spill] sm:$0xff]  ;;  %v6425_v18 = vcombine.low %v10424_v37, %v10423_v9  ;;  %v10427_v8 = vld [vmem:[#allocation115_spill] sm:$0xff] }
 0x56d   :  { %v6318_v62 = vcombine.high %v10402_v34, %v10401_v55  ;;  %v10404_v35 = vld [vmem:[#allocation76_spill] sm:$0xff]  ;;  %v6317_v5 = vcombine.low %v10402_v34, %v10401_v55  ;;  %v10405_v47 = vld [vmem:[#allocation74_spill] sm:$0xff]  ;;  %v10428_v59 = vld [vmem:[#allocation113_spill] sm:$0xff] }
 0x56e   :  { %5169 = vmatpush1.bf16.msra.mxu0 %v6333_v4  ;;  %5210 = vmatpush1.bf16.msra.mxu1 %v6397_v36  ;;  %v6382_v57 = vcombine.high %v10404_v35, %v10403_v2  ;;  %v6381_v42 = vcombine.low %v10404_v35, %v10403_v2  ;;  %v10406_v12 = vld [vmem:[#allocation72_spill] sm:$0xff]  ;;  %v10409_v43 = vld [vmem:[#allocation70_spill] sm:$0xff]  ;;  %v6421_v16 = vcombine.low %v10428_v59, %v10427_v8  ;;  %v10431_v55 = vld [vmem:[#allocation111_spill] sm:$0xff] }
 0x56f   :  { %5170 = vmatprep.subr.bf16.mxu0 %v6330_v7  ;;  %5211 = vmatprep.subr.bf16.mxu1 %v6394_v26  ;;  %v6378_v51 = vcombine.high %v10406_v12, %v10405_v47  ;;  %v6377_v19 = vcombine.low %v10406_v12, %v10405_v47  ;;  %v10410_v52 = vld [vmem:[#allocation68_spill] sm:$0xff]  ;;  %v10413_v58 = vld [vmem:[#allocation66_spill] sm:$0xff]  ;;  %v6430_v7 = vcombine.high %v10420_v56, %v10419_v15  ;;  %v10432_v34 = vld [vmem:[#allocation109_spill] sm:$0xff] }
 0x570   :  { %v6374_v29 = vcombine.high %v10410_v52, %v10409_v43  ;;  %v6373_v32 = vcombine.low %v10410_v52, %v10409_v43  ;;  %v10414_v17 = vld [vmem:[#allocation64_spill] sm:$0xff]  ;;  %v10417_v50 = vld [vmem:[#allocation62_spill] sm:$0xff]  ;;  %v6417_v35 = vcombine.low %v10432_v34, %v10431_v55  ;;  %v10435_v47 = vld [vmem:[#allocation107_spill] sm:$0xff] }
 0x571   :  { %v6370_v45 = vcombine.high %v10414_v17, %v10413_v58  ;;  %v6369_v53 = vcombine.low %v10414_v17, %v10413_v58  ;;  %v10418_v4 = vld [vmem:[#allocation60_spill] sm:$0xff]  ;;  %v10421_v26 = vld [vmem:[#allocation58_spill] sm:$0xff]  ;;  %v10436_v12 = vld [vmem:[#allocation105_spill] sm:$0xff] }
 0x572   :  { %5171 = vmatpush1.bf16.msra.mxu0 %v6329_v40  ;;  %5212 = vmatpush1.bf16.msra.mxu1 %v6393_v3  ;;  %v6366_v36 = vcombine.high %v10418_v4, %v10417_v50  ;;  %v6365_v22 = vcombine.low %v10418_v4, %v10417_v50  ;;  %v10422_v40 = vld [vmem:[#allocation56_spill] sm:$0xff]  ;;  %v6413_v28 = vcombine.low %v10436_v12, %v10435_v47  ;;  %v10440_v52 = vld [vmem:[#allocation103_spill] sm:$0xff]  ;;  %v10444_v54 = vld [vmem:[#allocation101_spill] sm:$0xff] }
 0x573   :  { %5172 = vmatprep.subr.bf16.mxu0 %v6326_v44  ;;  %5213 = vmatprep.subr.bf16.mxu1 %v6390_v49  ;;  %v6362_v3 = vcombine.high %v10422_v40, %v10421_v26  ;;  %v6426_v44 = vcombine.high %v10424_v37, %v10423_v9  ;;  %v6361_v11 = vcombine.low %v10422_v40, %v10421_v26  ;;  %v10425_v49 = vld [vmem:[#allocation54_spill] sm:$0xff]  ;;  %v10439_v43 = vld [vmem:[#allocation104_spill] sm:$0xff]  ;;  %v10447_v50 = vld [vmem:[#allocation99_spill] sm:$0xff] }
 0x574   :  { %v10442_v58 = vld [vmem:[#allocation40_spill] sm:$0xff]  ;;  %v10448_v4 = vld [vmem:[#allocation97_spill] sm:$0xff]  ;;  %v10451_v26 = vld [vmem:[#allocation95_spill] sm:$0xff] }
 0x575   :  { %v6403_v56 = vcombine.low %v10448_v4, %v10447_v50  ;;  %v10452_v40 = vld [vmem:[#allocation93_spill] sm:$0xff]  ;;  %v10453_v9 = vld [vmem:[#allocation31_spill] sm:$0xff] }
 0x576   :  { %5173 = vmatpush1.bf16.msra.mxu0 %v6325_v0  ;;  %5214 = vmatpush1.bf16.msra.mxu1 %v6389_v20  ;;  %v10426_v0 = vld [vmem:[#allocation52_spill] sm:$0xff]  ;;  %v10454_v37 = vld [vmem:[#allocation29_spill] sm:$0xff] }
 0x577   :  { %5174 = vmatprep.subr.bf16.mxu0 %v6322_v6  ;;  %5215 = vmatprep.subr.bf16.mxu1 %v6386_v46  ;;  %v6358_v20 = vcombine.high %v10426_v0, %v10425_v49  ;;  %v6422_v6 = vcombine.high %v10428_v59, %v10427_v8  ;;  %v6357_v48 = vcombine.low %v10426_v0, %v10425_v49  ;;  %v10429_v46 = vld [vmem:[#allocation50_spill] sm:$0xff]  ;;  %v10457_v8 = vld [vmem:[#allocation27_spill] sm:$0xff]  ;;  %v10458_v59 = vld [vmem:[#allocation25_spill] sm:$0xff] }
 0x578   :  { %v6331_v0 = vcombine.low %v10454_v37, %v10453_v9 }
 0x57a   :  { %5175 = vmatpush1.bf16.msra.mxu0 %v6321_v63  ;;  %5216 = vmatpush1.bf16.msra.mxu1 %v6385_v30  ;;  %v10430_v63 = vld [vmem:[#allocation48_spill] sm:$0xff] }
 0x57b   :  { %5176 = vmatprep.subr.bf16.mxu0 %v6318_v62  ;;  %5217 = vmatprep.subr.bf16.mxu1 %v6382_v57  ;;  %v6354_v30 = vcombine.high %v10430_v63, %v10429_v46  ;;  %v6418_v62 = vcombine.high %v10432_v34, %v10431_v55  ;;  %v6353_v2 = vcombine.low %v10430_v63, %v10429_v46  ;;  %v10433_v57 = vld [vmem:[#allocation46_spill] sm:$0xff]  ;;  %v10461_v55 = vld [vmem:[#allocation23_spill] sm:$0xff]  ;;  %v10462_v34 = vld [vmem:[#allocation21_spill] sm:$0xff] }
 0x57c   :  { %v6327_v63 = vcombine.low %v10458_v59, %v10457_v8 }
 0x57e   :  { %5177 = vmatpush1.bf16.msra.mxu0 %v6317_v5  ;;  %5218 = vmatpush1.bf16.msra.mxu1 %v6381_v42  ;;  %v10434_v5 = vld [vmem:[#allocation44_spill] sm:$0xff] }
 0x57f   :  { %5178 = vmatprep.subr.bf16.mxu0 %v6378_v51  ;;  %5219 = vmatprep.subr.bf16.mxu1 %v6442_v24  ;;  %v6350_v42 = vcombine.high %v10434_v5, %v10433_v57  ;;  %v6414_v51 = vcombine.high %v10436_v12, %v10435_v47  ;;  %v6349_v39 = vcombine.low %v10434_v5, %v10433_v57  ;;  %v10437_v24 = vld [vmem:[#allocation43_spill] sm:$0xff]  ;;  %v10466_v12 = vld [vmem:[#allocation17_spill] sm:$0xff] }
 0x580   :  { %v6323_v5 = vcombine.low %v10462_v34, %v10461_v55  ;;  %v10465_v47 = vld [vmem:[#allocation19_spill] sm:$0xff] }
 0x582   :  { %5179 = vmatpush2.bf16.msra.mxu0 %v6377_v19  ;;  %5220 = vmatpush2.bf16.msra.mxu1 %v6441_v61  ;;  %v10438_v19 = vld [vmem:[#allocation42_spill] sm:$0xff] }
 0x583   :  { %5180 = vmatprep.subr.bf16.mxu0 %v6374_v29  ;;  %5221 = vmatprep.subr.bf16.mxu1 %v6438_v60  ;;  %v6348_v61 = vcombine.high %v10438_v19, %v10437_v24  ;;  %v6412_v29 = vcombine.high %v10440_v52, %v10439_v43  ;;  %v6347_v60 = vcombine.low %v10438_v19, %v10437_v24 }
 0x584   :  { %v6319_v19 = vcombine.low %v10466_v12, %v10465_v47 }
 0x586   :  { %5181 = vmatpush2.bf16.msra.mxu0 %v6373_v32  ;;  %5222 = vmatpush2.bf16.msra.mxu1 %v6437_v41  ;;  %v6411_v32 = vcombine.low %v10440_v52, %v10439_v43  ;;  %v10441_v41 = vld [vmem:[#allocation41_spill] sm:$0xff]  ;;  %v10469_v43 = vld [vmem:[#allocation75_spill] sm:$0xff] }
 0x587   :  { %5182 = vmatprep.subr.bf16.mxu0 %v6370_v45  ;;  %5223 = vmatprep.subr.bf16.mxu1 %v6434_v27  ;;  %v6344_v17 = vcombine.high %v10442_v58, %v10441_v41  ;;  %v10443_v45 = vld [vmem:[#allocation102_spill] sm:$0xff]  ;;  %v6343_v13 = vcombine.low %v10442_v58, %v10441_v41  ;;  %v10445_v27 = vld [vmem:[#allocation39_spill] sm:$0xff]  ;;  %v10470_v52 = vld [vmem:[#allocation73_spill] sm:$0xff] }
 0x588   :  { %v6408_v25 = vcombine.high %v10444_v54, %v10443_v45  ;;  %v6407_v10 = vcombine.low %v10444_v54, %v10443_v45  ;;  %v6379_v58 = vcombine.low %v10470_v52, %v10469_v43  ;;  %v10473_v45 = vld [vmem:[#allocation71_spill] sm:$0xff]  ;;  %v10474_v54 = vld [vmem:[#allocation69_spill] sm:$0xff] }
 0x58a   :  { %5183 = vmatpush2.bf16.msra.mxu0 %v6369_v53  ;;  %5224 = vmatpush2.bf16.msra.mxu1 %v6433_v38  ;;  %v10446_v53 = vld [vmem:[#allocation37_spill] sm:$0xff] }
 0x58b   :  { %5184 = vmatprep.subr.bf16.mxu0 %v6366_v36  ;;  %5225 = vmatprep.subr.bf16.mxu1 %v6430_v7  ;;  %v6340_v38 = vcombine.high %v10446_v53, %v10445_v27  ;;  %v6404_v36 = vcombine.high %v10448_v4, %v10447_v50  ;;  %v6339_v15 = vcombine.low %v10446_v53, %v10445_v27  ;;  %v10449_v7 = vld [vmem:[#allocation35_spill] sm:$0xff]  ;;  %v10478_v4 = vld [vmem:[#allocation65_spill] sm:$0xff] }
 0x58c   :  { %v6375_v53 = vcombine.low %v10474_v54, %v10473_v45  ;;  %v10477_v50 = vld [vmem:[#allocation67_spill] sm:$0xff] }
 0x58e   :  { %5185 = vmatpush2.bf16.msra.mxu0 %v6365_v22  ;;  %5226 = vmatpush2.bf16.msra.mxu1 %v6429_v23  ;;  %v10450_v22 = vld [vmem:[#allocation33_spill] sm:$0xff] }
 0x58f   :  { %5186 = vmatprep.subr.bf16.mxu0 %v6362_v3  ;;  %5227 = vmatprep.subr.bf16.mxu1 %v6426_v44  ;;  %v6336_v23 = vcombine.high %v10450_v22, %v10449_v7  ;;  %v6400_v3 = vcombine.high %v10452_v40, %v10451_v26  ;;  %v6332_v44 = vcombine.high %v10454_v37, %v10453_v9 }
 0x592   :  { %5187 = vmatpush2.bf16.msra.mxu0 %v6361_v11  ;;  %5228 = vmatpush2.bf16.msra.mxu1 %v6425_v18  ;;  %v10455_v11 = vld [vmem:[#allocation91_spill] sm:$0xff]  ;;  %v10456_v18 = vld [vmem:[#allocation89_spill] sm:$0xff] }
 0x593   :  { %5188 = vmatprep.subr.bf16.mxu0 %v6358_v20  ;;  %5229 = vmatprep.subr.bf16.mxu1 %v6422_v6  ;;  %v6396_v49 = vcombine.high %v10456_v18, %v10455_v11  ;;  %v6395_v20 = vcombine.low %v10456_v18, %v10455_v11  ;;  %v6328_v6 = vcombine.high %v10458_v59, %v10457_v8  ;;  %v10485_v11 = vld [vmem:[#allocation59_spill] sm:$0xff]  ;;  %v10486_v18 = vld [vmem:[#allocation57_spill] sm:$0xff] }
 0x594   :  { %v6363_v59 = vcombine.low %v10486_v18, %v10485_v11 }
 0x596   :  { %5189 = vmatpush2.bf16.msra.mxu0 %v6357_v48  ;;  %5230 = vmatpush2.bf16.msra.mxu1 %v6421_v16  ;;  %v10459_v48 = vld [vmem:[#allocation87_spill] sm:$0xff]  ;;  %v10460_v16 = vld [vmem:[#allocation85_spill] sm:$0xff] }
 0x597   :  { %5190 = vmatprep.subr.bf16.mxu0 %v6354_v30  ;;  %5231 = vmatprep.subr.bf16.mxu1 %v6418_v62  ;;  %v6392_v46 = vcombine.high %v10460_v16, %v10459_v48  ;;  %v6391_v30 = vcombine.low %v10460_v16, %v10459_v48  ;;  %v6324_v62 = vcombine.high %v10462_v34, %v10461_v55  ;;  %v10489_v48 = vld [vmem:[#allocation55_spill] sm:$0xff]  ;;  %v10490_v16 = vld [vmem:[#allocation53_spill] sm:$0xff] }
 0x598   :  { %v6359_v34 = vcombine.low %v10490_v16, %v10489_v48 }
 0x59a   :  { %5191 = vmatpush2.bf16.msra.mxu0 %v6353_v2  ;;  %5232 = vmatpush2.bf16.msra.mxu1 %v6417_v35  ;;  %v10463_v2 = vld [vmem:[#allocation83_spill] sm:$0xff]  ;;  %v10464_v35 = vld [vmem:[#allocation81_spill] sm:$0xff] }
 0x59b   :  { %5192 = vmatprep.subr.bf16.mxu0 %v6350_v42  ;;  %5233 = vmatprep.subr.bf16.mxu1 %v6414_v51  ;;  %v6388_v57 = vcombine.high %v10464_v35, %v10463_v2  ;;  %v6387_v42 = vcombine.low %v10464_v35, %v10463_v2  ;;  %v6320_v51 = vcombine.high %v10466_v12, %v10465_v47  ;;  %v10493_v2 = vld [vmem:[#allocation51_spill] sm:$0xff]  ;;  %v10494_v35 = vld [vmem:[#allocation49_spill] sm:$0xff] }
 0x59c   :  { %v6355_v12 = vcombine.low %v10494_v35, %v10493_v2 }
 0x59e   :  { %5193 = vmatpush2.bf16.msra.mxu0 %v6349_v39  ;;  %5234 = vmatpush2.bf16.msra.mxu1 %v6413_v28  ;;  %v10467_v39 = vld [vmem:[#allocation79_spill] sm:$0xff]  ;;  %v10468_v28 = vld [vmem:[#allocation77_spill] sm:$0xff] }
 0x59f   :  { %5244 = vmatprep.subr.bf16.mxu0 %v6348_v61  ;;  %5285 = vmatprep.subr.bf16.mxu1 %v6412_v29  ;;  %v6384_v24 = vcombine.high %v10468_v28, %v10467_v39  ;;  %v6383_v61 = vcombine.low %v10468_v28, %v10467_v39  ;;  %v6380_v29 = vcombine.high %v10470_v52, %v10469_v43  ;;  %v10497_v39 = vld [vmem:[#allocation47_spill] sm:$0xff]  ;;  %v10498_v28 = vld [vmem:[#allocation45_spill] sm:$0xff] }
 0x5a0   :  { %v6351_v52 = vcombine.low %v10498_v28, %v10497_v39 }
 0x5a1   :  { %5195 = vmatmul.mubr.bf16.vlgmr.msra.gmra.mxu0 %v9547_v14  ;;  %5236 = vmatmul.mubr.bf16.vlgmr.msra.gmra.mxu1 %v9551_v31 }
 0x5a2   :  { %5245 = vmatpush1.bf16.msra.mxu0 %v6347_v60  ;;  %5286 = vmatpush1.bf16.msra.mxu1 %v6411_v32  ;;  %v10471_v60 = vld [vmem:[#allocation136_spill] sm:$0xff]  ;;  %v10472_v32 = vld [vmem:[#allocation134_spill] sm:$0xff] }
 0x5a3   :  { %5246 = vmatprep.subr.bf16.mxu0 %v6344_v17  ;;  %5287 = vmatprep.subr.bf16.mxu1 %v6408_v25  ;;  %v6444_v41 = vcombine.high %v10472_v32, %v10471_v60  ;;  %v6443_v17 = vcombine.low %v10472_v32, %v10471_v60  ;;  %v6376_v25 = vcombine.high %v10474_v54, %v10473_v45  ;;  %v4502_v60 = vlaneseq }
 0x5a4   :  { %5276 = vmatprep.mubr.bf16.mxu0 %v9451_v1  ;;  %5317 = vmatprep.mubr.bf16.mxu1 %v9453_v21  ;;  %v6335_v1 = vcombine.low %v10450_v22, %v10449_v7  ;;  %v6399_v21 = vcombine.low %v10452_v40, %v10451_v26  ;;  %v6371_v22 = vcombine.low %v10478_v4, %v10477_v50  ;;  %v10481_v26 = vld [vmem:[#allocation63_spill] sm:$0xff]  ;;  %v10482_v40 = vld [vmem:[#allocation61_spill] sm:$0xff] }
 0x5a5   :  { %v6367_v37 = vcombine.low %v10482_v40, %v10481_v26  ;;  %v4503_v32 = vshrl.u32 %v4502_v60, 7 }
 0x5a6   :  { %5247 = vmatpush1.bf16.msra.mxu0 %v6343_v13  ;;  %5288 = vmatpush1.bf16.msra.mxu1 %v6407_v10  ;;  %v10475_v13 = vld [vmem:[#allocation132_spill] sm:$0xff]  ;;  %v10476_v10 = vld [vmem:[#allocation130_spill] sm:$0xff] }
 0x5a7   :  { %5248 = vmatprep.subr.bf16.mxu0 %v6340_v38  ;;  %5289 = vmatprep.subr.bf16.mxu1 %v6404_v36  ;;  %v6440_v27 = vcombine.high %v10476_v10, %v10475_v13  ;;  %v6439_v38 = vcombine.low %v10476_v10, %v10475_v13  ;;  %v6372_v36 = vcombine.high %v10478_v4, %v10477_v50 }
 0x5aa   :  { %5249 = vmatpush1.bf16.msra.mxu0 %v6339_v15  ;;  %5290 = vmatpush1.bf16.msra.mxu1 %v6403_v56  ;;  %v10479_v15 = vld [vmem:[#allocation128_spill] sm:$0xff]  ;;  %v10480_v56 = vld [vmem:[#allocation126_spill] sm:$0xff] }
 0x5ab   :  { %5250 = vmatprep.subr.bf16.mxu0 %v6336_v23  ;;  %5291 = vmatprep.subr.bf16.mxu1 %v6400_v3  ;;  %v6436_v7 = vcombine.high %v10480_v56, %v10479_v15  ;;  %v6435_v23 = vcombine.low %v10480_v56, %v10479_v15  ;;  %v6368_v3 = vcombine.high %v10482_v40, %v10481_v26  ;;  %v4512_v56 = vsub.s32 2, %v4503_v32 }
 0x5ae   :  { %5251 = vmatpush1.bf16.msra.mxu0 %v6335_v1  ;;  %5292 = vmatpush1.bf16.msra.mxu1 %v6399_v21  ;;  %v10483_v1 = vld [vmem:[#allocation124_spill] sm:$0xff]  ;;  %v10484_v21 = vld [vmem:[#allocation122_spill] sm:$0xff] }
 0x5af   :  { %5252 = vmatprep.subr.bf16.mxu0 %v6332_v44  ;;  %5293 = vmatprep.subr.bf16.mxu1 %v6396_v49  ;;  %v6432_v9 = vcombine.high %v10484_v21, %v10483_v1  ;;  %v6431_v44 = vcombine.low %v10484_v21, %v10483_v1  ;;  %v6364_v49 = vcombine.high %v10486_v18, %v10485_v11 }
 0x5b2   :  { %5253 = vmatpush1.bf16.msra.mxu0 %v6331_v0  ;;  %5294 = vmatpush1.bf16.msra.mxu1 %v6395_v20  ;;  %v10487_v0 = vld [vmem:[#allocation120_spill] sm:$0xff]  ;;  %v10488_v20 = vld [vmem:[#allocation118_spill] sm:$0xff] }
 0x5b3   :  { %5254 = vmatprep.subr.bf16.mxu0 %v6328_v6  ;;  %5295 = vmatprep.subr.bf16.mxu1 %v6392_v46  ;;  %v6428_v8 = vcombine.high %v10488_v20, %v10487_v0  ;;  %v6427_v6 = vcombine.low %v10488_v20, %v10487_v0  ;;  %v6360_v46 = vcombine.high %v10490_v16, %v10489_v48  ;;  %v10501_v20 = vld [vmem:[#allocation167_spill] sm:$0xff]  ;;  %v10504_v16 = vld [vmem:[#allocation161_spill] sm:$0xff] }
 0x5b4   :  { %v10503_v48 = vld [vmem:[#allocation163_spill] sm:$0xff] }
 0x5b6   :  { %5255 = vmatpush1.bf16.msra.mxu0 %v6327_v63  ;;  %5296 = vmatpush1.bf16.msra.mxu1 %v6391_v30  ;;  %v10491_v63 = vld [vmem:[#allocation116_spill] sm:$0xff]  ;;  %v10492_v30 = vld [vmem:[#allocation114_spill] sm:$0xff] }
 0x5b7   :  { %5256 = vmatprep.subr.bf16.mxu0 %v6324_v62  ;;  %5297 = vmatprep.subr.bf16.mxu1 %v6388_v57  ;;  %v6424_v55 = vcombine.high %v10492_v30, %v10491_v63  ;;  %v6423_v62 = vcombine.low %v10492_v30, %v10491_v63  ;;  %v6356_v57 = vcombine.high %v10494_v35, %v10493_v2 }
 0x5ba   :  { %5257 = vmatpush1.bf16.msra.mxu0 %v6323_v5  ;;  %5298 = vmatpush1.bf16.msra.mxu1 %v6387_v42  ;;  %v10495_v5 = vld [vmem:[#allocation112_spill] sm:$0xff]  ;;  %v10496_v42 = vld [vmem:[#allocation110_spill] sm:$0xff] }
 0x5bb   :  { %5258 = vmatprep.subr.bf16.mxu0 %v6320_v51  ;;  %5299 = vmatprep.subr.bf16.mxu1 %v6384_v24  ;;  %v6420_v47 = vcombine.high %v10496_v42, %v10495_v5  ;;  %v6419_v51 = vcombine.low %v10496_v42, %v10495_v5  ;;  %v6352_v24 = vcombine.high %v10498_v28, %v10497_v39 }
 0x5be   :  { %5259 = vmatpush1.bf16.msra.mxu0 %v6319_v19  ;;  %5300 = vmatpush1.bf16.msra.mxu1 %v6383_v61  ;;  %v10499_v19 = vld [vmem:[#allocation108_spill] sm:$0xff]  ;;  %v10500_v61 = vld [vmem:[#allocation106_spill] sm:$0xff] }
 0x5bf   :  { %5260 = vmatprep.subr.bf16.mxu0 %v6380_v29  ;;  %5301 = vmatprep.subr.bf16.mxu1 %v6444_v41  ;;  %v6416_v43 = vcombine.high %v10500_v61, %v10499_v19  ;;  %v6415_v29 = vcombine.low %v10500_v61, %v10499_v19  ;;  %v4504_v41 = vsub.s32 0, %v4503_v32 }
 0x5c2   :  { %5261 = vmatpush2.bf16.msra.mxu0 %v6379_v58  ;;  %5302 = vmatpush2.bf16.msra.mxu1 %v6443_v17  ;;  %v4500_v58 = vld [vmem:[%s10067_s11] sm:$0xf]  ;;  %v4508_v17 = vsub.s32 1, %v4503_v32 }
 0x5c3   :  { %5262 = vmatprep.subr.bf16.mxu0 %v6376_v25  ;;  %5303 = vmatprep.subr.bf16.mxu1 %v6440_v27  ;;  %v4505_v45 = vrot.slane %v4500_v58, %v4504_v41 }
 0x5c4   :  { %v4509_v54 = vrot.slane %v4500_v58, %v4508_v17 }
 0x5c6   :  { %5263 = vmatpush2.bf16.msra.mxu0 %v6375_v53  ;;  %5304 = vmatpush2.bf16.msra.mxu1 %v6439_v38 }
 0x5c7   :  { %5264 = vmatprep.subr.bf16.mxu0 %v6372_v36  ;;  %5305 = vmatprep.subr.bf16.mxu1 %v6436_v7  ;;  %v4516_v7 = vsub.s32 3, %v4503_v32 }
 0x5ca   :  { %5265 = vmatpush2.bf16.msra.mxu0 %v6371_v22  ;;  %5306 = vmatpush2.bf16.msra.mxu1 %v6435_v23  ;;  %v4513_v22 = vrot.slane %v4500_v58, %v4512_v56  ;;  %v4517_v23 = vrot.slane %v4500_v58, %v4516_v7 }
 0x5cb   :  { %5266 = vmatprep.subr.bf16.mxu0 %v6368_v3  ;;  %5307 = vmatprep.subr.bf16.mxu1 %v6432_v9 }
 0x5ce   :  { %5267 = vmatpush2.bf16.msra.mxu0 %v6367_v37  ;;  %5308 = vmatpush2.bf16.msra.mxu1 %v6431_v44 }
 0x5cf   :  { %5268 = vmatprep.subr.bf16.mxu0 %v6364_v49  ;;  %5309 = vmatprep.subr.bf16.mxu1 %v6428_v8  ;;  %v10502_v8 = vld [vmem:[#allocation165_spill] sm:$0xff] }
 0x5d2   :  { %5269 = vmatpush2.bf16.msra.mxu0 %v6363_v59  ;;  %5310 = vmatpush2.bf16.msra.mxu1 %v6427_v6  ;;  %v9696_v59 = vcombine.high %v10502_v8, %v10501_v20  ;;  %v9700_v6 = vcombine.low %v10502_v8, %v10501_v20 }
 0x5d3   :  { %5270 = vmatprep.subr.bf16.mxu0 %v6360_v46  ;;  %5311 = vmatprep.subr.bf16.mxu1 %v6424_v55  ;;  %v9704_v46 = vcombine.high %v10504_v16, %v10503_v48 }
 0x5d6   :  { %5271 = vmatpush2.bf16.msra.mxu0 %v6359_v34  ;;  %5312 = vmatpush2.bf16.msra.mxu1 %v6423_v62 }
 0x5d7   :  { %5272 = vmatprep.subr.bf16.mxu0 %v6356_v57  ;;  %5313 = vmatprep.subr.bf16.mxu1 %v6420_v47 }
 0x5da   :  { %5273 = vmatpush2.bf16.msra.mxu0 %v6355_v12  ;;  %5314 = vmatpush2.bf16.msra.mxu1 %v6419_v51 }
 0x5db   :  { %5274 = vmatprep.subr.bf16.mxu0 %v6352_v24  ;;  %5315 = vmatprep.subr.bf16.mxu1 %v6416_v43 }
 0x5de   :  { %5275 = vmatpush2.bf16.msra.mxu0 %v6351_v52  ;;  %5316 = vmatpush2.bf16.msra.mxu1 %v6415_v29 }
 0x5e1   :  { %5277 = vmatmul.mubr.bf16.vlgmr.msra.gmra.mxu0 %v9547_v14  ;;  %5318 = vmatmul.mubr.bf16.vlgmr.msra.gmra.mxu1 %v9551_v31 }
 0x661   :  { %v5196_v25 = vpop.f32.mrf.mxu0  ;;  %v5237_v13 = vpop.f32.mrf.mxu1 }
 0x662   :  { %v5197_v10 = vadd.f32 %v5196_v25, %v4505_v45 }
 0x663   :  { %v5198_v27 = vpop.f32.mrf.mxu0  ;;  %v5239_v53 = vpop.f32.mrf.mxu1 }
 0x664   :  { %v9686_v38 = vadd.f32 %v5237_v13, %v5197_v10  ;;  %v5199_v14 = vadd.f32 %v5198_v27, %v4509_v54 }
 0x665   :  { %v5200_v50 = vpop.f32.mrf.mxu0  ;;  %v5241_v31 = vpop.f32.mrf.mxu1 }
 0x666   :  { %v9688_v4 = vadd.f32 %v5239_v53, %v5199_v14 }
 0x667   :  { %v5201_v36 = vpop.f32.mrf.mxu0  ;;  %v5242_v15 = vpop.f32.mrf.mxu1 }
 0x6a1   :  { %v5278_v26 = vpop.f32.mrf.mxu0  ;;  %v5319_v40 = vpop.f32.mrf.mxu1 }
 0x6a2   :  { %v5279_v3 = vadd.f32 %v5278_v26, %v4513_v22 }
 0x6a3   :  { %v5280_v1 = vpop.f32.mrf.mxu0  ;;  %v5321_v21 = vpop.f32.mrf.mxu1 }
 0x6a4   :  { %v9690_v9 = vadd.f32 %v5319_v40, %v5279_v3  ;;  %v5281_v37 = vadd.f32 %v5280_v1, %v4517_v23 }
 0x6a5   :  { %v5282_v44 = vpop.f32.mrf.mxu0  ;;  %v5323_v11 = vpop.f32.mrf.mxu1 }
 0x6a6   :  { %v9692_v18 = vadd.f32 %v5321_v21, %v5281_v37 }
 0x6a7   :  { %v5283_v49 = vpop.f32.mrf.mxu0  ;;  %v5324_v0 = vpop.f32.mrf.mxu1 }
 0x6a8   :  { %6987 = dma.done.wait [#allocation10 + $0x1], 4096 }
 0x6a9   :  { %6988 = vsyncadd [#allocation10 + $0x1], 4294963200  ;;  %v10505_v63 = vld [vmem:[#allocation168_spill] sm:$0xff]  ;;  %v10506_v30 = vld [vmem:[#allocation166_spill] sm:$0xff]  ;;  %5522 = vmatprep.subr.bf16.mxu0 %v9696_v59  ;;  %v9722_v57 = vcombine.low %v10504_v16, %v10503_v48  ;;  %v6992_v24 = vmov 0   ;;  %vm6993_vm8 = vmmov 0  }
 0x6aa   :  { %v9708_v55 = vcombine.high %v10506_v30, %v10505_v63  ;;  %v9713_v34 = vcombine.low %v10506_v30, %v10505_v63  ;;  %v10507_v62 = vld [vmem:[#allocation164_spill] sm:$0xff]  ;;  %v10508_v2 = vld [vmem:[#allocation162_spill] sm:$0xff]  ;;  %5523 = vmatpush1.bf16.msra.mxu0 %v9700_v6  ;;  %v10509_v5 = vld [vmem:[#allocation159_spill] sm:$0xff]  ;;  %5554 = vmatprep.mubr.bf16.mxu0 %v6992_v24  ;;  %vm6118_vm9 = vcmask 1024  }
 0x6ab   :  { %v9717_v35 = vcombine.high %v10508_v2, %v10507_v62  ;;  %5524 = vmatprep.subr.bf16.mxu0 %v9704_v46  ;;  %v10510_v42 = vld [vmem:[#allocation157_spill] sm:$0xff]  ;;  %v9733_v12 = vcombine.low %v10508_v2, %v10507_v62  ;;  %v10511_v51 = vld [vmem:[#allocation160_spill] sm:$0xff]  ;;  %v10512_v39 = vld [vmem:[#allocation158_spill] sm:$0xff]  ;;  %5595 = vmatprep.mubr.bf16.mxu1 %v6992_v24 }
 0x6ac   :  { %5563 = vmatprep.subr.bf16.mxu1 %v9708_v55  ;;  %v9728_v47 = vcombine.high %v10510_v42, %v10509_v5  ;;  %v9738_v28 = vcombine.high %v10512_v39, %v10511_v51  ;;  %v9744_v19 = vcombine.low %v10510_v42, %v10509_v5  ;;  %v10513_v61 = vld [vmem:[#allocation155_spill] sm:$0xff]  ;;  %v10514_v43 = vld [vmem:[#allocation153_spill] sm:$0xff]  ;;  %v9754_v29 = vcombine.low %v10512_v39, %v10511_v51  ;;  %v10515_v60 = vld [vmem:[#allocation156_spill] sm:$0xff] }
 0x6ad   :  { %5564 = vmatpush1.bf16.msra.mxu1 %v9713_v34  ;;  %v9749_v52 = vcombine.high %v10514_v43, %v10513_v61  ;;  %v10516_v32 = vld [vmem:[#allocation154_spill] sm:$0xff]  ;;  %v9765_v58 = vcombine.low %v10514_v43, %v10513_v61  ;;  %v10517_v17 = vld [vmem:[#allocation151_spill] sm:$0xff]  ;;  %v10518_v45 = vld [vmem:[#allocation149_spill] sm:$0xff] }
 0x6ae   :  { %5565 = vmatprep.subr.bf16.mxu1 %v9717_v35  ;;  %5525 = vmatpush1.bf16.msra.mxu0 %v9722_v57  ;;  %v9759_v41 = vcombine.high %v10516_v32, %v10515_v60  ;;  %v9770_v54 = vcombine.high %v10518_v45, %v10517_v17  ;;  %v9775_v25 = vcombine.low %v10516_v32, %v10515_v60  ;;  %v10519_v13 = vld [vmem:[#allocation152_spill] sm:$0xff]  ;;  %v10520_v10 = vld [vmem:[#allocation150_spill] sm:$0xff]  ;;  %v10521_v14 = vld [vmem:[#allocation147_spill] sm:$0xff] }
 0x6af   :  { %5526 = vmatprep.subr.bf16.mxu0 %v9728_v47  ;;  %v9780_v27 = vcombine.high %v10520_v10, %v10519_v13  ;;  %v9785_v53 = vcombine.low %v10518_v45, %v10517_v17  ;;  %v10522_v50 = vld [vmem:[#allocation145_spill] sm:$0xff]  ;;  %v9795_v36 = vcombine.low %v10520_v10, %v10519_v13  ;;  %v10523_v15 = vld [vmem:[#allocation148_spill] sm:$0xff]  ;;  %v10524_v56 = vld [vmem:[#allocation146_spill] sm:$0xff] }
 0x6b0   :  { %v9790_v31 = vcombine.high %v10522_v50, %v10521_v14  ;;  %v9800_v7 = vcombine.high %v10524_v56, %v10523_v15  ;;  %v9805_v22 = vcombine.low %v10522_v50, %v10521_v14  ;;  %v10525_v23 = vld [vmem:[#allocation143_spill] sm:$0xff]  ;;  %v10526_v26 = vld [vmem:[#allocation141_spill] sm:$0xff]  ;;  %v9815_v3 = vcombine.low %v10524_v56, %v10523_v15  ;;  %v10527_v1 = vld [vmem:[#allocation144_spill] sm:$0xff] }
 0x6b1   :  { %5566 = vmatpush1.bf16.msra.mxu1 %v9733_v12  ;;  %v9810_v40 = vcombine.high %v10526_v26, %v10525_v23  ;;  %v10528_v21 = vld [vmem:[#allocation142_spill] sm:$0xff]  ;;  %v9825_v44 = vcombine.low %v10526_v26, %v10525_v23  ;;  %v10529_v11 = vld [vmem:[#allocation139_spill] sm:$0xff]  ;;  %v10530_v49 = vld [vmem:[#allocation137_spill] sm:$0xff] }
 0x6b2   :  { %5567 = vmatprep.subr.bf16.mxu1 %v9738_v28  ;;  %5527 = vmatpush1.bf16.msra.mxu0 %v9744_v19  ;;  %v9820_v37 = vcombine.high %v10528_v21, %v10527_v1  ;;  %v9830_v0 = vcombine.high %v10530_v49, %v10529_v11  ;;  %v9835_v20 = vcombine.low %v10528_v21, %v10527_v1  ;;  %v10531_v8 = vld [vmem:[#allocation140_spill] sm:$0xff]  ;;  %v10532_v48 = vld [vmem:[#allocation138_spill] sm:$0xff] }
 0x6b3   :  { %5528 = vmatprep.subr.bf16.mxu0 %v9749_v52  ;;  %v9840_v16 = vcombine.high %v10532_v48, %v10531_v8  ;;  %v9845_v63 = vcombine.low %v10530_v49, %v10529_v11  ;;  %v9851_v30 = vcombine.low %v10532_v48, %v10531_v8 }
 0x6b5   :  { %5568 = vmatpush1.bf16.msra.mxu1 %v9754_v29 }
 0x6b6   :  { %5569 = vmatprep.subr.bf16.mxu1 %v9759_v41  ;;  %5529 = vmatpush1.bf16.msra.mxu0 %v9765_v58 }
 0x6b7   :  { %5530 = vmatprep.subr.bf16.mxu0 %v9770_v54 }
 0x6b9   :  { %5570 = vmatpush1.bf16.msra.mxu1 %v9775_v25 }
 0x6ba   :  { %5571 = vmatprep.subr.bf16.mxu1 %v9780_v27  ;;  %5531 = vmatpush1.bf16.msra.mxu0 %v9785_v53 }
 0x6bb   :  { %5532 = vmatprep.subr.bf16.mxu0 %v9790_v31 }
 0x6bd   :  { %5572 = vmatpush1.bf16.msra.mxu1 %v9795_v36 }
 0x6be   :  { %5573 = vmatprep.subr.bf16.mxu1 %v9800_v7  ;;  %5533 = vmatpush1.bf16.msra.mxu0 %v9805_v22 }
 0x6bf   :  { %5534 = vmatprep.subr.bf16.mxu0 %v9810_v40 }
 0x6c1   :  { %5574 = vmatpush1.bf16.msra.mxu1 %v9815_v3 }
 0x6c2   :  { %5575 = vmatprep.subr.bf16.mxu1 %v9820_v37  ;;  %5535 = vmatpush1.bf16.msra.mxu0 %v9825_v44 }
 0x6c3   :  { %5536 = vmatprep.subr.bf16.mxu0 %v9830_v0 }
 0x6c5   :  { %5576 = vmatpush1.bf16.msra.mxu1 %v9835_v20 }
 0x6c6   :  { %5577 = vmatprep.subr.bf16.mxu1 %v9840_v16  ;;  %5537 = vmatpush1.bf16.msra.mxu0 %v9845_v63 }
 0x6c7   :  { %5633 = vmatprep.subr.bf16.mxu0 %v9696_v59 }
 0x6c9   :  { %5578 = vmatpush1.bf16.msra.mxu1 %v9851_v30  ;;  %5555 = vmatmul.mubr.bf16.vlgmr.msra.gmra.mxu0 %v6992_v24 }
 0x6ca   :  { %5674 = vmatprep.subr.bf16.mxu1 %v9708_v55  ;;  %5634 = vmatpush1.bf16.msra.mxu0 %v9700_v6 }
 0x6cb   :  { %5635 = vmatprep.subr.bf16.mxu0 %v9704_v46  ;;  %5665 = vmatprep.mubr.bf16.mxu0 %v6992_v24 }
 0x6cc   :  { %5596 = vmatmul.mubr.bf16.vlgmr.msra.gmra.mxu1 %v6992_v24 }
 0x6cd   :  { %5675 = vmatpush1.bf16.msra.mxu1 %v9713_v34  ;;  %5706 = vmatprep.mubr.bf16.mxu1 %v6992_v24 }
 0x6ce   :  { %5676 = vmatprep.subr.bf16.mxu1 %v9717_v35  ;;  %5636 = vmatpush1.bf16.msra.mxu0 %v9722_v57 }
 0x6cf   :  { %5637 = vmatprep.subr.bf16.mxu0 %v9728_v47 }
 0x6d1   :  { %5677 = vmatpush1.bf16.msra.mxu1 %v9733_v12 }
 0x6d2   :  { %5678 = vmatprep.subr.bf16.mxu1 %v9738_v28  ;;  %5638 = vmatpush1.bf16.msra.mxu0 %v9744_v19 }
 0x6d3   :  { %5639 = vmatprep.subr.bf16.mxu0 %v9749_v52 }
 0x6d5   :  { %5679 = vmatpush1.bf16.msra.mxu1 %v9754_v29 }
 0x6d6   :  { %5680 = vmatprep.subr.bf16.mxu1 %v9759_v41  ;;  %5640 = vmatpush1.bf16.msra.mxu0 %v9765_v58 }
 0x6d7   :  { %5641 = vmatprep.subr.bf16.mxu0 %v9770_v54 }
 0x6d9   :  { %5681 = vmatpush1.bf16.msra.mxu1 %v9775_v25 }
 0x6da   :  { %5682 = vmatprep.subr.bf16.mxu1 %v9780_v27  ;;  %5642 = vmatpush1.bf16.msra.mxu0 %v9785_v53 }
 0x6db   :  { %5643 = vmatprep.subr.bf16.mxu0 %v9790_v31 }
 0x6dd   :  { %5683 = vmatpush1.bf16.msra.mxu1 %v9795_v36 }
 0x6de   :  { %5684 = vmatprep.subr.bf16.mxu1 %v9800_v7  ;;  %5644 = vmatpush1.bf16.msra.mxu0 %v9805_v22 }
 0x6df   :  { %5645 = vmatprep.subr.bf16.mxu0 %v9810_v40 }
 0x6e1   :  { %5685 = vmatpush1.bf16.msra.mxu1 %v9815_v3 }
 0x6e2   :  { %5686 = vmatprep.subr.bf16.mxu1 %v9820_v37  ;;  %5646 = vmatpush1.bf16.msra.mxu0 %v9825_v44 }
 0x6e3   :  { %5647 = vmatprep.subr.bf16.mxu0 %v9830_v0 }
 0x6e5   :  { %5687 = vmatpush1.bf16.msra.mxu1 %v9835_v20 }
 0x6e6   :  { %5688 = vmatprep.subr.bf16.mxu1 %v9840_v16  ;;  %5648 = vmatpush1.bf16.msra.mxu0 %v9845_v63 }
 0x6e7   :  { %5762 = vmatprep.subr.bf16.mxu0 %v9696_v59 }
 0x6e9   :  { %5689 = vmatpush1.bf16.msra.mxu1 %v9851_v30 }
 0x6ea   :  { %5803 = vmatprep.subr.bf16.mxu1 %v9708_v55 }
 0x789   :  { %v5556_v62 = vpop.f32.mrf.mxu0 }
 0x78a   :  { %v5604_v2 = vadd.f32 %v5556_v62, %v9686_v38 }
 0x78b   :  { %v5558_v42 = vpop.f32.mrf.mxu0 }
 0x78c   :  { %v5597_v5 = vpop.f32.mrf.mxu1  ;;  %v6477_v51 = vmul.f32 -1.442695, %v5604_v2  ;;  %v5605_v39 = vadd.f32 %v5558_v42, %v9688_v4 }
 0x78d   :  { %v5560_v43 = vpop.f32.mrf.mxu0  ;;  %v5606_v10 = vadd.f32 %v5597_v5, %v9690_v9 }
 0x78e   :  { %v5599_v61 = vpop.f32.mrf.mxu1  ;;  %6917 = vpow2.f32 %v6477_v51  ;;  %v6478_v60 = vmul.f32 -1.442695, %v5605_v39 }
 0x78f   :  { %v5561_v17 = vpop.f32.mrf.mxu0  ;;  %v5607_v13 = vadd.f32 %v5599_v61, %v9692_v18 }
 0x790   :  { %v5601_v32 = vpop.f32.mrf.mxu1  ;;  %6919 = vpow2.f32 %v6478_v60 }
 0x791   :  { %v6479_v14 = vmul.f32 -1.442695, %v5607_v13  ;;  %6921 = vtanh.f32 %v5606_v10 }
 0x792   :  { %v5602_v45 = vpop.f32.mrf.mxu1 }
 0x793   :  { %6923 = vpow2.f32 %v6479_v14 }
 0x79b   :  { %v6918_v50 = vpop.eup %6917 }
 0x79c   :  { %v5611_v15 = vadd.f32 1.0, %v6918_v50 }
 0x79d   :  { %v6920_v56 = vpop.eup %6919 }
 0x79e   :  { %6925 = vrcp.f32 %v5611_v15  ;;  %v5617_v23 = vadd.f32 1.0, %v6920_v56  ;;  %v6922_v26 = vpop.eup %6921 }
 0x7a0   :  { %6927 = vrcp.f32 %v5617_v23  ;;  %v6924_v1 = vpop.eup %6923 }
 0x7a1   :  { %v5624_v49 = vadd.f32 1.0, %v6924_v1 }
 0x7a3   :  { %6929 = vrcp.f32 %v5624_v49 }
 0x7ab   :  { %v6926_v21 = vpop.eup %6925 }
 0x7ac   :  { %v5628_v48 = vmul.f32 %v6926_v21, %v6922_v26 }
 0x7ad   :  { %v6928_v11 = vpop.eup %6927 }
 0x7ae   :  { %v5627_v8 = vmul.f32 0.0, %v6928_v11 }
 0x7b0   :  { %v9898_v62 = vadd.f32 %v5628_v48, %v5627_v8  ;;  %v6930_v2 = vpop.eup %6929 }
 0x7b2   :  { %6931 = vtanh.f32 %v9898_v62 }
 0x7bf   :  { %v6932_v5 = vpop.eup %6931 }
 0x7c0   :  { %v5631_v42 = vmul.f32 %v6932_v5, %v6930_v2 }
 0x7c2   :  { %v5632_v51 = vpack.c.bf16 %v5631_v42, %v5631_v42 }
 0x7c4   :  { %5666 = vmatmul.mubr.bf16.vlgmr.msra.gmra.mxu0 %v5632_v51  ;;  %5707 = vmatmul.mubr.bf16.vlgmr.msra.gmra.mxu1 %v5632_v51  ;;  %v5751_v51 = vrot.slane %v9898_v62, 6 }
 0x7c5   :  { %5763 = vmatpush1.bf16.msra.mxu0 %v9700_v6  ;;  %5804 = vmatpush1.bf16.msra.mxu1 %v9713_v34 }
 0x7c6   :  { %5764 = vmatprep.subr.bf16.mxu0 %v9704_v46  ;;  %5805 = vmatprep.subr.bf16.mxu1 %v9717_v35 }
 0x7c7   :  { %5794 = vmatprep.mubr.bf16.mxu0 %v6992_v24  ;;  %5835 = vmatprep.mubr.bf16.mxu1 %v6992_v24 }
 0x7c9   :  { %5765 = vmatpush1.bf16.msra.mxu0 %v9722_v57  ;;  %5806 = vmatpush1.bf16.msra.mxu1 %v9733_v12 }
 0x7ca   :  { %5766 = vmatprep.subr.bf16.mxu0 %v9728_v47  ;;  %5807 = vmatprep.subr.bf16.mxu1 %v9738_v28 }
 0x7cd   :  { %5767 = vmatpush1.bf16.msra.mxu0 %v9744_v19  ;;  %5808 = vmatpush1.bf16.msra.mxu1 %v9754_v29 }
 0x7ce   :  { %5768 = vmatprep.subr.bf16.mxu0 %v9749_v52  ;;  %5809 = vmatprep.subr.bf16.mxu1 %v9759_v41 }
 0x7d1   :  { %5769 = vmatpush1.bf16.msra.mxu0 %v9765_v58  ;;  %5810 = vmatpush1.bf16.msra.mxu1 %v9775_v25 }
 0x7d2   :  { %5770 = vmatprep.subr.bf16.mxu0 %v9770_v54  ;;  %5811 = vmatprep.subr.bf16.mxu1 %v9780_v27 }
 0x7d5   :  { %5771 = vmatpush1.bf16.msra.mxu0 %v9785_v53  ;;  %5812 = vmatpush1.bf16.msra.mxu1 %v9795_v36 }
 0x7d6   :  { %5772 = vmatprep.subr.bf16.mxu0 %v9790_v31  ;;  %5813 = vmatprep.subr.bf16.mxu1 %v9800_v7 }
 0x7d9   :  { %5773 = vmatpush1.bf16.msra.mxu0 %v9805_v22  ;;  %5814 = vmatpush1.bf16.msra.mxu1 %v9815_v3 }
 0x7da   :  { %5774 = vmatprep.subr.bf16.mxu0 %v9810_v40  ;;  %5815 = vmatprep.subr.bf16.mxu1 %v9820_v37 }
 0x7dd   :  { %5775 = vmatpush1.bf16.msra.mxu0 %v9825_v44  ;;  %5816 = vmatpush1.bf16.msra.mxu1 %v9835_v20 }
 0x7de   :  { %5776 = vmatprep.subr.bf16.mxu0 %v9830_v0  ;;  %5817 = vmatprep.subr.bf16.mxu1 %v9840_v16 }
 0x7e1   :  { %5777 = vmatpush1.bf16.msra.mxu0 %v9845_v63  ;;  %5818 = vmatpush1.bf16.msra.mxu1 %v9851_v30 }
 0x7e2   :  { %5891 = vmatprep.subr.bf16.mxu0 %v9696_v59  ;;  %5932 = vmatprep.subr.bf16.mxu1 %v9708_v55 }
 0x884   :  { %v5667_v39 = vpop.f32.mrf.mxu0  ;;  %v5708_v61 = vpop.f32.mrf.mxu1 }
 0x885   :  { %v5719_v43 = vrot.slane %v5667_v39, 6  ;;  %v5721_v26 = vrot.slane %v5708_v61, 6 }
 0x886   :  { %v5669_v60 = vpop.f32.mrf.mxu0  ;;  %v5710_v32 = vpop.f32.mrf.mxu1 }
 0x887   :  { %v5727_v17 = vadd.f32 %v5719_v43, %v9686_v38  ;;  %v5720_v45 = vrot.slane %v5669_v60, 6  ;;  %v5722_v59 = vrot.slane %v5710_v32, 6  ;;  %v5729_v11 = vadd.f32 %v5721_v26, %v9690_v9  ;;  %v6030_v26 = vld [vmem:[%s10068_s12 + $0x70] sm:$0xff] }
 0x888   :  { %v5671_v13 = vpop.f32.mrf.mxu0  ;;  %v5712_v10 = vpop.f32.mrf.mxu1 }
 0x889   :  { %v6480_v14 = vmul.f32 -1.442695, %v5727_v17  ;;  %v5728_v50 = vadd.f32 %v5720_v45, %v9688_v4  ;;  %v5730_v55 = vadd.f32 %v5722_v59, %v9692_v18 }
 0x88a   :  { %v5672_v15 = vpop.f32.mrf.mxu0  ;;  %v5713_v56 = vpop.f32.mrf.mxu1 }
 0x88b   :  { %6933 = vpow2.f32 %v6480_v14  ;;  %v6481_v23 = vmul.f32 -1.442695, %v5728_v50  ;;  %v6482_v1 = vmul.f32 -1.442695, %v5730_v55  ;;  %v6031_v55 = vld [vmem:[%s10068_s12 + $0x78] sm:$0xff] }
 0x88d   :  { %6935 = vpow2.f32 %v6481_v23 }
 0x88e   :  { %6937 = vpow2.f32 %v6482_v1  ;;  %v6029_v1 = vld [vmem:[%s10068_s12 + $0x68] sm:$0xff] }
 0x898   :  { %v6934_v21 = vpop.eup %6933 }
 0x899   :  { %v5734_v49 = vadd.f32 1.0, %v6934_v21  ;;  %v6028_v21 = vld [vmem:[%s10068_s12 + $0x60] sm:$0xff] }
 0x89a   :  { %v6936_v8 = vpop.eup %6935 }
 0x89b   :  { %6939 = vrcp.f32 %v5734_v49  ;;  %v5740_v48 = vadd.f32 1.0, %v6936_v8  ;;  %v6938_v2 = vpop.eup %6937  ;;  %v6026_v49 = vld [vmem:[%s10068_s12 + $0x50] sm:$0xff]  ;;  %v6025_v8 = vld [vmem:[%s10068_s12 + $0x48] sm:$0xff] }
 0x89c   :  { %6941 = vtanh.f32 %v5729_v11  ;;  %v5747_v43 = vadd.f32 1.0, %v6938_v2  ;;  %v6027_v11 = vld [vmem:[%s10068_s12 + $0x58] sm:$0xff] }
 0x89d   :  { %6943 = vrcp.f32 %v5740_v48  ;;  %v6024_v48 = vld [vmem:[%s10068_s12 + $0x40] sm:$0xff]  ;;  %v6023_v2 = vld [vmem:[%s10068_s12 + $0x38] sm:$0xff] }
 0x89e   :  { %6945 = vrcp.f32 %v5747_v43  ;;  %v6018_v43 = vld [vmem:[%s10068_s12 + $0x10] sm:$0xff] }
 0x8a8   :  { %v6940_v5 = vpop.eup %6939 }
 0x8a9   :  { %v6942_v42 = vpop.eup %6941 }
 0x8aa   :  { %v6944_v39 = vpop.eup %6943  ;;  %v5754_v60 = vmul.f32 %v6942_v42, %v6940_v5  ;;  %v6022_v5 = vld [vmem:[%s10068_s12 + $0x30] sm:$0xff]  ;;  %v6021_v42 = vld [vmem:[%s10068_s12 + $0x28] sm:$0xff] }
 0x8ab   :  { %v5753_v61 = vmul.f32 %v6944_v39, %v5751_v51  ;;  %v6946_v17 = vpop.eup %6945  ;;  %v6020_v51 = vld [vmem:[%s10068_s12 + $0x20] sm:$0xff]  ;;  %v6019_v39 = vld [vmem:[%s10068_s12 + $0x18] sm:$0xff] }
 0x8ad   :  { %v9940_v32 = vadd.f32 %v5754_v60, %v5753_v61  ;;  %v6017_v60 = vld [vmem:[%s10068_s12 + $0x8] sm:$0xff]  ;;  %v6016_v61 = vld [vmem:[%s10068_s12] sm:$0xff] }
 0x8af   :  { %6947 = vtanh.f32 %v9940_v32 }
 0x8bc   :  { %v6948_v45 = vpop.eup %6947 }
 0x8bd   :  { %v5757_v13 = vmul.f32 %v6948_v45, %v6946_v17 }
 0x8bf   :  { %v5758_v10 = vpack.c.bf16 %v5757_v13, %v5757_v13 }
 0x8c1   :  { %v5760_v14 = vrot.slane %v5758_v10, 1 }
 0x8c3   :  { %5795 = vmatmul.mubr.bf16.vlgmr.msra.gmra.mxu0 %v5760_v14  ;;  %5836 = vmatmul.mubr.bf16.vlgmr.msra.gmra.mxu1 %v5760_v14 }
 0x8c4   :  { %5892 = vmatpush1.bf16.msra.mxu0 %v9700_v6  ;;  %5933 = vmatpush1.bf16.msra.mxu1 %v9713_v34 }
 0x8c5   :  { %5893 = vmatprep.subr.bf16.mxu0 %v9704_v46  ;;  %5934 = vmatprep.subr.bf16.mxu1 %v9717_v35 }
 0x8c6   :  { %5923 = vmatprep.mubr.bf16.mxu0 %v6992_v24  ;;  %5964 = vmatprep.mubr.bf16.mxu1 %v6992_v24 }
 0x8c8   :  { %5894 = vmatpush1.bf16.msra.mxu0 %v9722_v57  ;;  %5935 = vmatpush1.bf16.msra.mxu1 %v9733_v12 }
 0x8c9   :  { %5895 = vmatprep.subr.bf16.mxu0 %v9728_v47  ;;  %5936 = vmatprep.subr.bf16.mxu1 %v9738_v28 }
 0x8cc   :  { %5896 = vmatpush1.bf16.msra.mxu0 %v9744_v19  ;;  %5937 = vmatpush1.bf16.msra.mxu1 %v9754_v29 }
 0x8cd   :  { %5897 = vmatprep.subr.bf16.mxu0 %v9749_v52  ;;  %5938 = vmatprep.subr.bf16.mxu1 %v9759_v41 }
 0x8d0   :  { %5898 = vmatpush1.bf16.msra.mxu0 %v9765_v58  ;;  %5939 = vmatpush1.bf16.msra.mxu1 %v9775_v25 }
 0x8d1   :  { %5899 = vmatprep.subr.bf16.mxu0 %v9770_v54  ;;  %5940 = vmatprep.subr.bf16.mxu1 %v9780_v27 }
 0x8d4   :  { %5900 = vmatpush1.bf16.msra.mxu0 %v9785_v53  ;;  %5941 = vmatpush1.bf16.msra.mxu1 %v9795_v36 }
 0x8d5   :  { %5901 = vmatprep.subr.bf16.mxu0 %v9790_v31  ;;  %5942 = vmatprep.subr.bf16.mxu1 %v9800_v7 }
 0x8d8   :  { %5902 = vmatpush1.bf16.msra.mxu0 %v9805_v22  ;;  %5943 = vmatpush1.bf16.msra.mxu1 %v9815_v3 }
 0x8d9   :  { %5903 = vmatprep.subr.bf16.mxu0 %v9810_v40  ;;  %5944 = vmatprep.subr.bf16.mxu1 %v9820_v37 }
 0x8dc   :  { %5904 = vmatpush1.bf16.msra.mxu0 %v9825_v44  ;;  %5945 = vmatpush1.bf16.msra.mxu1 %v9835_v20 }
 0x8dd   :  { %5905 = vmatprep.subr.bf16.mxu0 %v9830_v0  ;;  %5946 = vmatprep.subr.bf16.mxu1 %v9840_v16  ;;  %v5880_v0 = vrot.slane %v9940_v32, 6 }
 0x8e0   :  { %5906 = vmatpush1.bf16.msra.mxu0 %v9845_v63  ;;  %5947 = vmatpush1.bf16.msra.mxu1 %v9851_v30 }
 0x8e1   :  { %6869 = vmatprep.subr.mxu0 %v10379_v33 }
 0x983   :  { %v5796_v6 = vpop.f32.mrf.mxu0  ;;  %v5837_v46 = vpop.f32.mrf.mxu1 }
 0x984   :  { %v5848_v34 = vrot.slane %v5796_v6, 4  ;;  %v5850_v27 = vrot.slane %v5837_v46, 4 }
 0x985   :  { %v5798_v35 = vpop.f32.mrf.mxu0  ;;  %v5839_v57 = vpop.f32.mrf.mxu1 }
 0x986   :  { %v5856_v47 = vadd.f32 %v5848_v34, %v9686_v38  ;;  %v5849_v12 = vrot.slane %v5798_v35, 4  ;;  %v5851_v54 = vrot.slane %v5839_v57, 4  ;;  %v5858_v36 = vadd.f32 %v5850_v27, %v9690_v9 }
 0x987   :  { %v5800_v28 = vpop.f32.mrf.mxu0  ;;  %v5841_v24 = vpop.f32.mrf.mxu1 }
 0x988   :  { %v6483_v19 = vmul.f32 -1.442695, %v5856_v47  ;;  %v5857_v52 = vadd.f32 %v5849_v12, %v9688_v4  ;;  %v5859_v25 = vadd.f32 %v5851_v54, %v9692_v18 }
 0x989   :  { %v5801_v29 = vpop.f32.mrf.mxu0  ;;  %v5842_v41 = vpop.f32.mrf.mxu1 }
 0x98a   :  { %6949 = vpow2.f32 %v6483_v19  ;;  %v6484_v58 = vmul.f32 -1.442695, %v5857_v52  ;;  %v6485_v53 = vmul.f32 -1.442695, %v5859_v25 }
 0x98c   :  { %6951 = vpow2.f32 %v6484_v58 }
 0x98d   :  { %6953 = vpow2.f32 %v6485_v53 }
 0x997   :  { %v6950_v31 = vpop.eup %6949 }
 0x998   :  { %v5863_v7 = vadd.f32 1.0, %v6950_v31 }
 0x999   :  { %v6952_v22 = vpop.eup %6951 }
 0x99a   :  { %6955 = vrcp.f32 %v5863_v7  ;;  %v5869_v40 = vadd.f32 1.0, %v6952_v22  ;;  %v6954_v3 = vpop.eup %6953 }
 0x99b   :  { %6957 = vtanh.f32 %v5858_v36  ;;  %v5876_v16 = vadd.f32 1.0, %v6954_v3 }
 0x99c   :  { %6959 = vrcp.f32 %v5869_v40 }
 0x99d   :  { %6961 = vrcp.f32 %v5876_v16 }
 0x9a7   :  { %v6956_v37 = vpop.eup %6955 }
 0x9a8   :  { %v6958_v44 = vpop.eup %6957 }
 0x9a9   :  { %v6960_v20 = vpop.eup %6959  ;;  %v5883_v63 = vmul.f32 %v6958_v44, %v6956_v37  ;;  %v6489_v44 = vld [vmem:[#allocation11] ss:$0 sm:$0xff] }
 0x9aa   :  { %v5882_v30 = vmul.f32 %v6960_v20, %v5880_v0  ;;  %v6962_v50 = vpop.eup %6961 }
 0x9ac   :  { %v9981_v62 = vadd.f32 %v5883_v63, %v5882_v30 }
 0x9ae   :  { %6963 = vtanh.f32 %v9981_v62  ;;  %v6009_v53 = vrot.slane %v9981_v62, 6 }
 0x9bb   :  { %v6964_v15 = vpop.eup %6963 }
 0x9bc   :  { %v5886_v56 = vmul.f32 %v6964_v15, %v6962_v50 }
 0x9be   :  { %v5887_v23 = vpack.c.bf16 %v5886_v56, %v5886_v56 }
 0x9c0   :  { %v5889_v59 = vrot.slane %v5887_v23, 2 }
 0x9c2   :  { %5924 = vmatmul.mubr.bf16.vlgmr.msra.gmra.mxu0 %v5889_v59  ;;  %5965 = vmatmul.mubr.bf16.vlgmr.msra.gmra.mxu1 %v5889_v59 }
 0x9c3   :  { %6870 = vmatpush3.msra.mxu0 %v6031_v55  ;;  %6901 = vmatprep.mubr.msk.f32.mxu0 %vm6993_vm8, %v10379_v33 }
 0x9c4   :  { %6871 = vmatprep.subr.mxu0 %v10379_v33 }
 0x9c5   :  { %6872 = vmatpush3.msra.mxu0 %v6030_v26 }
 0x9c6   :  { %6873 = vmatprep.subr.mxu0 %v10379_v33 }
 0x9c7   :  { %6874 = vmatpush3.msra.mxu0 %v6029_v1 }
 0x9c8   :  { %6875 = vmatprep.subr.mxu0 %v10379_v33 }
 0x9c9   :  { %6876 = vmatpush3.msra.mxu0 %v6028_v21 }
 0x9ca   :  { %6877 = vmatprep.subr.mxu0 %v10379_v33 }
 0x9cb   :  { %6878 = vmatpush3.msra.mxu0 %v6027_v11 }
 0x9cc   :  { %6879 = vmatprep.subr.mxu0 %v10379_v33 }
 0x9cd   :  { %6880 = vmatpush3.msra.mxu0 %v6026_v49 }
 0x9ce   :  { %6881 = vmatprep.subr.mxu0 %v10379_v33 }
 0x9cf   :  { %6882 = vmatpush3.msra.mxu0 %v6025_v8 }
 0x9d0   :  { %6883 = vmatprep.subr.mxu0 %v10379_v33 }
 0x9d1   :  { %6884 = vmatpush3.msra.mxu0 %v6024_v48 }
 0x9d2   :  { %6885 = vmatprep.subr.mxu0 %v10379_v33 }
 0x9d3   :  { %6886 = vmatpush3.msra.mxu0 %v6023_v2 }
 0x9d4   :  { %6887 = vmatprep.subr.mxu0 %v10379_v33 }
 0x9d5   :  { %6888 = vmatpush3.msra.mxu0 %v6022_v5 }
 0x9d6   :  { %6889 = vmatprep.subr.mxu0 %v10379_v33 }
 0x9d7   :  { %6890 = vmatpush3.msra.mxu0 %v6021_v42 }
 0x9d8   :  { %6891 = vmatprep.subr.mxu0 %v10379_v33 }
 0x9d9   :  { %6892 = vmatpush3.msra.mxu0 %v6020_v51 }
 0x9da   :  { %6893 = vmatprep.subr.mxu0 %v10379_v33 }
 0x9db   :  { %6894 = vmatpush3.msra.mxu0 %v6019_v39 }
 0x9dc   :  { %6895 = vmatprep.subr.mxu0 %v10379_v33 }
 0x9dd   :  { %6896 = vmatpush3.msra.mxu0 %v6018_v43 }
 0x9de   :  { %6897 = vmatprep.subr.mxu0 %v10379_v33 }
 0x9df   :  { %6898 = vmatpush3.msra.mxu0 %v6017_v60 }
 0x9e0   :  { %6899 = vmatprep.subr.mxu0 %v10379_v33 }
 0x9e1   :  { %6900 = vmatpush3.msra.mxu0 %v6016_v61 }
 0xa82   :  { %v5925_v32 = vpop.f32.mrf.mxu0  ;;  %v5966_v17 = vpop.f32.mrf.mxu1 }
 0xa83   :  { %v5977_v45 = vrot.slane %v5925_v32, 2  ;;  %v5979_v19 = vrot.slane %v5966_v17, 2 }
 0xa84   :  { %v5927_v13 = vpop.f32.mrf.mxu0  ;;  %v5968_v10 = vpop.f32.mrf.mxu1 }
 0xa85   :  { %v5985_v14 = vadd.f32 %v5977_v45, %v9686_v38  ;;  %v5978_v6 = vrot.slane %v5927_v13, 2  ;;  %v5980_v33 = vrot.slane %v5968_v10, 2  ;;  %v5987_v41 = vadd.f32 %v5979_v19, %v9690_v9 }
 0xa86   :  { %v5929_v46 = vpop.f32.mrf.mxu0  ;;  %v5970_v34 = vpop.f32.mrf.mxu1 }
 0xa87   :  { %v6486_v35 = vmul.f32 -1.442695, %v5985_v14  ;;  %v5986_v57 = vadd.f32 %v5978_v6, %v9688_v4  ;;  %v5988_v24 = vadd.f32 %v5980_v33, %v9692_v18 }
 0xa88   :  { %v5930_v47 = vpop.f32.mrf.mxu0  ;;  %v5971_v12 = vpop.f32.mrf.mxu1 }
 0xa89   :  { %6965 = vpow2.f32 %v6486_v35  ;;  %v6487_v28 = vmul.f32 -1.442695, %v5986_v57  ;;  %v6488_v52 = vmul.f32 -1.442695, %v5988_v24 }
 0xa8b   :  { %6967 = vpow2.f32 %v6487_v28 }
 0xa8c   :  { %6969 = vpow2.f32 %v6488_v52 }
 0xa96   :  { %v6966_v29 = vpop.eup %6965 }
 0xa97   :  { %v5992_v38 = vadd.f32 1.0, %v6966_v29 }
 0xa98   :  { %v6968_v58 = vpop.eup %6967 }
 0xa99   :  { %6971 = vrcp.f32 %v5992_v38  ;;  %v5998_v54 = vadd.f32 1.0, %v6968_v58  ;;  %v6970_v4 = vpop.eup %6969 }
 0xa9a   :  { %6973 = vtanh.f32 %v5987_v41  ;;  %v6005_v36 = vadd.f32 1.0, %v6970_v4 }
 0xa9b   :  { %6975 = vrcp.f32 %v5998_v54 }
 0xa9c   :  { %6977 = vrcp.f32 %v6005_v36 }
 0xaa6   :  { %v6972_v25 = vpop.eup %6971 }
 0xaa7   :  { %v6974_v27 = vpop.eup %6973 }
 0xaa8   :  { %v6976_v31 = vpop.eup %6975  ;;  %v6012_v18 = vmul.f32 %v6974_v27, %v6972_v25 }
 0xaa9   :  { %v6011_v7 = vmul.f32 %v6976_v31, %v6009_v53  ;;  %v6978_v9 = vpop.eup %6977 }
 0xaab   :  { %v6013_v22 = vadd.f32 %v6012_v18, %v6011_v7 }
 0xaad   :  { %6979 = vtanh.f32 %v6013_v22 }
 0xaba   :  { %v6980_v40 = vpop.eup %6979 }
 0xabb   :  { %v6015_v3 = vmul.f32 %v6980_v40, %v6978_v9 }
 0xabd   :  { %v6040_v37 = vrot.slane %v6015_v3, 6 }
 0xabf   :  { %6902 = vmatmul.mubr.f32.vlgmr.msra.gmra.mxu0 %v6040_v37 }
 0xb7f   :  { %v6108_v0 = vpop.f32.mrf.mxu0 }
 0xb80   :  { %v6109_v20 = vadd.f32 %v6489_v44, %v6108_v0 }
 0xb81   :  { %v6903_v16 = vpop.f32.mrf.mxu0 }
 0xb82   :  { %v6490_v63 = vmul.f32 -1.442695, %v6109_v20 }
 0xb84   :  { %6981 = vpow2.f32 %v6490_v63 }
 0xb91   :  { %v6982_v30 = vpop.eup %6981 }
 0xb92   :  { %v6115_v62 = vadd.f32 1.0, %v6982_v30 }
 0xb94   :  { %6983 = vrcp.f32 %v6115_v62 }
 0xba1   :  { %v6984_v50 = vpop.eup %6983 }
 0xba2   :  { %6119 = vst.msk [vmem:[%s10070_s14] sm:$0x3] %vm6118_vm9, %v6984_v50 }
 0xba3   :  { %6124 = vsyncmov [#allocation10] }
 0xba6   :  { %s6125_s1 = vpop.sfrf %6124 }
 0xba7   :  { %p6491_p0 = scmp.ne.s32.totalorder %s6125_s1, 0 }
 0xba9   :  { %6129 = shalt.err (%p6491_p0)  }
 0xbaa   :  { %6131 = vsyncmov [#allocation10 + $0x1] }
 0xbad   :  { %s6132_s19 = vpop.sfrf %6131 }
 0xbae   :  { %p6492_p1 = scmp.ne.s32.totalorder %s6132_s19, 0 }
 0xbb0   :  { %6136 = shalt.err (%p6492_p1)  }

</bundles_post_ra>
